<compile_context>
chip_gen: v6e
topology: v6e:2x2x1
jax: 0.10.0
libtpu: 0.0.40
codegen_flags: <defaults>
</compile_context>

<pallas_src>
import functools

import jax
import jax.numpy as jnp
from jax import lax
from jax.experimental import pallas as pl
from jax.experimental.pallas import tpu as pltpu

# ----------------------------- config ---------------------------------------
LATENT_DIM = 16
IN_FEATURES = LATENT_DIM + 3          # 19
HIDDEN = 32                           # small stand-in for SIREN's 256
NUM_HIDDEN_LAYERS = 3                 # SingleBVPNet default
OUT_FEATURES = 1
NUM_DATA = 8
OMEGA_0 = 30.0                        # SIREN sine frequency

# lax.dot_general dims for A @ B.T (flash-attention "NT" pattern):
# both operands contract over their last axis.
NT_DIM_NUMBERS = (((1,), (1,)), ((), ()))


# ----------------------------- Pallas kernel --------------------------------
def _siren_mlp_kernel(x_ref,        # (tile_n, 3)  coords tile, natural layout
                      w0_ref,       # (3, H)       30*W0[:3,:]
                      bsin_ref,     # (4, H, 1)    30*[b0+lat@W0[3:], b1, b2, b3]
                      whid_ref,     # (3, H, H)    30*W_i^T
                      w4_ref,       # (1, H)       W4^T
                      b4_ref,       # (1, 1)       b4
                      o_ref):       # (1, tile_n)
    """One tile of points through the full SIREN MLP, lane-major activations."""
    # Layer-0 matmul straight off the (tile_n, 3) coords block (canonical dot,
    # K=3; omega_0 and the latent are already folded into w0 / bsin[0]).
    pre0 = jnp.dot(x_ref[...], w0_ref[...],
                   preferred_element_type=jnp.float32)              # (tile_n, H)

    # Flip to lane-major (H, tile_n) via an identity NT matmul on the (mostly
    # idle) MXU, so every sin / bias-add below runs on fully lane-dense vregs
    # and the final store is a lane-dense (1, tile_n) slab.
    rows = lax.broadcasted_iota(jnp.int32, (HIDDEN, HIDDEN), 0)
    cols = lax.broadcasted_iota(jnp.int32, (HIDDEN, HIDDEN), 1)
    eye = (rows == cols).astype(jnp.float32)
    h = lax.dot_general(eye, pre0, NT_DIM_NUMBERS,
                        preferred_element_type=jnp.float32)          # (H, tile_n)

    # Input sine layer.
    h = jnp.sin(h + bsin_ref[0])
    # Hidden sine layers (omega_0 folded into weights/biases).
    for l in range(NUM_HIDDEN_LAYERS):
        h = jnp.sin(jnp.dot(whid_ref[l], h,
                            preferred_element_type=jnp.float32) + bsin_ref[l + 1])
    # Outermost linear layer -> lane-dense (1, tile_n) store.
    o_ref[...] = jnp.dot(w4_ref[...], h,
                         preferred_element_type=jnp.float32) + b4_ref[...]


def _pick_tile_n(n):
    """Largest power-of-two tile in [256, 2048] keeping >= 8 grid steps."""
    tile_n = 2048
    while tile_n > 256 and pl.cdiv(n, tile_n) < 8:
        tile_n //= 2
    return tile_n


def siren_mlp_pallas(coords, folded, *, tile_n=None):
    """coords: (N, 3) float32 -> (1, N) float32 row of SDF values."""
    n = coords.shape[0]
    if tile_n is None:
        tile_n = _pick_tile_n(n)
    assert tile_n % 128 == 0, "tile_n must keep the (1, tile_n) output block lane-aligned"
    w0, bsin, whid, w4, b4 = folded

    def invariant(shape):
        # full (tiny) weight block, same block index for every grid step
        return pl.BlockSpec(shape, lambda i: (0,) * len(shape))

    grid = (pl.cdiv(n, tile_n),)

    # Advisory cost hint so XLA schedules the custom call correctly.
    flops_per_pt = 2 * (3 * HIDDEN                       # layer 0
                        + HIDDEN * HIDDEN                # identity layout flip
                        + NUM_HIDDEN_LAYERS * HIDDEN * HIDDEN
                        + HIDDEN)                        # final linear
    weight_bytes = 4 * (w0.size + bsin.size + whid.size + w4.size + b4.size)
    cost = pl.CostEstimate(
        flops=int(flops_per_pt * n),
        transcendentals=int((NUM_HIDDEN_LAYERS + 1) * HIDDEN * n),
        bytes_accessed=int(4 * coords.size + 4 * n + weight_bytes))

    return pl.pallas_call(
        _siren_mlp_kernel,
        out_shape=jax.ShapeDtypeStruct((1, n), jnp.float32),
        grid_spec=pltpu.PrefetchScalarGridSpec(
            num_scalar_prefetch=0,
            grid=grid,
            in_specs=[
                pl.BlockSpec((tile_n, 3), lambda i: (i, 0)),     # coords tile
                invariant(w0.shape), invariant(bsin.shape),
                invariant(whid.shape), invariant(w4.shape), invariant(b4.shape),
            ],
            out_specs=pl.BlockSpec((1, tile_n), lambda i: (0, i)),
        ),
        compiler_params=pltpu.CompilerParams(
            dimension_semantics=("parallel",)),
        cost_estimate=cost,
    )(coords, w0, bsin, whid, w4, b4)


# ----------------------------- parameter folding -----------------------------
def fold_params(params, embed_table, idx):
    """Fold the latent code and omega_0 into the weights; lay out for the kernel."""
    (w0, b0), (w1, b1), (w2, b2), (w3, b3), (w4, b4) = params
    lat = embed_table[idx]                                     # (LATENT_DIM,)

    # first sine layer: sin(30*([c,lat]@W0 + b0)) = sin(c@(30*W0[:3]) + b0_eff)
    w0_c = OMEGA_0 * w0[:3, :]                                 # (3, H)
    b0_eff = OMEGA_0 * (b0[0] + lat @ w0[3:, :])               # (H,)

    # all four sine-layer biases in one (4, H, 1) slab (lane-broadcast columns)
    bsin = jnp.stack([b0_eff[:, None],
                      (OMEGA_0 * b1[0])[:, None],
                      (OMEGA_0 * b2[0])[:, None],
                      (OMEGA_0 * b3[0])[:, None]], axis=0)     # (4, H, 1)

    # hidden sine-layer weights, transposed for (H, tile_n) activations
    whid = jnp.stack([(OMEGA_0 * w1).T,
                      (OMEGA_0 * w2).T,
                      (OMEGA_0 * w3).T], axis=0)               # (3, H, H)

    return w0_c, bsin, whid, w4.T, b4.T                        # ..., (1,H), (1,1)


# ----------------------------- parameter init --------------------------------
def init_params(key):
    """Deterministic SIREN-style init. Biases stored as (1, F)."""
    dims = [IN_FEATURES] + [HIDDEN] * (NUM_HIDDEN_LAYERS + 1) + [OUT_FEATURES]
    params = []
    for li in range(len(dims) - 1):
        fan_in, fan_out = dims[li], dims[li + 1]
        key, kw, kb = jax.random.split(key, 3)
        if li == 0:
            bound = 1.0 / fan_in                       # first-layer SIREN init
        else:
            bound = jnp.sqrt(6.0 / fan_in) / OMEGA_0   # hidden-layer SIREN init
        w = jax.random.uniform(kw, (fan_in, fan_out), jnp.float32, -bound, bound)
        b = jax.random.uniform(kb, (1, fan_out), jnp.float32, -bound, bound)
        params.append((w, b))
    return params, key


# ----------------------------- SDFDecoder wrapper ----------------------------
@functools.partial(jax.jit, static_argnames=("tile_n",))
def sdf_decoder_forward(coords, embed_table, idx, params, *, tile_n=None):
    """coords: (N, 3); embed_table: (NUM_DATA, LATENT_DIM); idx: scalar int."""
    n = coords.shape[0]
    folded = fold_params(params, embed_table, idx)
    # Coords stream in their natural (N, 3) layout; the ragged last tile is
    # handled by Pallas OOB clipping (no wrapper-side transpose / pad pass).
    out_row = siren_mlp_pallas(coords, folded, tile_n=tile_n)  # (1, N)
    return out_row.reshape(n, 1)                               # free reshape


# ----------------------------- reference (plain JAX) -------------------------
def reference_forward(coords, embed_table, idx, params):
    n = coords.shape[0]
    lat = jnp.broadcast_to(embed_table[idx][None, :], (n, LATENT_DIM))
    h = jnp.concatenate([coords, lat], axis=-1)
    for li, (w, b) in enumerate(params):
        h = h @ w + b
        if li < len(params) - 1:
            h = jnp.sin(OMEGA_0 * h)
    return h


# ----------------------------- main ------------------------------------------
if __name__ == "__main__":
    key = jax.random.PRNGKey(0)
    params, key = init_params(key)

    key, k_embed, k_coords = jax.random.split(key, 3)
    embed_table = 0.01 * jax.random.normal(k_embed, (NUM_DATA, LATENT_DIM),
                                           jnp.float32)
    N = 6000                      # deliberately not a multiple of the tile size
    coords = jax.random.uniform(k_coords, (N, 3), jnp.float32, -1.0, 1.0)
    idx = jnp.int32(3)

    out = jax.block_until_ready(sdf_decoder_forward(coords, embed_table, idx,
                                                    params))
    ref = reference_forward(coords, embed_table, idx, params)
    assert out.shape == (N, 1)
    # sin(30x) amplifies f32 rounding differences from folding omega/latent and
    # from the different contraction grouping inside the kernel, so allow a
    # slightly looser tolerance than a bit-identical check.
    err = float(jnp.max(jnp.abs(out - ref)))
    assert err < 2e-3, f"mismatch vs reference: max abs err {err}"

    print("KERNEL_OK")
</pallas_src>

<mosaic_0001>
module attributes {stable_mosaic.version = 11 : i64} {
  func.func @_siren_mlp_kernel(%arg0: i32, %arg1: memref<512x3xf32, #tpu.memory_space<vmem>>, %arg2: memref<3x32xf32, #tpu.memory_space<vmem>>, %arg3: memref<4x32x1xf32, #tpu.memory_space<vmem>>, %arg4: memref<3x32x32xf32, #tpu.memory_space<vmem>>, %arg5: memref<1x32xf32, #tpu.memory_space<vmem>>, %arg6: memref<1x1xf32, #tpu.memory_space<vmem>>, %arg7: memref<1x512xf32, #tpu.memory_space<vmem>>) attributes {dimension_semantics = [#tpu.dimension_semantics<parallel>], iteration_bounds = array<i64: 12>, scalar_prefetch = 0 : i64, scratch_operands = 0 : i64, tpu.core_type = #tpu.core_type<tc>, window_params = [{transform_indices = @transform_0, window_bounds = array<i64: 512, 3>}, {pipeline_mode = #tpu.pipeline_mode<synchronous>, transform_indices = @transform_1, window_bounds = array<i64: 3, 32>}, {pipeline_mode = #tpu.pipeline_mode<synchronous>, transform_indices = @transform_2, window_bounds = array<i64: 4, 32, 1>}, {pipeline_mode = #tpu.pipeline_mode<synchronous>, transform_indices = @transform_3, window_bounds = array<i64: 3, 32, 32>}, {pipeline_mode = #tpu.pipeline_mode<synchronous>, transform_indices = @transform_4, window_bounds = array<i64: 1, 32>}, {pipeline_mode = #tpu.pipeline_mode<synchronous>, transform_indices = @transform_5, window_bounds = array<i64: 1, 1>}, {transform_indices = @transform_6, window_bounds = array<i64: 1, 512>}]} {
    %c0 = arith.constant 0 : index
    %c0_0 = arith.constant 0 : index
    %0 = vector.load %arg1[%c0, %c0_0] : memref<512x3xf32, #tpu.memory_space<vmem>>, vector<512x3xf32>
    %c0_1 = arith.constant 0 : index
    %c0_2 = arith.constant 0 : index
    %1 = vector.load %arg2[%c0_1, %c0_2] : memref<3x32xf32, #tpu.memory_space<vmem>>, vector<3x32xf32>
    %cst = arith.constant dense<0.000000e+00> : vector<512x32xf32>
    %2 = tpu.matmul %0, %1, %cst {dimension_numbers = #tpu.dot_dimension_numbers<[1], [0], [0], [1], [0, 0, 1, 1], [], []>} : vector<512x3xf32>, vector<3x32xf32>, vector<512x32xf32> -> vector<512x32xf32>
    %3 = tpu.iota {dimensions = array<i32: 0>} : vector<32x32xi32>
    %4 = tpu.iota {dimensions = array<i32: 1>} : vector<32x32xi32>
    %5 = arith.cmpi eq, %3, %4 : vector<32x32xi32>
    %6 = arith.extui %5 : vector<32x32xi1> to vector<32x32xi32>
    %7 = arith.sitofp %6 : vector<32x32xi32> to vector<32x32xf32>
    %cst_3 = arith.constant dense<0.000000e+00> : vector<32x512xf32>
    %8 = tpu.matmul %7, %2, %cst_3 {dimension_numbers = #tpu.dot_dimension_numbers<[1], [1], [0], [0], [0, 0, 1, 0], [], []>} : vector<32x32xf32>, vector<512x32xf32>, vector<32x512xf32> -> vector<32x512xf32>
    %c0_4 = arith.constant 0 : index
    %c0_5 = arith.constant 0 : index
    %c0_6 = arith.constant 0 : index
    %9 = vector.load %arg3[%c0_4, %c0_5, %c0_6] : memref<4x32x1xf32, #tpu.memory_space<vmem>>, vector<1x32x1xf32>
    %10 = vector.shape_cast %9 : vector<1x32x1xf32> to vector<32x1xf32>
    %11 = vector.broadcast %10 : vector<32x1xf32> to vector<32x512xf32>
    %12 = arith.addf %8, %11 : vector<32x512xf32>
    %13 = math.sin %12 : vector<32x512xf32>
    %c0_7 = arith.constant 0 : index
    %c0_8 = arith.constant 0 : index
    %c0_9 = arith.constant 0 : index
    %14 = vector.load %arg4[%c0_7, %c0_8, %c0_9] : memref<3x32x32xf32, #tpu.memory_space<vmem>>, vector<1x32x32xf32>
    %15 = vector.shape_cast %14 : vector<1x32x32xf32> to vector<32x32xf32>
    %cst_10 = arith.constant dense<0.000000e+00> : vector<32x512xf32>
    %16 = tpu.matmul %15, %13, %cst_10 {dimension_numbers = #tpu.dot_dimension_numbers<[1], [0], [0], [1], [0, 0, 1, 1], [], []>} : vector<32x32xf32>, vector<32x512xf32>, vector<32x512xf32> -> vector<32x512xf32>
    %c1 = arith.constant 1 : index
    %c0_11 = arith.constant 0 : index
    %c0_12 = arith.constant 0 : index
    %17 = vector.load %arg3[%c1, %c0_11, %c0_12] : memref<4x32x1xf32, #tpu.memory_space<vmem>>, vector<1x32x1xf32>
    %18 = vector.shape_cast %17 : vector<1x32x1xf32> to vector<32x1xf32>
    %19 = vector.broadcast %18 : vector<32x1xf32> to vector<32x512xf32>
    %20 = arith.addf %16, %19 : vector<32x512xf32>
    %21 = math.sin %20 : vector<32x512xf32>
    %c1_13 = arith.constant 1 : index
    %c0_14 = arith.constant 0 : index
    %c0_15 = arith.constant 0 : index
    %22 = vector.load %arg4[%c1_13, %c0_14, %c0_15] : memref<3x32x32xf32, #tpu.memory_space<vmem>>, vector<1x32x32xf32>
    %23 = vector.shape_cast %22 : vector<1x32x32xf32> to vector<32x32xf32>
    %cst_16 = arith.constant dense<0.000000e+00> : vector<32x512xf32>
    %24 = tpu.matmul %23, %21, %cst_16 {dimension_numbers = #tpu.dot_dimension_numbers<[1], [0], [0], [1], [0, 0, 1, 1], [], []>} : vector<32x32xf32>, vector<32x512xf32>, vector<32x512xf32> -> vector<32x512xf32>
    %c2 = arith.constant 2 : index
    %c0_17 = arith.constant 0 : index
    %c0_18 = arith.constant 0 : index
    %25 = vector.load %arg3[%c2, %c0_17, %c0_18] : memref<4x32x1xf32, #tpu.memory_space<vmem>>, vector<1x32x1xf32>
    %26 = vector.shape_cast %25 : vector<1x32x1xf32> to vector<32x1xf32>
    %27 = vector.broadcast %26 : vector<32x1xf32> to vector<32x512xf32>
    %28 = arith.addf %24, %27 : vector<32x512xf32>
    %29 = math.sin %28 : vector<32x512xf32>
    %c2_19 = arith.constant 2 : index
    %c0_20 = arith.constant 0 : index
    %c0_21 = arith.constant 0 : index
    %30 = vector.load %arg4[%c2_19, %c0_20, %c0_21] : memref<3x32x32xf32, #tpu.memory_space<vmem>>, vector<1x32x32xf32>
    %31 = vector.shape_cast %30 : vector<1x32x32xf32> to vector<32x32xf32>
    %cst_22 = arith.constant dense<0.000000e+00> : vector<32x512xf32>
    %32 = tpu.matmul %31, %29, %cst_22 {dimension_numbers = #tpu.dot_dimension_numbers<[1], [0], [0], [1], [0, 0, 1, 1], [], []>} : vector<32x32xf32>, vector<32x512xf32>, vector<32x512xf32> -> vector<32x512xf32>
    %c3 = arith.constant 3 : index
    %c0_23 = arith.constant 0 : index
    %c0_24 = arith.constant 0 : index
    %33 = vector.load %arg3[%c3, %c0_23, %c0_24] : memref<4x32x1xf32, #tpu.memory_space<vmem>>, vector<1x32x1xf32>
    %34 = vector.shape_cast %33 : vector<1x32x1xf32> to vector<32x1xf32>
    %35 = vector.broadcast %34 : vector<32x1xf32> to vector<32x512xf32>
    %36 = arith.addf %32, %35 : vector<32x512xf32>
    %37 = math.sin %36 : vector<32x512xf32>
    %c0_25 = arith.constant 0 : index
    %c0_26 = arith.constant 0 : index
    %38 = vector.load %arg5[%c0_25, %c0_26] : memref<1x32xf32, #tpu.memory_space<vmem>>, vector<1x32xf32>
    %cst_27 = arith.constant dense<0.000000e+00> : vector<1x512xf32>
    %39 = tpu.matmul %38, %37, %cst_27 {dimension_numbers = #tpu.dot_dimension_numbers<[1], [0], [0], [1], [0, 0, 1, 1], [], []>} : vector<1x32xf32>, vector<32x512xf32>, vector<1x512xf32> -> vector<1x512xf32>
    %c0_28 = arith.constant 0 : index
    %c0_29 = arith.constant 0 : index
    %40 = vector.load %arg6[%c0_28, %c0_29] : memref<1x1xf32, #tpu.memory_space<vmem>>, vector<1x1xf32>
    %41 = vector.broadcast %40 : vector<1x1xf32> to vector<1x512xf32>
    %42 = arith.addf %39, %41 : vector<1x512xf32>
    %c0_30 = arith.constant 0 : index
    %c0_31 = arith.constant 0 : index
    %43 = vector.load %arg7[%c0_30, %c0_31] : memref<1x512xf32, #tpu.memory_space<vmem>>, vector<1x512xf32>
    tpu.vector_store %arg7[%c0_30, %c0_31], %42 {strides = array<i32>} : memref<1x512xf32, #tpu.memory_space<vmem>>, vector<1x512xf32>,
    return
  }
  func.func @transform_0(%arg0: i32) -> (i32, i32) {
    %c0_i32 = arith.constant 0 : i32
    %c0_i32_0 = arith.constant 0 : i32
    return %arg0, %c0_i32 : i32, i32
  }
  func.func @transform_1(%arg0: i32) -> (i32, i32) {
    %c0_i32 = arith.constant 0 : i32
    %c0_i32_0 = arith.constant 0 : i32
    %c0_i32_1 = arith.constant 0 : i32
    return %c0_i32, %c0_i32_0 : i32, i32
  }
  func.func @transform_2(%arg0: i32) -> (i32, i32, i32) {
    %c0_i32 = arith.constant 0 : i32
    %c0_i32_0 = arith.constant 0 : i32
    %c0_i32_1 = arith.constant 0 : i32
    %c0_i32_2 = arith.constant 0 : i32
    return %c0_i32, %c0_i32_0, %c0_i32_1 : i32, i32, i32
  }
  func.func @transform_3(%arg0: i32) -> (i32, i32, i32) {
    %c0_i32 = arith.constant 0 : i32
    %c0_i32_0 = arith.constant 0 : i32
    %c0_i32_1 = arith.constant 0 : i32
    %c0_i32_2 = arith.constant 0 : i32
    return %c0_i32, %c0_i32_0, %c0_i32_1 : i32, i32, i32
  }
  func.func @transform_4(%arg0: i32) -> (i32, i32) {
    %c0_i32 = arith.constant 0 : i32
    %c0_i32_0 = arith.constant 0 : i32
    %c0_i32_1 = arith.constant 0 : i32
    return %c0_i32, %c0_i32_0 : i32, i32
  }
  func.func @transform_5(%arg0: i32) -> (i32, i32) {
    %c0_i32 = arith.constant 0 : i32
    %c0_i32_0 = arith.constant 0 : i32
    %c0_i32_1 = arith.constant 0 : i32
    return %c0_i32, %c0_i32_0 : i32, i32
  }
  func.func @transform_6(%arg0: i32) -> (i32, i32) {
    %c0_i32 = arith.constant 0 : i32
    %c0_i32_0 = arith.constant 0 : i32
    return %c0_i32, %arg0 : i32, i32
  }
}

</mosaic_0001>

<bundles_post_ra>
// kernel: sdf_decoder_forward.1
= control target key start
LH: loop header
LB: loop body
LE: loop exit
PB: predicated region body
PF: predicated region fallthrough
CT: control target
= control target key end

     0   :  { %s16697_s0 = inlined_call_operand.vmem [shape: f32[6000,3], index: 0, kind: input, shape index: {}]   ;;  %s16698_s1 = inlined_call_operand.vmem [shape: f32[3,32], index: 1, kind: input, shape index: {}]   ;;  %s16699_s2 = inlined_call_operand.vmem [shape: f32[4,32,1], index: 2, kind: input, shape index: {}]   ;;  %s16700_s3 = inlined_call_operand.vmem [shape: f32[3,32,32], index: 3, kind: input, shape index: {}]   ;;  %s16701_s4 = inlined_call_operand.vmem [shape: f32[1,32], index: 4, kind: input, shape index: {}]   ;;  %s16702_s5 = inlined_call_operand.<no memory space> [shape: f32[1,1], index: 5, kind: input, shape index: {}]   ;;  %s16703_s6 = inlined_call_operand.hbm [shape: f32[1,6000], index: 6, kind: output, shape index: {}]  }
   0x1   :  { %v11_v0 = vstv %s16702_s5 }
   0x2   :  { %12 = vst [vmem:[#allocation2] sm:$0x1] %v11_v0 }
   0x3   :  { %13 = vsyncpa [#allocation4], 0 }
   0x4   :  { %15 = vsyncpa [#allocation4 + $0x1], 0  ;;  %s10308_s23 = smov 0   ;;  %s10310_s24 = smov 0  }
   0x5   :  { %s10312_s25 = smov 0   ;;  %s10314_s26 = smov 0  }
   0x6 LB: > { %s10329_s5 = sadd.s32 4294967295, %s10258_s26   ;;  %s8936_s27 = sadd.s32 4294967294, %s10258_s26   ;;  %s10258_s26 = sphi %s10314_s26, %s17503_s26   ;;  %s10254_s25 = sphi %s10312_s25, %s17502_s25   ;;  %s10250_s24 = sphi %s10310_s24, %s17501_s24   ;;  %s10246_s23 = sphi %s10308_s23, %s17500_s23  }
   0x7   : > { %s10333_s28 = sadd.s32 1, %s10258_s26   ;;  %s159_s29 = sadd.s32 1, %s10254_s25 }
   0x8   : > { %s156_s30 = ssub.s32 %s10258_s26, %s10333_s28  ;;  %p169_p0 = scmp.ne.s32.totalorder %s10254_s25, %s10250_s24 }
   0x9   : > { %p157_p1 = scmp.eq.s32.totalorder %s156_s30, 0  ;;  %p170_p2 = scmp.eq.s32.totalorder %s10329_s5, 11 }
   0xa   : > { %p175_p3 = scmp.ne.s32.totalorder %s10250_s24, %s10246_s23  ;;  %p176_p4 = scmp.eq.s32.totalorder %s8936_s27, 11 }
   0xb   : > { %s10344_s7 = scalar_select %p157_p1, %s10254_s25, %s159_s29  }
   0xc   : > { %p10346_p5 = por %p170_p2, %p169_p0  ;;  %p10350_p6 = por %p176_p4, %p175_p3 }
   0xd   : > { %p8939_p7 = scmp.ge.s32.totalorder %s10258_s26, 1  ;;  %p226_p8 = scmp.lt.s32.totalorder %s10258_s26, 13 }
   0xf   : > { %p227_p9 = pnand %p8939_p7, %p226_p8 }
  0x11   : > { %230 = sbr.rel (%p227_p9) target bundleno = 2925 (0xb6d), region = 44 }
  0x16   : > { %v343_v1 = vld [vmem:[%s16698_s1] sm:$0x7]  ;;  %vm537_vm0 = vcmask 1042432   ;;  %s10360_s12 = sshll.u32 %s10329_s5, 6  ;;  %vm344_vm1 = vcmask 23552   ;;  %vm16754_vm3 = vcmask 261120  }
  0x17   : > { %9539 = vmatprep.subr.msk.mxu0 %vm537_vm0, %v343_v1  ;;  %p265_p10 = scmp.lt.s32.totalorder %s10360_s12, 749  ;;  %s257_s16 = sand.u32 1, %s10250_s24  }
  0x18   : > { %9540 = vmatpush3.msk.msra.mxu0 %vm537_vm0, %v343_v1  ;;  %s16650_s19 = scalar_lea.sflag [#allocation4], %s257_s16  ;;  %s9387_s20 = sshll.u32 (%p10346_p5), %s10329_s5, 2 }
  0x19   : > { %s266_s13 = scalar_select %p265_p10, %s10360_s12, 749 }
  0x1a   : > { %s8866_s21 = ssub.s32 (%p10346_p5), 47, %s9387_s20 }
  0x1b   : > { %s8942_s14 = sshll.u32 %s266_s13, 3  ;;  %p8867_p11 = scmp.lt.s32.totalorder (%p10346_p5), %s8866_s21, 4 }
  0x1c   : > { %s10367_s17 = scalar_lea.vmem %s16697_s0, %s8942_s14 }
  0x1d   : > { %v279_v2 = vld [vmem:[%s10367_s17] sm:$0xff]  ;;  %v280_v3 = vld [vmem:[%s10367_s17 + $0x8] sm:$0xff]  ;;  %v281_v4 = vld [vmem:[%s10367_s17 + $0x10] sm:$0xff] }
  0x1e   : > { %9541 = vmatprep.mubr.msk.f32.mxu0 %vm344_vm1, %v279_v2  ;;  %v282_v5 = vld [vmem:[%s10367_s17 + $0x18] sm:$0xff]  ;;  %v283_v6 = vld [vmem:[%s10367_s17 + $0x20] sm:$0xff]  ;;  %v284_v7 = vld [vmem:[%s10367_s17 + $0x28] sm:$0xff]  ;;  %v16704_v2 = vlaneseq }
  0x1f   : > { %9542 = vmatmul.mubr.msk.f32.vlgmr.msra.gmra.mxu0 %vm344_vm1, %v280_v3  ;;  %v285_v8 = vld [vmem:[%s10367_s17 + $0x30] sm:$0xff]  ;;  %v286_v9 = vld [vmem:[%s10367_s17 + $0x38] sm:$0xff]  ;;  %v287_v10 = vld [vmem:[%s10367_s17 + $0x40] sm:$0xff] }
  0x20   : > { %9544 = vmatprep.mubr.msk.f32.mxu0 %vm344_vm1, %v281_v4  ;;  %v288_v11 = vld [vmem:[%s10367_s17 + $0x48] sm:$0xff]  ;;  %v289_v12 = vld [vmem:[%s10367_s17 + $0x50] sm:$0xff]  ;;  %v290_v13 = vld [vmem:[%s10367_s17 + $0x58] sm:$0xff]  ;;  %v10498_v3 = vshrl.u32 %v16704_v2, 7  ;;  %v10501_v4 = vand.u32 127, %v16704_v2 }
  0x21   : > { %v291_v14 = vld [vmem:[%s10367_s17 + $0x60] sm:$0xff]  ;;  %v292_v15 = vld [vmem:[%s10367_s17 + $0x68] sm:$0xff]  ;;  %v293_v16 = vld [vmem:[%s10367_s17 + $0x70] sm:$0xff] }
  0x22   : > { %v294_v17 = vld [vmem:[%s10367_s17 + $0x78] sm:$0xff]  ;;  %v295_v18 = vld [vmem:[%s10367_s17 + $0x80] sm:$0xff]  ;;  %v296_v19 = vld [vmem:[%s10367_s17 + $0x88] sm:$0xff]  ;;  %16955 = vst [vmem:[#allocation6_spill] sm:$0xff] %v10498_v3  ;;  %vm933_vm2 = vcmp.eq.s32.totalorder %v10498_v3, %v10501_v4 }
  0x23   : > { %9545 = vmatmul.mubr.msk.f32.gmra.mxu0 %vm344_vm1, %v282_v5  ;;  %v297_v20 = vld [vmem:[%s10367_s17 + $0x90] sm:$0xff]  ;;  %v298_v21 = vld [vmem:[%s10367_s17 + $0x98] sm:$0xff]  ;;  %v299_v22 = vld [vmem:[%s10367_s17 + $0xa0] sm:$0xff]  ;;  %v16705_v5 = vmov 0.0  }
  0x24   : > { %9547 = vmatprep.mubr.msk.f32.mxu0 %vm344_vm1, %v283_v6  ;;  %v300_v23 = vld [vmem:[%s10367_s17 + $0xa8] sm:$0xff]  ;;  %v301_v24 = vld [vmem:[%s10367_s17 + $0xb0] sm:$0xff]  ;;  %v302_v25 = vld [vmem:[%s10367_s17 + $0xb8] sm:$0xff]  ;;  %v10506_v6 = vsel %vm933_vm2, 1.0, %v16705_v5 }
  0x25   : > { %v303_v26 = vld [vmem:[%s10367_s17 + $0xc0] sm:$0xff]  ;;  %v304_v27 = vld [vmem:[%s10367_s17 + $0xc8] sm:$0xff]  ;;  %v305_v28 = vld [vmem:[%s10367_s17 + $0xd0] sm:$0xff]  ;;  %9491 = vmatprep.mubr.msk.f32.mxu1 %vm16754_vm3, %v10506_v6 }
  0x26   : > { %v306_v29 = vld [vmem:[%s10367_s17 + $0xd8] sm:$0xff]  ;;  %v307_v30 = vld [vmem:[%s10367_s17 + $0xe0] sm:$0xff]  ;;  %v308_v31 = vld [vmem:[%s10367_s17 + $0xe8] sm:$0xff] }
  0x27   : > { %9548 = vmatmul.mubr.msk.f32.gmra.mxu0 %vm344_vm1, %v284_v7  ;;  %v309_v32 = vld [vmem:[%s10367_s17 + $0xf0] sm:$0xff]  ;;  %v310_v33 = vld [vmem:[%s10367_s17 + $0xf8] sm:$0xff]  ;;  %v311_v34 = vld [vmem:[%s10367_s17 + $0x100] sm:$0xff] }
  0x28   : > { %9550 = vmatprep.mubr.msk.f32.mxu0 %vm344_vm1, %v285_v8  ;;  %v312_v35 = vld [vmem:[%s10367_s17 + $0x108] sm:$0xff]  ;;  %v313_v36 = vld [vmem:[%s10367_s17 + $0x110] sm:$0xff]  ;;  %v314_v37 = vld [vmem:[%s10367_s17 + $0x118] sm:$0xff] }
  0x29   : > { %v315_v38 = vld [vmem:[%s10367_s17 + $0x120] sm:$0xff]  ;;  %v316_v39 = vld [vmem:[%s10367_s17 + $0x128] sm:$0xff]  ;;  %v317_v40 = vld [vmem:[%s10367_s17 + $0x130] sm:$0xff] }
  0x2a   : > { %v318_v41 = vld [vmem:[%s10367_s17 + $0x138] sm:$0xff]  ;;  %v319_v42 = vld [vmem:[%s10367_s17 + $0x140] sm:$0xff]  ;;  %v320_v43 = vld [vmem:[%s10367_s17 + $0x148] sm:$0xff] }
  0x2b   : > { %9551 = vmatmul.mubr.msk.f32.gmra.mxu0 %vm344_vm1, %v286_v9  ;;  %v321_v44 = vld [vmem:[%s10367_s17 + $0x150] sm:$0xff]  ;;  %v322_v45 = vld [vmem:[%s10367_s17 + $0x158] sm:$0xff]  ;;  %v323_v46 = vld [vmem:[%s10367_s17 + $0x160] sm:$0xff] }
  0x2c   : > { %9553 = vmatprep.mubr.msk.f32.mxu0 %vm344_vm1, %v287_v10  ;;  %v324_v47 = vld [vmem:[%s10367_s17 + $0x168] sm:$0xff]  ;;  %v325_v48 = vld [vmem:[%s10367_s17 + $0x170] sm:$0xff]  ;;  %v326_v49 = vld [vmem:[%s10367_s17 + $0x178] sm:$0xff] }
  0x2d   : > { %v327_v50 = vld [vmem:[%s10367_s17 + $0x180] sm:$0xff]  ;;  %v328_v51 = vld [vmem:[%s10367_s17 + $0x188] sm:$0xff]  ;;  %v329_v52 = vld [vmem:[%s10367_s17 + $0x190] sm:$0xff] }
  0x2e   : > { %v330_v53 = vld [vmem:[%s10367_s17 + $0x198] sm:$0xff]  ;;  %v331_v54 = vld [vmem:[%s10367_s17 + $0x1a0] sm:$0xff]  ;;  %v332_v55 = vld [vmem:[%s10367_s17 + $0x1a8] sm:$0xff] }
  0x2f   : > { %9554 = vmatmul.mubr.msk.f32.gmra.mxu0 %vm344_vm1, %v288_v11  ;;  %v333_v56 = vld [vmem:[%s10367_s17 + $0x1b0] sm:$0xff]  ;;  %v334_v57 = vld [vmem:[%s10367_s17 + $0x1b8] sm:$0xff]  ;;  %v335_v58 = vld [vmem:[%s10367_s17 + $0x1c0] sm:$0xff] }
  0x30   : > { %9556 = vmatprep.mubr.msk.f32.mxu0 %vm344_vm1, %v289_v12  ;;  %v336_v59 = vld [vmem:[%s10367_s17 + $0x1c8] sm:$0xff]  ;;  %v337_v60 = vld [vmem:[%s10367_s17 + $0x1d0] sm:$0xff]  ;;  %v338_v61 = vld [vmem:[%s10367_s17 + $0x1d8] sm:$0xff] }
  0x31   : > { %v339_v62 = vld [vmem:[%s10367_s17 + $0x1e0] sm:$0xff]  ;;  %v340_v63 = vld [vmem:[%s10367_s17 + $0x1e8] sm:$0xff]  ;;  %v341_v0 = vld [vmem:[%s10367_s17 + $0x1f0] sm:$0xff] }
  0x32   : > { %v342_v1 = vld [vmem:[%s10367_s17 + $0x1f8] sm:$0xff]  ;;  %s8940_s17 = sshll.u32 %s257_s16, 2 }
  0x33   : > { %9557 = vmatmul.mubr.msk.f32.gmra.mxu0 %vm344_vm1, %v290_v13  ;;  %s259_s18 = scalar_lea.vmem [#allocation3], %s8940_s17 }
  0x34   : > { %9559 = vmatprep.mubr.msk.f32.mxu0 %vm344_vm1, %v291_v14 }
  0x37   : > { %9560 = vmatmul.mubr.msk.f32.gmra.mxu0 %vm344_vm1, %v292_v15 }
  0x38   : > { %9562 = vmatprep.mubr.msk.f32.mxu0 %vm344_vm1, %v293_v16 }
  0x3b   : > { %9563 = vmatmul.mubr.msk.f32.gmra.mxu0 %vm344_vm1, %v294_v17 }
  0x3c   : > { %9565 = vmatprep.mubr.msk.f32.mxu0 %vm344_vm1, %v295_v18 }
  0x3f   : > { %9566 = vmatmul.mubr.msk.f32.gmra.mxu0 %vm344_vm1, %v296_v19 }
  0x40   : > { %9568 = vmatprep.mubr.msk.f32.mxu0 %vm344_vm1, %v297_v20 }
  0x43   : > { %9569 = vmatmul.mubr.msk.f32.gmra.mxu0 %vm344_vm1, %v298_v21 }
  0x44   : > { %9571 = vmatprep.mubr.msk.f32.mxu0 %vm344_vm1, %v299_v22 }
  0x47   : > { %9572 = vmatmul.mubr.msk.f32.gmra.mxu0 %vm344_vm1, %v300_v23 }
  0x48   : > { %9574 = vmatprep.mubr.msk.f32.mxu0 %vm344_vm1, %v301_v24 }
  0x4b   : > { %9575 = vmatmul.mubr.msk.f32.gmra.mxu0 %vm344_vm1, %v302_v25 }
  0x4c   : > { %9577 = vmatprep.mubr.msk.f32.mxu0 %vm344_vm1, %v303_v26 }
  0x4f   : > { %9578 = vmatmul.mubr.msk.f32.gmra.mxu0 %vm344_vm1, %v304_v27 }
  0x50   : > { %9580 = vmatprep.mubr.msk.f32.mxu0 %vm344_vm1, %v305_v28 }
  0x53   : > { %9581 = vmatmul.mubr.msk.f32.gmra.mxu0 %vm344_vm1, %v306_v29 }
  0x54   : > { %9583 = vmatprep.mubr.msk.f32.mxu0 %vm344_vm1, %v307_v30 }
  0x57   : > { %9584 = vmatmul.mubr.msk.f32.gmra.mxu0 %vm344_vm1, %v308_v31  ;;  %v10261_v31 = vmov 0  }
  0x58   : > { %9586 = vmatprep.mubr.msk.f32.mxu0 %vm344_vm1, %v309_v32  ;;  %9940 = vset.pattern.permute.xlu0 %v10261_v31  ;;  %v948_v32 = vld [vmem:[%s16699_s2 + $0x18] sm:$0xff] }
  0x59   : > { %9941 = vset.pattern.permute.xlu1 %v10261_v31  ;;  %966 = vperm.xlu0 %9940, %v948_v32  }
  0x5b   : > { %9587 = vmatmul.mubr.msk.f32.gmra.mxu0 %vm344_vm1, %v310_v33 }
  0x5c   : > { %9589 = vmatprep.mubr.msk.f32.mxu0 %vm344_vm1, %v311_v34 }
  0x5f   : > { %9590 = vmatmul.mubr.msk.f32.gmra.mxu0 %vm344_vm1, %v312_v35  ;;  %v947_v35 = vld [vmem:[%s16699_s2 + $0x10] sm:$0xff] }
  0x60   : > { %9592 = vmatprep.mubr.msk.f32.mxu0 %vm344_vm1, %v313_v36  ;;  %961 = vperm.xlu0 %9940, %v947_v35   ;;  %v930_v35 = vadd.s32 24, %v10498_v3 }
  0x62   : > { %vm936_vm6 = vcmp.eq.s32.totalorder %v930_v35, %v10501_v4 }
  0x63   : > { %9593 = vmatmul.mubr.msk.f32.gmra.mxu0 %vm344_vm1, %v314_v37 }
  0x64   : > { %9595 = vmatprep.mubr.msk.f32.mxu0 %vm344_vm1, %v315_v38  ;;  %v9151_v38 = vld [vmem:[%s16699_s2 + $0x38] sm:$0xff] }
  0x65   : > { %3042 = vperm.xlu0 %9940, %v9151_v38  }
  0x67   : > { %9596 = vmatmul.mubr.msk.f32.gmra.mxu0 %vm344_vm1, %v316_v39 }
  0x68   : > { %9598 = vmatprep.mubr.msk.f32.mxu0 %vm344_vm1, %v317_v40 }
  0x6b   : > { %9599 = vmatmul.mubr.msk.f32.gmra.mxu0 %vm344_vm1, %v318_v41  ;;  %v9149_v41 = vld [vmem:[%s16699_s2 + $0x28] sm:$0xff] }
  0x6c   : > { %9601 = vmatprep.mubr.msk.f32.mxu0 %vm344_vm1, %v319_v42  ;;  %3032 = vperm.xlu0 %9940, %v9149_v41  }
  0x6f   : > { %9602 = vmatmul.mubr.msk.f32.gmra.mxu0 %vm344_vm1, %v320_v43  ;;  %v946_v43 = vld [vmem:[%s16699_s2 + $0x8] sm:$0xff] }
  0x70   : > { %9604 = vmatprep.mubr.msk.f32.mxu0 %vm344_vm1, %v321_v44  ;;  %v9231_v44 = vld [vmem:[%s16699_s2 + $0x58] sm:$0xff]  ;;  %956 = vperm.xlu1 %9941, %v946_v43  }
  0x71   : > { %4926 = vperm.xlu0 %9940, %v9231_v44  }
  0x73   : > { %9605 = vmatmul.mubr.msk.f32.gmra.mxu0 %vm344_vm1, %v322_v45 }
  0x74   : > { %9607 = vmatprep.mubr.msk.f32.mxu0 %vm344_vm1, %v323_v46 }
  0x77   : > { %9608 = vmatmul.mubr.msk.f32.gmra.mxu0 %vm344_vm1, %v324_v47  ;;  %v945_v47 = vld [vmem:[%s16699_s2] sm:$0xff] }
  0x78   : > { %9610 = vmatprep.mubr.msk.f32.mxu0 %vm344_vm1, %v325_v48  ;;  %v9229_v48 = vld [vmem:[%s16699_s2 + $0x48] sm:$0xff]  ;;  %951 = vperm.xlu1 %9941, %v945_v47  }
  0x79   : > { %4916 = vperm.xlu0 %9940, %v9229_v48  }
  0x7b   : > { %9611 = vmatmul.mubr.msk.f32.gmra.mxu0 %vm344_vm1, %v326_v49 }
  0x7c   : > { %9613 = vmatprep.mubr.msk.f32.mxu0 %vm344_vm1, %v327_v50 }
  0x7f   : > { %9614 = vmatmul.mubr.msk.f32.gmra.mxu0 %vm344_vm1, %v328_v51  ;;  %v9311_v51 = vld [vmem:[%s16699_s2 + $0x78] sm:$0xff] }
  0x80   : > { %9616 = vmatprep.mubr.msk.f32.mxu0 %vm344_vm1, %v329_v52  ;;  %6810 = vperm.xlu0 %9940, %v9311_v51  }
  0x83   : > { %9617 = vmatmul.mubr.msk.f32.gmra.mxu0 %vm344_vm1, %v330_v53 }
  0x84   : > { %9619 = vmatprep.mubr.msk.f32.mxu0 %vm344_vm1, %v331_v54  ;;  %v9309_v54 = vld [vmem:[%s16699_s2 + $0x68] sm:$0xff] }
  0x85   : > { %6800 = vperm.xlu0 %9940, %v9309_v54  }
  0x87   : > { %9620 = vmatmul.mubr.msk.f32.gmra.mxu0 %vm344_vm1, %v332_v55  ;;  %v9150_v55 = vld [vmem:[%s16699_s2 + $0x30] sm:$0xff] }
  0x88   : > { %9622 = vmatprep.mubr.msk.f32.mxu0 %vm344_vm1, %v333_v56  ;;  %3037 = vperm.xlu1 %9941, %v9150_v55  }
  0x8b   : > { %9623 = vmatmul.mubr.msk.f32.gmra.mxu0 %vm344_vm1, %v334_v57  ;;  %v9148_v57 = vld [vmem:[%s16699_s2 + $0x20] sm:$0xff] }
  0x8c   : > { %9625 = vmatprep.mubr.msk.f32.mxu0 %vm344_vm1, %v335_v58  ;;  %3027 = vperm.xlu1 %9941, %v9148_v57  }
  0x8f   : > { %9626 = vmatmul.mubr.msk.f32.gmra.mxu0 %vm344_vm1, %v336_v59  ;;  %v8668_v59 = vld [vmem:[#allocation2] sm:$0x1] }
  0x90   : > { %9628 = vmatprep.mubr.msk.f32.mxu0 %vm344_vm1, %v337_v60  ;;  %8671 = vperm.xlu0 %9940, %v8668_v59  }
  0x93   : > { %9629 = vmatmul.mubr.msk.f32.gmra.mxu0 %vm344_vm1, %v338_v61  ;;  %v9230_v61 = vld [vmem:[%s16699_s2 + $0x50] sm:$0xff] }
  0x94   : > { %9631 = vmatprep.mubr.msk.f32.mxu0 %vm344_vm1, %v339_v62  ;;  %4921 = vperm.xlu1 %9941, %v9230_v61  }
  0x97   : > { %9632 = vmatmul.mubr.msk.f32.gmra.mxu0 %vm344_vm1, %v340_v63 }
  0x98   : > { %9634 = vmatprep.mubr.msk.f32.mxu0 %vm344_vm1, %v341_v0  ;;  %v9228_v0 = vld [vmem:[%s16699_s2 + $0x40] sm:$0xff] }
  0x99   : > { %4911 = vperm.xlu1 %9941, %v9228_v0  }
  0x9b   : > { %9635 = vmatmul.mubr.msk.f32.gmra.mxu0 %vm344_vm1, %v342_v1 }
  0x9c   : > { %3121 = vmatprep.mubr.f32.mxu0 %v16705_v5 }
  0xdf   : > { %v10511_v7 = vpop.f32.mrf.mxu0 }
  0xe1   : > { %v10513_v8 = vpop.f32.mrf.mxu0 }
  0xe3   : > { %v10515_v9 = vpop.f32.mrf.mxu0 }
  0xe5   : > { %v10517_v10 = vpop.f32.mrf.mxu0 }
  0xe7   : > { %v10519_v11 = vpop.f32.mrf.mxu0 }
  0xe9   : > { %v10521_v12 = vpop.f32.mrf.mxu0 }
  0xeb   : > { %v10523_v13 = vpop.f32.mrf.mxu0 }
  0xed   : > { %v10525_v14 = vpop.f32.mrf.mxu0 }
  0xef   : > { %v10527_v15 = vpop.f32.mrf.mxu0 }
  0xf1   : > { %v10529_v16 = vpop.f32.mrf.mxu0 }
  0xf3   : > { %v10531_v17 = vpop.f32.mrf.mxu0 }
  0xf5   : > { %v10533_v18 = vpop.f32.mrf.mxu0 }
  0xf7   : > { %v9561_v19 = vpop.f32.mrf.mxu0 }
  0xf9   : > { %v667_v20 = vpop.f32.mrf.mxu0 }
  0xfb   : > { %v9564_v21 = vpop.f32.mrf.mxu0 }
  0xfd   : > { %v677_v22 = vpop.f32.mrf.mxu0 }
  0xff   : > { %v10535_v23 = vpop.f32.mrf.mxu0 }
 0x101   : > { %v10537_v24 = vpop.f32.mrf.mxu0 }
 0x103   : > { %v10539_v25 = vpop.f32.mrf.mxu0 }
 0x105   : > { %v10541_v26 = vpop.f32.mrf.mxu0 }
 0x107   : > { %v10543_v27 = vpop.f32.mrf.mxu0 }
 0x109   : > { %v10545_v28 = vpop.f32.mrf.mxu0 }
 0x10b   : > { %v10547_v29 = vpop.f32.mrf.mxu0 }
 0x10d   : > { %v10549_v30 = vpop.f32.mrf.mxu0 }
 0x10f   : > { %v9579_v33 = vpop.f32.mrf.mxu0 }
 0x111   : > { %v727_v34 = vpop.f32.mrf.mxu0 }
 0x113   : > { %v9582_v36 = vpop.f32.mrf.mxu0 }
 0x115   : > { %v737_v37 = vpop.f32.mrf.mxu0 }
 0x117   : > { %v9585_v39 = vpop.f32.mrf.mxu0 }
 0x119   : > { %v747_v40 = vpop.f32.mrf.mxu0 }
 0x11b   : > { %v9588_v42 = vpop.f32.mrf.mxu0 }
 0x11c   : > { %9459 = vmatprep.subr.msk.mxu1 %vm16754_vm3, %v9588_v42 }
 0x11d   : > { %v757_v45 = vpop.f32.mrf.mxu0  ;;  %9460 = vmatpush3.xpose.msk.msra.mxu1 %vm16754_vm3, %v9564_v21 }
 0x11e   : > { %9461 = vmatprep.subr.msk.mxu1 %vm16754_vm3, %v757_v45 }
 0x11f   : > { %v10572_v46 = vpop.f32.mrf.mxu0 }
 0x121   : > { %v10580_v49 = vpop.f32.mrf.mxu0  ;;  %9462 = vmatpush3.xpose.msk.msra.mxu1 %vm16754_vm3, %v677_v22 }
 0x122   : > { %9463 = vmatprep.subr.msk.mxu1 %vm16754_vm3, %v9585_v39 }
 0x123   : > { %v10584_v50 = vpop.f32.mrf.mxu0 }
 0x125   : > { %v10589_v52 = vpop.f32.mrf.mxu0  ;;  %9464 = vmatpush3.xpose.msk.msra.mxu1 %vm16754_vm3, %v9561_v19 }
 0x126   : > { %9465 = vmatprep.subr.msk.mxu1 %vm16754_vm3, %v747_v40 }
 0x127   : > { %v10593_v53 = vpop.f32.mrf.mxu0 }
 0x129   : > { %v10601_v56 = vpop.f32.mrf.mxu0  ;;  %9466 = vmatpush3.xpose.msk.msra.mxu1 %vm16754_vm3, %v667_v20 }
 0x12a   : > { %9467 = vmatprep.subr.msk.mxu1 %vm16754_vm3, %v9582_v36 }
 0x12b   : > { %v10608_v58 = vpop.f32.mrf.mxu0 }
 0x12d   : > { %v10610_v60 = vpop.f32.mrf.mxu0  ;;  %9468 = vmatpush3.xpose.msk.msra.mxu1 %vm16754_vm3, %v10531_v17 }
 0x12e   : > { %9469 = vmatprep.subr.msk.mxu1 %vm16754_vm3, %v737_v37 }
 0x12f   : > { %v10618_v62 = vpop.f32.mrf.mxu0 }
 0x131   : > { %v10620_v63 = vpop.f32.mrf.mxu0  ;;  %9470 = vmatpush3.xpose.msk.msra.mxu1 %vm16754_vm3, %v10533_v18  ;;  %v9310_v18 = vld [vmem:[%s16699_s2 + $0x70] sm:$0xff] }
 0x132   : > { %9471 = vmatprep.subr.msk.mxu1 %vm16754_vm3, %v9579_v33  ;;  %6805 = vperm.xlu1 %9941, %v9310_v18  }
 0x133   : > { %v10628_v1 = vpop.f32.mrf.mxu0 }
 0x135   : > { %v10630_v17 = vpop.f32.mrf.mxu0  ;;  %9472 = vmatpush3.xpose.msk.msra.mxu1 %vm16754_vm3, %v10527_v15  ;;  %v9308_v15 = vld [vmem:[%s16699_s2 + $0x60] sm:$0xff] }
 0x136   : > { %9473 = vmatprep.subr.msk.mxu1 %vm16754_vm3, %v727_v34  ;;  %6795 = vperm.xlu1 %9941, %v9308_v15   ;;  %v16723_v15 = vmov 683565275  }
 0x137   : > { %v9609_v19 = vpop.f32.mrf.mxu0 }
 0x139   : > { %v827_v20 = vpop.f32.mrf.mxu0  ;;  %9474 = vmatpush3.xpose.msk.msra.mxu1 %vm16754_vm3, %v10529_v16 }
 0x13a   : > { %9475 = vmatprep.subr.msk.mxu1 %vm16754_vm3, %v10547_v29 }
 0x13b   : > { %v9612_v21 = vpop.f32.mrf.mxu0 }
 0x13d   : > { %v837_v22 = vpop.f32.mrf.mxu0  ;;  %9476 = vmatpush3.xpose.msk.msra.mxu1 %vm16754_vm3, %v10523_v13 }
 0x13e   : > { %9477 = vmatprep.subr.msk.mxu1 %vm16754_vm3, %v10549_v30 }
 0x13f   : > { %v10649_v31 = vpop.f32.mrf.mxu0 }
 0x141   : > { %v10651_v16 = vpop.f32.mrf.mxu0  ;;  %9478 = vmatpush3.xpose.msk.msra.mxu1 %vm16754_vm3, %v10525_v14 }
 0x142   : > { %9479 = vmatprep.subr.msk.mxu1 %vm16754_vm3, %v10543_v27 }
 0x143   : > { %v10657_v29 = vpop.f32.mrf.mxu0 }
 0x145   : > { %v10659_v32 = vpop.f32.mrf.mxu0  ;;  %9480 = vmatpush3.xpose.msk.msra.mxu1 %vm16754_vm3, %v10519_v11 }
 0x146   : > { %9481 = vmatprep.subr.msk.mxu1 %vm16754_vm3, %v10545_v28  ;;  %v928_v28 = vadd.s32 8, %v10498_v3 }
 0x147   : > { %v9621_v13 = vpop.f32.mrf.mxu0 }
 0x148   : > { %vm934_vm4 = vcmp.eq.s32.totalorder %v928_v28, %v10501_v4 }
 0x149   : > { %v867_v30 = vpop.f32.mrf.mxu0  ;;  %9482 = vmatpush3.xpose.msk.msra.mxu1 %vm16754_vm3, %v10521_v12 }
 0x14a   : > { %9483 = vmatprep.subr.msk.mxu1 %vm16754_vm3, %v10539_v25 }
 0x14b   : > { %v9624_v14 = vpop.f32.mrf.mxu0 }
 0x14d   : > { %v877_v27 = vpop.f32.mrf.mxu0  ;;  %9484 = vmatpush3.xpose.msk.msra.mxu1 %vm16754_vm3, %v10515_v9 }
 0x14e   : > { %9485 = vmatprep.subr.msk.mxu1 %vm16754_vm3, %v10541_v26  ;;  %v929_v26 = vadd.s32 16, %v10498_v3 }
 0x14f   : > { %v9627_v11 = vpop.f32.mrf.mxu0 }
 0x150   : > { %vm935_vm5 = vcmp.eq.s32.totalorder %v929_v26, %v10501_v4  ;;  %v10759_v4 = vpop.permute.xlu1 %956 }
 0x151   : > { %v887_v33 = vpop.f32.mrf.mxu0  ;;  %9486 = vmatpush3.xpose.msk.msra.mxu1 %vm16754_vm3, %v10517_v10  ;;  %v9009_v10 = vsel %vm934_vm4, 1.0, %v16705_v5 }
 0x152   : > { %9487 = vmatprep.subr.msk.mxu1 %vm16754_vm3, %v10535_v23 }
 0x153   : > { %v9630_v12 = vpop.f32.mrf.mxu0 }
 0x154   : > { %v10761_v36 = vpop.permute.xlu1 %951 }
 0x155   : > { %v897_v25 = vpop.f32.mrf.mxu0  ;;  %9488 = vmatpush3.xpose.msk.msra.mxu1 %vm16754_vm3, %v10511_v7 }
 0x156   : > { %9489 = vmatprep.subr.msk.mxu1 %vm16754_vm3, %v10537_v24  ;;  %v9011_v24 = vsel %vm936_vm6, 1.0, %v16705_v5 }
 0x157   : > { %v9633_v9 = vpop.f32.mrf.mxu0 }
 0x159   : > { %v907_v34 = vpop.f32.mrf.mxu0  ;;  %9490 = vmatpush3.xpose.msk.msra.mxu1 %vm16754_vm3, %v10513_v8  ;;  %v9010_v8 = vsel %vm935_vm5, 1.0, %v16705_v5 }
 0x15b   : > { %v9636_v23 = vpop.f32.mrf.mxu0 }
 0x15c   : > { %9492 = vmatmul.mubr.msk.f32.vlgmr.msra.gmra.mxu1 %vm16754_vm3, %v10506_v6  ;;  %9499 = vmatprep.subr.msk.mxu1 %vm16754_vm3, %v9636_v23 }
 0x15d   : > { %9500 = vmatpush3.xpose.msk.msra.mxu1 %vm16754_vm3, %v9612_v21  ;;  %v917_v7 = vpop.f32.mrf.mxu0  ;;  %9493 = vmatprep.mubr.msk.f32.mxu1 %vm16754_vm3, %v9009_v10 }
 0x15e   : > { %9501 = vmatprep.subr.msk.mxu1 %vm16754_vm3, %v917_v7 }
 0x160   : > { %9494 = vmatmul.mubr.msk.f32.gmra.mxu1 %vm16754_vm3, %v9009_v10 }
 0x161   : > { %9502 = vmatpush3.xpose.msk.msra.mxu1 %vm16754_vm3, %v837_v22  ;;  %9495 = vmatprep.mubr.msk.f32.mxu1 %vm16754_vm3, %v9010_v8  ;;  %v16716_v22 = vmov 2475754826  }
 0x162   : > { %9503 = vmatprep.subr.msk.mxu1 %vm16754_vm3, %v9633_v9 }
 0x164   : > { %9496 = vmatmul.mubr.msk.f32.gmra.mxu1 %vm16754_vm3, %v9010_v8 }
 0x165   : > { %9504 = vmatpush3.xpose.msk.msra.mxu1 %vm16754_vm3, %v9609_v19  ;;  %9497 = vmatprep.mubr.msk.f32.mxu1 %vm16754_vm3, %v9011_v24 }
 0x166   : > { %9505 = vmatprep.subr.msk.mxu1 %vm16754_vm3, %v907_v34 }
 0x168   : > { %9498 = vmatmul.mubr.msk.f32.gmra.mxu1 %vm16754_vm3, %v9011_v24 }
 0x169   : > { %9506 = vmatpush3.xpose.msk.msra.mxu1 %vm16754_vm3, %v827_v20  ;;  %9531 = vmatprep.mubr.msk.f32.mxu1 %vm16754_vm3, %v10506_v6 }
 0x16a   : > { %9507 = vmatprep.subr.msk.mxu1 %vm16754_vm3, %v9630_v12 }
 0x16d   : > { %9508 = vmatpush3.xpose.msk.msra.mxu1 %vm16754_vm3, %v10628_v1 }
 0x16e   : > { %9509 = vmatprep.subr.msk.mxu1 %vm16754_vm3, %v897_v25  ;;  %v16725_v25 = vmov 1326507024  }
 0x171   : > { %9510 = vmatpush3.xpose.msk.msra.mxu1 %vm16754_vm3, %v10630_v17 }
 0x172   : > { %9511 = vmatprep.subr.msk.mxu1 %vm16754_vm3, %v9627_v11 }
 0x175   : > { %9512 = vmatpush3.xpose.msk.msra.mxu1 %vm16754_vm3, %v10618_v62 }
 0x176   : > { %9513 = vmatprep.subr.msk.mxu1 %vm16754_vm3, %v887_v33 }
 0x179   : > { %9514 = vmatpush3.xpose.msk.msra.mxu1 %vm16754_vm3, %v10620_v63 }
 0x17a   : > { %9515 = vmatprep.subr.msk.mxu1 %vm16754_vm3, %v9624_v14 }
 0x17d   : > { %9516 = vmatpush3.xpose.msk.msra.mxu1 %vm16754_vm3, %v10608_v58 }
 0x17e   : > { %9517 = vmatprep.subr.msk.mxu1 %vm16754_vm3, %v877_v27 }
 0x181   : > { %9518 = vmatpush3.xpose.msk.msra.mxu1 %vm16754_vm3, %v10610_v60 }
 0x182   : > { %9519 = vmatprep.subr.msk.mxu1 %vm16754_vm3, %v9621_v13 }
 0x185   : > { %9520 = vmatpush3.xpose.msk.msra.mxu1 %vm16754_vm3, %v10593_v53 }
 0x186   : > { %9521 = vmatprep.subr.msk.mxu1 %vm16754_vm3, %v867_v30  ;;  %v16741_v30 = vmov 920167782  }
 0x189   : > { %9522 = vmatpush3.xpose.msk.msra.mxu1 %vm16754_vm3, %v10601_v56 }
 0x18a   : > { %9523 = vmatprep.subr.msk.mxu1 %vm16754_vm3, %v10657_v29 }
 0x18d   : > { %9524 = vmatpush3.xpose.msk.msra.mxu1 %vm16754_vm3, %v10584_v50 }
 0x18e   : > { %9525 = vmatprep.subr.msk.mxu1 %vm16754_vm3, %v10659_v32  ;;  %v16714_v32 = vmov 2102212464  }
 0x191   : > { %9526 = vmatpush3.xpose.msk.msra.mxu1 %vm16754_vm3, %v10589_v52 }
 0x192   : > { %9527 = vmatprep.subr.msk.mxu1 %vm16754_vm3, %v10649_v31 }
 0x195   : > { %9528 = vmatpush3.xpose.msk.msra.mxu1 %vm16754_vm3, %v10572_v46 }
 0x196   : > { %9529 = vmatprep.subr.msk.mxu1 %vm16754_vm3, %v10651_v16  ;;  %v16712_v16 = vmov 2131351028  }
 0x199   : > { %9530 = vmatpush3.xpose.msk.msra.mxu1 %vm16754_vm3, %v10580_v49 }
 0x19c   : > { %9532 = vmatmul.mubr.msk.f32.vlgmr.msra.gmra.mxu1 %vm16754_vm3, %v10506_v6 }
 0x19d   : > { %9533 = vmatprep.mubr.msk.f32.mxu1 %vm16754_vm3, %v9009_v10 }
 0x1a0   : > { %9534 = vmatmul.mubr.msk.f32.gmra.mxu1 %vm16754_vm3, %v9009_v10 }
 0x1a1   : > { %9535 = vmatprep.mubr.msk.f32.mxu1 %vm16754_vm3, %v9010_v8 }
 0x1a4   : > { %9536 = vmatmul.mubr.msk.f32.gmra.mxu1 %vm16754_vm3, %v9010_v8 }
 0x1a5   : > { %9537 = vmatprep.mubr.msk.f32.mxu1 %vm16754_vm3, %v9011_v24 }
 0x1a8   : > { %9538 = vmatmul.mubr.msk.f32.gmra.mxu1 %vm16754_vm3, %v9011_v24 }
 0x1a9   : > { %3210 = vmatprep.mubr.f32.mxu1 %v16705_v5 }
 0x21c   : > { %v1240_v37 = vpop.f32.mrf.mxu1 }
 0x21d   : > { %v10764_v6 = vadd.f32 %v1240_v37, %v10761_v36 }
 0x21e   : > { %v1242_v38 = vpop.f32.mrf.mxu1 }
 0x21f   : > { %16956 = vst [vmem:[#allocation7_spill] sm:$0xff] %v10764_v6  ;;  %v1352_v39 = vand.u32 2147483647, %v10764_v6  ;;  %v1355_v40 = vand.u32 2139095040, %v10764_v6  ;;  %v10769_v41 = vadd.f32 %v1242_v38, %v10761_v36 }
 0x220   : > { %v1246_v42 = vpop.f32.mrf.mxu1 }
 0x221   : > { %16957 = vst [vmem:[#allocation8_spill] sm:$0xff] %v10769_v41  ;;  %v1356_v43 = vshrl.u32 %v1355_v40, 23  ;;  %v1359_v44 = vand.u32 8388607, %v1352_v39  ;;  %v16707_v45 = vand.u32 2147483647, %v10769_v41  ;;  %v10776_v47 = vadd.f32 %v1246_v42, %v10759_v4 }
 0x222   : > { %v1459_v46 = vand.u32 2139095040, %v10769_v41  ;;  %v1248_v49 = vpop.f32.mrf.mxu1 }
 0x223   : > { %16958 = vst [vmem:[#allocation9_spill] sm:$0xff] %v10776_v47  ;;  %v9084_v48 = vadd.s32 4294967169, %v1356_v43  ;;  %v1463_v51 = vand.u32 8388607, %v16707_v45  ;;  %v1360_v52 = vor.u32 8388608, %v1359_v44  ;;  %v1771_v54 = vand.u32 2139095040, %v10776_v47 }
 0x224   : > { %v1460_v50 = vshrl.u32 %v1459_v46, 23  ;;  %v1768_v57 = vand.u32 2147483647, %v10776_v47  ;;  %v10783_v58 = vadd.f32 %v1248_v49, %v10759_v4 }
 0x225   : > { %v1362_v53 = vadd.s32 1, %v9084_v48  ;;  %v1464_v56 = vor.u32 8388608, %v1463_v51  ;;  %v1772_v59 = vshrl.u32 %v1771_v54, 23  ;;  %v10785_v0 = vshll.u32 %v1360_v52, 8 }
 0x226   : > { %v9088_v55 = vadd.s32 4294967169, %v1460_v50  ;;  %v10793_v18 = vand.u32 8388607, %v1768_v57  ;;  %v1875_v19 = vand.u32 2139095040, %v10783_v58 }
 0x227   : > { %vm1363_vm7 = vcmp.gt.s32.totalorder %v1362_v53, 0  ;;  %v10787_v1 = vshll.u32 %v1464_v56, 8  ;;  %v10789_v17 = vadd.s32 4294967169, %v1772_v59 }
 0x228   : > { %v1364_v60 = vsel %vm1363_vm7, %v1362_v53, 0  ;;  %v1466_v61 = vadd.s32 1, %v9088_v55 }
 0x229   : > { %v1365_v62 = vshrl.u32 %v1364_v60, 5  ;;  %v1366_v63 = vand.u32 31, %v1364_v60 }
 0x22a   : > { %vm1467_vm8 = vcmp.gt.s32.totalorder %v1466_v61, 0 }
 0x22b   : > { %v1367_v20 = vsub.s32 32, %v1366_v63  ;;  %v1369_v21 = vshll.u32 %v16723_v15, %v1366_v63  ;;  %v1372_v31 = vshll.u32 %v16716_v22, %v1366_v63  ;;  %v1375_v29 = vshll.u32 %v16712_v16, %v1366_v63 }
 0x22c   : > { %v1378_v13 = vshll.u32 %v16714_v32, %v1366_v63  ;;  %v1381_v14 = vshll.u32 %v16741_v30, %v1366_v63  ;;  %vm1384_vm9 = vcmp.lt.s32.totalorder %v1365_v62, 1  ;;  %vm1385_vm10 = vcmp.lt.s32.totalorder %v1365_v62, 2 }
 0x22d   : > { %v1370_v27 = vshrl.u32 %v16716_v22, %v1367_v20  ;;  %v1373_v11 = vshrl.u32 %v16712_v16, %v1367_v20  ;;  %v1376_v33 = vshrl.u32 %v16714_v32, %v1367_v20  ;;  %v1368_v12 = vshrl.u32 %v16723_v15, %v1367_v20 }
 0x22e   : > { %v1379_v28 = vshrl.u32 %v16741_v30, %v1367_v20  ;;  %v1382_v9 = vshrl.u32 %v16725_v25, %v1367_v20  ;;  %vm1386_vm11 = vcmp.lt.s32.totalorder %v1365_v62, 3  ;;  %v1468_v23 = vsel %vm1467_vm8, %v1466_v61, 0 }
 0x22f   : > { %v1371_v26 = vor.u32 %v1370_v27, %v1369_v21  ;;  %v1374_v34 = vor.u32 %v1373_v11, %v1372_v31  ;;  %v1377_v10 = vor.u32 %v1376_v33, %v1375_v29  ;;  %vm1387_vm12 = vcmp.lt.s32.totalorder %v1365_v62, 4 }
 0x230   : > { %v1380_v35 = vor.u32 %v1379_v28, %v1378_v13  ;;  %v1383_v7 = vor.u32 %v1382_v9, %v1381_v14  ;;  %v1470_v8 = vand.u32 31, %v1468_v23  ;;  %v1469_v51 = vshrl.u32 %v1468_v23, 5 }
 0x231   : > { %v1388_v24 = vsel %vm1384_vm9, %v1368_v12, %v1371_v26  ;;  %v1389_v37 = vsel %vm1387_vm12, %v1377_v10, 2102212464  ;;  %v1392_v38 = vsel %vm1384_vm9, %v1371_v26, %v1374_v34  ;;  %v1396_v40 = vsel %vm1384_vm9, %v1374_v34, %v1377_v10 }
 0x232   : > { %v1390_v42 = vsel %vm1386_vm11, %v1374_v34, %v1389_v37  ;;  %v1393_v43 = vsel %vm1387_vm12, %v1380_v35, 920167782  ;;  %v1397_v44 = vsel %vm1387_vm12, %v1383_v7, 1326507024  ;;  %v1471_v46 = vsub.s32 32, %v1470_v8 }
 0x233   : > { %v1391_v48 = vsel %vm1385_vm10, %v1388_v24, %v1390_v42  ;;  %v1394_v49 = vsel %vm1386_vm11, %v1377_v10, %v1393_v43  ;;  %v1398_v50 = vsel %vm1386_vm11, %v1380_v35, %v1397_v44  ;;  %v1473_v55 = vshll.u32 %v16723_v15, %v1470_v8 }
 0x234   : > { %v1395_v52 = vsel %vm1385_vm10, %v1392_v38, %v1394_v49  ;;  %v1399_v53 = vsel %vm1385_vm10, %v1396_v40, %v1398_v50  ;;  %v1407_v54 = vmul.u32 %v10785_v0, %v1391_v48  ;;  %v1472_v63 = vshrl.u32 %v16723_v15, %v1471_v46 }
 0x235   : > { %v10820_v56 = vmul.u32.u64.low %v10785_v0, %v1399_v53  ;;  %v10821_v59 = vmul.u32.u64.high %v10785_v0, %v1399_v53, %v10820_v56  ;;  %v10824_v60 = vmul.u32.u64.low %v10785_v0, %v1395_v52  ;;  %v10825_v61 = vmul.u32.u64.high %v10785_v0, %v1395_v52, %v10824_v60 }
 0x236   : > { %v1474_v20 = vshrl.u32 %v16716_v22, %v1471_v46  ;;  %v1476_v62 = vshll.u32 %v16716_v22, %v1470_v8  ;;  %v1477_v21 = vshrl.u32 %v16712_v16, %v1471_v46  ;;  %v1479_v31 = vshll.u32 %v16712_v16, %v1470_v8 }
 0x237   : > { %v1480_v29 = vshrl.u32 %v16714_v32, %v1471_v46  ;;  %v1482_v13 = vshll.u32 %v16714_v32, %v1470_v8  ;;  %v1483_v14 = vshrl.u32 %v16741_v30, %v1471_v46  ;;  %v1485_v11 = vshll.u32 %v16741_v30, %v1470_v8 }
 0x238   : > { %v1475_v27 = vor.u32 %v1474_v20, %v1473_v55  ;;  %v1478_v0 = vor.u32 %v1477_v21, %v1476_v62  ;;  %v1486_v33 = vshrl.u32 %v16725_v25, %v1471_v46  ;;  %vm1409_vm13 = vc.u32 %v10821_v59, %v10824_v60 }
 0x239   : > { %v1410_v12 = vadd.s32 1, %v10825_v61  ;;  %v1481_v28 = vor.u32 %v1480_v29, %v1479_v31  ;;  %vm1488_vm14 = vcmp.lt.s32.totalorder %v1469_v51, 1  ;;  %v1484_v9 = vor.u32 %v1483_v14, %v1482_v13 }
 0x23a   : > { %v1487_v26 = vor.u32 %v1486_v33, %v1485_v11  ;;  %vm1489_vm15 = vcmp.lt.s32.totalorder %v1469_v51, 2  ;;  %vm1490_vm0 = vcmp.lt.s32.totalorder %v1469_v51, 3  ;;  %vm1491_vm1 = vcmp.lt.s32.totalorder %v1469_v51, 4 }
 0x23b   : > { %v1411_v34 = vsel %vm1409_vm13, %v1410_v12, %v10825_v61  ;;  %v1492_v10 = vsel %vm1488_vm14, %v1472_v63, %v1475_v27  ;;  %v1496_v23 = vsel %vm1488_vm14, %v1475_v27, %v1478_v0  ;;  %v1493_v7 = vsel %vm1491_vm1, %v1481_v28, 2102212464 }
 0x23c   : > { %v1412_v35 = vadd.s32 %v1411_v34, %v1407_v54  ;;  %v1497_v8 = vsel %vm1491_vm1, %v1484_v9, 920167782  ;;  %v1500_v24 = vsel %vm1488_vm14, %v1478_v0, %v1481_v28  ;;  %v1494_v37 = vsel %vm1490_vm0, %v1478_v0, %v1493_v7 }
 0x23d   : > { %v1498_v38 = vsel %vm1490_vm0, %v1481_v28, %v1497_v8  ;;  %v1501_v40 = vsel %vm1491_vm1, %v1487_v26, 1326507024  ;;  %v1778_v42 = vadd.s32 1, %v10789_v17  ;;  %v1876_v48 = vshrl.u32 %v1875_v19, 23 }
 0x23e   : > { %v1413_v43 = vadd.s32 536870912, %v1412_v35  ;;  %v1499_v44 = vsel %vm1489_vm15, %v1496_v23, %v1498_v38  ;;  %v1502_v46 = vsel %vm1490_vm0, %v1484_v9, %v1501_v40  ;;  %v1495_v49 = vsel %vm1489_vm15, %v1492_v10, %v1494_v37 }
 0x23f   : > { %v1503_v50 = vsel %vm1489_vm15, %v1500_v24, %v1502_v46  ;;  %v10849_v52 = vmul.u32.u64.low %v10787_v1, %v1499_v44  ;;  %v10850_v53 = vmul.u32.u64.high %v10787_v1, %v1499_v44, %v10849_v52  ;;  %vm1779_vm2 = vcmp.gt.s32.totalorder %v1778_v42, 0 }
 0x240   : > { %v10853_v54 = vshrl.u32 %v1413_v43, 30  ;;  %v10856_v17 = vmul.u32.u64.low %v10787_v1, %v1503_v50  ;;  %v10857_v55 = vmul.u32.u64.high %v10787_v1, %v1503_v50, %v10856_v17  ;;  %v1780_v56 = vsel %vm1779_vm2, %v1778_v42, 0 }
 0x241   : > { %v1782_v19 = vand.u32 31, %v1780_v56  ;;  %v1511_v63 = vmul.u32 %v10787_v1, %v1495_v49  ;;  %v1514_v51 = vadd.s32 1, %v10850_v53  ;;  %v1776_v20 = vor.u32 8388608, %v10793_v18 }
 0x242   : > { %16959 = vst [vmem:[#allocation10_spill] sm:$0xff] %v10853_v54  ;;  %v1415_v61 = vshll.u32 %v10853_v54, 30  ;;  %vm1513_vm4 = vc.u32 %v10857_v55, %v10849_v52  ;;  %v9104_v31 = vadd.s32 4294967169, %v1876_v48  ;;  %v1781_v13 = vshrl.u32 %v1780_v56, 5 }
 0x243   : > { %v1783_v21 = vsub.s32 32, %v1782_v19  ;;  %v1515_v29 = vsel %vm1513_vm4, %v1514_v51, %v10850_v53  ;;  %v1785_v14 = vshll.u32 %v16723_v15, %v1782_v19  ;;  %v1788_v27 = vshll.u32 %v16716_v22, %v1782_v19 }
 0x244   : > { %v10863_v62 = vsub.s32 %v1412_v35, %v1415_v61  ;;  %v1516_v0 = vadd.s32 %v1515_v29, %v1511_v63  ;;  %v1791_v18 = vshll.u32 %v16712_v16, %v1782_v19  ;;  %v1794_v28 = vshll.u32 %v16714_v32, %v1782_v19 }
 0x245   : > { %v1786_v11 = vshrl.u32 %v16716_v22, %v1783_v21  ;;  %v1789_v33 = vshrl.u32 %v16712_v16, %v1783_v21  ;;  %v1792_v12 = vshrl.u32 %v16714_v32, %v1783_v21  ;;  %v1795_v9 = vshrl.u32 %v16741_v30, %v1783_v21 }
 0x246   : > { %v1418_v1 = vsub.s32 0, %v10863_v62  ;;  %v1517_v34 = vadd.s32 536870912, %v1516_v0  ;;  %v1797_v23 = vshll.u32 %v16741_v30, %v1782_v19  ;;  %v1784_v35 = vshrl.u32 %v16723_v15, %v1783_v21  ;;  %v10887_v19 = vpop.permute.xlu0 %966 }
 0x247   : > { %v1787_v10 = vor.u32 %v1786_v11, %v1785_v14  ;;  %v1790_v7 = vor.u32 %v1789_v33, %v1788_v27  ;;  %v1796_v8 = vor.u32 %v1795_v9, %v1794_v28  ;;  %v1798_v24 = vshrl.u32 %v16725_v25, %v1783_v21 }
 0x248   : > { %v9085_v26 = vmin.u32 %v1418_v1, %v10863_v62  ;;  %v10881_v38 = vshrl.u32 %v1517_v34, 30  ;;  %v1793_v40 = vor.u32 %v1792_v12, %v1791_v18  ;;  %vm1800_vm5 = vcmp.lt.s32.totalorder %v1781_v13, 1 }
 0x249   : > { %v1799_v42 = vor.u32 %v1798_v24, %v1797_v23  ;;  %vm1801_vm6 = vcmp.lt.s32.totalorder %v1781_v13, 2  ;;  %vm1802_vm7 = vcmp.lt.s32.totalorder %v1781_v13, 3  ;;  %vm1803_vm8 = vcmp.lt.s32.totalorder %v1781_v13, 4 }
 0x24a   : > { %v1420_v37 = vclz %v9085_v26  ;;  %16960 = vst [vmem:[#allocation11_spill] sm:$0xff] %v10881_v38  ;;  %v1519_v44 = vshll.u32 %v10881_v38, 30  ;;  %v1805_v46 = vsel %vm1803_vm8, %v1793_v40, 2102212464  ;;  %v1808_v48 = vsel %vm1800_vm5, %v1787_v10, %v1790_v7  ;;  %v10907_v34 = vpop.permute.xlu0 %961 }
 0x24b   : > { %v1809_v49 = vsel %vm1803_vm8, %v1796_v8, 920167782  ;;  %v1813_v50 = vsel %vm1803_vm8, %v1799_v42, 1326507024  ;;  %v1816_v53 = vshll.u32 %v1776_v20, 8  ;;  %v1882_v17 = vadd.s32 1, %v9104_v31 }
 0x24c   : > { %v9086_v43 = vadd.s32 4294967294, %v1420_v37  ;;  %v1810_v56 = vsel %vm1802_vm7, %v1793_v40, %v1809_v49  ;;  %v1812_v61 = vsel %vm1800_vm5, %v1790_v7, %v1793_v40  ;;  %v1804_v63 = vsel %vm1800_vm5, %v1784_v35, %v1787_v10 }
 0x24d   : > { %v1806_v51 = vsel %vm1802_vm7, %v1790_v7, %v1805_v46  ;;  %v1811_v21 = vsel %vm1801_vm6, %v1808_v48, %v1810_v56  ;;  %v1814_v29 = vsel %vm1802_vm7, %v1796_v8, %v1813_v50  ;;  %v10893_v27 = vsub.s32 %v1516_v0, %v1519_v44  ;;  %v1252_v8 = vpop.f32.mrf.mxu1 }
 0x24e   : > { %vm9087_vm9 = vcmp.lt.s32.totalorder %v9086_v43, 0  ;;  %v16708_v20 = vand.u32 2147483647, %v10783_v58  ;;  %v1815_v31 = vsel %vm1801_vm6, %v1812_v61, %v1814_v29  ;;  %vm1883_vm10 = vcmp.gt.s32.totalorder %v1882_v17, 0 }
 0x24f   : > { %v1423_v14 = vsel %vm9087_vm9, 0, %v9086_v43  ;;  %v10897_v1 = vmul.u32.u64.low %v1816_v53, %v1811_v21  ;;  %v10898_v11 = vmul.u32.u64.high %v1816_v53, %v1811_v21, %v10897_v1  ;;  %v1807_v18 = vsel %vm1801_vm6, %v1804_v63, %v1806_v51 }
 0x250   : > { %v1884_v33 = vsel %vm1883_vm10, %v1882_v17, 0  ;;  %v10902_v12 = vmul.u32.u64.low %v1816_v53, %v1815_v31  ;;  %v10903_v28 = vmul.u32.u64.high %v1816_v53, %v1815_v31, %v10902_v12  ;;  %v1428_v26 = vsub.s32 4294967266, %v1423_v14 }
 0x251   : > { %v1886_v9 = vand.u32 31, %v1884_v33  ;;  %v1879_v0 = vand.u32 8388607, %v16708_v20  ;;  %v1424_v10 = vsub.s32 32, %v1423_v14  ;;  %v1522_v23 = vsub.s32 0, %v10893_v27 }
 0x252   : > { %v1823_v35 = vmul.u32 %v1816_v53, %v1807_v18  ;;  %v1826_v7 = vadd.s32 1, %v10898_v11  ;;  %v1408_v24 = vadd.s32 %v10824_v60, %v10821_v59  ;;  %vm1825_vm11 = vc.u32 %v10903_v28, %v10897_v1 }
 0x253   : > { %v1887_v13 = vsub.s32 32, %v1886_v9  ;;  %v1429_v37 = vadd.s32 127, %v1428_v26  ;;  %v1880_v42 = vor.u32 8388608, %v1879_v0  ;;  %v10917_v43 = vadd.f32 %v1252_v8, %v10907_v34 }
 0x254   : > { %v1827_v40 = vsel %vm1825_vm11, %v1826_v7, %v10898_v11  ;;  %v1426_v44 = vshrl.u32 %v1408_v24, %v1424_v10  ;;  %v9089_v46 = vmin.u32 %v1522_v23, %v10893_v27  ;;  %v1885_v49 = vshrl.u32 %v1884_v33, 5 }
 0x255   : > { %v1828_v48 = vadd.s32 %v1827_v40, %v1823_v35  ;;  %v1889_v50 = vshll.u32 %v16723_v15, %v1886_v9  ;;  %v1890_v53 = vshrl.u32 %v16716_v22, %v1887_v13  ;;  %v1892_v59 = vshll.u32 %v16716_v22, %v1886_v9 }
 0x256   : > { %v1893_v60 = vshrl.u32 %v16712_v16, %v1887_v13  ;;  %v1895_v56 = vshll.u32 %v16712_v16, %v1886_v9  ;;  %v1896_v61 = vshrl.u32 %v16714_v32, %v1887_v13  ;;  %v1898_v63 = vshll.u32 %v16714_v32, %v1886_v9 }
 0x257   : > { %v1829_v17 = vadd.s32 536870912, %v1828_v48  ;;  %v1425_v51 = vshll.u32 %v10863_v62, %v1423_v14  ;;  %v1430_v21 = vshll.u32 %v1429_v37, 23  ;;  %v1899_v29 = vshrl.u32 %v16741_v30, %v1887_v13 }
 0x258   : > { %v1920_v31 = vshll.u32 %v1880_v42, 8  ;;  %v1524_v11 = vclz %v9089_v46  ;;  %v1901_v33 = vshll.u32 %v16741_v30, %v1886_v9  ;;  %v1902_v12 = vshrl.u32 %v16725_v25, %v1887_v13 }
 0x259   : > { %v10929_v18 = vshrl.u32 %v1829_v17, 30  ;;  %v1888_v26 = vshrl.u32 %v16723_v15, %v1887_v13  ;;  %v1891_v0 = vor.u32 %v1890_v53, %v1889_v50  ;;  %v1894_v10 = vor.u32 %v1893_v60, %v1892_v59 }
 0x25a   : > { %v1900_v23 = vor.u32 %v1899_v29, %v1898_v63  ;;  %v1427_v35 = vor.u32 %v1426_v44, %v1425_v51  ;;  %v1897_v62 = vor.u32 %v1896_v61, %v1895_v56  ;;  %vm1904_vm12 = vcmp.lt.s32.totalorder %v1885_v49, 1 }
 0x25b   : > { %16961 = vst [vmem:[#allocation12_spill] sm:$0xff] %v10929_v18  ;;  %v1831_v7 = vshll.u32 %v10929_v18, 30  ;;  %v1431_v14 = vor.u32 4788187, %v1430_v21  ;;  %v1903_v8 = vor.u32 %v1902_v12, %v1901_v33  ;;  %vm1906_vm13 = vcmp.lt.s32.totalorder %v1885_v49, 3  ;;  %v1254_v21 = vpop.f32.mrf.mxu1 }
 0x25c   : > { %v2187_v24 = vand.u32 2139095040, %v10917_v43  ;;  %v9090_v37 = vadd.s32 4294967294, %v1524_v11  ;;  %vm1905_vm14 = vcmp.lt.s32.totalorder %v1885_v49, 2  ;;  %vm1907_vm15 = vcmp.lt.s32.totalorder %v1885_v49, 4 }
 0x25d   : > { %v10936_v40 = vsub.s32 %v1828_v48, %v1831_v7  ;;  %v1908_v9 = vsel %vm1904_vm12, %v1888_v26, %v1891_v0  ;;  %v1909_v13 = vsel %vm1907_vm15, %v1897_v62, 2102212464  ;;  %v1912_v42 = vsel %vm1904_vm12, %v1891_v0, %v1894_v10 }
 0x25e   : > { %v1913_v44 = vsel %vm1907_vm15, %v1900_v23, 920167782  ;;  %v1910_v50 = vsel %vm1906_vm13, %v1894_v10, %v1909_v13  ;;  %v1916_v59 = vsel %vm1904_vm12, %v1894_v10, %v1897_v62  ;;  %v1432_v60 = vand.u32 2147483647, %v1431_v14 }
 0x25f   : > { %v1834_v46 = vsub.s32 0, %v10936_v40  ;;  %v1914_v53 = vsel %vm1906_vm13, %v1897_v62, %v1913_v44  ;;  %v1917_v17 = vsel %vm1907_vm15, %v1903_v8, 1326507024  ;;  %vm9091_vm0 = vcmp.lt.s32.totalorder %v9090_v37, 0 }
 0x260   : > { %v1915_v48 = vsel %vm1905_vm14, %v1912_v42, %v1914_v53  ;;  %v1918_v61 = vsel %vm1906_vm13, %v1900_v23, %v1917_v17  ;;  %v1911_v29 = vsel %vm1905_vm14, %v1908_v9, %v1910_v50  ;;  %v2188_v33 = vshrl.u32 %v2187_v24, 23 }
 0x261   : > { %v9101_v56 = vmin.u32 %v1834_v46, %v10936_v40  ;;  %v10947_v63 = vmul.u32.u64.low %v1920_v31, %v1915_v48  ;;  %v10948_v51 = vmul.u32.u64.high %v1920_v31, %v1915_v48, %v10947_v63  ;;  %v1919_v11 = vsel %vm1905_vm14, %v1916_v59, %v1918_v61 }
 0x262   : > { %v1434_v12 = vcvt.s32.f32 %v1427_v35  ;;  %v10953_v0 = vmul.u32.u64.low %v1920_v31, %v1919_v11  ;;  %v10954_v10 = vmul.u32.u64.high %v1920_v31, %v1919_v11, %v10953_v0  ;;  %v9116_v7 = vadd.s32 4294967169, %v2188_v33 }
 0x263   : > { %v1836_v26 = vclz %v9101_v56  ;;  %v10957_v62 = vadd.f32 %v1254_v21, %v10907_v34  ;;  %v10959_v14 = vsel %vm9091_vm0, 0, %v9090_v37  ;;  %v1927_v8 = vmul.u32 %v1920_v31, %v1911_v29 }
 0x264   : > { %v1435_v23 = vmul.f32 %v1434_v12, %v1432_v60  ;;  %v1930_v13 = vadd.s32 1, %v10948_v51  ;;  %v2194_v9 = vadd.s32 1, %v9116_v7  ;;  %vm1929_vm1 = vc.u32 %v10954_v10, %v10947_v63 }
 0x265   : > { %v9102_v42 = vadd.s32 4294967294, %v1836_v26  ;;  %v16711_v49 = vand.u32 2147483647, %v10917_v43  ;;  %v1532_v35 = vsub.s32 4294967266, %v10959_v14  ;;  %v2291_v44 = vand.u32 2139095040, %v10957_v62 }
 0x266   : > { %v1931_v24 = vsel %vm1929_vm1, %v1930_v13, %v10948_v51  ;;  %vm2195_vm2 = vcmp.gt.s32.totalorder %v2194_v9, 0  ;;  %v1436_v46 = vxor.u32 2147483648, %v1435_v23  ;;  %vm16762_vm4 = vcmp.lt.s32.totalorder %v10764_v6, 0 }
 0x267   : > { %v1932_v37 = vadd.s32 %v1931_v24, %v1927_v8  ;;  %vm9103_vm5 = vcmp.lt.s32.totalorder %v9102_v42, 0  ;;  %v2196_v31 = vsel %vm2195_vm2, %v2194_v9, 0  ;;  %v10971_v50 = vadd.s32 %v10849_v52, %v10857_v55 }
 0x268   : > { %v1824_v53 = vadd.s32 %v10897_v1, %v10903_v28  ;;  %v2191_v60 = vand.u32 8388607, %v16711_v49  ;;  %v1528_v48 = vsub.s32 32, %v10959_v14  ;;  %v10978_v17 = vadd.s32 127, %v1532_v35 }
 0x269   : > { %v1933_v59 = vadd.s32 536870912, %v1932_v37  ;;  %v2198_v56 = vand.u32 31, %v2196_v31  ;;  %v2292_v61 = vshrl.u32 %v2291_v44, 23  ;;  %v1437_v51 = vsel %vm16762_vm4, %v1436_v46, %v1435_v23 }
 0x26a   : > { %v10982_v21 = vsel %vm9103_vm5, 0, %v9102_v42  ;;  %v2197_v55 = vshrl.u32 %v2196_v31, 5  ;;  %v2192_v26 = vor.u32 8388608, %v2191_v60  ;;  %vm11002_vm7 = vcmp.le.f32.partialorder %v1352_v39, 0.7853982 }
 0x26b   : > { %v10984_v52 = vshrl.u32 %v1933_v59, 30  ;;  %v2199_v29 = vsub.s32 32, %v2198_v56  ;;  %v2201_v1 = vshll.u32 %v16723_v15, %v2198_v56  ;;  %v2204_v28 = vshll.u32 %v16716_v22, %v2198_v56 }
 0x26c   : > { %v2207_v11 = vshll.u32 %v16712_v16, %v2198_v56  ;;  %v1840_v33 = vsub.s32 32, %v10982_v21  ;;  %v2210_v0 = vshll.u32 %v16714_v32, %v2198_v56  ;;  %v9120_v13 = vadd.s32 4294967169, %v2292_v61 }
 0x26d   : > { %v1935_v12 = vshll.u32 %v10984_v52, 30  ;;  %v2202_v7 = vshrl.u32 %v16716_v22, %v2199_v29  ;;  %v2205_v23 = vshrl.u32 %v16712_v16, %v2199_v29  ;;  %v2208_v8 = vshrl.u32 %v16714_v32, %v2199_v29 }
 0x26e   : > { %v2211_v9 = vshrl.u32 %v16741_v30, %v2199_v29  ;;  %v2213_v35 = vshll.u32 %v16741_v30, %v2198_v56  ;;  %vm2216_vm6 = vcmp.lt.s32.totalorder %v2197_v55, 1  ;;  %v2214_v31 = vshrl.u32 %v16725_v25, %v2199_v29 }
 0x26f   : > { %v10995_v42 = vsub.s32 %v1932_v37, %v1935_v12  ;;  %v2203_v24 = vor.u32 %v2202_v7, %v2201_v1  ;;  %v2206_v44 = vor.u32 %v2205_v23, %v2204_v28  ;;  %v2209_v46 = vor.u32 %v2208_v8, %v2207_v11 }
 0x270   : > { %v16962_v59 = vmov 0  ;;  %v1844_v60 = vsub.s32 4294967266, %v10982_v21  ;;  %v2200_v61 = vshrl.u32 %v16723_v15, %v2199_v29  ;;  %v2212_v12 = vor.u32 %v2211_v9, %v2210_v0 }
 0x271   : > { %v16963_v59 = vsel %vm11002_vm7, 4294967295, %v16962_v59  ;;  %v1938_v37 = vsub.s32 0, %v10995_v42  ;;  %v2215_v56 = vor.u32 %v2214_v31, %v2213_v35  ;;  %vm2218_vm8 = vcmp.lt.s32.totalorder %v2197_v55, 3 }
 0x272   : > { %16964 = vst [vmem:[#allocation13_spill] sm:$0xff] %v16963_v59  ;;  %vm2219_vm9 = vcmp.lt.s32.totalorder %v2197_v55, 4  ;;  %v2298_v1 = vadd.s32 1, %v9120_v13  ;;  %vm2217_vm10 = vcmp.lt.s32.totalorder %v2197_v55, 2  ;;  %v2224_v39 = vsel %vm2216_vm6, %v2203_v24, %v2206_v44 }
 0x273   : > { %v9105_v28 = vmin.u32 %v1938_v37, %v10995_v42  ;;  %v2221_v11 = vsel %vm2219_vm9, %v2209_v46, 2102212464  ;;  %v2225_v7 = vsel %vm2219_vm9, %v2212_v12, 920167782  ;;  %v2228_v23 = vsel %vm2216_vm6, %v2206_v44, %v2209_v46 }
 0x274   : > { %v2229_v8 = vsel %vm2219_vm9, %v2215_v56, 1326507024  ;;  %v2232_v2 = vshll.u32 %v2192_v26, 8  ;;  %v2220_v5 = vsel %vm2216_vm6, %v2200_v61, %v2203_v24  ;;  %v2222_v29 = vsel %vm2218_vm8, %v2206_v44, %v2221_v11  ;;  %v1258_v56 = vpop.f32.mrf.mxu1 }
 0x275   : > { %v2226_v0 = vsel %vm2218_vm8, %v2209_v46, %v2225_v7  ;;  %v16709_v9 = vand.u32 2147483647, %v10957_v62  ;;  %v1841_v13 = vshll.u32 %v10936_v40, %v10982_v21  ;;  %v1842_v35 = vshrl.u32 %v1824_v53, %v1840_v33 }
 0x276   : > { %v2227_v31 = vsel %vm2217_vm10, %v2224_v39, %v2226_v0  ;;  %v2230_v37 = vsel %vm2218_vm8, %v2212_v12, %v2229_v8  ;;  %v1845_v45 = vadd.s32 127, %v1844_v60  ;;  %v1940_v20 = vclz %v9105_v28 }
 0x277   : > { %v2231_v26 = vsel %vm2217_vm10, %v2228_v23, %v2230_v37  ;;  %vm2299_vm11 = vcmp.gt.s32.totalorder %v2298_v1, 0  ;;  %v2223_v24 = vsel %vm2217_vm10, %v2220_v5, %v2222_v29  ;;  %v1529_v40 = vshll.u32 %v10893_v27, %v10959_v14 }
 0x278   : > { %v11022_v44 = vmul.u32.u64.low %v2232_v2, %v2231_v26  ;;  %v11023_v61 = vmul.u32.u64.high %v2232_v2, %v2231_v26, %v11022_v44  ;;  %v2300_v46 = vsel %vm2299_vm11, %v2298_v1, 0  ;;  %v11028_v53 = vshrl.u32 %v10971_v50, %v1528_v48 }
 0x279   : > { %v11030_v21 = vmul.u32.u64.low %v2232_v2, %v2227_v31  ;;  %v11031_v33 = vmul.u32.u64.high %v2232_v2, %v2227_v31, %v11030_v21  ;;  %v11037_v55 = vsel %vm11002_vm7, %v10764_v6, %v1437_v51  ;;  %v1534_v5 = vshll.u32 %v10978_v17, 23 }
 0x27a   : > { %v2295_v60 = vand.u32 8388607, %v16709_v9  ;;  %v2302_v12 = vand.u32 31, %v2300_v46  ;;  %v1843_v1 = vor.u32 %v1842_v35, %v1841_v13  ;;  %v1846_v28 = vshll.u32 %v1845_v45, 23 }
 0x27b   : > { %v2239_v11 = vmul.u32 %v2232_v2, %v2223_v24  ;;  %v11043_v50 = vadd.f32 %v1258_v56, %v10887_v19  ;;  %v9106_v48 = vadd.s32 4294967294, %v1940_v20  ;;  %vm2241_vm12 = vc.u32 %v11023_v61, %v11030_v21 }
 0x27c   : > { %v2301_v39 = vshrl.u32 %v2300_v46, 5  ;;  %v2303_v7 = vsub.s32 32, %v2302_v12  ;;  %v11049_v51 = vadd.s32 %v10947_v63, %v10954_v10  ;;  %v2242_v23 = vadd.s32 1, %v11031_v33 }
 0x27d   : > { %v2305_v8 = vshll.u32 %v16723_v15, %v2302_v12  ;;  %v2308_v45 = vshll.u32 %v16716_v22, %v2302_v12  ;;  %v2296_v2 = vor.u32 8388608, %v2295_v60  ;;  %v2311_v0 = vshll.u32 %v16712_v16, %v2302_v12 }
 0x27e   : > { %v2306_v29 = vshrl.u32 %v16716_v22, %v2303_v7  ;;  %v2309_v20 = vshrl.u32 %v16712_v16, %v2303_v7  ;;  %v1847_v13 = vor.u32 4788187, %v1846_v28  ;;  %v1850_v35 = vcvt.s32.f32 %v1843_v1 }
 0x27f   : > { %v2243_v31 = vsel %vm2241_vm12, %v2242_v23, %v11031_v33  ;;  %v2312_v63 = vshrl.u32 %v16714_v32, %v2303_v7  ;;  %vm9107_vm13 = vcmp.lt.s32.totalorder %v9106_v48, 0  ;;  %v2314_v37 = vshll.u32 %v16714_v32, %v2302_v12 }
 0x280   : > { %v2244_v10 = vadd.s32 %v2243_v31, %v2239_v11  ;;  %vm2320_vm14 = vcmp.lt.s32.totalorder %v2301_v39, 1  ;;  %v2304_v26 = vshrl.u32 %v16723_v15, %v2303_v7  ;;  %v2307_v24 = vor.u32 %v2306_v29, %v2305_v8 }
 0x281   : > { %v2310_v44 = vor.u32 %v2309_v20, %v2308_v45  ;;  %v2315_v46 = vshrl.u32 %v16741_v30, %v2303_v7  ;;  %v2313_v60 = vor.u32 %v2312_v63, %v2311_v0  ;;  %v2317_v28 = vshll.u32 %v16741_v30, %v2302_v12 }
 0x282   : > { %v2245_v56 = vadd.s32 536870912, %v2244_v10  ;;  %v2318_v1 = vshrl.u32 %v16725_v25, %v2303_v7  ;;  %vm2322_vm15 = vcmp.lt.s32.totalorder %v2301_v39, 3  ;;  %vm2323_vm0 = vcmp.lt.s32.totalorder %v2301_v39, 4 }
 0x283   : > { %v2316_v33 = vor.u32 %v2315_v46, %v2314_v37  ;;  %v2336_v23 = vshll.u32 %v2296_v2, 8  ;;  %vm2321_vm1 = vcmp.lt.s32.totalorder %v2301_v39, 2  ;;  %v2325_v9 = vsel %vm2323_vm0, %v2313_v60, 2102212464 }
 0x284   : > { %v11064_v11 = vshrl.u32 %v2245_v56, 30  ;;  %v2319_v31 = vor.u32 %v2318_v1, %v2317_v28  ;;  %v1848_v8 = vand.u32 2147483647, %v1847_v13  ;;  %v2324_v45 = vsel %vm2320_vm14, %v2304_v26, %v2307_v24  ;;  %v1260_v1 = vpop.f32.mrf.mxu1 }
 0x285   : > { %v2328_v29 = vsel %vm2320_vm14, %v2307_v24, %v2310_v44  ;;  %v2329_v20 = vsel %vm2323_vm0, %v2316_v33, 920167782  ;;  %v2326_v7 = vsel %vm2322_vm15, %v2310_v44, %v2325_v9  ;;  %v2332_v2 = vsel %vm2320_vm14, %v2310_v44, %v2313_v60 }
 0x286   : > { %v2247_v12 = vshll.u32 %v11064_v11, 30  ;;  %v2330_v0 = vsel %vm2322_vm15, %v2313_v60, %v2329_v20  ;;  %v1943_v63 = vsel %vm9107_vm13, 0, %v9106_v48  ;;  %v2333_v13 = vsel %vm2323_vm0, %v2319_v31, 1326507024 }
 0x287   : > { %v2331_v37 = vsel %vm2321_vm1, %v2328_v29, %v2330_v0  ;;  %v16710_v26 = vand.u32 2147483647, %v11043_v50  ;;  %vm16780_vm2 = vcmp.lt.s32.totalorder %v10776_v47, 0  ;;  %v2334_v46 = vsel %vm2322_vm15, %v2316_v33, %v2333_v13 }
 0x288   : > { %v11079_v24 = vsub.s32 %v2244_v10, %v2247_v12  ;;  %v11082_v56 = vmul.u32.u64.low %v2336_v23, %v2331_v37  ;;  %v11083_v9 = vmul.u32.u64.high %v2336_v23, %v2331_v37, %v11082_v56  ;;  %v1851_v28 = vmul.f32 %v1850_v35, %v1848_v8 }
 0x289   : > { %v2327_v44 = vsel %vm2321_vm1, %v2324_v45, %v2326_v7  ;;  %v2335_v48 = vsel %vm2321_vm1, %v2332_v2, %v2334_v46  ;;  %v2603_v60 = vand.u32 2139095040, %v11043_v50  ;;  %v1944_v31 = vsub.s32 32, %v1943_v63 }
 0x28a   : > { %v2250_v29 = vsub.s32 0, %v11079_v24  ;;  %v11090_v20 = vmul.u32.u64.low %v2336_v23, %v2335_v48  ;;  %v11091_v10 = vmul.u32.u64.high %v2336_v23, %v2335_v48, %v11090_v20  ;;  %v11097_v33 = vor.u32 %v11028_v53, %v1529_v40 }
 0x28b   : > { %v1948_v35 = vsub.s32 4294967266, %v1943_v63  ;;  %v2604_v8 = vshrl.u32 %v2603_v60, 23  ;;  %v2607_v39 = vand.u32 8388607, %v16710_v26  ;;  %v2343_v12 = vmul.u32 %v2336_v23, %v2327_v44 }
 0x28c   : > { %v9117_v45 = vmin.u32 %v2250_v29, %v11079_v24  ;;  %v2346_v7 = vadd.s32 1, %v11083_v9  ;;  %v11104_v0 = vadd.f32 %v1260_v1, %v10887_v19  ;;  %9942 = vcosq.f32 %v11037_v55 }
 0x28d   : > { %v11109_v27 = vor.u32 4788187, %v1534_v5  ;;  %v1852_v14 = vxor.u32 2147483648, %v1851_v28  ;;  %v9132_v40 = vadd.s32 4294967169, %v2604_v8  ;;  %v1945_v53 = vshll.u32 %v10995_v42, %v1943_v63 }
 0x28e   : > { %v1946_v2 = vshrl.u32 %v11049_v51, %v1944_v31  ;;  %v2252_v37 = vclz %v9117_v45  ;;  %vm2345_vm5 = vc.u32 %v11091_v10, %v11082_v56  ;;  %v11115_v23 = vadd.s32 127, %v1948_v35 }
 0x28f   : > { %v2347_v13 = vsel %vm2345_vm5, %v2346_v7, %v11083_v9  ;;  %v2608_v46 = vor.u32 8388608, %v2607_v39  ;;  %v2610_v44 = vadd.s32 1, %v9132_v40  ;;  %v2707_v60 = vand.u32 2139095040, %v11104_v0 }
 0x290   : > { %v9118_v5 = vadd.s32 4294967294, %v2252_v37  ;;  %v2348_v48 = vadd.s32 %v2347_v13, %v2343_v12  ;;  %v11123_v51 = vsel %vm16780_vm2, %v1852_v14, %v1851_v28  ;;  %v2240_v63 = vadd.s32 %v11030_v21, %v11023_v61 }
 0x291   : > { %vm2611_vm6 = vcmp.gt.s32.totalorder %v2610_v44, 0  ;;  %v11127_v1 = vor.u32 %v1946_v2, %v1945_v53  ;;  %v11130_v8 = vshll.u32 %v2608_v46, 8  ;;  %v16718_v28 = vand.u32 2147483647, %v11104_v0 }
 0x292   : > { %vm9119_vm8 = vcmp.lt.s32.totalorder %v9118_v5, 0  ;;  %v2349_v9 = vadd.s32 536870912, %v2348_v48  ;;  %v2612_v31 = vsel %vm2611_vm6, %v2610_v44, 0  ;;  %v2708_v12 = vshrl.u32 %v2707_v60, 23 }
 0x293   : > { %v2255_v20 = vsel %vm9119_vm8, 0, %v9118_v5  ;;  %v2614_v35 = vand.u32 31, %v2612_v31  ;;  %v2613_v7 = vshrl.u32 %v2612_v31, 5  ;;  %vm11153_vm9 = vcmp.le.f32.partialorder %v1768_v57, 0.7853982 }
 0x294   : > { %v2260_v39 = vsub.s32 4294967266, %v2255_v20  ;;  %v11132_v45 = vshrl.u32 %v2349_v9, 30  ;;  %v2256_v40 = vsub.s32 32, %v2255_v20  ;;  %v9136_v26 = vadd.s32 4294967169, %v2708_v12 }
 0x295   : > { %v2615_v61 = vsub.s32 32, %v2614_v35  ;;  %v2617_v21 = vshll.u32 %v16723_v15, %v2614_v35  ;;  %v2620_v14 = vshll.u32 %v16716_v22, %v2614_v35  ;;  %v2623_v2 = vshll.u32 %v16712_v16, %v2614_v35 }
 0x296   : > { %v2351_v53 = vshll.u32 %v11132_v45, 30  ;;  %v2626_v37 = vshll.u32 %v16714_v32, %v2614_v35  ;;  %v2261_v13 = vadd.s32 127, %v2260_v39  ;;  %v2257_v49 = vshll.u32 %v11079_v24, %v2255_v20  ;;  %v1329_v20 = vpop.f32.mrf.mxu1 }
 0x297   : > { %v2618_v46 = vshrl.u32 %v16716_v22, %v2615_v61  ;;  %v2621_v44 = vshrl.u32 %v16712_v16, %v2615_v61  ;;  %v2624_v5 = vshrl.u32 %v16714_v32, %v2615_v61  ;;  %v2616_v9 = vshrl.u32 %v16723_v15, %v2615_v61 }
 0x298   : > { %v11143_v60 = vsub.s32 %v2348_v48, %v2351_v53  ;;  %v2627_v31 = vshrl.u32 %v16741_v30, %v2615_v61  ;;  %v2629_v29 = vshll.u32 %v16741_v30, %v2614_v35  ;;  %v16966_v16 = vmov 0 }
 0x299   : > { %v2619_v17 = vor.u32 %v2618_v46, %v2617_v21  ;;  %v2622_v42 = vor.u32 %v2621_v44, %v2620_v14  ;;  %v11149_v39 = vpop.eup %9942  ;;  %v16967_v16 = vsel %vm11153_vm9, 4294967295, %v16966_v16  ;;  %v2258_v48 = vshrl.u32 %v2240_v63, %v2256_v40 }
 0x29a   : > { %16965 = vst [vmem:[#allocation14_spill] sm:$0xff] %v11149_v39  ;;  %16968 = vst [vmem:[#allocation15_spill] sm:$0xff] %v16967_v16  ;;  %v2354_v53 = vsub.s32 0, %v11143_v60  ;;  %v2625_v32 = vor.u32 %v2624_v5, %v2623_v2  ;;  %v2628_v22 = vor.u32 %v2627_v31, %v2626_v37  ;;  %v2262_v12 = vshll.u32 %v2261_v13, 23 }
 0x29b   : > { %v2630_v24 = vshrl.u32 %v16725_v25, %v2615_v61  ;;  %vm2632_vm10 = vcmp.lt.s32.totalorder %v2613_v7, 1  ;;  %vm2634_vm11 = vcmp.lt.s32.totalorder %v2613_v7, 3  ;;  %vm2633_vm12 = vcmp.lt.s32.totalorder %v2613_v7, 2 }
 0x29c   : > { %v9121_v35 = vmin.u32 %v2354_v53, %v11143_v60  ;;  %vm2635_vm13 = vcmp.lt.s32.totalorder %v2613_v7, 4  ;;  %v2636_v57 = vsel %vm2632_vm10, %v2616_v9, %v2619_v17  ;;  %v2640_v63 = vsel %vm2632_vm10, %v2619_v17, %v2622_v42  ;;  %v1331_v9 = vpop.f32.mrf.mxu1 }
 0x29d   : > { %v2631_v21 = vor.u32 %v2630_v24, %v2629_v29  ;;  %v2637_v14 = vsel %vm2635_vm13, %v2625_v32, 2102212464  ;;  %v2641_v40 = vsel %vm2635_vm13, %v2628_v22, 920167782  ;;  %v2711_v61 = vand.u32 8388607, %v16718_v28 }
 0x29e   : > { %v2638_v2 = vsel %vm2634_vm11, %v2622_v42, %v2637_v14  ;;  %v2642_v37 = vsel %vm2634_vm11, %v2625_v32, %v2641_v40  ;;  %v11167_v13 = vadd.f32 %v1329_v20, %v10761_v36  ;;  %v2259_v46 = vor.u32 %v2258_v48, %v2257_v49 }
 0x29f   : > { %v2643_v44 = vsel %vm2633_vm12, %v2640_v63, %v2642_v37  ;;  %v2644_v5 = vsel %vm2632_vm10, %v2622_v42, %v2625_v32  ;;  %v2645_v29 = vsel %vm2635_vm13, %v2631_v21, 1326507024  ;;  %v2263_v31 = vor.u32 4788187, %v2262_v12 }
 0x2a0   : > { %16969 = vst [vmem:[#allocation16_spill] sm:$0xff] %v11167_v13  ;;  %v2356_v17 = vclz %v9121_v35  ;;  %v2639_v53 = vsel %vm2633_vm12, %v2636_v57, %v2638_v2  ;;  %v2646_v24 = vsel %vm2634_vm11, %v2628_v22, %v2645_v29  ;;  %v2714_v49 = vadd.s32 1, %v9136_v26 }
 0x2a1   : > { %v2647_v14 = vsel %vm2633_vm12, %v2644_v5, %v2646_v24  ;;  %v11175_v40 = vmul.u32.u64.low %v11130_v8, %v2643_v44  ;;  %v11176_v28 = vmul.u32.u64.high %v11130_v8, %v2643_v44, %v11175_v40  ;;  %9944 = vsinq.f32 %v11037_v55 }
 0x2a2   : > { %v16970_v32 = vshll.u32 %v11115_v23, 23  ;;  %v11185_v48 = vmul.u32.u64.low %v11130_v8, %v2647_v14  ;;  %v11186_v12 = vmul.u32.u64.high %v11130_v8, %v2647_v14, %v11185_v48  ;;  %v16971_v22 = vand.u32 2147483647, %v11109_v27  ;;  %v1335_v23 = vpop.f32.mrf.mxu1 }
 0x2a3   : > { %v16972_v7 = vcvt.s32.f32 %v11097_v33  ;;  %v11198_v26 = vsel %vm11153_vm9, %v10776_v47, %v11123_v51  ;;  %vm2715_vm14 = vcmp.gt.s32.totalorder %v2714_v49, 0  ;;  %v9122_v35 = vadd.s32 4294967294, %v2356_v17 }
 0x2a4   : > { %v11182_v42 = vor.u32 4788187, %v16970_v32  ;;  %v2655_v57 = vmul.u32 %v11130_v8, %v2639_v53  ;;  %v2712_v21 = vor.u32 8388608, %v2711_v61  ;;  %v1563_v27 = vand.u32 2139095040, %v11167_v13 }
 0x2a5   : > { %v11192_v20 = vmul.f32 %v16972_v7, %v16971_v22  ;;  %v2264_v63 = vand.u32 2147483647, %v2263_v31  ;;  %v2266_v33 = vcvt.s32.f32 %v2259_v46  ;;  %v2658_v2 = vadd.s32 1, %v11176_v28 }
 0x2a6   : > { %v2716_v37 = vsel %vm2715_vm14, %v2714_v49, 0  ;;  %vm2657_vm15 = vc.u32 %v11186_v12, %v11175_v40  ;;  %v11208_v51 = vadd.f32 %v1331_v9, %v10761_v36  ;;  %v11211_v5 = vadd.f32 %v1335_v23, %v10759_v4 }
 0x2a7   : > { %v11215_v8 = vadd.s32 %v11082_v56, %v11091_v10  ;;  %v2659_v61 = vsel %vm2657_vm15, %v2658_v2, %v11176_v28  ;;  %v2718_v46 = vand.u32 31, %v2716_v37  ;;  %vm9123_vm0 = vcmp.lt.s32.totalorder %v9122_v35, 0 }
 0x2a8   : > { %16973 = vst [vmem:[#allocation17_spill] sm:$0xff] %v11208_v51  ;;  %16974 = vst [vmem:[#allocation18_spill] sm:$0xff] %v11211_v5  ;;  %v2660_v31 = vadd.s32 %v2659_v61, %v2655_v57  ;;  %v11219_v17 = vshll.u32 %v2712_v21, 8  ;;  %v1564_v53 = vshrl.u32 %v1563_v27, 23  ;;  %v11221_v24 = vmul.f32 %v2266_v33, %v2264_v63 }
 0x2a9   : > { %v2719_v36 = vsub.s32 32, %v2718_v46  ;;  %v2721_v9 = vshll.u32 %v16723_v15, %v2718_v46  ;;  %v16975_v14 = vmov 2475754826   ;;  %v2717_v56 = vshrl.u32 %v2716_v37, 5 }
 0x2aa   : > { %v2724_v49 = vshll.u32 %v16975_v14, %v2718_v46  ;;  %v2661_v32 = vadd.s32 536870912, %v2660_v31  ;;  %v16976_v10 = vmov 2131351028   ;;  %v16977_v28 = vmov 2102212464  }
 0x2ab   : > { %v2727_v48 = vshll.u32 %v16976_v10, %v2718_v46  ;;  %v2730_v22 = vshll.u32 %v16977_v28, %v2718_v46  ;;  %v11227_v7 = vsel %vm9123_vm0, 0, %v9122_v35  ;;  %v2722_v23 = vshrl.u32 %v16975_v14, %v2719_v36 }
 0x2ac   : > { %v2725_v57 = vshrl.u32 %v16976_v10, %v2719_v36  ;;  %v2728_v21 = vshrl.u32 %v16977_v28, %v2719_v36  ;;  %v11232_v27 = vshrl.u32 %v2661_v32, 30  ;;  %v2731_v63 = vshrl.u32 %v16741_v30, %v2719_v36 }
 0x2ad   : > { %v2733_v33 = vshll.u32 %v16741_v30, %v2718_v46  ;;  %v9092_v2 = vadd.s32 4294967169, %v1564_v53  ;;  %v2720_v37 = vshrl.u32 %v16723_v15, %v2719_v36  ;;  %v2723_v61 = vor.u32 %v2722_v23, %v2721_v9 }
 0x2ae   : > { %v2726_v55 = vor.u32 %v2725_v57, %v2724_v49  ;;  %v2734_v35 = vshrl.u32 %v16725_v25, %v2719_v36  ;;  %v2663_v44 = vshll.u32 %v11232_v27, 30  ;;  %v2729_v29 = vor.u32 %v2728_v21, %v2727_v48  ;;  %v11239_v39 = vpop.eup %9944 }
 0x2af   : > { %v2732_v3 = vor.u32 %v2731_v63, %v2730_v22  ;;  %vm2736_vm1 = vcmp.lt.s32.totalorder %v2717_v56, 1  ;;  %16978 = vst [vmem:[#allocation19_spill] sm:$0xff] %v11239_v39  ;;  %v2364_v32 = vsub.s32 4294967266, %v11227_v7  ;;  %vm2738_vm5 = vcmp.lt.s32.totalorder %v2717_v56, 3 }
 0x2b0   : > { %v2735_v59 = vor.u32 %v2734_v35, %v2733_v33  ;;  %vm2739_vm6 = vcmp.lt.s32.totalorder %v2717_v56, 4  ;;  %v11243_v53 = vsub.s32 %v2660_v31, %v2663_v44  ;;  %vm2737_vm8 = vcmp.lt.s32.totalorder %v2717_v56, 2 }
 0x2b1   : > { %v2741_v9 = vsel %vm2739_vm6, %v2729_v29, 2102212464  ;;  %v2740_v36 = vsel %vm2736_vm1, %v2720_v37, %v2723_v61  ;;  %v2744_v49 = vsel %vm2736_vm1, %v2723_v61, %v2726_v55  ;;  %v2745_v48 = vsel %vm2739_vm6, %v2732_v3, 920167782 }
 0x2b2   : > { %v1570_v22 = vadd.s32 1, %v9092_v2  ;;  %v2666_v23 = vsub.s32 0, %v11243_v53  ;;  %v2742_v57 = vsel %vm2738_vm5, %v2726_v55, %v2741_v9  ;;  %v2746_v21 = vsel %vm2738_vm5, %v2729_v29, %v2745_v48 }
 0x2b3   : > { %v2748_v63 = vsel %vm2736_vm1, %v2726_v55, %v2729_v29  ;;  %v2360_v44 = vsub.s32 32, %v11227_v7  ;;  %v11254_v31 = vadd.s32 127, %v2364_v32  ;;  %v2747_v33 = vsel %vm2737_vm8, %v2744_v49, %v2746_v21 }
 0x2b4   : > { %v2749_v37 = vsel %vm2739_vm6, %v2735_v59, 1326507024  ;;  %v9133_v61 = vmin.u32 %v2666_v23, %v11243_v53  ;;  %v11261_v35 = vmul.u32.u64.low %v11219_v17, %v2747_v33  ;;  %v11262_v46 = vmul.u32.u64.high %v11219_v17, %v2747_v33, %v11261_v35 }
 0x2b5   : > { %v2750_v2 = vsel %vm2738_vm5, %v2732_v3, %v2749_v37  ;;  %v2743_v9 = vsel %vm2737_vm8, %v2740_v36, %v2742_v57  ;;  %v16979_v29 = vand.u32 2147483647, %v11167_v13  ;;  %vm1571_vm10 = vcmp.gt.s32.totalorder %v1570_v22, 0 }
 0x2b6   : > { %v2751_v55 = vsel %vm2737_vm8, %v2748_v63, %v2750_v2  ;;  %v2668_v49 = vclz %v9133_v61  ;;  %v1572_v23 = vsel %vm1571_vm10, %v1570_v22, 0  ;;  %v11276_v21 = vshrl.u32 %v11215_v8, %v2360_v44 }
 0x2b7   : > { %v1567_v32 = vand.u32 8388607, %v16979_v29  ;;  %v11270_v59 = vmul.u32.u64.low %v11219_v17, %v2751_v55  ;;  %v11271_v48 = vmul.u32.u64.high %v11219_v17, %v2751_v55, %v11270_v59  ;;  %v2656_v56 = vadd.s32 %v11175_v40, %v11186_v12 }
 0x2b8   : > { %v1574_v36 = vand.u32 31, %v1572_v23  ;;  %v9134_v63 = vadd.s32 4294967294, %v2668_v49  ;;  %v2759_v33 = vmul.u32 %v11219_v17, %v2743_v9  ;;  %v2762_v37 = vadd.s32 1, %v11262_v46 }
 0x2b9   : > { %v1568_v61 = vor.u32 8388608, %v1567_v32  ;;  %v11283_v2 = vshrl.u32 %v1572_v23, 5  ;;  %vm2761_vm12 = vc.u32 %v11271_v48, %v11261_v35  ;;  %v16980_v38 = vmov 1326507024  }
 0x2ba   : > { %v1575_v22 = vsub.s32 32, %v1574_v36  ;;  %v1577_v55 = vshll.u32 %v16723_v15, %v1574_v36  ;;  %vm9135_vm11 = vcmp.lt.s32.totalorder %v9134_v63, 0  ;;  %v1580_v40 = vshll.u32 %v16975_v14, %v1574_v36 }
 0x2bb   : > { %v1583_v12 = vshll.u32 %v16976_v10, %v1574_v36  ;;  %v2671_v8 = vsel %vm9135_vm11, 0, %v9134_v63  ;;  %v2763_v44 = vsel %vm2761_vm12, %v2762_v37, %v11262_v46  ;;  %v1586_v9 = vshll.u32 %v16977_v28, %v1574_v36 }
 0x2bc   : > { %v1578_v17 = vshrl.u32 %v16975_v14, %v1575_v22  ;;  %v2672_v29 = vsub.s32 32, %v2671_v8  ;;  %v2673_v32 = vshll.u32 %v11243_v53, %v2671_v8  ;;  %v2676_v49 = vsub.s32 4294967266, %v2671_v8 }
 0x2bd   : > { %v2764_v59 = vadd.s32 %v2763_v44, %v2759_v33  ;;  %v1581_v57 = vshrl.u32 %v16976_v10, %v1575_v22  ;;  %v1584_v3 = vshrl.u32 %v16977_v28, %v1575_v22  ;;  %v1587_v15 = vshrl.u32 %v16741_v30, %v1575_v22 }
 0x2be   : > { %v1579_v23 = vor.u32 %v1578_v17, %v1577_v55  ;;  %v2674_v25 = vshrl.u32 %v2656_v56, %v2672_v29  ;;  %v2677_v63 = vadd.s32 127, %v2676_v49  ;;  %v1589_v46 = vshll.u32 %v16741_v30, %v1574_v36 }
 0x2bf   : > { %v2765_v39 = vadd.s32 536870912, %v2764_v59  ;;  %v1582_v37 = vor.u32 %v1581_v57, %v1580_v40  ;;  %v1585_v6 = vor.u32 %v1584_v3, %v1583_v12  ;;  %v1588_v54 = vor.u32 %v1587_v15, %v1586_v9 }
 0x2c0   : > { %v1590_v16 = vshrl.u32 %v16980_v38, %v1575_v22  ;;  %v2678_v53 = vshll.u32 %v2677_v63, 23  ;;  %v1608_v33 = vshll.u32 %v1568_v61, 8  ;;  %v16735_v55 = vand.u32 2147483647, %v11208_v51 }
 0x2c1   : > { %v11299_v8 = vshrl.u32 %v2765_v39, 30  ;;  %vm2186_vm13 = vcmp.lt.s32.totalorder %v10917_v43, 0  ;;  %v2675_v44 = vor.u32 %v2674_v25, %v2673_v32  ;;  %v16981_v17 = vmov 683565275  }
 0x2c2   : > { %v1576_v56 = vshrl.u32 %v16981_v17, %v1575_v22  ;;  %v1591_v29 = vor.u32 %v1590_v16, %v1589_v46  ;;  %v1667_v49 = vand.u32 2139095040, %v11208_v51  ;;  %vm1592_vm14 = vcmp.lt.s32.totalorder %v11283_v2, 1 }
 0x2c3   : > { %v2767_v36 = vshll.u32 %v11299_v8, 30  ;;  %vm1593_vm15 = vcmp.lt.s32.totalorder %v11283_v2, 2  ;;  %vm1595_vm0 = vcmp.lt.s32.totalorder %v11283_v2, 4  ;;  %vm1594_vm1 = vcmp.lt.s32.totalorder %v11283_v2, 3 }
 0x2c4   : > { %v1597_v15 = vsel %vm1595_vm0, %v1585_v6, 2102212464  ;;  %v1600_v39 = vsel %vm1592_vm14, %v1579_v23, %v1582_v37  ;;  %v1601_v25 = vsel %vm1595_vm0, %v1588_v54, 920167782  ;;  %v2679_v3 = vor.u32 4788187, %v2678_v53 }
 0x2c5   : > { %v11312_v57 = vsub.s32 %v2764_v59, %v2767_v36  ;;  %v1602_v16 = vsel %vm1594_vm1, %v1585_v6, %v1601_v25  ;;  %v1604_v61 = vsel %vm1592_vm14, %v1582_v37, %v1585_v6  ;;  %vm16763_vm5 = vcmp.lt.s32.totalorder %v10769_v41, 0 }
 0x2c6   : > { %v2682_v22 = vcvt.s32.f32 %v2675_v44  ;;  %v1603_v40 = vsel %vm1593_vm15, %v1600_v39, %v1602_v16  ;;  %v1605_v12 = vsel %vm1595_vm0, %v1591_v29, 1326507024  ;;  %v1668_v9 = vshrl.u32 %v1667_v49, 23 }
 0x2c7   : > { %v16982_v32 = vand.u32 2147483647, %v10917_v43  ;;  %v2770_v59 = vsub.s32 0, %v11312_v57  ;;  %v1596_v46 = vsel %vm1592_vm14, %v1576_v56, %v1579_v23  ;;  %v1598_v6 = vsel %vm1594_vm1, %v1582_v37, %v1597_v15 }
 0x2c8   : > { %v1606_v53 = vsel %vm1594_vm1, %v1588_v54, %v1605_v12  ;;  %v11336_v29 = vmul.u32.u64.low %v1608_v33, %v1603_v40  ;;  %v11337_v49 = vmul.u32.u64.high %v1608_v33, %v1603_v40, %v11336_v29  ;;  %v9096_v36 = vadd.s32 4294967169, %v1668_v9 }
 0x2c9   : > { %vm11323_vm6 = vcmp.le.f32.partialorder %v16982_v32, 0.7853982  ;;  %v1607_v44 = vsel %vm1593_vm15, %v1604_v61, %v1606_v53  ;;  %v2680_v39 = vand.u32 2147483647, %v2679_v3  ;;  %v9137_v25 = vmin.u32 %v2770_v59, %v11312_v57 }
 0x2ca   : > { %v11341_v16 = vmul.u32.u64.low %v1608_v33, %v1607_v44  ;;  %v11342_v32 = vmul.u32.u64.high %v1608_v33, %v1607_v44, %v11341_v16  ;;  %v1540_v23 = vxor.u32 2147483648, %v11192_v20  ;;  %9946 = vcosq.f32 %v11198_v26 }
 0x2cb   : > { %v1599_v54 = vsel %vm1593_vm15, %v1596_v46, %v1598_v6  ;;  %v1674_v37 = vadd.s32 1, %v9096_v36  ;;  %v16985_v56 = vand.u32 2147483647, %v11182_v42  ;;  %v16986_v15 = vcvt.s32.f32 %v11127_v1 }
 0x2cc   : > { %v16987_v3 = vxor.u32 2147483648, %v11221_v24  ;;  %v16988_v12 = vshll.u32 %v11143_v60, %v11227_v7  ;;  %v2772_v2 = vclz %v9137_v25  ;;  %v16989_v59 = vshll.u32 %v11254_v31, 23 }
 0x2cd   : > { %v11352_v61 = vmul.f32 %v16986_v15, %v16985_v56  ;;  %v1618_v1 = vadd.s32 1, %v11337_v49  ;;  %v1671_v46 = vand.u32 8388607, %v16735_v55  ;;  %vm1675_vm8 = vcmp.gt.s32.totalorder %v1674_v37, 0 }
 0x2ce   : > { %v2269_v40 = vsel %vm2186_vm13, %v16987_v3, %v11221_v24  ;;  %v11363_v9 = vor.u32 %v11276_v21, %v16988_v12  ;;  %v11367_v42 = vor.u32 4788187, %v16989_v59  ;;  %v11372_v6 = vmul.f32 %v2682_v22, %v2680_v39 }
 0x2cf   : > { %v1615_v24 = vmul.u32 %v1608_v33, %v1599_v54  ;;  %vm1617_vm10 = vc.u32 %v11342_v32, %v11336_v29  ;;  %v16736_v60 = vand.u32 2147483647, %v11211_v5  ;;  %v9138_v7 = vadd.s32 4294967294, %v2772_v2 }
 0x2d0   : > { %v1619_v21 = vsel %vm1617_vm10, %v1618_v1, %v11337_v49  ;;  %v1676_v31 = vsel %vm1675_vm8, %v1674_v37, 0  ;;  %v1979_v53 = vand.u32 2139095040, %v11211_v5  ;;  %v11382_v44 = vsel %vm16763_vm5, %v1540_v23, %v11192_v20 }
 0x2d1   : > { %16990 = vst [vmem:[#allocation20_spill] sm:$0xff] %v11382_v44  ;;  %9948 = vsinq.f32 %v11198_v26  ;;  %v1620_v22 = vadd.s32 %v1619_v21, %v1615_v24  ;;  %v1678_v33 = vand.u32 31, %v1676_v31  ;;  %v11389_v39 = vsel %vm11323_vm6, %v10917_v43, %v2269_v40 }
 0x2d2   : > { %v2760_v20 = vadd.s32 %v11261_v35, %v11271_v48  ;;  %v1672_v26 = vor.u32 8388608, %v1671_v46  ;;  %vm9139_vm11 = vcmp.lt.s32.totalorder %v9138_v7, 0  ;;  %v1980_v37 = vshrl.u32 %v1979_v53, 23 }
 0x2d3   : > { %v1621_v23 = vadd.s32 536870912, %v1620_v22  ;;  %v1679_v54 = vsub.s32 32, %v1678_v33  ;;  %v11398_v56 = vand.u32 8388607, %v16736_v60  ;;  %v1677_v3 = vshrl.u32 %v1676_v31, 5 }
 0x2d4   : > { %v1681_v40 = vshll.u32 %v16981_v17, %v1678_v33  ;;  %v1684_v12 = vshll.u32 %v16975_v14, %v1678_v33  ;;  %v1687_v48 = vshll.u32 %v16976_v10, %v1678_v33  ;;  %v2775_v1 = vsel %vm9139_vm11, 0, %v9138_v7 }
 0x2d5   : > { %v11400_v15 = vshrl.u32 %v1621_v23, 30  ;;  %v1682_v2 = vshrl.u32 %v16975_v14, %v1679_v54  ;;  %v1685_v35 = vshrl.u32 %v16976_v10, %v1679_v54  ;;  %v1688_v59 = vshrl.u32 %v16977_v28, %v1679_v54 }
 0x2d6   : > { %v1690_v24 = vshll.u32 %v16977_v28, %v1678_v33  ;;  %v1691_v21 = vshrl.u32 %v16741_v30, %v1679_v54  ;;  %v11411_v55 = vshll.u32 %v1672_v26, 8  ;;  %vm2602_vm12 = vcmp.lt.s32.totalorder %v11043_v50, 0 }
 0x2d7   : > { %16991 = vst [vmem:[#allocation21_spill] sm:$0xff] %v11400_v15  ;;  %v1623_v46 = vshll.u32 %v11400_v15, 30  ;;  %v1683_v31 = vor.u32 %v1682_v2, %v1681_v40  ;;  %v1686_v53 = vor.u32 %v1685_v35, %v1684_v12  ;;  %v1689_v23 = vor.u32 %v1688_v59, %v1687_v48  ;;  %v11413_v60 = vpop.eup %9946 }
 0x2d8   : > { %16992 = vst [vmem:[#allocation22_spill] sm:$0xff] %v11413_v60  ;;  %v2776_v36 = vsub.s32 32, %v2775_v1  ;;  %v1692_v25 = vor.u32 %v1691_v21, %v1690_v24  ;;  %v9108_v7 = vadd.s32 4294967169, %v1980_v37  ;;  %v2777_v49 = vshll.u32 %v11312_v57, %v2775_v1 }
 0x2d9   : > { %v11416_v16 = vsub.s32 %v1620_v22, %v1623_v46  ;;  %v2780_v15 = vsub.s32 4294967266, %v2775_v1  ;;  %v1693_v51 = vshll.u32 %v16741_v30, %v1678_v33  ;;  %v1694_v40 = vshrl.u32 %v16980_v38, %v1679_v54 }
 0x2da   : > { %vm1696_vm14 = vcmp.lt.s32.totalorder %v1677_v3, 1  ;;  %vm1698_vm15 = vcmp.lt.s32.totalorder %v1677_v3, 3  ;;  %vm1699_vm0 = vcmp.lt.s32.totalorder %v1677_v3, 4  ;;  %v1680_v37 = vshrl.u32 %v16981_v17, %v1679_v54 }
 0x2db   : > { %v1626_v12 = vsub.s32 0, %v11416_v16  ;;  %v1695_v26 = vor.u32 %v1694_v40, %v1693_v51  ;;  %v1701_v2 = vsel %vm1699_vm0, %v1689_v23, 2102212464  ;;  %v1704_v35 = vsel %vm1696_vm14, %v1683_v31, %v1686_v53 }
 0x2dc   : > { %v1705_v22 = vsel %vm1699_vm0, %v1692_v25, 920167782  ;;  %vm1697_vm1 = vcmp.lt.s32.totalorder %v1677_v3, 2  ;;  %v2778_v59 = vshrl.u32 %v2760_v20, %v2776_v36  ;;  %v1708_v46 = vsel %vm1696_vm14, %v1686_v53, %v1689_v23  ;;  %v1337_v20 = vpop.f32.mrf.mxu1 }
 0x2dd   : > { %v9093_v48 = vmin.u32 %v1626_v12, %v11416_v16  ;;  %v1706_v57 = vsel %vm1698_vm15, %v1689_v23, %v1705_v22  ;;  %v1709_v24 = vsel %vm1699_vm0, %v1695_v26, 1326507024  ;;  %v1700_v21 = vsel %vm1696_vm14, %v1680_v37, %v1683_v31 }
 0x2de   : > { %v11426_v33 = vpop.eup %9948  ;;  %v1707_v1 = vsel %vm1697_vm1, %v1704_v35, %v1706_v57  ;;  %v1702_v40 = vsel %vm1698_vm15, %v1686_v53, %v1701_v2  ;;  %v1710_v12 = vsel %vm1698_vm15, %v1692_v25, %v1709_v24  ;;  %v1986_v36 = vadd.s32 1, %v9108_v7 }
 0x2df   : > { %16993 = vst [vmem:[#allocation23_spill] sm:$0xff] %v11426_v33  ;;  %v1628_v51 = vclz %v9093_v48  ;;  %v1711_v54 = vsel %vm1697_vm1, %v1708_v46, %v1710_v12  ;;  %v11435_v30 = vmul.u32.u64.low %v11411_v55, %v1707_v1  ;;  %v11436_v22 = vmul.u32.u64.high %v11411_v55, %v1707_v1, %v11435_v30 }
 0x2e0   : > { %v11439_v35 = vadd.s32 127, %v2780_v15  ;;  %v11442_v26 = vmul.u32.u64.low %v11411_v55, %v1711_v54  ;;  %v11443_v48 = vmul.u32.u64.high %v11411_v55, %v1711_v54, %v11442_v26  ;;  %v16994_v31 = vand.u32 2147483647, %v11367_v42 }
 0x2e1   : > { %v9094_v23 = vadd.s32 4294967294, %v1628_v51  ;;  %v16995_v25 = vcvt.s32.f32 %v11363_v9  ;;  %v16996_v2 = vxor.u32 2147483648, %v11372_v6  ;;  %v1984_v15 = vor.u32 8388608, %v11398_v56 }
 0x2e2   : > { %vm1987_vm8 = vcmp.gt.s32.totalorder %v1986_v36, 0  ;;  %v1703_v37 = vsel %vm1697_vm1, %v1700_v21, %v1702_v40  ;;  %v11461_v42 = vadd.f32 %v1337_v20, %v10759_v4  ;;  %v1616_v9 = vadd.s32 %v11336_v29, %v11342_v32 }
 0x2e3   : > { %v11449_v53 = vmul.f32 %v16995_v25, %v16994_v31  ;;  %v11456_v7 = vsel %vm2602_vm12, %v16996_v2, %v11372_v6  ;;  %vm9095_vm10 = vcmp.lt.s32.totalorder %v9094_v23, 0  ;;  %v1988_v57 = vsel %vm1987_vm8, %v1986_v36, 0 }
 0x2e4   : > { %16997 = vst [vmem:[#allocation24_spill] sm:$0xff] %v11461_v42  ;;  %v1631_v1 = vsel %vm9095_vm10, 0, %v9094_v23  ;;  %v1722_v46 = vadd.s32 1, %v11436_v22  ;;  %v1990_v24 = vand.u32 31, %v1988_v57  ;;  %v11466_v51 = vor.u32 %v2778_v59, %v2777_v49 }
 0x2e5   : > { %v2782_v6 = vshll.u32 %v11439_v35, 23  ;;  %v1632_v56 = vsub.s32 32, %v1631_v1  ;;  %v1636_v12 = vsub.s32 4294967266, %v1631_v1  ;;  %v1719_v3 = vmul.u32 %v11411_v55, %v1703_v37 }
 0x2e6   : > { %vm1721_vm11 = vc.u32 %v11443_v48, %v11435_v30  ;;  %v1991_v4 = vsub.s32 32, %v1990_v24  ;;  %v11472_v21 = vshll.u32 %v1984_v15, 8  ;;  %v1989_v32 = vshrl.u32 %v1988_v57, 5 }
 0x2e7   : > { %v1637_v40 = vadd.s32 127, %v1636_v12  ;;  %v1723_v29 = vsel %vm1721_vm11, %v1722_v46, %v11436_v22  ;;  %v1993_v59 = vshll.u32 %v16981_v17, %v1990_v24  ;;  %v1634_v55 = vshrl.u32 %v1616_v9, %v1632_v56 }
 0x2e8   : > { %v1724_v49 = vadd.s32 %v1723_v29, %v1719_v3  ;;  %v1994_v36 = vshrl.u32 %v16975_v14, %v1991_v4  ;;  %v1997_v20 = vshrl.u32 %v16976_v10, %v1991_v4  ;;  %v1996_v35 = vshll.u32 %v16975_v14, %v1990_v24 }
 0x2e9   : > { %v1999_v23 = vshll.u32 %v16976_v10, %v1990_v24  ;;  %v2000_v26 = vshrl.u32 %v16977_v28, %v1991_v4  ;;  %v1633_v31 = vshll.u32 %v11416_v16, %v1631_v1  ;;  %v2002_v25 = vshll.u32 %v16977_v28, %v1990_v24 }
 0x2ea   : > { %v1725_v22 = vadd.s32 536870912, %v1724_v49  ;;  %v16998_v2 = vmov 920167782   ;;  %v1638_v37 = vshll.u32 %v1637_v40, 23  ;;  %v1995_v57 = vor.u32 %v1994_v36, %v1993_v59 }
 0x2eb   : > { %v2003_v15 = vshrl.u32 %v16998_v2, %v1991_v4  ;;  %v1998_v46 = vor.u32 %v1997_v20, %v1996_v35  ;;  %v2001_v12 = vor.u32 %v2000_v26, %v1999_v23  ;;  %v2005_v56 = vshll.u32 %v16998_v2, %v1990_v24 }
 0x2ec   : > { %v11485_v3 = vshrl.u32 %v1725_v22, 30  ;;  %v2006_v29 = vshrl.u32 %v16980_v38, %v1991_v4  ;;  %v1635_v54 = vor.u32 %v1634_v55, %v1633_v31  ;;  %v1992_v44 = vshrl.u32 %v16981_v17, %v1991_v4 }
 0x2ed   : > { %v2004_v9 = vor.u32 %v2003_v15, %v2002_v25  ;;  %vm2011_vm14 = vcmp.lt.s32.totalorder %v1989_v32, 4  ;;  %v2083_v16 = vand.u32 2139095040, %v11461_v42  ;;  %v17000_v1 = vand.u32 2147483647, %v11043_v50 }
 0x2ee   : > { %16999 = vst [vmem:[#allocation25_spill] sm:$0xff] %v11485_v3  ;;  %v1727_v59 = vshll.u32 %v11485_v3, 30  ;;  %v2007_v36 = vor.u32 %v2006_v29, %v2005_v56  ;;  %vm2008_vm0 = vcmp.lt.s32.totalorder %v1989_v32, 1  ;;  %v2013_v24 = vsel %vm2011_vm14, %v2001_v12, 2102212464 }
 0x2ef   : > { %vm11493_vm15 = vcmp.le.f32.partialorder %v17000_v1, 0.7853982  ;;  %v1639_v20 = vor.u32 4788187, %v1638_v37  ;;  %vm2010_vm1 = vcmp.lt.s32.totalorder %v1989_v32, 3  ;;  %v2016_v55 = vsel %vm2008_vm0, %v1995_v57, %v1998_v46  ;;  %v1341_v1 = vpop.f32.mrf.mxu1 }
 0x2f0   : > { %v2017_v4 = vsel %vm2011_vm14, %v2004_v9, 920167782  ;;  %v11500_v35 = vsub.s32 %v1724_v49, %v1727_v59  ;;  %vm2009_vm8 = vcmp.lt.s32.totalorder %v1989_v32, 2  ;;  %v2020_v26 = vsel %vm2008_vm0, %v1998_v46, %v2001_v12 }
 0x2f1   : > { %v2018_v23 = vsel %vm2010_vm1, %v2001_v12, %v2017_v4  ;;  %vm16783_vm10 = vcmp.lt.s32.totalorder %v10783_v58, 0  ;;  %v2012_v31 = vsel %vm2008_vm0, %v1992_v44, %v1995_v57  ;;  %v2014_v22 = vsel %vm2010_vm1, %v1998_v46, %v2013_v24 }
 0x2f2   : > { %v2019_v25 = vsel %vm2009_vm8, %v2016_v55, %v2018_v23  ;;  %v2021_v15 = vsel %vm2011_vm14, %v2007_v36, 1326507024  ;;  %vm2290_vm11 = vcmp.lt.s32.totalorder %v10957_v62, 0  ;;  %v1730_v37 = vsub.s32 0, %v11500_v35 }
 0x2f3   : > { %v2022_v56 = vsel %vm2010_vm1, %v2004_v9, %v2021_v15  ;;  %v11508_v29 = vmul.u32.u64.low %v11472_v21, %v2019_v25  ;;  %v11509_v49 = vmul.u32.u64.high %v11472_v21, %v2019_v25, %v11508_v29  ;;  %v2783_v12 = vor.u32 4788187, %v2782_v6 }
 0x2f4   : > { %v1640_v59 = vand.u32 2147483647, %v1639_v20  ;;  %v2023_v44 = vsel %vm2009_vm8, %v2020_v26, %v2022_v56  ;;  %v2084_v57 = vshrl.u32 %v2083_v16, 23  ;;  %v9097_v46 = vmin.u32 %v1730_v37, %v11500_v35 }
 0x2f5   : > { %v11515_v36 = vmul.u32.u64.low %v11472_v21, %v2023_v44  ;;  %v11516_v24 = vmul.u32.u64.high %v11472_v21, %v2023_v44, %v11515_v36  ;;  %v17003_v55 = vand.u32 2147483647, %v11461_v42  ;;  %9950 = vcosq.f32 %v11389_v39 }
 0x2f6   : > { %v2015_v4 = vsel %vm2009_vm8, %v2012_v31, %v2014_v22  ;;  %v9112_v23 = vadd.s32 4294967169, %v2084_v57  ;;  %v11523_v6 = vadd.f32 %v1341_v1, %v10907_v34  ;;  %v2372_v20 = vxor.u32 2147483648, %v11449_v53 }
 0x2f7   : > { %v2087_v9 = vand.u32 8388607, %v17003_v55  ;;  %v1642_v16 = vcvt.s32.f32 %v1635_v54  ;;  %v1732_v26 = vclz %v9097_v46  ;;  %v2034_v25 = vadd.s32 1, %v11509_v49 }
 0x2f8   : > { %v11531_v15 = vsel %vm11493_vm15, %v11043_v50, %v11456_v7  ;;  %v2784_v37 = vand.u32 2147483647, %v2783_v12  ;;  %v2786_v32 = vcvt.s32.f32 %v11466_v51  ;;  %v2090_v31 = vadd.s32 1, %v9112_v23 }
 0x2f9   : > { %v11534_v22 = vmul.f32 %v1642_v16, %v1640_v59  ;;  %v2031_v56 = vmul.u32 %v11472_v21, %v2015_v4  ;;  %vm2033_vm14 = vc.u32 %v11516_v24, %v11508_v29  ;;  %v2088_v54 = vor.u32 8388608, %v2087_v9 }
 0x2fa   : > { %v9098_v1 = vadd.s32 4294967294, %v1732_v26  ;;  %v2035_v44 = vsel %vm2033_vm14, %v2034_v25, %v11509_v49  ;;  %vm2091_vm0 = vcmp.gt.s32.totalorder %v2090_v31, 0  ;;  %v2395_v57 = vand.u32 2139095040, %v11523_v6  ;;  %v1343_v25 = vpop.f32.mrf.mxu1 }
 0x2fb   : > { %v17004_v7 = vxor.u32 2147483648, %v11352_v61  ;;  %9952 = vsinq.f32 %v11389_v39  ;;  %v2036_v21 = vadd.s32 %v2035_v44, %v2031_v56  ;;  %v2092_v12 = vsel %vm2091_vm0, %v2090_v31, 0 }
 0x2fc   : > { %v11552_v59 = vsel %vm2290_vm11, %v2372_v20, %v11449_v53  ;;  %9954 = vcosq.f32 %v11531_v15  ;;  %v11555_v49 = vmul.f32 %v2786_v32, %v2784_v37  ;;  %v2094_v46 = vand.u32 31, %v2092_v12 }
 0x2fd   : > { %v11546_v51 = vsel %vm16783_vm10, %v17004_v7, %v11352_v61  ;;  %v1644_v36 = vxor.u32 2147483648, %v11534_v22  ;;  %v11560_v61 = vadd.s32 %v11435_v30, %v11443_v48  ;;  %v2037_v55 = vadd.s32 536870912, %v2036_v21 }
 0x2fe   : > { %v16752_v39 = vand.u32 2147483647, %v11523_v6  ;;  %vm9099_vm1 = vcmp.lt.s32.totalorder %v9098_v1, 0  ;;  %v2095_v9 = vsub.s32 32, %v2094_v46  ;;  %v11563_v4 = vshll.u32 %v2088_v54, 8 }
 0x2ff   : > { %v2396_v53 = vshrl.u32 %v2395_v57, 23  ;;  %v11565_v23 = vshrl.u32 %v2037_v55, 30  ;;  %v2093_v20 = vshrl.u32 %v2092_v12, 5  ;;  %v2097_v16 = vshll.u32 %v16981_v17, %v2094_v46 }
 0x300   : > { %v2100_v26 = vshll.u32 %v16975_v14, %v2094_v46  ;;  %v2098_v37 = vshrl.u32 %v16975_v14, %v2095_v9  ;;  %v2101_v30 = vshrl.u32 %v16976_v10, %v2095_v9  ;;  %v2103_v48 = vshll.u32 %v16976_v10, %v2094_v46 }
 0x301   : > { %17005 = vst [vmem:[#allocation26_spill] sm:$0xff] %v11565_v23  ;;  %v2104_v32 = vshrl.u32 %v16977_v28, %v2095_v9  ;;  %v2039_v31 = vshll.u32 %v11565_v23, 30  ;;  %v2106_v56 = vshll.u32 %v16977_v28, %v2094_v46  ;;  %v2107_v54 = vshrl.u32 %v16998_v2, %v2095_v9 }
 0x302   : > { %v2399_v44 = vand.u32 8388607, %v16752_v39  ;;  %vm16761_vm8 = vcmp.lt.s32.totalorder %v11167_v13, 0  ;;  %v2099_v57 = vor.u32 %v2098_v37, %v2097_v16  ;;  %v2102_v7 = vor.u32 %v2101_v30, %v2100_v26  ;;  %v11582_v3 = vpop.eup %9950 }
 0x303   : > { %v2105_v12 = vor.u32 %v2104_v32, %v2103_v48  ;;  %v11580_v55 = vadd.f32 %v1343_v25, %v10907_v34  ;;  %17007 = vst [vmem:[#allocation28_spill] sm:$0xff] %v11582_v3  ;;  %v11585_v42 = vsel %vm9099_vm1, 0, %v9098_v1  ;;  %v11587_v23 = vsub.s32 %v2036_v21, %v2039_v31 }
 0x304   : > { %v2096_v41 = vshrl.u32 %v16981_v17, %v2095_v9  ;;  %v2108_v60 = vor.u32 %v2107_v54, %v2106_v56  ;;  %v2109_v39 = vshll.u32 %v16998_v2, %v2094_v46  ;;  %v2110_v33 = vshrl.u32 %v16980_v38, %v2095_v9 }
 0x305   : > { %17006 = vst [vmem:[#allocation27_spill] sm:$0xff] %v11580_v55  ;;  %vm2112_vm14 = vcmp.lt.s32.totalorder %v2093_v20, 1  ;;  %v9124_v16 = vadd.s32 4294967169, %v2396_v53  ;;  %v2042_v26 = vsub.s32 0, %v11587_v23  ;;  %vm2114_vm0 = vcmp.lt.s32.totalorder %v2093_v20, 3 }
 0x306   : > { %vm2115_vm3 = vcmp.lt.s32.totalorder %v2093_v20, 4  ;;  %v2116_v34 = vsel %vm2112_vm14, %v2096_v41, %v2099_v57  ;;  %v2111_v25 = vor.u32 %v2110_v33, %v2109_v39  ;;  %v2120_v21 = vsel %vm2112_vm14, %v2099_v57, %v2102_v7 }
 0x307   : > { %v2117_v1 = vsel %vm2115_vm3, %v2105_v12, 2102212464  ;;  %v2121_v37 = vsel %vm2115_vm3, %v2108_v60, 920167782  ;;  %v9109_v30 = vmin.u32 %v2042_v26, %v11587_v23  ;;  %vm2113_vm1 = vcmp.lt.s32.totalorder %v2093_v20, 2 }
 0x308   : > { %v2118_v46 = vsel %vm2114_vm0, %v2102_v7, %v2117_v1  ;;  %v2122_v9 = vsel %vm2114_vm0, %v2105_v12, %v2121_v37  ;;  %v11598_v48 = vpop.eup %9952  ;;  %v1740_v53 = vsub.s32 4294967266, %v11585_v42  ;;  %v2124_v31 = vsel %vm2112_vm14, %v2102_v7, %v2105_v12 }
 0x309   : > { %17008 = vst [vmem:[#allocation29_spill] sm:$0xff] %v11598_v48  ;;  %v2123_v32 = vsel %vm2113_vm1, %v2120_v21, %v2122_v9  ;;  %v2125_v41 = vsel %vm2115_vm3, %v2111_v25, 1326507024  ;;  %v11602_v33 = vpop.eup %9954  ;;  %v2044_v39 = vclz %v9109_v30  ;;  %v2119_v56 = vsel %vm2113_vm1, %v2116_v34, %v2118_v46 }
 0x30a   : > { %v2126_v54 = vsel %vm2114_vm0, %v2108_v60, %v2125_v41  ;;  %v2400_v57 = vor.u32 8388608, %v2399_v44  ;;  %v11606_v1 = vmul.u32.u64.low %v11563_v4, %v2123_v32  ;;  %v11607_v47 = vmul.u32.u64.high %v11563_v4, %v2123_v32, %v11606_v1 }
 0x30b   : > { %v2127_v26 = vsel %vm2113_vm1, %v2124_v31, %v2126_v54  ;;  %v2402_v37 = vadd.s32 1, %v9124_v16  ;;  %v11613_v21 = vsel %vm16761_vm8, %v1644_v36, %v11534_v22  ;;  %v9110_v7 = vadd.s32 4294967294, %v2044_v39 }
 0x30c   : > { %v11616_v12 = vmul.u32.u64.low %v11563_v4, %v2127_v26  ;;  %v11617_v25 = vmul.u32.u64.high %v11563_v4, %v2127_v26, %v11616_v12  ;;  %v11620_v20 = vadd.s32 127, %v1740_v53  ;;  %v2032_v44 = vadd.s32 %v11508_v29, %v11516_v24 }
 0x30d   : > { %vm2403_vm3 = vcmp.gt.s32.totalorder %v2402_v37, 0  ;;  %vm9111_vm14 = vcmp.lt.s32.totalorder %v9110_v7, 0  ;;  %v2135_v16 = vmul.u32 %v11563_v4, %v2119_v56  ;;  %v11625_v30 = vshll.u32 %v2400_v57, 8 }
 0x30e   : > { %v2404_v34 = vsel %vm2403_vm3, %v2402_v37, 0  ;;  %v2047_v22 = vsel %vm9111_vm14, 0, %v9110_v7  ;;  %v2138_v36 = vadd.s32 1, %v11607_v47  ;;  %v2499_v41 = vand.u32 2139095040, %v11580_v55 }
 0x30f   : > { %v2406_v46 = vand.u32 31, %v2404_v34  ;;  %v2048_v32 = vsub.s32 32, %v2047_v22  ;;  %v2052_v31 = vsub.s32 4294967266, %v2047_v22  ;;  %v2405_v53 = vshrl.u32 %v2404_v34, 5 }
 0x310   : > { %v2049_v29 = vshll.u32 %v11587_v23, %v2047_v22  ;;  %vm2137_vm0 = vc.u32 %v11617_v25, %v11606_v1  ;;  %v17011_v48 = vmov 0  ;;  %vm16773_vm4 = vcmp.lt.s32.totalorder %v11211_v5, 0 }
 0x311   : > { %v2407_v24 = vsub.s32 32, %v2406_v46  ;;  %v2409_v4 = vshll.u32 %v16981_v17, %v2406_v46  ;;  %v2050_v39 = vshrl.u32 %v2032_v44, %v2048_v32  ;;  %v2053_v56 = vadd.s32 127, %v2052_v31 }
 0x312   : > { %v2139_v54 = vsel %vm2137_vm0, %v2138_v36, %v11607_v47  ;;  %v2412_v57 = vshll.u32 %v16975_v14, %v2406_v46  ;;  %v2415_v12 = vshll.u32 %v16976_v10, %v2406_v46  ;;  %v2418_v32 = vshll.u32 %v16977_v28, %v2406_v46 }
 0x313   : > { %v2140_v26 = vadd.s32 %v2139_v54, %v2135_v16  ;;  %v2410_v37 = vshrl.u32 %v16975_v14, %v2407_v24  ;;  %v2413_v7 = vshrl.u32 %v16976_v10, %v2407_v24  ;;  %v2051_v23 = vor.u32 %v2050_v39, %v2049_v29 }
 0x314   : > { %v2054_v34 = vshll.u32 %v2053_v56, 23  ;;  %v2408_v22 = vshrl.u32 %v16981_v17, %v2407_v24  ;;  %v2416_v9 = vshrl.u32 %v16977_v28, %v2407_v24  ;;  %v2419_v47 = vshrl.u32 %v16998_v2, %v2407_v24 }
 0x315   : > { %v2141_v60 = vadd.s32 536870912, %v2140_v26  ;;  %v2411_v44 = vor.u32 %v2410_v37, %v2409_v4  ;;  %v2058_v16 = vcvt.s32.f32 %v2051_v23  ;;  %v2414_v31 = vor.u32 %v2413_v7, %v2412_v57 }
 0x316   : > { %v2055_v36 = vor.u32 4788187, %v2054_v34  ;;  %v2417_v54 = vor.u32 %v2416_v9, %v2415_v12  ;;  %v2420_v18 = vor.u32 %v2419_v47, %v2418_v32  ;;  %v2421_v29 = vshll.u32 %v16998_v2, %v2406_v46 }
 0x317   : > { %v11643_v3 = vshrl.u32 %v2141_v60, 30  ;;  %v2422_v39 = vshrl.u32 %v16980_v38, %v2407_v24  ;;  %v17010_v56 = vand.u32 2147483647, %v11167_v13  ;;  %vm2424_vm3 = vcmp.lt.s32.totalorder %v2405_v53, 1 }
 0x318   : > { %v2056_v4 = vand.u32 2147483647, %v2055_v36  ;;  %vm2425_vm14 = vcmp.lt.s32.totalorder %v2405_v53, 2  ;;  %vm2427_vm0 = vcmp.lt.s32.totalorder %v2405_v53, 4  ;;  %vm2426_vm8 = vcmp.lt.s32.totalorder %v2405_v53, 3 }
 0x319   : > { %17009 = vst [vmem:[#allocation30_spill] sm:$0xff] %v11643_v3  ;;  %vm11649_vm1 = vcmp.le.f32.partialorder %v17010_v56, 0.7853982  ;;  %v2143_v57 = vshll.u32 %v11643_v3, 30  ;;  %v2423_v9 = vor.u32 %v2422_v39, %v2421_v29  ;;  %v2429_v60 = vsel %vm2427_vm0, %v2417_v54, 2102212464 }
 0x31a   : > { %v17012_v48 = vsel %vm11649_vm1, 4294967295, %v17011_v48  ;;  %v2059_v46 = vmul.f32 %v2058_v16, %v2056_v4  ;;  %v2428_v24 = vsel %vm2424_vm3, %v2408_v22, %v2411_v44  ;;  %v2432_v37 = vsel %vm2424_vm3, %v2411_v44, %v2414_v31 }
 0x31b   : > { %17013 = vst [vmem:[#allocation31_spill] sm:$0xff] %v17012_v48  ;;  %v2433_v7 = vsel %vm2427_vm0, %v2420_v18, 920167782  ;;  %v11657_v12 = vsub.s32 %v2140_v26, %v2143_v57  ;;  %v2430_v23 = vsel %vm2426_vm8, %v2414_v31, %v2429_v60  ;;  %v2436_v32 = vsel %vm2424_vm3, %v2414_v31, %v2417_v54  ;;  %v1347_v31 = vpop.f32.mrf.mxu1 }
 0x31c   : > { %v2434_v34 = vsel %vm2426_vm8, %v2417_v54, %v2433_v7  ;;  %vm2706_vm5 = vcmp.lt.s32.totalorder %v11104_v0, 0  ;;  %v17014_v47 = vsub.s32 32, %v11585_v42  ;;  %v1742_v29 = vshll.u32 %v11620_v20, 23 }
 0x31d   : > { %v2435_v22 = vsel %vm2425_vm14, %v2432_v37, %v2434_v34  ;;  %v2437_v44 = vsel %vm2427_vm0, %v2423_v9, 1326507024  ;;  %v2146_v26 = vsub.s32 0, %v11657_v12  ;;  %v17015_v54 = vand.u32 2147483647, %v11211_v5 }
 0x31e   : > { %v1738_v36 = vshrl.u32 %v11560_v61, %v17014_v47  ;;  %v2438_v16 = vsel %vm2426_vm8, %v2420_v18, %v2437_v44  ;;  %v11671_v39 = vmul.u32.u64.low %v11625_v30, %v2435_v22  ;;  %v11672_v56 = vmul.u32.u64.high %v11625_v30, %v2435_v22, %v11671_v39 }
 0x31f   : > { %vm11677_vm3 = vcmp.le.f32.partialorder %v17015_v54, 0.7853982  ;;  %v17016_v61 = vmov 0  ;;  %v2060_v20 = vxor.u32 2147483648, %v2059_v46  ;;  %v2431_v4 = vsel %vm2425_vm14, %v2428_v24, %v2430_v23 }
 0x320   : > { %v17017_v61 = vsel %vm11677_vm3, 4294967295, %v17016_v61  ;;  %v2439_v57 = vsel %vm2425_vm14, %v2436_v32, %v2438_v16  ;;  %v2500_v9 = vshrl.u32 %v2499_v41, 23  ;;  %v9113_v18 = vmin.u32 %v2146_v26, %v11657_v12 }
 0x321   : > { %17018 = vst [vmem:[#allocation32_spill] sm:$0xff] %v17017_v61  ;;  %v11685_v60 = vmul.u32.u64.low %v11625_v30, %v2439_v57  ;;  %v11686_v37 = vmul.u32.u64.high %v11625_v30, %v2439_v57, %v11685_v60  ;;  %v17019_v7 = vand.u32 2147483647, %v11580_v55  ;;  %9956 = vsinq.f32 %v11531_v15 }
 0x322   : > { %v1737_v47 = vshll.u32 %v11500_v35, %v11585_v42  ;;  %v9128_v22 = vadd.s32 4294967169, %v2500_v9  ;;  %v11694_v24 = vadd.f32 %v1347_v31, %v10887_v19  ;;  %v2788_v53 = vxor.u32 2147483648, %v11555_v49 }
 0x323   : > { %v2503_v34 = vand.u32 8388607, %v17019_v7  ;;  %v1648_v41 = vsel %vm11649_vm1, %v11167_v13, %v11613_v21  ;;  %v2148_v23 = vclz %v9113_v18  ;;  %v2450_v32 = vadd.s32 1, %v11672_v56 }
 0x324   : > { %v11702_v44 = vor.u32 %v1738_v36, %v1737_v47  ;;  %v11704_v15 = vor.u32 4788187, %v1742_v29  ;;  %v2447_v42 = vmul.u32 %v11625_v30, %v2431_v4  ;;  %v2506_v35 = vadd.s32 1, %v9128_v22 }
 0x325   : > { %v2061_v26 = vsel %vm16773_vm4, %v2060_v20, %v2059_v46  ;;  %v9114_v16 = vadd.s32 4294967294, %v2148_v23  ;;  %vm2449_vm8 = vc.u32 %v11686_v37, %v11671_v39  ;;  %v2504_v31 = vor.u32 8388608, %v2503_v34  ;;  %v1349_v23 = vpop.f32.mrf.mxu1 }
 0x326   : > { %v2451_v21 = vsel %vm2449_vm8, %v2450_v32, %v11672_v56  ;;  %vm2507_vm14 = vcmp.gt.s32.totalorder %v2506_v35, 0  ;;  %v16764_v54 = vand.u32 2147483647, %v11694_v24  ;;  %v2811_v36 = vand.u32 2139095040, %v11694_v24 }
 0x327   : > { %v11717_v30 = vsel %vm2706_vm5, %v2788_v53, %v11555_v49  ;;  %9958 = vcosq.f32 %v1648_v41  ;;  %v2452_v29 = vadd.s32 %v2451_v21, %v2447_v42  ;;  %v2508_v46 = vsel %vm2507_vm14, %v2506_v35, 0 }
 0x328   : > { %9960 = vsinq.f32 %v1648_v41  ;;  %vm9115_vm0 = vcmp.lt.s32.totalorder %v9114_v16, 0  ;;  %v2510_v4 = vand.u32 31, %v2508_v46  ;;  %v1744_v56 = vand.u32 2147483647, %v11704_v15 }
 0x329   : > { %v11724_v57 = vsel %vm11677_vm3, %v11211_v5, %v2061_v26  ;;  %v11728_v9 = vadd.s32 %v11606_v1, %v11617_v25  ;;  %v2453_v49 = vadd.s32 536870912, %v2452_v29  ;;  %v11730_v60 = vshll.u32 %v2504_v31, 8 }
 0x32a   : > { %v2511_v18 = vsub.s32 32, %v2510_v4  ;;  %v2812_v7 = vshrl.u32 %v2811_v36, 23  ;;  %v11734_v34 = vand.u32 8388607, %v16764_v54  ;;  %v11736_v47 = vsel %vm9115_vm0, 0, %v9114_v16 }
 0x32b   : > { %v11738_v22 = vshrl.u32 %v2453_v49, 30  ;;  %v2513_v53 = vshll.u32 %v16981_v17, %v2510_v4  ;;  %v2516_v41 = vshll.u32 %v16975_v14, %v2510_v4  ;;  %v2519_v32 = vshll.u32 %v16976_v10, %v2510_v4 }
 0x32c   : > { %v2514_v1 = vshrl.u32 %v16975_v14, %v2511_v18  ;;  %v2517_v25 = vshrl.u32 %v16976_v10, %v2511_v18  ;;  %v2520_v15 = vshrl.u32 %v16977_v28, %v2511_v18  ;;  %v2509_v35 = vshrl.u32 %v2508_v46, 5 }
 0x32d   : > { %17020 = vst [vmem:[#allocation33_spill] sm:$0xff] %v11738_v22  ;;  %v2455_v42 = vshll.u32 %v11738_v22, 30  ;;  %v2522_v26 = vshll.u32 %v16977_v28, %v2510_v4  ;;  %v2523_v16 = vshrl.u32 %v16998_v2, %v2511_v18  ;;  %v11750_v49 = vadd.f32 %v1349_v23, %v10887_v19 }
 0x32e   : > { %v2515_v31 = vor.u32 %v2514_v1, %v2513_v53  ;;  %v2518_v21 = vor.u32 %v2517_v25, %v2516_v41  ;;  %v2521_v36 = vor.u32 %v2520_v15, %v2519_v32  ;;  %v11752_v54 = vpop.eup %9956  ;;  %v9140_v13 = vadd.s32 4294967169, %v2812_v7 }
 0x32f   : > { %v11754_v20 = vsub.s32 %v2452_v29, %v2455_v42  ;;  %v2524_v48 = vor.u32 %v2523_v16, %v2522_v26  ;;  %v2816_v61 = vor.u32 8388608, %v11734_v34  ;;  %v2156_v46 = vsub.s32 4294967266, %v11736_v47 }
 0x330   : > { %v2512_v5 = vshrl.u32 %v16981_v17, %v2511_v18  ;;  %v2525_v3 = vshll.u32 %v16998_v2, %v2510_v4  ;;  %v2526_v53 = vshrl.u32 %v16980_v38, %v2511_v18  ;;  %vm2528_vm8 = vcmp.lt.s32.totalorder %v2509_v35, 1 }
 0x331   : > { %v2458_v41 = vsub.s32 0, %v11754_v20  ;;  %vm2530_vm14 = vcmp.lt.s32.totalorder %v2509_v35, 3  ;;  %vm2531_vm0 = vcmp.lt.s32.totalorder %v2509_v35, 4  ;;  %v2536_v23 = vsel %vm2528_vm8, %v2515_v31, %v2518_v21 }
 0x332   : > { %v2527_v19 = vor.u32 %v2526_v53, %v2525_v3  ;;  %v2533_v29 = vsel %vm2531_vm0, %v2521_v36, 2102212464  ;;  %v2537_v1 = vsel %vm2531_vm0, %v2524_v48, 920167782  ;;  %vm2529_vm4 = vcmp.lt.s32.totalorder %v2509_v35, 2 }
 0x333   : > { %v9125_v7 = vmin.u32 %v2458_v41, %v11754_v20  ;;  %v2532_v34 = vsel %vm2528_vm8, %v2512_v5, %v2515_v31  ;;  %v2538_v25 = vsel %vm2530_vm14, %v2521_v36, %v2537_v1  ;;  %v2534_v4 = vsel %vm2530_vm14, %v2518_v21, %v2533_v29 }
 0x334   : > { %v11764_v32 = vpop.eup %9958  ;;  %v2539_v18 = vsel %vm2529_vm4, %v2536_v23, %v2538_v25  ;;  %v2540_v15 = vsel %vm2528_vm8, %v2518_v21, %v2521_v36  ;;  %v2541_v42 = vsel %vm2531_vm0, %v2527_v19, 1326507024  ;;  %v2152_v3 = vsub.s32 32, %v11736_v47 }
 0x335   : > { %17021 = vst [vmem:[#allocation34_spill] sm:$0xff] %v11764_v32  ;;  %v11768_v26 = vpop.eup %9960  ;;  %v11771_v16 = vadd.s32 127, %v2156_v46  ;;  %v2460_v53 = vclz %v9125_v7  ;;  %v2542_v41 = vsel %vm2530_vm14, %v2524_v48, %v2541_v42  ;;  %v2818_v29 = vadd.s32 1, %v9140_v13 }
 0x336   : > { %17022 = vst [vmem:[#allocation35_spill] sm:$0xff] %v11768_v26  ;;  %v2543_v5 = vsel %vm2529_vm4, %v2540_v15, %v2542_v41  ;;  %v11776_v31 = vmul.u32.u64.low %v11730_v60, %v2539_v18  ;;  %v11777_v1 = vmul.u32.u64.high %v11730_v60, %v2539_v18, %v11776_v31  ;;  %v2535_v21 = vsel %vm2529_vm4, %v2532_v34, %v2534_v4 }
 0x337   : > { %v9126_v23 = vadd.s32 4294967294, %v2460_v53  ;;  %v11782_v36 = vmul.u32.u64.low %v11730_v60, %v2543_v5  ;;  %v11783_v19 = vmul.u32.u64.high %v11730_v60, %v2543_v5, %v11782_v36  ;;  %v17023_v46 = vcvt.s32.f32 %v11702_v44 }
 0x338   : > { %9962 = vcosq.f32 %v11724_v57  ;;  %v2448_v48 = vadd.s32 %v11671_v39, %v11686_v37  ;;  %vm2819_vm8 = vcmp.gt.s32.totalorder %v2818_v29, 0  ;;  %v11793_v25 = vshrl.u32 %v11728_v9, %v2152_v3 }
 0x339   : > { %v11787_v7 = vmul.f32 %v17023_v46, %v1744_v56  ;;  %vm9127_vm4 = vcmp.lt.s32.totalorder %v9126_v23, 0  ;;  %v2820_v35 = vsel %vm2819_vm8, %v2818_v29, 0  ;;  %v2551_v4 = vmul.u32 %v11730_v60, %v2535_v21 }
 0x33a   : > { %v2463_v34 = vsel %vm9127_vm4, 0, %v9126_v23  ;;  %v2554_v44 = vadd.s32 1, %v11777_v1  ;;  %v2822_v56 = vand.u32 31, %v2820_v35  ;;  %v11798_v42 = vshll.u32 %v2816_v61, 8 }
 0x33b   : > { %v2464_v18 = vsub.s32 32, %v2463_v34  ;;  %v2468_v15 = vsub.s32 4294967266, %v2463_v34  ;;  %v2465_v37 = vshll.u32 %v11754_v20, %v2463_v34  ;;  %vm2553_vm14 = vc.u32 %v11783_v19, %v11776_v31 }
 0x33c   : > { %v2821_v9 = vshrl.u32 %v2820_v35, 5  ;;  %v2823_v3 = vsub.s32 32, %v2822_v56  ;;  %v2555_v60 = vsel %vm2553_vm14, %v2554_v44, %v11777_v1  ;;  %v2825_v5 = vshll.u32 %v16981_v17, %v2822_v56 }
 0x33d   : > { %v2466_v53 = vshrl.u32 %v2448_v48, %v2464_v18  ;;  %v2469_v41 = vadd.s32 127, %v2468_v15  ;;  %v2556_v29 = vadd.s32 %v2555_v60, %v2551_v4  ;;  %v2828_v61 = vshll.u32 %v16975_v14, %v2822_v56 }
 0x33e   : > { %v2826_v23 = vshrl.u32 %v16975_v14, %v2823_v3  ;;  %v2829_v21 = vshrl.u32 %v16976_v10, %v2823_v3  ;;  %v2831_v46 = vshll.u32 %v16976_v10, %v2822_v56  ;;  %v2832_v35 = vshrl.u32 %v16977_v28, %v2823_v3 }
 0x33f   : > { %v2467_v36 = vor.u32 %v2466_v53, %v2465_v37  ;;  %v2470_v20 = vshll.u32 %v2469_v41, 23  ;;  %v2557_v34 = vadd.s32 536870912, %v2556_v29  ;;  %v2834_v48 = vshll.u32 %v16977_v28, %v2822_v56 }
 0x340   : > { %v2835_v1 = vshrl.u32 %v16998_v2, %v2823_v3  ;;  %v2915_v44 = vand.u32 2139095040, %v11750_v49  ;;  %v2827_v18 = vor.u32 %v2826_v23, %v2825_v5  ;;  %v2830_v15 = vor.u32 %v2829_v21, %v2828_v61 }
 0x341   : > { %v2471_v4 = vor.u32 4788187, %v2470_v20  ;;  %v2833_v60 = vor.u32 %v2832_v35, %v2831_v46  ;;  %v11814_v13 = vshrl.u32 %v2557_v34, 30  ;;  %v2837_v37 = vshll.u32 %v16998_v2, %v2822_v56 }
 0x342   : > { %v2836_v39 = vor.u32 %v2835_v1, %v2834_v48  ;;  %v2838_v53 = vshrl.u32 %v16980_v38, %v2823_v3  ;;  %v2474_v32 = vcvt.s32.f32 %v2467_v36  ;;  %v2824_v26 = vshrl.u32 %v16981_v17, %v2823_v3 }
 0x343   : > { %v2472_v41 = vand.u32 2147483647, %v2471_v4  ;;  %vm2843_vm0 = vcmp.lt.s32.totalorder %v2821_v9, 4  ;;  %v2559_v22 = vshll.u32 %v11814_v13, 30  ;;  %vm2840_vm8 = vcmp.lt.s32.totalorder %v2821_v9, 1 }
 0x344   : > { %v2839_v55 = vor.u32 %v2838_v53, %v2837_v37  ;;  %v2845_v5 = vsel %vm2843_vm0, %v2833_v60, 2102212464  ;;  %vm2841_vm4 = vcmp.lt.s32.totalorder %v2821_v9, 2  ;;  %vm2842_vm14 = vcmp.lt.s32.totalorder %v2821_v9, 3 }
 0x345   : > { %v11821_v23 = vpop.eup %9962  ;;  %v2848_v61 = vsel %vm2840_vm8, %v2827_v18, %v2830_v15  ;;  %v2849_v56 = vsel %vm2843_vm0, %v2836_v39, 920167782  ;;  %vm16782_vm2 = vcmp.lt.s32.totalorder %v11523_v6, 0  ;;  %v11825_v21 = vsub.s32 %v2556_v29, %v2559_v22 }
 0x346   : > { %v2844_v36 = vsel %vm2840_vm8, %v2824_v26, %v2827_v18  ;;  %v2850_v3 = vsel %vm2842_vm14, %v2833_v60, %v2849_v56  ;;  %v2852_v20 = vsel %vm2840_vm8, %v2830_v15, %v2833_v60  ;;  %v2475_v46 = vmul.f32 %v2474_v32, %v2472_v41 }
 0x347   : > { %v2846_v35 = vsel %vm2842_vm14, %v2830_v15, %v2845_v5  ;;  %v2851_v34 = vsel %vm2841_vm4, %v2848_v61, %v2850_v3  ;;  %v2853_v48 = vsel %vm2843_vm0, %v2839_v55, 1326507024  ;;  %v2562_v1 = vsub.s32 0, %v11825_v21 }
 0x348   : > { %v2854_v4 = vsel %vm2842_vm14, %v2836_v39, %v2853_v48  ;;  %v11831_v37 = vmul.u32.u64.low %v11798_v42, %v2851_v34  ;;  %v11832_v53 = vmul.u32.u64.high %v11798_v42, %v2851_v34, %v11831_v37  ;;  %9964 = vsinq.f32 %v11724_v57 }
 0x349   : > { %v2855_v22 = vsel %vm2841_vm4, %v2852_v20, %v2854_v4  ;;  %v2916_v26 = vshrl.u32 %v2915_v44, 23  ;;  %v17024_v29 = vand.u32 2147483647, %v11750_v49  ;;  %v2153_v18 = vshll.u32 %v11657_v12, %v11736_v47 }
 0x34a   : > { %v9129_v55 = vmin.u32 %v2562_v1, %v11825_v21  ;;  %v11842_v15 = vmul.u32.u64.low %v11798_v42, %v2855_v22  ;;  %v11843_v39 = vmul.u32.u64.high %v11798_v42, %v2855_v22, %v11842_v15  ;;  %v2476_v60 = vxor.u32 2147483648, %v2475_v46 }
 0x34b   : > { %v2919_v32 = vand.u32 8388607, %v17024_v29  ;;  %v2847_v41 = vsel %vm2841_vm4, %v2844_v36, %v2846_v35  ;;  %v9144_v5 = vadd.s32 4294967169, %v2916_v26  ;;  %v2790_v57 = vsub.s32 4, %v11299_v8 }
 0x34c   : > { %v11848_v44 = vor.u32 %v11793_v25, %v2153_v18  ;;  %v17025_v61 = vshll.u32 %v11771_v16, 23  ;;  %v2564_v12 = vclz %v9129_v55  ;;  %v2866_v47 = vadd.s32 1, %v11832_v53 }
 0x34d   : > { %v2920_v3 = vor.u32 8388608, %v2919_v32  ;;  %v2922_v20 = vadd.s32 1, %v9144_v5  ;;  %v17026_v34 = vand.u32 2147483647, %v11104_v0  ;;  %v2791_v25 = vsel %vm2706_vm5, %v2790_v57, %v11299_v8 }
 0x34e   : > { %v11852_v56 = vor.u32 4788187, %v17025_v61  ;;  %v9130_v36 = vadd.s32 4294967294, %v2564_v12  ;;  %v2863_v16 = vmul.u32 %v11798_v42, %v2847_v41  ;;  %vm2865_vm8 = vc.u32 %v11843_v39, %v11831_v37 }
 0x34f   : > { %vm11857_vm0 = vcmp.le.f32.partialorder %v17026_v34, 0.7853982  ;;  %v11872_v48 = vsel %vm16782_vm2, %v2476_v60, %v2475_v46  ;;  %v2552_v1 = vadd.s32 %v11776_v31, %v11783_v19  ;;  %v2867_v4 = vsel %vm2865_vm8, %v2866_v47, %v11832_v53 }
 0x350   : > { %v2792_v35 = vsel %vm11857_vm0, %v11104_v0, %v11717_v30  ;;  %vm2923_vm5 = vcmp.gt.s32.totalorder %v2922_v20, 0  ;;  %vm9131_vm4 = vcmp.lt.s32.totalorder %v9130_v36, 0  ;;  %v2868_v8 = vadd.s32 %v2867_v4, %v2863_v16 }
 0x351   : > { %v2924_v42 = vsel %vm2923_vm5, %v2922_v20, 0  ;;  %v2793_v22 = vsel %vm11857_vm0, 0, %v2791_v25  ;;  %v2567_v26 = vsel %vm9131_vm4, 0, %v9130_v36  ;;  %v11879_v32 = vshll.u32 %v2920_v3, 8 }
 0x352   : > { %v2926_v29 = vand.u32 31, %v2924_v42  ;;  %9966 = vsinq.f32 %v2792_v35  ;;  %v2572_v30 = vsub.s32 4294967266, %v2567_v26  ;;  %v11882_v46 = vadd.s32 %v11831_v37, %v11843_v39 }
 0x353   : > { %v2869_v18 = vadd.s32 536870912, %v2868_v8  ;;  %9968 = vcosq.f32 %v2792_v35  ;;  %v2568_v31 = vsub.s32 32, %v2567_v26  ;;  %v2925_v19 = vshrl.u32 %v2924_v42, 5 }
 0x354   : > { %v2927_v53 = vsub.s32 32, %v2926_v29  ;;  %v2797_v55 = vadd.s32 3, %v2793_v22  ;;  %v2573_v15 = vadd.s32 127, %v2572_v30  ;;  %v2929_v41 = vshll.u32 %v16981_v17, %v2926_v29 }
 0x355   : > { %v11884_v60 = vshrl.u32 %v2869_v18, 30  ;;  %v2932_v5 = vshll.u32 %v16975_v14, %v2926_v29  ;;  %v2935_v37 = vshll.u32 %v16976_v10, %v2926_v29  ;;  %v11892_v12 = vpop.eup %9964  ;;  %v2938_v20 = vshll.u32 %v16977_v28, %v2926_v29 }
 0x356   : > { %v2930_v57 = vshrl.u32 %v16975_v14, %v2927_v53  ;;  %v2933_v61 = vshrl.u32 %v16976_v10, %v2927_v53  ;;  %v2936_v39 = vshrl.u32 %v16977_v28, %v2927_v53  ;;  %v2574_v47 = vshll.u32 %v2573_v15, 23 }
 0x357   : > { %v2871_v3 = vshll.u32 %v11884_v60, 30  ;;  %v2939_v34 = vshrl.u32 %v16998_v2, %v2927_v53  ;;  %v2569_v9 = vshll.u32 %v11825_v21, %v2567_v26  ;;  %v2570_v35 = vshrl.u32 %v2552_v1, %v2568_v31 }
 0x358   : > { %v2931_v25 = vor.u32 %v2930_v57, %v2929_v41  ;;  %v2934_v36 = vor.u32 %v2933_v61, %v2932_v5  ;;  %v2937_v16 = vor.u32 %v2936_v39, %v2935_v37  ;;  %v2928_v42 = vshrl.u32 %v16981_v17, %v2927_v53 }
 0x359   : > { %v11898_v4 = vsub.s32 %v2868_v8, %v2871_v3  ;;  %v2940_v22 = vor.u32 %v2939_v34, %v2938_v20  ;;  %v11901_v30 = vor.u32 4788187, %v2574_v47  ;;  %v2941_v18 = vshll.u32 %v16998_v2, %v2926_v29 }
 0x35a   : > { %v2942_v15 = vshrl.u32 %v16980_v38, %v2927_v53  ;;  %vm2944_vm14 = vcmp.lt.s32.totalorder %v2925_v19, 1  ;;  %vm2946_vm0 = vcmp.lt.s32.totalorder %v2925_v19, 3  ;;  %vm2947_vm8 = vcmp.lt.s32.totalorder %v2925_v19, 4 }
 0x35b   : > { %v2874_v28 = vsub.s32 0, %v11898_v4  ;;  %v2948_v21 = vsel %vm2944_vm14, %v2928_v42, %v2931_v25  ;;  %v2949_v41 = vsel %vm2947_vm8, %v2937_v16, 2102212464  ;;  %v2952_v1 = vsel %vm2944_vm14, %v2931_v25, %v2934_v36 }
 0x35c   : > { %v2943_v26 = vor.u32 %v2942_v15, %v2941_v18  ;;  %v2953_v8 = vsel %vm2947_vm8, %v2940_v22, 920167782  ;;  %vm2945_vm5 = vcmp.lt.s32.totalorder %v2925_v19, 2  ;;  %v2950_v5 = vsel %vm2946_vm0, %v2934_v36, %v2949_v41 }
 0x35d   : > { %v9141_v31 = vmin.u32 %v2874_v28, %v11898_v4  ;;  %v2954_v57 = vsel %vm2946_vm0, %v2937_v16, %v2953_v8  ;;  %v2956_v61 = vsel %vm2944_vm14, %v2934_v36, %v2937_v16  ;;  %v2686_v37 = vsub.s32 4, %v11232_v27 }
 0x35e   : > { %v2955_v29 = vsel %vm2945_vm5, %v2952_v1, %v2954_v57  ;;  %v2957_v53 = vsel %vm2947_vm8, %v2943_v26, 1326507024  ;;  %v11910_v47 = vor.u32 %v2570_v35, %v2569_v9  ;;  %v2951_v20 = vsel %vm2945_vm5, %v2948_v21, %v2950_v5 }
 0x35f   : > { %v9967_v39 = vpop.eup %9966  ;;  %v2876_v3 = vclz %v9141_v31  ;;  %v2958_v34 = vsel %vm2946_vm0, %v2940_v22, %v2957_v53  ;;  %vm2796_vm4 = vweird.f32 %v11104_v0  ;;  %v2798_v36 = vand.u32 3, %v2797_v55 }
 0x360   : > { %v9969_v28 = vpop.eup %9968  ;;  %v2959_v25 = vsel %vm2945_vm5, %v2956_v61, %v2958_v34  ;;  %v11915_v42 = vmul.u32.u64.low %v11879_v32, %v2955_v29  ;;  %v11916_v18 = vmul.u32.u64.high %v11879_v32, %v2955_v29, %v11915_v42  ;;  %v2576_v16 = vand.u32 2147483647, %v11901_v30 }
 0x361   : > { %v9142_v15 = vadd.s32 4294967294, %v2876_v3  ;;  %v11921_v9 = vmul.u32.u64.low %v11879_v32, %v2959_v25  ;;  %v11922_v35 = vmul.u32.u64.high %v11879_v32, %v2959_v25, %v11921_v9  ;;  %v2967_v19 = vmul.u32 %v11879_v32, %v2951_v20 }
 0x362   : > { %vm2799_vm14 = vcmp.lt.s32.totalorder %v2798_v36, 2  ;;  %vm2800_vm0 = vcmp.eq.s32.totalorder %v2798_v36, 0  ;;  %v2801_v22 = vxor.u32 2147483648, %v9967_v39  ;;  %vm2803_vm5 = vcmp.eq.s32.totalorder %v2798_v36, 2 }
 0x363   : > { %vm9143_vm8 = vcmp.lt.s32.totalorder %v9142_v15, 0  ;;  %v2804_v21 = vxor.u32 2147483648, %v9969_v28  ;;  %v2687_v26 = vsel %vm2602_vm12, %v2686_v37, %v11232_v27  ;;  %v2970_v41 = vadd.s32 1, %v11916_v18 }
 0x364   : > { %v2879_v55 = vsel %vm9143_vm8, 0, %v9142_v15  ;;  %v2802_v1 = vsel %vm2800_vm0, %v9969_v28, %v2801_v22  ;;  %v2689_v8 = vsel %vm11493_vm15, 0, %v2687_v26  ;;  %vm2692_vm2 = vweird.f32 %v11043_v50  ;;  %v17042_v22 = vld [vmem:[#allocation29_spill] sm:$0xff] }
 0x365   : > { %v2880_v31 = vsub.s32 32, %v2879_v55  ;;  %v2881_v32 = vshll.u32 %v11898_v4, %v2879_v55  ;;  %v2884_v5 = vsub.s32 4294967266, %v2879_v55  ;;  %v17029_v57 = vand.u32 2147483647, %v11523_v6 }
 0x366   : > { %vm2969_vm12 = vc.u32 %v11922_v35, %v11915_v42  ;;  %v2805_v27 = vsel %vm2803_vm5, %v2804_v21, %v9967_v39  ;;  %v2693_v61 = vadd.s32 3, %v2689_v8  ;;  %v2697_v40 = vxor.u32 2147483648, %v11752_v54 }
 0x367   : > { %vm11935_vm10 = vcmp.le.f32.partialorder %v17029_v57, 0.7853982  ;;  %v2882_v53 = vshrl.u32 %v11882_v46, %v2880_v31  ;;  %v2885_v37 = vadd.s32 127, %v2884_v5  ;;  %v2971_v4 = vsel %vm2969_vm12, %v2970_v41, %v11916_v18 }
 0x368   : > { %v2806_v3 = vsel %vm2799_vm14, %v2802_v1, %v2805_v27  ;;  %v2972_v20 = vadd.s32 %v2971_v4, %v2967_v19  ;;  %v2694_v28 = vand.u32 3, %v2693_v61  ;;  %v2700_v25 = vxor.u32 2147483648, %v11602_v33 }
 0x369   : > { %v2807_v34 = vsel %vm2796_vm4, nan, %v2806_v3  ;;  %v2883_v15 = vor.u32 %v2882_v53, %v2881_v32  ;;  %v2886_v9 = vshll.u32 %v2885_v37, 23  ;;  %v17032_v39 = vand.u32 2147483647, %v10957_v62 }
 0x36a   : > { %3081 = vmatprep.subr.mxu0 %v2807_v34  ;;  %v2374_v46 = vsub.s32 4, %v11132_v45  ;;  %vm2810_vm14 = vcmp.lt.s32.totalorder %v11694_v24, 0  ;;  %v2973_v18 = vadd.s32 536870912, %v2972_v20  ;;  %vm2695_vm0 = vcmp.lt.s32.totalorder %v2694_v28, 2 }
 0x36b   : > { %vm11950_vm15 = vcmp.le.f32.partialorder %v17032_v39, 0.7853982  ;;  %vm2696_vm8 = vcmp.eq.s32.totalorder %v2694_v28, 0  ;;  %vm2699_vm4 = vcmp.eq.s32.totalorder %v2694_v28, 2  ;;  %v2887_v0 = vor.u32 4788187, %v2886_v9 }
 0x36c   : > { %v2890_v36 = vcvt.s32.f32 %v2883_v15  ;;  %v2698_v19 = vsel %vm2696_vm8, %v11602_v33, %v2697_v40  ;;  %v2701_v21 = vsel %vm2699_vm4, %v2700_v25, %v11752_v54  ;;  %v11958_v26 = vshrl.u32 %v2973_v18, 30 }
 0x36d   : > { %v2702_v55 = vsel %vm2695_vm0, %v2698_v19, %v2701_v21  ;;  %v2375_v41 = vsel %vm2290_vm11, %v2374_v46, %v11132_v45  ;;  %v2376_v1 = vsel %vm11950_vm15, %v10957_v62, %v11552_v59  ;;  %v2888_v8 = vand.u32 2147483647, %v2887_v0  ;;  %v17043_v46 = vld [vmem:[#allocation12_spill] sm:$0xff] }
 0x36e   : > { %v2703_v31 = vsel %vm2692_vm2, nan, %v2702_v55  ;;  %v2377_v33 = vsel %vm11950_vm15, 0, %v2375_v41  ;;  %9970 = vcosq.f32 %v2376_v1  ;;  %v2160_v54 = vand.u32 2147483647, %v11852_v56  ;;  %v17044_v19 = vld [vmem:[#allocation28_spill] sm:$0xff]  ;;  %v17045_v41 = vld [vmem:[#allocation9_spill] sm:$0xff] }
 0x36f   : > { %v2578_v32 = vcvt.s32.f32 %v11910_v47  ;;  %v2975_v5 = vshll.u32 %v11958_v26, 30  ;;  %3082 = vmatpush1.msra.mxu0 %v2703_v31  ;;  %9972 = vsinq.f32 %v2376_v1  ;;  %v2162_v45 = vcvt.s32.f32 %v11848_v44 }
 0x370   : > { %v11979_v50 = vsel %vm11935_vm10, %v11523_v6, %v11872_v48  ;;  %v2891_v59 = vmul.f32 %v2890_v36, %v2888_v8  ;;  %v2270_v57 = vsub.s32 4, %v11064_v11  ;;  %v2381_v27 = vadd.s32 3, %v2377_v33 }
 0x371   : > { %v11984_v56 = vmul.f32 %v2578_v32, %v2576_v16  ;;  %v11986_v47 = vsub.s32 %v2972_v20, %v2975_v5  ;;  %v17035_v61 = vand.u32 2147483647, %v10783_v58  ;;  %v1958_v53 = vsub.s32 4, %v10984_v52 }
 0x372   : > { %v2892_v40 = vxor.u32 2147483648, %v2891_v59  ;;  %v2271_v48 = vsel %vm2186_vm13, %v2270_v57, %v11064_v11  ;;  %v12002_v16 = vmul.f32 %v2162_v45, %v2160_v54  ;;  %9974 = vcosq.f32 %v11979_v50 }
 0x373   : > { %vm11990_vm2 = vcmp.le.f32.partialorder %v17035_v61, 0.7853982  ;;  %v17038_v37 = vand.u32 2147483647, %v11694_v24  ;;  %v2978_v3 = vsub.s32 0, %v11986_v47  ;;  %v2273_v20 = vsel %vm11323_vm6, 0, %v2271_v48 }
 0x374   : > { %v1960_v30 = vsel %vm11990_vm2, %v10783_v58, %v11546_v51  ;;  %v2893_v11 = vsel %vm2810_vm14, %v2892_v40, %v2891_v59  ;;  %vm17041_vm13 = vcmp.lt.s32.totalorder %v10783_v58, 0  ;;  %v2382_v28 = vand.u32 3, %v2381_v27 }
 0x375   : > { %vm12007_vm11 = vcmp.le.f32.partialorder %v17038_v37, 0.7853982  ;;  %v1959_v51 = vsel %vm17041_vm13, %v1958_v53, %v10984_v52  ;;  %9976 = vcosq.f32 %v1960_v30  ;;  %v9145_v34 = vmin.u32 %v2978_v3, %v11986_v47 }
 0x376   : > { %v2277_v25 = vadd.s32 3, %v2273_v20  ;;  %v1961_v15 = vsel %vm11990_vm2, 0, %v1959_v51  ;;  %v2580_v9 = vxor.u32 2147483648, %v11984_v56  ;;  %v2968_v39 = vadd.s32 %v11915_v42, %v11922_v35  ;;  %v17048_v20 = vld [vmem:[#allocation11_spill] sm:$0xff] }
 0x377   : > { %v2281_v63 = vxor.u32 2147483648, %v17042_v22  ;;  %v1854_v18 = vsub.s32 4, %v17043_v46  ;;  %v2896_v52 = vsel %vm12007_vm11, %v11694_v24, %v2893_v11  ;;  %v2980_v0 = vclz %v9145_v34 }
 0x378   : > { %v2278_v36 = vand.u32 3, %v2277_v25  ;;  %v2284_v21 = vxor.u32 2147483648, %v17044_v19  ;;  %vm2380_vm6 = vweird.f32 %v10957_v62  ;;  %9978 = vsinq.f32 %v1960_v30 }
 0x379   : > { %v1965_v55 = vadd.s32 3, %v1961_v15  ;;  %vm17046_vm5 = vcmp.lt.s32.totalorder %v17045_v41, 0  ;;  %v9146_v35 = vadd.s32 4294967294, %v2980_v0  ;;  %vm2383_vm12 = vcmp.lt.s32.totalorder %v2382_v28, 2  ;;  %v17049_v15 = vld [vmem:[#allocation23_spill] sm:$0xff] }
 0x37a   : > { %v1855_v42 = vsel %vm17046_vm5, %v1854_v18, %v17043_v46  ;;  %vm2384_vm15 = vcmp.eq.s32.totalorder %v2382_v28, 0  ;;  %vm2276_vm0 = vweird.f32 %v10917_v43  ;;  %9980 = vcosq.f32 %v2896_v52 }
 0x37b   : > { %vm2387_vm8 = vcmp.eq.s32.totalorder %v2382_v28, 2  ;;  %vm2280_vm4 = vcmp.eq.s32.totalorder %v2278_v36, 0  ;;  %vm2283_vm2 = vcmp.eq.s32.totalorder %v2278_v36, 2  ;;  %v9971_v1 = vpop.eup %9970  ;;  %vm9147_vm13 = vcmp.lt.s32.totalorder %v9146_v35, 0 }
 0x37c   : > { %v2282_v8 = vsel %vm2280_vm4, %v17044_v19, %v2281_v63  ;;  %v2285_v31 = vsel %vm2283_vm2, %v2284_v21, %v17042_v22  ;;  %v1857_v54 = vsel %vm11153_vm9, 0, %v1855_v42  ;;  %v9973_v32 = vpop.eup %9972  ;;  %v2983_v5 = vsel %vm9147_vm13, 0, %v9146_v35  ;;  %v17050_v63 = vld [vmem:[#allocation22_spill] sm:$0xff]  ;;  %v17056_v42 = vld [vmem:[#allocation20_spill] sm:$0xff]  ;;  %v17064_v21 = vld [vmem:[#allocation27_spill] sm:$0xff] }
 0x37d   : > { %v2388_v45 = vxor.u32 2147483648, %v9971_v1  ;;  %v1966_v59 = vand.u32 3, %v1965_v55  ;;  %v1861_v57 = vadd.s32 3, %v1857_v54  ;;  %v2984_v27 = vsub.s32 32, %v2983_v5 }
 0x37e   : > { %v2988_v61 = vsub.s32 4294967266, %v2983_v5  ;;  %v2385_v44 = vxor.u32 2147483648, %v9973_v32  ;;  %vm2279_vm5 = vcmp.lt.s32.totalorder %v2278_v36, 2  ;;  %v2985_v40 = vshll.u32 %v11986_v47, %v2983_v5  ;;  %v17051_v36 = vld [vmem:[#allocation8_spill] sm:$0xff] }
 0x37f   : > { %v2389_v48 = vsel %vm2387_vm8, %v2388_v45, %v9973_v32  ;;  %v2286_v53 = vsel %vm2279_vm5, %v2282_v8, %v2285_v31  ;;  %v1862_v30 = vand.u32 3, %v1861_v57  ;;  %v2986_v37 = vshrl.u32 %v2968_v39, %v2984_v27  ;;  %v12044_v34 = vpop.eup %9974  ;;  %v17057_v32 = vld [vmem:[#allocation10_spill] sm:$0xff] }
 0x380   : > { %v2989_v3 = vadd.s32 127, %v2988_v61  ;;  %v2386_v11 = vsel %vm2384_vm15, %v9971_v1, %v2385_v44  ;;  %v1542_v51 = vsub.s32 4, %v17048_v20  ;;  %9982 = vsinq.f32 %v2896_v52 }
 0x381   : > { %v2390_v25 = vsel %vm2383_vm12, %v2386_v11, %v2389_v48  ;;  %v1865_v22 = vxor.u32 2147483648, %v17049_v15  ;;  %v1868_v46 = vxor.u32 2147483648, %v17050_v63  ;;  %v2987_v18 = vor.u32 %v2986_v37, %v2985_v40  ;;  %v17058_v48 = vld [vmem:[#allocation7_spill] sm:$0xff] }
 0x382   : > { %v9977_v47 = vpop.eup %9976  ;;  %v2990_v0 = vshll.u32 %v2989_v3, 23  ;;  %v2391_v39 = vsel %vm2380_vm6, nan, %v2390_v25  ;;  %v17052_v19 = vand.u32 2147483647, %v17051_v36  ;;  %vm2914_vm15 = vcmp.lt.s32.totalorder %v11750_v49, 0 }
 0x383   : > { %3083 = vmatprep.subr.mxu0 %v2391_v39  ;;  %v2287_v28 = vsel %vm2276_vm0, nan, %v2286_v53  ;;  %v1972_v52 = vxor.u32 2147483648, %v9977_v47  ;;  %vm17055_vm12 = vcmp.lt.s32.totalorder %v17051_v36, 0  ;;  %vm1971_vm6 = vcmp.eq.s32.totalorder %v1966_v59, 2 }
 0x384   : > { %vm12053_vm9 = vcmp.le.f32.partialorder %v17052_v19, 0.7853982  ;;  %v1543_v55 = vsel %vm17055_vm12, %v1542_v51, %v17048_v20  ;;  %v2991_v35 = vor.u32 4788187, %v2990_v0  ;;  %3084 = vmatpush1.msra.mxu0 %v2287_v28  ;;  %vm1864_vm8 = vcmp.eq.s32.totalorder %v1862_v30, 0 }
 0x385   : > { %v1544_v62 = vsel %vm12053_vm9, %v17051_v36, %v17056_v42  ;;  %vm1867_vm4 = vcmp.eq.s32.totalorder %v1862_v30, 2  ;;  %v1866_v1 = vsel %vm1864_vm8, %v17050_v63, %v1865_v22  ;;  %v1545_v8 = vsel %vm12053_vm9, 0, %v1543_v55  ;;  %v9979_v31 = vpop.eup %9978  ;;  %v17067_v42 = vld [vmem:[#allocation14_spill] sm:$0xff] }
 0x386   : > { %v1869_v43 = vsel %vm1867_vm4, %v1868_v46, %v17049_v15  ;;  %9984 = vcosq.f32 %v1544_v62  ;;  %v2992_v33 = vand.u32 2147483647, %v2991_v35  ;;  %v2994_v54 = vcvt.s32.f32 %v2987_v18 }
 0x387   : > { %9986 = vsinq.f32 %v1544_v62  ;;  %v1438_v5 = vsub.s32 4, %v17057_v32  ;;  %vm1968_vm0 = vcmp.eq.s32.totalorder %v1966_v59, 0  ;;  %v1969_v45 = vxor.u32 2147483648, %v9979_v31  ;;  %v12072_v27 = vpop.eup %9980 }
 0x388   : > { %v1973_v57 = vsel %vm1971_vm6, %v1972_v52, %v9979_v31  ;;  %vm1863_vm2 = vcmp.lt.s32.totalorder %v1862_v30, 2  ;;  %v2995_v61 = vmul.f32 %v2994_v54, %v2992_v33  ;;  %v1549_v40 = vadd.s32 3, %v1545_v8  ;;  %v17065_v52 = vld [vmem:[#allocation24_spill] sm:$0xff] }
 0x389   : > { %v1870_v44 = vsel %vm1863_vm2, %v1866_v1, %v1869_v43  ;;  %vm17059_vm13 = vcmp.lt.s32.totalorder %v17058_v48, 0  ;;  %vm1964_vm5 = vweird.f32 %v10783_v58  ;;  %vm1967_vm9 = vcmp.lt.s32.totalorder %v1966_v59, 2 }
 0x38a   : > { %v1439_v53 = vsel %vm17059_vm13, %v1438_v5, %v17057_v32  ;;  %v1970_v37 = vsel %vm1968_vm0, %v9977_v47, %v1969_v45  ;;  %vm1860_vm12 = vweird.f32 %v17045_v41  ;;  %v2996_v3 = vxor.u32 2147483648, %v2995_v61 }
 0x38b   : > { %v1974_v11 = vsel %vm1967_vm9, %v1970_v37, %v1973_v57  ;;  %v1441_v30 = vsel %vm11002_vm7, 0, %v1439_v53  ;;  %v2998_v51 = vsub.s32 4, %v11958_v26  ;;  %v1871_v15 = vsel %vm1860_vm12, nan, %v1870_v44  ;;  %v17071_v44 = vld [vmem:[#allocation33_spill] sm:$0xff] }
 0x38c   : > { %v1975_v25 = vsel %vm1964_vm5, nan, %v1974_v11  ;;  %v1445_v22 = vadd.s32 3, %v1441_v30  ;;  %v2894_v63 = vsub.s32 4, %v11884_v60  ;;  %v2997_v46 = vsel %vm2914_vm15, %v2996_v3, %v2995_v61 }
 0x38d   : > { %3085 = vmatprep.subr.mxu0 %v1975_v25  ;;  %v1550_v58 = vand.u32 3, %v1549_v40  ;;  %v17061_v59 = vand.u32 2147483647, %v11750_v49  ;;  %v2999_v47 = vsel %vm2914_vm15, %v2998_v51, %v11958_v26  ;;  %v1748_v18 = vxor.u32 2147483648, %v11787_v7  ;;  %v12102_v19 = vpop.eup %9982 }
 0x38e   : > { %9988 = vsinq.f32 %v11979_v50  ;;  %3086 = vmatpush1.msra.mxu0 %v1871_v15  ;;  %v2895_v39 = vsel %vm2810_vm14, %v2894_v63, %v11884_v60  ;;  %vm2498_vm7 = vcmp.lt.s32.totalorder %v17064_v21, 0  ;;  %v1446_v28 = vand.u32 3, %v1445_v22  ;;  %v17066_v50 = vld [vmem:[#allocation19_spill] sm:$0xff]  ;;  %v17073_v22 = vld [vmem:[#allocation17_spill] sm:$0xff] }
 0x38f   : > { %vm12087_vm6 = vcmp.le.f32.partialorder %v17061_v59, 0.7853982  ;;  %vm2082_vm15 = vcmp.lt.s32.totalorder %v17065_v52, 0  ;;  %v1449_v55 = vxor.u32 2147483648, %v17066_v50  ;;  %v1452_v62 = vxor.u32 2147483648, %v17067_v42 }
 0x390   : > { %v3000_v0 = vsel %vm12087_vm6, %v11750_v49, %v2997_v46  ;;  %v3001_v26 = vsel %vm12087_vm6, 0, %v2999_v47  ;;  %v2897_v35 = vsel %vm12007_vm11, 0, %v2895_v39  ;;  %v2164_v60 = vxor.u32 2147483648, %v12002_v16 }
 0x391   : > { %9990 = vcosq.f32 %v3000_v0  ;;  %v2581_v1 = vsel %vm2498_vm7, %v2580_v9, %v11984_v56  ;;  %vm1548_vm14 = vweird.f32 %v17051_v36  ;;  %vm1551_vm8 = vcmp.lt.s32.totalorder %v1550_v58, 2 }
 0x392   : > { %9992 = vsinq.f32 %v3000_v0  ;;  %vm1552_vm4 = vcmp.eq.s32.totalorder %v1550_v58, 0  ;;  %vm1555_vm0 = vcmp.eq.s32.totalorder %v1550_v58, 2  ;;  %v3005_v43 = vadd.s32 3, %v3001_v26  ;;  %v12155_v58 = vld [vmem:[%s16700_s3] sm:$0xff] }
 0x393   : > { %v2582_v8 = vsub.s32 4, %v11814_v13  ;;  %v9985_v31 = vpop.eup %9984  ;;  %vm1448_vm2 = vcmp.eq.s32.totalorder %v1446_v28, 0  ;;  %vm1451_vm13 = vcmp.eq.s32.totalorder %v1446_v28, 2  ;;  %v2901_v4 = vadd.s32 3, %v2897_v35 }
 0x394   : > { %v17068_v33 = vand.u32 2147483647, %v17064_v21  ;;  %v9987_v32 = vpop.eup %9986  ;;  %v1556_v56 = vxor.u32 2147483648, %v9985_v31  ;;  %v1450_v9 = vsel %vm1448_vm2, %v17067_v42, %v1449_v55  ;;  %v1453_v5 = vsel %vm1451_vm13, %v1452_v62, %v17066_v50  ;;  %v12176_v62 = vld [vmem:[%s16700_s3 + $0x8] sm:$0xff] }
 0x395   : > { %v1553_v57 = vxor.u32 2147483648, %v9987_v32  ;;  %v2583_v61 = vsel %vm2498_vm7, %v2582_v8, %v11814_v13  ;;  %v2478_v40 = vsub.s32 4, %v17071_v44  ;;  %vm1447_vm5 = vcmp.lt.s32.totalorder %v1446_v28, 2  ;;  %v17081_v8 = vld [vmem:[#allocation18_spill] sm:$0xff]  ;;  %v17091_v50 = vld [vmem:[#allocation21_spill] sm:$0xff] }
 0x396   : > { %vm12122_vm11 = vcmp.le.f32.partialorder %v17068_v33, 0.7853982  ;;  %v1557_v53 = vsel %vm1555_vm0, %v1556_v56, %v9987_v32  ;;  %v2905_v37 = vxor.u32 2147483648, %v12102_v19  ;;  %v2908_v3 = vxor.u32 2147483648, %v12072_v27 }
 0x397   : > { %v2584_v45 = vsel %vm12122_vm11, %v17064_v21, %v2581_v1  ;;  %v1554_v11 = vsel %vm1552_vm4, %v9985_v31, %v1553_v57  ;;  %v1454_v20 = vsel %vm1447_vm5, %v1450_v9, %v1453_v5  ;;  %v2902_v30 = vand.u32 3, %v2901_v4  ;;  %v12193_v5 = vld [vmem:[%s16700_s3 + $0x10] sm:$0xff] }
 0x398   : > { %9994 = vcosq.f32 %v2584_v45  ;;  %v1558_v51 = vsel %vm1551_vm8, %v1554_v11, %v1557_v53  ;;  %v3006_v25 = vand.u32 3, %v3005_v43  ;;  %v2585_v13 = vsel %vm12122_vm11, 0, %v2583_v61 }
 0x399   : > { %9996 = vsinq.f32 %v2584_v45  ;;  %vm17072_vm9 = vcmp.lt.s32.totalorder %v11523_v6, 0  ;;  %vm1666_vm12 = vcmp.lt.s32.totalorder %v17073_v22, 0  ;;  %v2165_v63 = vsel %vm2082_vm15, %v2164_v60, %v12002_v16  ;;  %v17080_v60 = vld [vmem:[#allocation30_spill] sm:$0xff] }
 0x39a   : > { %v2479_v15 = vsel %vm17072_vm9, %v2478_v40, %v17071_v44  ;;  %v1559_v46 = vsel %vm1548_vm14, nan, %v1558_v51  ;;  %vm1444_vm6 = vweird.f32 %v17058_v48  ;;  %vm3004_vm7 = vweird.f32 %v11750_v49  ;;  %v17074_v48 = vld [vmem:[#allocation26_spill] sm:$0xff] }
 0x39b   : > { %v2481_v59 = vsel %vm11935_vm10, 0, %v2479_v15  ;;  %3087 = vmatprep.subr.mxu0 %v1559_v46  ;;  %v1455_v41 = vsel %vm1444_vm6, nan, %v1454_v20  ;;  %vm2900_vm8 = vweird.f32 %v11694_v24  ;;  %v9989_v47 = vpop.eup %9988  ;;  %vm2904_vm14 = vcmp.eq.s32.totalorder %v2902_v30, 0  ;;  %v17089_v15 = vld [vmem:[#allocation25_spill] sm:$0xff] }
 0x39c   : > { %v2485_v16 = vadd.s32 3, %v2481_v59  ;;  %3088 = vmatpush1.msra.mxu0 %v1455_v41  ;;  %vm2907_vm4 = vcmp.eq.s32.totalorder %v2902_v30, 2  ;;  %v2589_v36 = vadd.s32 3, %v2585_v13  ;;  %v2062_v0 = vsub.s32 4, %v17074_v48 }
 0x39d   : > { %vm17075_vm0 = vcmask 261120   ;;  %vm3008_vm2 = vcmp.eq.s32.totalorder %v3006_v25, 0  ;;  %v2906_v29 = vsel %vm2904_vm14, %v12072_v27, %v2905_v37  ;;  %v2909_v28 = vsel %vm2907_vm4, %v2908_v3, %v12102_v19 }
 0x39e   : > { %v9991_v39 = vpop.eup %9990  ;;  %9152 = vmatmul.mubr.msk.f32.vlgmr.msra.gmra.mxu0 %vm17075_vm0, %v12155_v58  ;;  %v17076_v26 = vand.u32 2147483647, %v17065_v52  ;;  %v17079_v42 = vmov 0.0   ;;  %vm3011_vm13 = vcmp.eq.s32.totalorder %v3006_v25, 2  ;;  %v2166_v27 = vsub.s32 4, %v17080_v60  ;;  %vm17083_vm9 = vmmov %vm17075_vm0 }
 0x39f   : > { %v9993_v55 = vpop.eup %9992  ;;  %3127 = vmatprep.mubr.f32.mxu0 %v17079_v42  ;;  %v3012_v35 = vxor.u32 2147483648, %v9991_v39  ;;  %vm2903_vm11 = vcmp.lt.s32.totalorder %v2902_v30, 2  ;;  %v2486_v43 = vand.u32 3, %v2485_v16  ;;  %vm17082_vm5 = vcmp.lt.s32.totalorder %v17081_v8, 0  ;;  %vm17085_vm4 = vmmov %vm17075_vm0 }
 0x3a0   : > { %vm12168_vm10 = vcmp.le.f32.partialorder %v17076_v26, 0.7853982  ;;  %v3009_v1 = vxor.u32 2147483648, %v9993_v55  ;;  %v2063_v31 = vsel %vm17082_vm5, %v2062_v0, %v17074_v48  ;;  %v2910_v33 = vsel %vm2903_vm11, %v2906_v29, %v2909_v28 }
 0x3a1   : > { %v2168_v19 = vsel %vm12168_vm10, %v17065_v52, %v2165_v63  ;;  %v3013_v4 = vsel %vm3011_vm13, %v3012_v35, %v9993_v55  ;;  %v2590_v54 = vand.u32 3, %v2589_v36  ;;  %v2489_v32 = vxor.u32 2147483648, %v9989_v47  ;;  %v17092_v35 = vld [vmem:[#allocation16_spill] sm:$0xff] }
 0x3a2   : > { %9153 = vmatmul.mubr.msk.f32.gmra.mxu0 %vm17083_vm9, %v12176_v62  ;;  %vm3007_vm6 = vcmp.lt.s32.totalorder %v3006_v25, 2  ;;  %v3010_v56 = vsel %vm3008_vm2, %v9991_v39, %v3009_v1  ;;  %v2492_v9 = vxor.u32 2147483648, %v12044_v34  ;;  %9998 = vcosq.f32 %v2168_v19 }
 0x3a3   : > { %3133 = vmatprep.mubr.f32.mxu0 %v17079_v42  ;;  %v3014_v45 = vsel %vm3007_vm6, %v3010_v56, %v3013_v4  ;;  %v2167_v57 = vsel %vm2082_vm15, %v2166_v27, %v17080_v60  ;;  %10000 = vsinq.f32 %v2168_v19  ;;  %v2065_v44 = vsel %vm11677_vm3, 0, %v2063_v31 }
 0x3a4   : > { %v1749_v53 = vsel %vm1666_vm12, %v1748_v18, %v11787_v7  ;;  %v3015_v37 = vsel %vm3004_vm7, nan, %v3014_v45  ;;  %v2911_v3 = vsel %vm2900_vm8, nan, %v2910_v33  ;;  %vm2488_vm14 = vcmp.eq.s32.totalorder %v2486_v43, 0 }
 0x3a5   : > { %v9995_v40 = vpop.eup %9994  ;;  %3170 = vmatprep.subr.mxu1 %v3015_v37  ;;  %vm2595_vm15 = vcmp.eq.s32.totalorder %v2590_v54, 2  ;;  %v2490_v20 = vsel %vm2488_vm14, %v12044_v34, %v2489_v32  ;;  %vm2491_vm3 = vcmp.eq.s32.totalorder %v2486_v43, 2  ;;  %v2169_v49 = vsel %vm12168_vm10, 0, %v2167_v57  ;;  %v12224_v34 = vld [vmem:[%s16700_s3 + $0x18] sm:$0xff]  ;;  %vm17090_vm10 = vmmov %vm17085_vm4 }
 0x3a6   : > { %v2596_v11 = vxor.u32 2147483648, %v9995_v40  ;;  %v9997_v30 = vpop.eup %9996  ;;  %9154 = vmatmul.mubr.msk.f32.gmra.mxu0 %vm17085_vm4, %v12193_v5  ;;  %3171 = vmatpush1.msra.mxu1 %v2911_v3  ;;  %v2493_v51 = vsel %vm2491_vm3, %v2492_v9, %v9989_v47  ;;  %v2069_v7 = vadd.s32 3, %v2065_v44  ;;  %v17086_v24 = vand.u32 2147483647, %v17073_v22 }
 0x3a7   : > { %3139 = vmatprep.mubr.f32.mxu0 %v17079_v42  ;;  %v2593_v25 = vxor.u32 2147483648, %v9997_v30  ;;  %v1750_v63 = vsub.s32 4, %v17089_v15  ;;  %vm2591_vm8 = vcmp.lt.s32.totalorder %v2590_v54, 2  ;;  %vm2592_vm0 = vcmp.eq.s32.totalorder %v2590_v54, 0 }
 0x3a8   : > { %vm12216_vm7 = vcmp.le.f32.partialorder %v17086_v24, 0.7853982  ;;  %v2597_v13 = vsel %vm2595_vm15, %v2596_v11, %v9997_v30  ;;  %vm2487_vm2 = vcmp.lt.s32.totalorder %v2486_v43, 2  ;;  %v2173_v16 = vadd.s32 3, %v2169_v49 }
 0x3a9   : > { %v1752_v46 = vsel %vm12216_vm7, %v17073_v22, %v1749_v53  ;;  %v2594_v59 = vsel %vm2592_vm0, %v9995_v40, %v2593_v25  ;;  %v2494_v41 = vsel %vm2487_vm2, %v2490_v20, %v2493_v51  ;;  %v1751_v47 = vsel %vm1666_vm12, %v1750_v63, %v17089_v15 }
 0x3aa   : > { %10002 = vcosq.f32 %v1752_v46  ;;  %9155 = vmatmul.mubr.msk.f32.gmra.mxu0 %vm17090_vm10, %v12224_v34  ;;  %vm2588_vm13 = vweird.f32 %v17064_v21  ;;  %v2598_v36 = vsel %vm2591_vm8, %v2594_v59, %v2597_v13  ;;  %v2070_v48 = vand.u32 3, %v2069_v7 }
 0x3ab   : > { %10004 = vsinq.f32 %v1752_v46  ;;  %v2599_v0 = vsel %vm2588_vm13, nan, %v2598_v36  ;;  %vm2484_vm11 = vweird.f32 %v11523_v6  ;;  %v2073_v39 = vxor.u32 2147483648, %v11892_v12  ;;  %5005 = vmatprep.mubr.f32.mxu0 %v17079_v42 }
 0x3ac   : > { %v2076_v29 = vxor.u32 2147483648, %v11821_v23  ;;  %3172 = vmatprep.subr.mxu1 %v2599_v0  ;;  %v2495_v28 = vsel %vm2484_vm11, nan, %v2494_v41  ;;  %v1753_v26 = vsel %vm12216_vm7, 0, %v1751_v47  ;;  %v1646_v55 = vsub.s32 4, %v17091_v50 }
 0x3ad   : > { %3173 = vmatpush1.msra.mxu1 %v2495_v28  ;;  %v2174_v21 = vand.u32 3, %v2173_v16  ;;  %vm2072_vm12 = vcmp.eq.s32.totalorder %v2070_v48, 0  ;;  %vm2075_vm5 = vcmp.eq.s32.totalorder %v2070_v48, 2  ;;  %vm17093_vm9 = vcmp.lt.s32.totalorder %v17092_v35, 0 }
 0x3ae   : > { %v1647_v6 = vsel %vm17093_vm9, %v1646_v55, %v17091_v50  ;;  %v2074_v27 = vsel %vm2072_vm12, %v11821_v23, %v2073_v39  ;;  %v2077_v19 = vsel %vm2075_vm5, %v2076_v29, %v11892_v12  ;;  %v1757_v1 = vadd.s32 3, %v1753_v26  ;;  %v17095_v23 = vld [vmem:[#allocation35_spill] sm:$0xff]  ;;  %v17096_v12 = vld [vmem:[#allocation34_spill] sm:$0xff] }
 0x3af   : > { %v9999_v60 = vpop.eup %9998  ;;  %v1649_v31 = vsel %vm11649_vm1, 0, %v1647_v6  ;;  %vm2175_vm6 = vcmp.lt.s32.totalorder %v2174_v21, 2  ;;  %vm2179_vm14 = vcmp.eq.s32.totalorder %v2174_v21, 2  ;;  %vm2071_vm15 = vcmp.lt.s32.totalorder %v2070_v48, 2 }
 0x3b0   : > { %v10001_v4 = vpop.eup %10000  ;;  %v2180_v33 = vxor.u32 2147483648, %v9999_v60  ;;  %v1653_v54 = vadd.s32 3, %v1649_v31  ;;  %vm2176_vm3 = vcmp.eq.s32.totalorder %v2174_v21, 0  ;;  %v2078_v9 = vsel %vm2071_vm15, %v2074_v27, %v2077_v19 }
 0x3b1   : > { %v2177_v32 = vxor.u32 2147483648, %v10001_v4  ;;  %v1758_v61 = vand.u32 3, %v1757_v1  ;;  %v1657_v44 = vxor.u32 2147483648, %v17095_v23  ;;  %v1660_v40 = vxor.u32 2147483648, %v17096_v12 }
 0x3b2   : > { %v2181_v56 = vsel %vm2179_vm14, %v2180_v33, %v10001_v4  ;;  %v1654_v45 = vand.u32 3, %v1653_v54  ;;  %vm2172_vm4 = vweird.f32 %v17065_v52  ;;  %vm2068_vm1 = vweird.f32 %v17081_v8 }
 0x3b3   : > { %v2178_v57 = vsel %vm2176_vm3, %v9999_v60, %v2177_v32  ;;  %v2079_v11 = vsel %vm2068_vm1, nan, %v2078_v9  ;;  %vm1763_vm0 = vcmp.eq.s32.totalorder %v1758_v61, 2  ;;  %vm1760_vm2 = vcmp.eq.s32.totalorder %v1758_v61, 0 }
 0x3b4   : > { %v2182_v53 = vsel %vm2175_vm6, %v2178_v57, %v2181_v56  ;;  %vm1656_vm7 = vcmp.eq.s32.totalorder %v1654_v45, 0  ;;  %vm1659_vm8 = vcmp.eq.s32.totalorder %v1654_v45, 2  ;;  %vm1655_vm10 = vcmp.lt.s32.totalorder %v1654_v45, 2 }
 0x3b5   : > { %v2183_v3 = vsel %vm2172_vm4, nan, %v2182_v53  ;;  %v1658_v51 = vsel %vm1656_vm7, %v17096_v12, %v1657_v44  ;;  %v1661_v49 = vsel %vm1659_vm8, %v1660_v40, %v17095_v23  ;;  %vm1759_vm13 = vcmp.lt.s32.totalorder %v1758_v61, 2 }
 0x3b6   : > { %3174 = vmatprep.subr.mxu1 %v2183_v3  ;;  %v1662_v18 = vsel %vm1655_vm10, %v1658_v51, %v1661_v49  ;;  %vm1756_vm11 = vweird.f32 %v17073_v22  ;;  %vm1652_vm12 = vweird.f32 %v17092_v35  ;;  %vm17097_vm5 = vcmask 261120   ;;  %v12270_v22 = vpop.permute.xlu1 %3037 }
 0x3b7   : > { %v10003_v37 = vpop.eup %10002  ;;  %3175 = vmatpush1.msra.mxu1 %v2079_v11  ;;  %v1663_v13 = vsel %vm1652_vm12, nan, %v1662_v18  ;;  %vm17098_vm9 = vmmov %vm17097_vm5  ;;  %v17104_v44 = vmov 2102212464  }
 0x3b8   : > { %v1764_v20 = vxor.u32 2147483648, %v10003_v37  ;;  %v10005_v30 = vpop.eup %10004  ;;  %vm17099_vm6 = vmmov %vm17097_vm5 }
 0x3b9   : > { %v1761_v7 = vxor.u32 2147483648, %v10005_v30  ;;  %vm17100_vm14 = vmmov %vm17097_vm5 }
 0x3ba   : > { %v1765_v24 = vsel %vm1763_vm0, %v1764_v20, %v10005_v30  ;;  %v12274_v15 = vpop.permute.xlu1 %3027 }
 0x3bb   : > { %v1762_v52 = vsel %vm1760_vm2, %v10003_v37, %v1761_v7 }
 0x3bc   : > { %v1766_v8 = vsel %vm1759_vm13, %v1762_v52, %v1765_v24 }
 0x3bd   : > { %v1767_v25 = vsel %vm1756_vm11, nan, %v1766_v8 }
 0x3be   : > { %3176 = vmatprep.subr.mxu1 %v1767_v25 }
 0x3bf   : > { %3177 = vmatpush1.msra.mxu1 %v1663_v13 }
 0x3c0   : > { %9156 = vmatmul.mubr.msk.f32.vlgmr.msra.gmra.mxu1 %vm17097_vm5, %v12155_v58  ;;  %v12272_v58 = vpop.permute.xlu0 %3042 }
 0x3c1   : > { %3216 = vmatprep.mubr.f32.mxu1 %v17079_v42 }
 0x3c4   : > { %9157 = vmatmul.mubr.msk.f32.gmra.mxu1 %vm17098_vm9, %v12176_v62  ;;  %v12284_v16 = vpop.permute.xlu0 %3032 }
 0x3c5   : > { %3222 = vmatprep.mubr.f32.mxu1 %v17079_v42 }
 0x3c8   : > { %9158 = vmatmul.mubr.msk.f32.gmra.mxu1 %vm17099_vm6, %v12193_v5 }
 0x3c9   : > { %3228 = vmatprep.mubr.f32.mxu1 %v17079_v42 }
 0x3cc   : > { %9159 = vmatmul.mubr.msk.f32.gmra.mxu1 %vm17100_vm14, %v12224_v34 }
 0x3cd   : > { %5094 = vmatprep.mubr.f32.mxu1 %v17079_v42 }
 0x45e   : > { %v3123_v63 = vpop.f32.mrf.mxu0 }
 0x45f   : > { %v12277_v62 = vadd.f32 %v3123_v63, %v12274_v15 }
 0x460   : > { %v3125_v46 = vpop.f32.mrf.mxu0 }
 0x461   : > { %17101 = vst [vmem:[#allocation29_spill] sm:$0xff] %v12277_v62  ;;  %v3235_v5 = vand.u32 2147483647, %v12277_v62  ;;  %v3238_v59 = vand.u32 2139095040, %v12277_v62  ;;  %v12282_v41 = vadd.f32 %v3125_v46, %v12274_v15 }
 0x462   : > { %v3129_v34 = vpop.f32.mrf.mxu0 }
 0x463   : > { %17102 = vst [vmem:[#allocation12_spill] sm:$0xff] %v12282_v41  ;;  %v3239_v47 = vshrl.u32 %v3238_v59, 23  ;;  %v3242_v36 = vand.u32 8388607, %v3235_v5  ;;  %v16784_v48 = vand.u32 2147483647, %v12282_v41  ;;  %v12291_v39 = vadd.f32 %v3129_v34, %v12284_v16 }
 0x464   : > { %v3342_v0 = vand.u32 2139095040, %v12282_v41  ;;  %v3131_v28 = vpop.f32.mrf.mxu0 }
 0x465   : > { %17103 = vst [vmem:[#allocation28_spill] sm:$0xff] %v12291_v39  ;;  %v9160_v29 = vadd.s32 4294967169, %v3239_v47  ;;  %v3346_v50 = vand.u32 8388607, %v16784_v48  ;;  %v3654_v21 = vand.u32 2139095040, %v12291_v39  ;;  %v3243_v35 = vor.u32 8388608, %v3242_v36 }
 0x466   : > { %v3343_v26 = vshrl.u32 %v3342_v0, 23  ;;  %v12297_v27 = vadd.f32 %v3131_v28, %v12284_v16  ;;  %v3651_v33 = vand.u32 2147483647, %v12291_v39 }
 0x467   : > { %v3245_v55 = vadd.s32 1, %v9160_v29  ;;  %v3347_v60 = vor.u32 8388608, %v3346_v50  ;;  %v3655_v19 = vshrl.u32 %v3654_v21, 23  ;;  %v12300_v54 = vshll.u32 %v3243_v35, 8 }
 0x468   : > { %v9164_v6 = vadd.s32 4294967169, %v3343_v26  ;;  %v3758_v9 = vand.u32 2139095040, %v12297_v27 }
 0x469   : > { %vm3246_vm15 = vcmp.gt.s32.totalorder %v3245_v55, 0  ;;  %v12302_v32 = vshll.u32 %v3347_v60, 8  ;;  %v12304_v56 = vadd.s32 4294967169, %v3655_v19 }
 0x46a   : > { %v3247_v1 = vsel %vm3246_vm15, %v3245_v55, 0  ;;  %v3349_v43 = vadd.s32 1, %v9164_v6 }
 0x46b   : > { %v3248_v31 = vshrl.u32 %v3247_v1, 5  ;;  %v3249_v4 = vand.u32 31, %v3247_v1 }
 0x46c   : > { %vm3350_vm3 = vcmp.gt.s32.totalorder %v3349_v43, 0 }
 0x46d   : > { %v3250_v45 = vsub.s32 32, %v3249_v4  ;;  %v3252_v57 = vshll.u32 %v16981_v17, %v3249_v4  ;;  %v3255_v61 = vshll.u32 %v16975_v14, %v3249_v4  ;;  %v3258_v23 = vshll.u32 %v16976_v10, %v3249_v4 }
 0x46e   : > { %v3261_v12 = vshll.u32 %v17104_v44, %v3249_v4  ;;  %v3264_v40 = vshll.u32 %v16998_v2, %v3249_v4  ;;  %vm3267_vm4 = vcmp.lt.s32.totalorder %v3248_v31, 1  ;;  %vm3268_vm1 = vcmp.lt.s32.totalorder %v3248_v31, 2 }
 0x46f   : > { %v3253_v53 = vshrl.u32 %v16975_v14, %v3250_v45  ;;  %v3256_v37 = vshrl.u32 %v16976_v10, %v3250_v45  ;;  %v3259_v3 = vshrl.u32 %v17104_v44, %v3250_v45  ;;  %v3251_v11 = vshrl.u32 %v16981_v17, %v3250_v45 }
 0x470   : > { %v3262_v20 = vshrl.u32 %v16998_v2, %v3250_v45  ;;  %v3265_v30 = vshrl.u32 %v16980_v38, %v3250_v45  ;;  %vm3269_vm7 = vcmp.lt.s32.totalorder %v3248_v31, 3  ;;  %v3351_v24 = vsel %vm3350_vm3, %v3349_v43, 0 }
 0x471   : > { %v3254_v51 = vor.u32 %v3253_v53, %v3252_v57  ;;  %v3257_v49 = vor.u32 %v3256_v37, %v3255_v61  ;;  %v3260_v7 = vor.u32 %v3259_v3, %v3258_v23  ;;  %vm3270_vm8 = vcmp.lt.s32.totalorder %v3248_v31, 4 }
 0x472   : > { %v3263_v52 = vor.u32 %v3262_v20, %v3261_v12  ;;  %v3266_v18 = vor.u32 %v3265_v30, %v3264_v40  ;;  %v3353_v8 = vand.u32 31, %v3351_v24  ;;  %v3352_v26 = vshrl.u32 %v3351_v24, 5 }
 0x473   : > { %v3271_v25 = vsel %vm3267_vm4, %v3251_v11, %v3254_v51  ;;  %v3272_v13 = vsel %vm3270_vm8, %v3260_v7, 2102212464  ;;  %v3275_v63 = vsel %vm3267_vm4, %v3254_v51, %v3257_v49  ;;  %v3279_v46 = vsel %vm3267_vm4, %v3257_v49, %v3260_v7 }
 0x474   : > { %v3273_v59 = vsel %vm3269_vm7, %v3257_v49, %v3272_v13  ;;  %v3276_v34 = vsel %vm3270_vm8, %v3263_v52, 920167782  ;;  %v3280_v47 = vsel %vm3270_vm8, %v3266_v18, 1326507024  ;;  %v3354_v36 = vsub.s32 32, %v3353_v8 }
 0x475   : > { %v3274_v0 = vsel %vm3268_vm1, %v3271_v25, %v3273_v59  ;;  %v3277_v29 = vsel %vm3269_vm7, %v3260_v7, %v3276_v34  ;;  %v3281_v28 = vsel %vm3269_vm7, %v3263_v52, %v3280_v47  ;;  %v3356_v35 = vshll.u32 %v16981_v17, %v3353_v8 }
 0x476   : > { %v3278_v50 = vsel %vm3268_vm1, %v3275_v63, %v3277_v29  ;;  %v3282_v55 = vsel %vm3268_vm1, %v3279_v46, %v3281_v28  ;;  %v3290_v21 = vmul.u32 %v12300_v54, %v3274_v0  ;;  %v3355_v43 = vshrl.u32 %v16981_v17, %v3354_v36 }
 0x477   : > { %v12331_v6 = vmul.u32.u64.low %v12300_v54, %v3282_v55  ;;  %v12332_v60 = vmul.u32.u64.high %v12300_v54, %v3282_v55, %v12331_v6  ;;  %v12335_v19 = vmul.u32.u64.low %v12300_v54, %v3278_v50  ;;  %v12336_v1 = vmul.u32.u64.high %v12300_v54, %v3278_v50, %v12335_v19 }
 0x478   : > { %v3357_v4 = vshrl.u32 %v16975_v14, %v3354_v36  ;;  %v3359_v31 = vshll.u32 %v16975_v14, %v3353_v8  ;;  %v3360_v45 = vshrl.u32 %v16976_v10, %v3354_v36  ;;  %v3362_v57 = vshll.u32 %v16976_v10, %v3353_v8 }
 0x479   : > { %v3363_v61 = vshrl.u32 %v17104_v44, %v3354_v36  ;;  %v3365_v23 = vshll.u32 %v17104_v44, %v3353_v8  ;;  %v3366_v12 = vshrl.u32 %v16998_v2, %v3354_v36  ;;  %v3368_v53 = vshll.u32 %v16998_v2, %v3353_v8 }
 0x47a   : > { %v3358_v40 = vor.u32 %v3357_v4, %v3356_v35  ;;  %v3361_v54 = vor.u32 %v3360_v45, %v3359_v31  ;;  %v3369_v37 = vshrl.u32 %v16980_v38, %v3354_v36  ;;  %vm3292_vm0 = vc.u32 %v12332_v60, %v12335_v19 }
 0x47b   : > { %v3293_v3 = vadd.s32 1, %v12336_v1  ;;  %v3364_v11 = vor.u32 %v3363_v61, %v3362_v57  ;;  %vm3371_vm2 = vcmp.lt.s32.totalorder %v3352_v26, 1  ;;  %v3367_v20 = vor.u32 %v3366_v12, %v3365_v23 }
 0x47c   : > { %v3370_v30 = vor.u32 %v3369_v37, %v3368_v53  ;;  %vm3372_vm10 = vcmp.lt.s32.totalorder %v3352_v26, 2  ;;  %vm3373_vm13 = vcmp.lt.s32.totalorder %v3352_v26, 3  ;;  %vm3374_vm11 = vcmp.lt.s32.totalorder %v3352_v26, 4 }
 0x47d   : > { %v3294_v51 = vsel %vm3292_vm0, %v3293_v3, %v12336_v1  ;;  %v3375_v49 = vsel %vm3371_vm2, %v3355_v43, %v3358_v40  ;;  %v3379_v7 = vsel %vm3371_vm2, %v3358_v40, %v3361_v54  ;;  %v3376_v52 = vsel %vm3374_vm11, %v3364_v11, 2102212464 }
 0x47e   : > { %v3295_v24 = vadd.s32 %v3294_v51, %v3290_v21  ;;  %v3380_v18 = vsel %vm3374_vm11, %v3367_v20, 920167782  ;;  %v3383_v8 = vsel %vm3371_vm2, %v3361_v54, %v3364_v11  ;;  %v3377_v25 = vsel %vm3373_vm13, %v3361_v54, %v3376_v52 }
 0x47f   : > { %v3381_v13 = vsel %vm3373_vm13, %v3364_v11, %v3380_v18  ;;  %v3384_v63 = vsel %vm3374_vm11, %v3370_v30, 1326507024  ;;  %v3661_v46 = vadd.s32 1, %v12304_v56  ;;  %v3759_v36 = vshrl.u32 %v3758_v9, 23 }
 0x480   : > { %v3296_v59 = vadd.s32 536870912, %v3295_v24  ;;  %v3382_v34 = vsel %vm3372_vm10, %v3379_v7, %v3381_v13  ;;  %v3385_v47 = vsel %vm3373_vm13, %v3367_v20, %v3384_v63  ;;  %v3378_v0 = vsel %vm3372_vm10, %v3375_v49, %v3377_v25 }
 0x481   : > { %v3386_v29 = vsel %vm3372_vm10, %v3383_v8, %v3385_v47  ;;  %v12360_v28 = vmul.u32.u64.low %v12302_v32, %v3382_v34  ;;  %v12361_v50 = vmul.u32.u64.high %v12302_v32, %v3382_v34, %v12360_v28  ;;  %vm3662_vm12 = vcmp.gt.s32.totalorder %v3661_v46, 0 }
 0x482   : > { %v12364_v55 = vshrl.u32 %v3296_v59, 30  ;;  %v12367_v56 = vmul.u32.u64.low %v12302_v32, %v3386_v29  ;;  %v12368_v21 = vmul.u32.u64.high %v12302_v32, %v3386_v29, %v12367_v56  ;;  %v3663_v35 = vsel %vm3662_vm12, %v3661_v46, 0 }
 0x483   : > { %v3665_v9 = vand.u32 31, %v3663_v35  ;;  %v3394_v1 = vmul.u32 %v12302_v32, %v3378_v0  ;;  %v3397_v26 = vadd.s32 1, %v12361_v50  ;;  %v3658_v43 = vand.u32 8388607, %v3651_v33 }
 0x484   : > { %17105 = vst [vmem:[#allocation9_spill] sm:$0xff] %v12364_v55  ;;  %v3298_v6 = vshll.u32 %v12364_v55, 30  ;;  %v16785_v4 = vand.u32 2147483647, %v12297_v27  ;;  %vm3396_vm5 = vc.u32 %v12368_v21, %v12360_v28  ;;  %v9180_v57 = vadd.s32 4294967169, %v3759_v36 }
 0x485   : > { %v3666_v45 = vsub.s32 32, %v3665_v9  ;;  %v3398_v61 = vsel %vm3396_vm5, %v3397_v26, %v12361_v50  ;;  %v3664_v23 = vshrl.u32 %v3663_v35, 5  ;;  %v3668_v12 = vshll.u32 %v16981_v17, %v3665_v9 }
 0x486   : > { %v12376_v31 = vsub.s32 %v3295_v24, %v3298_v6  ;;  %v3671_v32 = vshll.u32 %v16975_v14, %v3665_v9  ;;  %v3399_v54 = vadd.s32 %v3398_v61, %v3394_v1  ;;  %v3674_v37 = vshll.u32 %v16976_v10, %v3665_v9 }
 0x487   : > { %v3669_v53 = vshrl.u32 %v16975_v14, %v3666_v45  ;;  %v3672_v3 = vshrl.u32 %v16976_v10, %v3666_v45  ;;  %v3675_v11 = vshrl.u32 %v17104_v44, %v3666_v45  ;;  %v3677_v20 = vshll.u32 %v17104_v44, %v3665_v9 }
 0x488   : > { %v3301_v40 = vsub.s32 0, %v12376_v31  ;;  %v3678_v30 = vshrl.u32 %v16998_v2, %v3666_v45  ;;  %v3400_v49 = vadd.s32 536870912, %v3399_v54  ;;  %v3680_v24 = vshll.u32 %v16998_v2, %v3665_v9 }
 0x489   : > { %v3670_v7 = vor.u32 %v3669_v53, %v3668_v12  ;;  %v3673_v52 = vor.u32 %v3672_v3, %v3671_v32  ;;  %v3676_v18 = vor.u32 %v3675_v11, %v3674_v37  ;;  %v3681_v25 = vshrl.u32 %v16980_v38, %v3666_v45 }
 0x48a   : > { %v9161_v51 = vmin.u32 %v3301_v40, %v12376_v31  ;;  %v3679_v8 = vor.u32 %v3678_v30, %v3677_v20  ;;  %v12393_v63 = vshrl.u32 %v3400_v49, 30  ;;  %v3659_v46 = vor.u32 8388608, %v3658_v43 }
 0x48b   : > { %v3765_v59 = vadd.s32 1, %v9180_v57  ;;  %v3682_v34 = vor.u32 %v3681_v25, %v3680_v24  ;;  %vm3683_vm9 = vcmp.lt.s32.totalorder %v3664_v23, 1  ;;  %vm3684_vm6 = vcmp.lt.s32.totalorder %v3664_v23, 2  ;;  %v3135_v25 = vpop.f32.mrf.mxu0 }
 0x48c   : > { %v3303_v13 = vclz %v9161_v51  ;;  %17106 = vst [vmem:[#allocation15_spill] sm:$0xff] %v12393_v63  ;;  %vm3685_vm14 = vcmp.lt.s32.totalorder %v3664_v23, 3  ;;  %v3402_v36 = vshll.u32 %v12393_v63, 30  ;;  %vm3686_vm15 = vcmp.lt.s32.totalorder %v3664_v23, 4 }
 0x48d   : > { %v3691_v0 = vsel %vm3683_vm9, %v3670_v7, %v3673_v52  ;;  %v3667_v29 = vshrl.u32 %v16981_v17, %v3666_v45  ;;  %v3688_v50 = vsel %vm3686_vm15, %v3676_v18, 2102212464  ;;  %v3692_v56 = vsel %vm3686_vm15, %v3679_v8, 920167782 }
 0x48e   : > { %v9162_v47 = vadd.s32 4294967294, %v3303_v13  ;;  %v3696_v35 = vsel %vm3686_vm15, %v3682_v34, 1326507024  ;;  %v12398_v6 = vsub.s32 %v3399_v54, %v3402_v36  ;;  %v3693_v9 = vsel %vm3685_vm14, %v3676_v18, %v3692_v56 }
 0x48f   : > { %v3695_v1 = vsel %vm3683_vm9, %v3673_v52, %v3676_v18  ;;  %v3694_v43 = vsel %vm3684_vm6, %v3691_v0, %v3693_v9  ;;  %v3697_v57 = vsel %vm3685_vm14, %v3679_v8, %v3696_v35  ;;  %v3699_v61 = vshll.u32 %v3659_v46, 8 }
 0x490   : > { %vm9163_vm3 = vcmp.lt.s32.totalorder %v9162_v47, 0  ;;  %v3405_v32 = vsub.s32 0, %v12398_v6  ;;  %v3687_v45 = vsel %vm3683_vm9, %v3667_v29, %v3670_v7  ;;  %v3689_v40 = vsel %vm3685_vm14, %v3673_v52, %v3688_v50 }
 0x491   : > { %v3306_v26 = vsel %vm9163_vm3, 0, %v9162_v47  ;;  %v3698_v54 = vsel %vm3684_vm6, %v3695_v1, %v3697_v57  ;;  %v12408_v53 = vmul.u32.u64.low %v3699_v61, %v3694_v43  ;;  %v12409_v37 = vmul.u32.u64.high %v3699_v61, %v3694_v43, %v12408_v53 }
 0x492   : > { %v3311_v12 = vsub.s32 4294967266, %v3306_v26  ;;  %vm3766_vm4 = vcmp.gt.s32.totalorder %v3765_v59, 0  ;;  %v9165_v3 = vmin.u32 %v3405_v32, %v12398_v6  ;;  %v3690_v7 = vsel %vm3684_vm6, %v3687_v45, %v3689_v40 }
 0x493   : > { %v3767_v11 = vsel %vm3766_vm4, %v3765_v59, 0  ;;  %v12413_v20 = vmul.u32.u64.low %v3699_v61, %v3698_v54  ;;  %v12414_v30 = vmul.u32.u64.high %v3699_v61, %v3698_v54, %v12413_v20  ;;  %v3709_v52 = vadd.s32 1, %v12409_v37 }
 0x494   : > { %v3769_v51 = vand.u32 31, %v3767_v11  ;;  %v3312_v49 = vadd.s32 127, %v3311_v12  ;;  %v3407_v24 = vclz %v9165_v3  ;;  %v3762_v18 = vand.u32 8388607, %v16785_v4 }
 0x495   : > { %v3307_v13 = vsub.s32 32, %v3306_v26  ;;  %v3706_v34 = vmul.u32 %v3699_v61, %v3690_v7  ;;  %vm3708_vm1 = vc.u32 %v12414_v30, %v12408_v53  ;;  %v3291_v59 = vadd.s32 %v12335_v19, %v12332_v60 }
 0x496   : > { %v3770_v8 = vsub.s32 32, %v3769_v51  ;;  %v9166_v46 = vadd.s32 4294967294, %v3407_v24  ;;  %v3313_v47 = vshll.u32 %v3312_v49, 23  ;;  %v3710_v23 = vsel %vm3708_vm1, %v3709_v52, %v12409_v37 }
 0x497   : > { %v12426_v36 = vadd.f32 %v3135_v25, %v12270_v22  ;;  %v3308_v0 = vshll.u32 %v12376_v31, %v3306_v26  ;;  %v3711_v29 = vadd.s32 %v3710_v23, %v3706_v34  ;;  %v3763_v50 = vor.u32 8388608, %v3762_v18 }
 0x498   : > { %v3773_v56 = vshrl.u32 %v16975_v14, %v3770_v8  ;;  %v3309_v35 = vshrl.u32 %v3291_v59, %v3307_v13  ;;  %vm9167_vm7 = vcmp.lt.s32.totalorder %v9166_v46, 0  ;;  %v3776_v9 = vshrl.u32 %v16976_v10, %v3770_v8 }
 0x499   : > { %v3779_v1 = vshrl.u32 %v17104_v44, %v3770_v8  ;;  %v3712_v43 = vadd.s32 536870912, %v3711_v29  ;;  %v3768_v60 = vshrl.u32 %v3767_v11, 5  ;;  %v3772_v19 = vshll.u32 %v16981_v17, %v3769_v51 }
 0x49a   : > { %v3775_v57 = vshll.u32 %v16975_v14, %v3769_v51  ;;  %v3314_v61 = vor.u32 4788187, %v3313_v47  ;;  %v3778_v12 = vshll.u32 %v16976_v10, %v3769_v51  ;;  %v3781_v31 = vshll.u32 %v17104_v44, %v3769_v51 }
 0x49b   : > { %v3782_v26 = vshrl.u32 %v16998_v2, %v3770_v8  ;;  %v12437_v32 = vsel %vm9167_vm7, 0, %v9166_v46  ;;  %v12439_v45 = vshrl.u32 %v3712_v43, 30  ;;  %v3774_v40 = vor.u32 %v3773_v56, %v3772_v19 }
 0x49c   : > { %v3785_v54 = vshrl.u32 %v16980_v38, %v3770_v8  ;;  %v3777_v37 = vor.u32 %v3776_v9, %v3775_v57  ;;  %v3780_v3 = vor.u32 %v3779_v1, %v3778_v12  ;;  %v3784_v20 = vshll.u32 %v16998_v2, %v3769_v51  ;;  %v3137_v57 = vpop.f32.mrf.mxu0 }
 0x49d   : > { %17107 = vst [vmem:[#allocation11_spill] sm:$0xff] %v12439_v45  ;;  %v3783_v11 = vor.u32 %v3782_v26, %v3781_v31  ;;  %v3310_v49 = vor.u32 %v3309_v35, %v3308_v0  ;;  %v3714_v24 = vshll.u32 %v12439_v45, 30  ;;  %v3803_v7 = vshll.u32 %v3763_v50, 8 }
 0x49e   : > { %v3315_v52 = vand.u32 2147483647, %v3314_v61  ;;  %v3771_v18 = vshrl.u32 %v16981_v17, %v3770_v8  ;;  %v3786_v25 = vor.u32 %v3785_v54, %v3784_v20  ;;  %v4070_v13 = vand.u32 2139095040, %v12426_v36 }
 0x49f   : > { %v3415_v46 = vsub.s32 4294967266, %v12437_v32  ;;  %v12447_v34 = vsub.s32 %v3711_v29, %v3714_v24  ;;  %vm3787_vm8 = vcmp.lt.s32.totalorder %v3768_v60, 1  ;;  %vm3790_vm0 = vcmp.lt.s32.totalorder %v3768_v60, 4 }
 0x4a0   : > { %vm3789_vm2 = vcmp.lt.s32.totalorder %v3768_v60, 3  ;;  %v3792_v59 = vsel %vm3790_vm0, %v3780_v3, 2102212464  ;;  %v3795_v47 = vsel %vm3787_vm8, %v3774_v40, %v3777_v37  ;;  %v3796_v51 = vsel %vm3790_vm0, %v3783_v11, 920167782 }
 0x4a1   : > { %v3717_v23 = vsub.s32 0, %v12447_v34  ;;  %vm3788_vm10 = vcmp.lt.s32.totalorder %v3768_v60, 2  ;;  %v3797_v0 = vsel %vm3789_vm2, %v3780_v3, %v3796_v51  ;;  %v3799_v50 = vsel %vm3787_vm8, %v3777_v37, %v3780_v3 }
 0x4a2   : > { %v3791_v56 = vsel %vm3787_vm8, %v3771_v18, %v3774_v40  ;;  %v3793_v8 = vsel %vm3789_vm2, %v3777_v37, %v3792_v59  ;;  %v3798_v35 = vsel %vm3788_vm10, %v3795_v47, %v3797_v0  ;;  %v3800_v9 = vsel %vm3790_vm0, %v3786_v25, 1326507024 }
 0x4a3   : > { %v9177_v1 = vmin.u32 %v3717_v23, %v12447_v34  ;;  %v3801_v29 = vsel %vm3789_vm2, %v3783_v11, %v3800_v9  ;;  %v12452_v43 = vmul.u32.u64.low %v3803_v7, %v3798_v35  ;;  %v12453_v19 = vmul.u32.u64.high %v3803_v7, %v3798_v35, %v12452_v43 }
 0x4a4   : > { %v3317_v61 = vcvt.s32.f32 %v3310_v49  ;;  %v3802_v12 = vsel %vm3788_vm10, %v3799_v50, %v3801_v29  ;;  %v4071_v31 = vshrl.u32 %v4070_v13, 23  ;;  %v3794_v37 = vsel %vm3788_vm10, %v3791_v56, %v3793_v8 }
 0x4a5   : > { %v3719_v26 = vclz %v9177_v1  ;;  %v12457_v54 = vmul.u32.u64.low %v3803_v7, %v3802_v12  ;;  %v12458_v3 = vmul.u32.u64.high %v3803_v7, %v3802_v12, %v12457_v54  ;;  %v12462_v24 = vadd.f32 %v3137_v57, %v12270_v22 }
 0x4a6   : > { %v3318_v40 = vmul.f32 %v3317_v61, %v3315_v52  ;;  %v9192_v20 = vadd.s32 4294967169, %v4071_v31  ;;  %v3411_v11 = vsub.s32 32, %v12437_v32  ;;  %v3416_v18 = vadd.s32 127, %v3415_v46 }
 0x4a7   : > { %v9178_v25 = vadd.s32 4294967294, %v3719_v26  ;;  %v3813_v49 = vadd.s32 1, %v12453_v19  ;;  %v4174_v13 = vand.u32 2139095040, %v12462_v24  ;;  %v3395_v47 = vadd.s32 %v12360_v28, %v12368_v21 }
 0x4a8   : > { %v4077_v59 = vadd.s32 1, %v9192_v20  ;;  %v3810_v52 = vmul.u32 %v3803_v7, %v3794_v37  ;;  %vm3812_vm11 = vc.u32 %v12458_v3, %v12452_v43  ;;  %v3319_v46 = vxor.u32 2147483648, %v3318_v40 }
 0x4a9   : > { %vm9179_vm13 = vcmp.lt.s32.totalorder %v9178_v25, 0  ;;  %v3814_v51 = vsel %vm3812_vm11, %v3813_v49, %v12453_v19  ;;  %v3413_v23 = vshrl.u32 %v3395_v47, %v3411_v11  ;;  %v3417_v0 = vshll.u32 %v3416_v18, 23 }
 0x4aa   : > { %v12471_v60 = vsel %vm9179_vm13, 0, %v9178_v25  ;;  %vm4078_vm12 = vcmp.gt.s32.totalorder %v4077_v59, 0  ;;  %v3815_v50 = vadd.s32 %v3814_v51, %v3810_v52  ;;  %v16789_v8 = vand.u32 2147483647, %v12426_v36 }
 0x4ab   : > { %v3727_v56 = vsub.s32 4294967266, %v12471_v60  ;;  %v4079_v35 = vsel %vm4078_vm12, %v4077_v59, 0  ;;  %v4175_v28 = vshrl.u32 %v4174_v13, 23  ;;  %v3412_v21 = vshll.u32 %v12398_v6, %v12437_v32 }
 0x4ac   : > { %v3816_v7 = vadd.s32 536870912, %v3815_v50  ;;  %vm16826_vm5 = vcmp.lt.s32.totalorder %v12277_v62, 0  ;;  %v3707_v9 = vadd.s32 %v12408_v53, %v12414_v30  ;;  %v4081_v1 = vand.u32 31, %v4079_v35 }
 0x4ad   : > { %v12483_v29 = vsel %vm16826_vm5, %v3319_v46, %v3318_v40  ;;  %v12485_v19 = vor.u32 %v3413_v23, %v3412_v21  ;;  %v12487_v57 = vor.u32 4788187, %v3417_v0  ;;  %v3728_v12 = vadd.s32 127, %v3727_v56 }
 0x4ae   : > { %v12489_v61 = vshrl.u32 %v3816_v7, 30  ;;  %v4074_v6 = vand.u32 8388607, %v16789_v8  ;;  %v4082_v32 = vsub.s32 32, %v4081_v1  ;;  %v9196_v31 = vadd.s32 4294967169, %v4175_v28 }
 0x4af   : > { %v4080_v53 = vshrl.u32 %v4079_v35, 5  ;;  %v4084_v30 = vshll.u32 %v16981_v17, %v4081_v1  ;;  %v4087_v54 = vshll.u32 %v16975_v14, %v4081_v1  ;;  %v4090_v20 = vshll.u32 %v16976_v10, %v4081_v1 }
 0x4b0   : > { %17108 = vst [vmem:[#allocation23_spill] sm:$0xff] %v12489_v61  ;;  %v3818_v26 = vshll.u32 %v12489_v61, 30  ;;  %v4085_v40 = vshrl.u32 %v16975_v14, %v4082_v32  ;;  %v4088_v37 = vshrl.u32 %v16976_v10, %v4082_v32  ;;  %v4091_v11 = vshrl.u32 %v17104_v44, %v4082_v32 }
 0x4b1   : > { %v4093_v25 = vshll.u32 %v17104_v44, %v4081_v1  ;;  %v4094_v49 = vshrl.u32 %v16998_v2, %v4082_v32  ;;  %v4096_v59 = vshll.u32 %v16998_v2, %v4081_v1  ;;  %v4097_v51 = vshrl.u32 %v16980_v38, %v4082_v32 }
 0x4b2   : > { %v12500_v18 = vsub.s32 %v3815_v50, %v3818_v26  ;;  %v4086_v13 = vor.u32 %v4085_v40, %v4084_v30  ;;  %v4089_v47 = vor.u32 %v4088_v37, %v4087_v54  ;;  %v4092_v52 = vor.u32 %v4091_v11, %v4090_v20 }
 0x4b3   : > { %v4075_v23 = vor.u32 8388608, %v4074_v6  ;;  %v4095_v0 = vor.u32 %v4094_v49, %v4093_v25  ;;  %v16786_v56 = vand.u32 2147483647, %v12462_v24  ;;  %v3723_v50 = vsub.s32 32, %v12471_v60 }
 0x4b4   : > { %v3821_v46 = vsub.s32 0, %v12500_v18  ;;  %v4098_v35 = vor.u32 %v4097_v51, %v4096_v59  ;;  %vm4099_vm9 = vcmp.lt.s32.totalorder %v4080_v53, 1  ;;  %v4181_v28 = vadd.s32 1, %v9196_v31 }
 0x4b5   : > { %v3729_v21 = vshll.u32 %v3728_v12, 23  ;;  %vm4101_vm6 = vcmp.lt.s32.totalorder %v4080_v53, 3  ;;  %vm4102_vm14 = vcmp.lt.s32.totalorder %v4080_v53, 4  ;;  %v4107_v7 = vsel %vm4099_vm9, %v4086_v13, %v4089_v47 }
 0x4b6   : > { %v4104_v1 = vsel %vm4102_vm14, %v4092_v52, 2102212464  ;;  %v4108_v26 = vsel %vm4102_vm14, %v4095_v0, 920167782  ;;  %v4111_v30 = vsel %vm4099_vm9, %v4089_v47, %v4092_v52  ;;  %v4112_v54 = vsel %vm4102_vm14, %v4098_v35, 1326507024  ;;  %v3141_v35 = vpop.f32.mrf.mxu0 }
 0x4b7   : > { %v9181_v6 = vmin.u32 %v3821_v46, %v12500_v18  ;;  %v4083_v40 = vshrl.u32 %v16981_v17, %v4082_v32  ;;  %vm4100_vm15 = vcmp.lt.s32.totalorder %v4080_v53, 2  ;;  %v4109_v37 = vsel %vm4101_vm6, %v4092_v52, %v4108_v26 }
 0x4b8   : > { %v4110_v20 = vsel %vm4100_vm15, %v4107_v7, %v4109_v37  ;;  %v4113_v12 = vsel %vm4101_vm6, %v4095_v0, %v4112_v54  ;;  %v4115_v31 = vshll.u32 %v4075_v23, 8  ;;  %v4178_v11 = vand.u32 8388607, %v16786_v56 }
 0x4b9   : > { %v4103_v25 = vsel %vm4099_vm9, %v4083_v40, %v4086_v13  ;;  %v4105_v49 = vsel %vm4101_vm6, %v4089_v47, %v4104_v1  ;;  %v4114_v59 = vsel %vm4100_vm15, %v4111_v30, %v4113_v12  ;;  %vm4182_vm3 = vcmp.gt.s32.totalorder %v4181_v28, 0 }
 0x4ba   : > { %v3725_v51 = vshrl.u32 %v3707_v9, %v3723_v50  ;;  %v12521_v32 = vmul.u32.u64.low %v4115_v31, %v4114_v59  ;;  %v12522_v46 = vmul.u32.u64.high %v4115_v31, %v4114_v59, %v12521_v32  ;;  %v4183_v52 = vsel %vm4182_vm3, %v4181_v28, 0 }
 0x4bb   : > { %v3730_v7 = vor.u32 4788187, %v3729_v21  ;;  %v3823_v26 = vclz %v9181_v6  ;;  %v12524_v0 = vmul.u32.u64.low %v4115_v31, %v4110_v20  ;;  %v12525_v23 = vmul.u32.u64.high %v4115_v31, %v4110_v20, %v12524_v0 }
 0x4bc   : > { %vm12530_vm4 = vcmp.le.f32.partialorder %v3235_v5, 0.7853982  ;;  %v17109_v13 = vmov 0  ;;  %v3724_v9 = vshll.u32 %v12447_v34, %v12471_v60  ;;  %v4106_v47 = vsel %vm4100_vm15, %v4103_v25, %v4105_v49 }
 0x4bd   : > { %v17110_v13 = vsel %vm12530_vm4, 4294967295, %v17109_v13  ;;  %v4185_v50 = vand.u32 31, %v4183_v52  ;;  %v12541_v28 = vsel %vm12530_vm4, %v12277_v62, %v12483_v29  ;;  %v3419_v21 = vand.u32 2147483647, %v12487_v57  ;;  %v3143_v29 = vpop.f32.mrf.mxu0 }
 0x4be   : > { %17111 = vst [vmem:[#allocation22_spill] sm:$0xff] %v17110_v13  ;;  %v3421_v1 = vcvt.s32.f32 %v12485_v19  ;;  %v12546_v5 = vadd.f32 %v3141_v35, %v12272_v58  ;;  %v3726_v30 = vor.u32 %v3725_v51, %v3724_v9  ;;  %vm4124_vm1 = vc.u32 %v12522_v46, %v12524_v0 }
 0x4bf   : > { %v4179_v34 = vor.u32 8388608, %v4178_v11  ;;  %v4186_v60 = vsub.s32 32, %v4185_v50  ;;  %v3731_v53 = vand.u32 2147483647, %v3730_v7  ;;  %v9182_v54 = vadd.s32 4294967294, %v3823_v26 }
 0x4c0   : > { %v4122_v6 = vmul.u32 %v4115_v31, %v4106_v47  ;;  %v4125_v40 = vadd.s32 1, %v12525_v23  ;;  %v4184_v37 = vshrl.u32 %v4183_v52, 5  ;;  %v4188_v57 = vshll.u32 %v16981_v17, %v4185_v50 }
 0x4c1   : > { %v4189_v19 = vshrl.u32 %v16975_v14, %v4186_v60  ;;  %v4192_v20 = vshrl.u32 %v16976_v10, %v4186_v60  ;;  %v4191_v25 = vshll.u32 %v16975_v14, %v4185_v50  ;;  %v4194_v11 = vshll.u32 %v16976_v10, %v4185_v50 }
 0x4c2   : > { %v4126_v12 = vsel %vm4124_vm1, %v4125_v40, %v12525_v23  ;;  %v4195_v49 = vshrl.u32 %v17104_v44, %v4186_v60  ;;  %v3733_v59 = vcvt.s32.f32 %v3726_v30  ;;  %v12559_v32 = vadd.f32 %v3143_v29, %v12272_v58 }
 0x4c3   : > { %v4127_v31 = vadd.s32 %v4126_v12, %v4122_v6  ;;  %v4190_v51 = vor.u32 %v4189_v19, %v4188_v57  ;;  %v4193_v52 = vor.u32 %v4192_v20, %v4191_v25  ;;  %v4197_v7 = vshll.u32 %v17104_v44, %v4185_v50 }
 0x4c4   : > { %v4196_v35 = vor.u32 %v4195_v49, %v4194_v11  ;;  %v4198_v26 = vshrl.u32 %v16998_v2, %v4186_v60  ;;  %v3734_v9 = vmul.f32 %v3733_v59, %v3731_v53  ;;  %v4200_v47 = vshll.u32 %v16998_v2, %v4185_v50 }
 0x4c5   : > { %v4128_v23 = vadd.s32 536870912, %v4127_v31  ;;  %v4201_v40 = vshrl.u32 %v16980_v38, %v4186_v60  ;;  %vm9183_vm7 = vcmp.lt.s32.totalorder %v9182_v54, 0  ;;  %vm4206_vm8 = vcmp.lt.s32.totalorder %v4184_v37, 4 }
 0x4c6   : > { %v4199_v48 = vor.u32 %v4198_v26, %v4197_v7  ;;  %v4219_v30 = vshll.u32 %v4179_v34, 8  ;;  %vm4203_vm0 = vcmp.lt.s32.totalorder %v4184_v37, 1  ;;  %v4208_v57 = vsel %vm4206_vm8, %v4196_v35, 2102212464 }
 0x4c7   : > { %v12565_v6 = vshrl.u32 %v4128_v23, 30  ;;  %v4202_v29 = vor.u32 %v4201_v40, %v4200_v47  ;;  %v4187_v19 = vshrl.u32 %v16981_v17, %v4186_v60  ;;  %vm4205_vm2 = vcmp.lt.s32.totalorder %v4184_v37, 3 }
 0x4c8   : > { %v4211_v20 = vsel %vm4203_vm0, %v4190_v51, %v4193_v52  ;;  %v4212_v53 = vsel %vm4206_vm8, %v4199_v48, 920167782  ;;  %vm16831_vm10 = vcmp.lt.s32.totalorder %v12291_v39, 0  ;;  %vm4204_vm13 = vcmp.lt.s32.totalorder %v4184_v37, 2 }
 0x4c9   : > { %v4130_v50 = vshll.u32 %v12565_v6, 30  ;;  %v4213_v12 = vsel %vm4205_vm2, %v4196_v35, %v4212_v53  ;;  %v4215_v25 = vsel %vm4203_vm0, %v4193_v52, %v4196_v35  ;;  %v4207_v34 = vsel %vm4203_vm0, %v4187_v19, %v4190_v51 }
 0x4ca   : > { %v4209_v11 = vsel %vm4205_vm2, %v4193_v52, %v4208_v57  ;;  %v4214_v49 = vsel %vm4204_vm13, %v4211_v20, %v4213_v12  ;;  %v4216_v59 = vsel %vm4206_vm8, %v4202_v29, 1326507024  ;;  %10006 = vcosq.f32 %v12541_v28 }
 0x4cb   : > { %v12574_v7 = vsub.s32 %v4127_v31, %v4130_v50  ;;  %v4217_v60 = vsel %vm4205_vm2, %v4199_v48, %v4216_v59  ;;  %v12576_v26 = vmul.u32.u64.low %v4219_v30, %v4214_v49  ;;  %v12577_v23 = vmul.u32.u64.high %v4219_v30, %v4214_v49, %v12576_v26 }
 0x4cc   : > { %v12582_v47 = vsel %vm9183_vm7, 0, %v9182_v54  ;;  %v4218_v35 = vsel %vm4204_vm13, %v4215_v25, %v4217_v60  ;;  %v4486_v51 = vand.u32 2139095040, %v12546_v5  ;;  %v12586_v52 = vmul.f32 %v3421_v1, %v3419_v21 }
 0x4cd   : > { %v4133_v40 = vsub.s32 0, %v12574_v7  ;;  %v12589_v31 = vmul.u32.u64.low %v4219_v30, %v4218_v35  ;;  %v12590_v29 = vmul.u32.u64.high %v4219_v30, %v4218_v35, %v12589_v31  ;;  %v3735_v48 = vxor.u32 2147483648, %v3734_v9 }
 0x4ce   : > { %v4210_v57 = vsel %vm4204_vm13, %v4207_v34, %v4209_v11  ;;  %v4487_v19 = vshrl.u32 %v4486_v51, 23  ;;  %v4590_v20 = vand.u32 2139095040, %v12559_v32  ;;  %v3831_v54 = vsub.s32 4294967266, %v12582_v47 }
 0x4cf   : > { %v9193_v53 = vmin.u32 %v4133_v40, %v12574_v7  ;;  %v4229_v50 = vadd.s32 1, %v12577_v23  ;;  %v16788_v21 = vand.u32 2147483647, %v12546_v5  ;;  %10008 = vsinq.f32 %v12541_v28 }
 0x4d0   : > { %vm12601_vm11 = vcmp.le.f32.partialorder %v3651_v33, 0.7853982  ;;  %v17112_v1 = vmov 0  ;;  %v9208_v37 = vadd.s32 4294967169, %v4487_v19  ;;  %v4591_v12 = vshrl.u32 %v4590_v20, 23 }
 0x4d1   : > { %v17113_v1 = vsel %vm12601_vm11, 4294967295, %v17112_v1  ;;  %v4135_v34 = vclz %v9193_v53  ;;  %v4226_v11 = vmul.u32 %v4219_v30, %v4210_v57  ;;  %vm4228_vm12 = vc.u32 %v12590_v29, %v12576_v26 }
 0x4d2   : > { %17114 = vst [vmem:[#allocation8_spill] sm:$0xff] %v17113_v1  ;;  %v3736_v49 = vsel %vm16831_vm10, %v3735_v48, %v3734_v9  ;;  %v3827_v28 = vsub.s32 32, %v12582_v47  ;;  %v4230_v59 = vsel %vm4228_vm12, %v4229_v50, %v12577_v23  ;;  %v4493_v33 = vadd.s32 1, %v9208_v37 }
 0x4d3   : > { %v12612_v60 = vadd.s32 127, %v3831_v54  ;;  %v9194_v35 = vadd.s32 4294967294, %v4135_v34  ;;  %v4231_v51 = vadd.s32 %v4230_v59, %v4226_v11  ;;  %v4490_v40 = vand.u32 8388607, %v16788_v21 }
 0x4d4   : > { %v3811_v30 = vadd.s32 %v12452_v43, %v12458_v3  ;;  %vm4494_vm9 = vcmp.gt.s32.totalorder %v4493_v33, 0  ;;  %v16787_v31 = vand.u32 2147483647, %v12559_v32  ;;  %v9212_v57 = vadd.s32 4294967169, %v4591_v12 }
 0x4d5   : > { %v12622_v9 = vsel %vm12601_vm11, %v12291_v39, %v3736_v49  ;;  %vm9195_vm6 = vcmp.lt.s32.totalorder %v9194_v35, 0  ;;  %v4232_v23 = vadd.s32 536870912, %v4231_v51  ;;  %v4495_v48 = vsel %vm4494_vm9, %v4493_v33, 0 }
 0x4d6   : > { %v4123_v20 = vadd.s32 %v12524_v0, %v12522_v46  ;;  %v12628_v54 = vsel %vm9195_vm6, 0, %v9194_v35  ;;  %v4497_v43 = vand.u32 31, %v4495_v48  ;;  %v12630_v3 = vshrl.u32 %v3811_v30, %v3827_v28  ;;  %v3212_v35 = vpop.f32.mrf.mxu1 }
 0x4d7   : > { %v12633_v50 = vshrl.u32 %v4232_v23, 30  ;;  %v4491_v37 = vor.u32 8388608, %v4490_v40  ;;  %v4139_v12 = vsub.s32 32, %v12628_v54  ;;  %v12638_v11 = vand.u32 8388607, %v16787_v31  ;;  %v12640_v59 = vpop.eup %10006 }
 0x4d8   : > { %v4498_v34 = vsub.s32 32, %v4497_v43  ;;  %v4597_v49 = vadd.s32 1, %v9212_v57  ;;  %17115 = vst [vmem:[#allocation20_spill] sm:$0xff] %v12640_v59  ;;  %v4143_v46 = vsub.s32 4294967266, %v12628_v54  ;;  %v4500_v28 = vshll.u32 %v16981_v17, %v4497_v43 }
 0x4d9   : > { %v4234_v0 = vshll.u32 %v12633_v50, 30  ;;  %v4503_v33 = vshll.u32 %v16975_v14, %v4497_v43  ;;  %v4506_v23 = vshll.u32 %v16976_v10, %v4497_v43  ;;  %v4496_v56 = vshrl.u32 %v4495_v48, 5 }
 0x4da   : > { %v4501_v40 = vshrl.u32 %v16975_v14, %v4498_v34  ;;  %v4504_v30 = vshrl.u32 %v16976_v10, %v4498_v34  ;;  %v4507_v4 = vshrl.u32 %v17104_v44, %v4498_v34  ;;  %v4509_v31 = vshll.u32 %v17104_v44, %v4497_v43 }
 0x4db   : > { %v12650_v57 = vsub.s32 %v4231_v51, %v4234_v0  ;;  %v4510_v21 = vshrl.u32 %v16998_v2, %v4498_v34  ;;  %v12655_v25 = vadd.f32 %v3212_v35, %v12274_v15  ;;  %v4531_v62 = vshll.u32 %v4491_v37, 8 }
 0x4dc   : > { %v4502_v8 = vor.u32 %v4501_v40, %v4500_v28  ;;  %v4505_v53 = vor.u32 %v4504_v30, %v4503_v33  ;;  %v4508_v19 = vor.u32 %v4507_v4, %v4506_v23  ;;  %v12657_v42 = vpop.eup %10008  ;;  %vm4598_vm14 = vcmp.gt.s32.totalorder %v4597_v49, 0 }
 0x4dd   : > { %17116 = vst [vmem:[#allocation10_spill] sm:$0xff] %v12655_v25  ;;  %17117 = vst [vmem:[#allocation7_spill] sm:$0xff] %v12657_v42  ;;  %v4237_v59 = vsub.s32 0, %v12650_v57  ;;  %v4511_v13 = vor.u32 %v4510_v21, %v4509_v31  ;;  %vm16827_vm15 = vcmp.lt.s32.totalorder %v12282_v41, 0  ;;  %v4141_v51 = vshrl.u32 %v4123_v20, %v4139_v12 }
 0x4de   : > { %v4144_v48 = vadd.s32 127, %v4143_v46  ;;  %v4512_v0 = vshll.u32 %v16998_v2, %v4497_v43  ;;  %v4513_v28 = vshrl.u32 %v16980_v38, %v4498_v34  ;;  %vm4515_vm3 = vcmp.lt.s32.totalorder %v4496_v56, 1 }
 0x4df   : > { %v9197_v4 = vmin.u32 %v4237_v59, %v12650_v57  ;;  %vm4517_vm1 = vcmp.lt.s32.totalorder %v4496_v56, 3  ;;  %vm4518_vm7 = vcmp.lt.s32.totalorder %v4496_v56, 4  ;;  %v4523_v40 = vsel %vm4515_vm3, %v4502_v8, %v4505_v53 }
 0x4e0   : > { %v4514_v33 = vor.u32 %v4513_v28, %v4512_v0  ;;  %v4520_v35 = vsel %vm4518_vm7, %v4508_v19, 2102212464  ;;  %v4524_v21 = vsel %vm4518_vm7, %v4511_v13, 920167782  ;;  %v4499_v37 = vshrl.u32 %v16981_v17, %v4498_v34 }
 0x4e1   : > { %v4239_v31 = vclz %v9197_v4  ;;  %vm4516_vm8 = vcmp.lt.s32.totalorder %v4496_v56, 2  ;;  %v4525_v20 = vsel %vm4517_vm1, %v4508_v19, %v4524_v21  ;;  %v4145_v12 = vshll.u32 %v4144_v48, 23 }
 0x4e2   : > { %v4526_v43 = vsel %vm4516_vm8, %v4523_v40, %v4525_v20  ;;  %v4527_v46 = vsel %vm4515_vm3, %v4505_v53, %v4508_v19  ;;  %v4528_v59 = vsel %vm4518_vm7, %v4514_v33, 1326507024  ;;  %v4140_v30 = vshll.u32 %v12574_v7, %v12628_v54 }
 0x4e3   : > { %v4519_v23 = vsel %vm4515_vm3, %v4499_v37, %v4502_v8  ;;  %v4521_v0 = vsel %vm4517_vm1, %v4505_v53, %v4520_v35  ;;  %v4529_v28 = vsel %vm4517_vm1, %v4511_v13, %v4528_v59  ;;  %v4599_v48 = vsel %vm4598_vm14, %v4597_v49, 0 }
 0x4e4   : > { %v4530_v34 = vsel %vm4516_vm8, %v4527_v46, %v4529_v28  ;;  %v12675_v4 = vmul.u32.u64.low %v4531_v62, %v4526_v43  ;;  %v12676_v42 = vmul.u32.u64.high %v4531_v62, %v4526_v43, %v12675_v4  ;;  %v9198_v40 = vadd.s32 4294967294, %v4239_v31 }
 0x4e5   : > { %v12680_v19 = vmul.u32.u64.low %v4531_v62, %v4530_v34  ;;  %v12681_v33 = vmul.u32.u64.high %v4531_v62, %v4530_v34, %v12680_v19  ;;  %v4595_v7 = vor.u32 8388608, %v12638_v11  ;;  %v4142_v54 = vor.u32 %v4141_v51, %v4140_v30 }
 0x4e6   : > { %v4146_v8 = vor.u32 4788187, %v4145_v12  ;;  %v4522_v53 = vsel %vm4516_vm8, %v4519_v23, %v4521_v0  ;;  %v4601_v35 = vand.u32 31, %v4599_v48  ;;  %v17118_v13 = vxor.u32 2147483648, %v12586_v52 }
 0x4e7   : > { %10010 = vcosq.f32 %v12622_v9  ;;  %v17120_v49 = vshll.u32 %v12500_v18, %v12582_v47  ;;  %v17121_v11 = vshll.u32 %v12612_v60, 23  ;;  %v12705_v51 = vadd.s32 %v12576_v26, %v12590_v29 }
 0x4e8   : > { %v12690_v21 = vsel %vm16827_vm15, %v17118_v13, %v12586_v52  ;;  %v4541_v37 = vadd.s32 1, %v12676_v42  ;;  %v4602_v52 = vsub.s32 32, %v4601_v35  ;;  %v16796_v20 = vand.u32 2147483647, %v12655_v25 }
 0x4e9   : > { %17119 = vst [vmem:[#allocation13_spill] sm:$0xff] %v12690_v21  ;;  %v12697_v31 = vor.u32 %v12630_v3, %v17120_v49  ;;  %v12701_v56 = vor.u32 4788187, %v17121_v11  ;;  %vm9199_vm0 = vcmp.lt.s32.totalorder %v9198_v40, 0  ;;  %v4538_v12 = vmul.u32 %v4531_v62, %v4522_v53 }
 0x4ea   : > { %vm4540_vm2 = vc.u32 %v12681_v33, %v12675_v4  ;;  %v12711_v18 = vshll.u32 %v4595_v7, 8  ;;  %v4147_v47 = vand.u32 2147483647, %v4146_v8  ;;  %v4149_v60 = vcvt.s32.f32 %v4142_v54 }
 0x4eb   : > { %v4542_v3 = vsel %vm4540_vm2, %v4541_v37, %v12676_v42  ;;  %v4605_v43 = vshrl.u32 %v16975_v14, %v4602_v52  ;;  %v4604_v29 = vshll.u32 %v16981_v17, %v4601_v35  ;;  %v4607_v46 = vshll.u32 %v16975_v14, %v4601_v35 }
 0x4ec   : > { %v4543_v26 = vadd.s32 %v4542_v3, %v4538_v12  ;;  %v4608_v59 = vshrl.u32 %v16976_v10, %v4602_v52  ;;  %v12718_v30 = vsel %vm9199_vm0, 0, %v9198_v40  ;;  %v4600_v62 = vshrl.u32 %v4599_v48, 5 }
 0x4ed   : > { %v4610_v23 = vshll.u32 %v16976_v10, %v4601_v35  ;;  %v4611_v0 = vshrl.u32 %v17104_v44, %v4602_v52  ;;  %v4606_v34 = vor.u32 %v4605_v43, %v4604_v29  ;;  %v4613_v42 = vshll.u32 %v17104_v44, %v4601_v35 }
 0x4ee   : > { %v4544_v28 = vadd.s32 536870912, %v4543_v26  ;;  %v4609_v19 = vor.u32 %v4608_v59, %v4607_v46  ;;  %v4614_v54 = vshrl.u32 %v16998_v2, %v4602_v52  ;;  %v4616_v8 = vshll.u32 %v16998_v2, %v4601_v35 }
 0x4ef   : > { %v4612_v7 = vor.u32 %v4611_v0, %v4610_v23  ;;  %v4617_v53 = vshrl.u32 %v16980_v38, %v4602_v52  ;;  %v4150_v13 = vmul.f32 %v4149_v60, %v4147_v47  ;;  %v3446_v48 = vand.u32 2139095040, %v12655_v25 }
 0x4f0   : > { %v12726_v40 = vshrl.u32 %v4544_v28, 30  ;;  %v12731_v49 = vand.u32 8388607, %v16796_v20  ;;  %v4247_v11 = vsub.s32 4294967266, %v12718_v30  ;;  %v4615_v37 = vor.u32 %v4614_v54, %v4613_v42 }
 0x4f1   : > { %v4618_v12 = vor.u32 %v4617_v53, %v4616_v8  ;;  %vm4622_vm13 = vcmp.lt.s32.totalorder %v4600_v62, 4  ;;  %v4603_v35 = vshrl.u32 %v16981_v17, %v4602_v52  ;;  %vm4619_vm12 = vcmp.lt.s32.totalorder %v4600_v62, 1 }
 0x4f2   : > { %v4546_v3 = vshll.u32 %v12726_v40, 30  ;;  %v4624_v47 = vsel %vm4622_vm13, %v4612_v7, 2102212464  ;;  %vm4620_vm9 = vcmp.lt.s32.totalorder %v4600_v62, 2  ;;  %vm4621_vm6 = vcmp.lt.s32.totalorder %v4600_v62, 3 }
 0x4f3   : > { %v4627_v60 = vsel %vm4619_vm12, %v4606_v34, %v4609_v19  ;;  %v4628_v43 = vsel %vm4622_vm13, %v4615_v37, 920167782  ;;  %v4623_v46 = vsel %vm4619_vm12, %v4603_v35, %v4606_v34  ;;  %v4631_v23 = vsel %vm4619_vm12, %v4609_v19, %v4612_v7 }
 0x4f4   : > { %v12738_v29 = vsub.s32 %v4543_v26, %v4546_v3  ;;  %v4629_v59 = vsel %vm4621_vm6, %v4612_v7, %v4628_v43  ;;  %v12741_v0 = vpop.eup %10010  ;;  %vm4069_vm14 = vcmp.lt.s32.totalorder %v12426_v36, 0  ;;  %v4625_v52 = vsel %vm4621_vm6, %v4609_v19, %v4624_v47  ;;  %v3214_v3 = vpop.f32.mrf.mxu1 }
 0x4f5   : > { %17122 = vst [vmem:[#allocation27_spill] sm:$0xff] %v12741_v0  ;;  %v4630_v28 = vsel %vm4620_vm9, %v4627_v60, %v4629_v59  ;;  %v4632_v42 = vsel %vm4622_vm13, %v4618_v12, 1326507024  ;;  %v3447_v54 = vshrl.u32 %v3446_v48, 23  ;;  %v4243_v8 = vsub.s32 32, %v12718_v30 }
 0x4f6   : > { %v4248_v53 = vadd.s32 127, %v4247_v11  ;;  %v4549_v26 = vsub.s32 0, %v12738_v29  ;;  %v4633_v34 = vsel %vm4621_vm6, %v4615_v37, %v4632_v42  ;;  %v4626_v48 = vsel %vm4620_vm9, %v4623_v46, %v4625_v52 }
 0x4f7   : > { %v4634_v7 = vsel %vm4620_vm9, %v4631_v23, %v4633_v34  ;;  %v12752_v35 = vmul.u32.u64.low %v12711_v18, %v4630_v28  ;;  %v12753_v43 = vmul.u32.u64.high %v12711_v18, %v4630_v28, %v12752_v35  ;;  %v9168_v19 = vadd.s32 4294967169, %v3447_v54 }
 0x4f8   : > { %v9209_v47 = vmin.u32 %v4549_v26, %v12738_v29  ;;  %v12759_v12 = vmul.u32.u64.low %v12711_v18, %v4634_v7  ;;  %v12760_v11 = vmul.u32.u64.high %v12711_v18, %v4634_v7, %v12759_v12  ;;  %10012 = vsinq.f32 %v12622_v9 }
 0x4f9   : > { %v3837_v37 = vcvt.s32.f32 %v12697_v31  ;;  %v3453_v60 = vadd.s32 1, %v9168_v19  ;;  %v12765_v59 = vadd.f32 %v3214_v3, %v12274_v15  ;;  %v3835_v23 = vand.u32 2147483647, %v12701_v56 }
 0x4fa   : > { %v4151_v28 = vxor.u32 2147483648, %v4150_v13  ;;  %v4245_v42 = vshrl.u32 %v12705_v51, %v4243_v8  ;;  %v4551_v54 = vclz %v9209_v47  ;;  %v4249_v62 = vshll.u32 %v4248_v53, 23 }
 0x4fb   : > { %17123 = vst [vmem:[#allocation24_spill] sm:$0xff] %v12765_v59  ;;  %v4642_v46 = vmul.u32 %v12711_v18, %v4626_v48  ;;  %v4645_v52 = vadd.s32 1, %v12753_v43  ;;  %vm3454_vm3 = vcmp.gt.s32.totalorder %v3453_v60, 0  ;;  %vm4644_vm1 = vc.u32 %v12760_v11, %v12752_v35 }
 0x4fc   : > { %v9210_v26 = vadd.s32 4294967294, %v4551_v54  ;;  %v3451_v9 = vor.u32 8388608, %v12731_v49  ;;  %v3455_v15 = vsel %vm3454_vm3, %v3453_v60, 0  ;;  %v4244_v31 = vshll.u32 %v12650_v57, %v12718_v30  ;;  %v3218_v60 = vpop.f32.mrf.mxu1 }
 0x4fd   : > { %v4646_v56 = vsel %vm4644_vm1, %v4645_v52, %v12753_v43  ;;  %v3457_v51 = vand.u32 31, %v3455_v15  ;;  %v3550_v8 = vand.u32 2139095040, %v12765_v59  ;;  %v12778_v53 = vmul.f32 %v3837_v37, %v3835_v23 }
 0x4fe   : > { %v12782_v18 = vsel %vm4069_vm14, %v4151_v28, %v4150_v13  ;;  %vm9211_vm7 = vcmp.lt.s32.totalorder %v9210_v26, 0  ;;  %v4647_v34 = vadd.s32 %v4646_v56, %v4642_v46  ;;  %v12784_v3 = vor.u32 %v4245_v42, %v4244_v31 }
 0x4ff   : > { %v12786_v49 = vor.u32 4788187, %v4249_v62  ;;  %v4539_v57 = vadd.s32 %v12675_v4, %v12681_v33  ;;  %v3458_v30 = vsub.s32 32, %v3457_v51  ;;  %v4554_v7 = vsel %vm9211_vm7, 0, %v9210_v26 }
 0x500   : > { %v4648_v43 = vadd.s32 536870912, %v4647_v34  ;;  %v12790_v19 = vshll.u32 %v3451_v9, 8  ;;  %v12793_v48 = vshrl.u32 %v3455_v15, 5  ;;  %v3551_v37 = vshrl.u32 %v3550_v8, 23 }
 0x501   : > { %v3461_v13 = vshrl.u32 %v16975_v14, %v3458_v30  ;;  %v3464_v12 = vshrl.u32 %v16976_v10, %v3458_v30  ;;  %v3460_v28 = vshll.u32 %v16981_v17, %v3457_v51  ;;  %v3463_v4 = vshll.u32 %v16975_v14, %v3457_v51 }
 0x502   : > { %v12797_v23 = vshrl.u32 %v4648_v43, 30  ;;  %v3467_v33 = vshrl.u32 %v17104_v44, %v3458_v30  ;;  %v4559_v42 = vsub.s32 4294967266, %v4554_v7  ;;  %v3466_v54 = vshll.u32 %v16976_v10, %v3457_v51 }
 0x503   : > { %v3469_v62 = vshll.u32 %v17104_v44, %v3457_v51  ;;  %v3470_v46 = vshrl.u32 %v16998_v2, %v3458_v30  ;;  %v3462_v26 = vor.u32 %v3461_v13, %v3460_v28  ;;  %v3465_v9 = vor.u32 %v3464_v12, %v3463_v4 }
 0x504   : > { %v4650_v52 = vshll.u32 %v12797_v23, 30  ;;  %v12807_v15 = vadd.f32 %v3218_v60, %v12284_v16  ;;  %v3468_v31 = vor.u32 %v3467_v33, %v3466_v54  ;;  %v3472_v8 = vshll.u32 %v16998_v2, %v3457_v51 }
 0x505   : > { %v3471_v56 = vor.u32 %v3470_v46, %v3469_v62  ;;  %v3473_v43 = vshrl.u32 %v16980_v38, %v3458_v30  ;;  %v12811_v20 = vpop.eup %10012  ;;  %v17125_v47 = vand.u32 2147483647, %v12426_v36  ;;  %v4555_v21 = vsub.s32 32, %v4554_v7 }
 0x506   : > { %17124 = vst [vmem:[#allocation19_spill] sm:$0xff] %v12811_v20  ;;  %v4556_v13 = vshll.u32 %v12738_v29, %v4554_v7  ;;  %v12820_v12 = vsub.s32 %v4647_v34, %v4650_v52  ;;  %v9172_v60 = vadd.s32 4294967169, %v3551_v37  ;;  %v4560_v28 = vadd.s32 127, %v4559_v42 }
 0x507   : > { %vm12815_vm8 = vcmp.le.f32.partialorder %v17125_v47, 0.7853982  ;;  %v3459_v4 = vshrl.u32 %v16981_v17, %v3458_v30  ;;  %v3474_v51 = vor.u32 %v3473_v43, %v3472_v8  ;;  %vm3475_vm0 = vcmp.lt.s32.totalorder %v12793_v48, 1 }
 0x508   : > { %v4653_v33 = vsub.s32 0, %v12820_v12  ;;  %vm3477_vm2 = vcmp.lt.s32.totalorder %v12793_v48, 3  ;;  %vm3478_vm13 = vcmp.lt.s32.totalorder %v12793_v48, 4  ;;  %v3483_v47 = vsel %vm3475_vm0, %v3462_v26, %v3465_v9 }
 0x509   : > { %v3480_v54 = vsel %vm3478_vm13, %v3468_v31, 2102212464  ;;  %v3484_v29 = vsel %vm3478_vm13, %v3471_v56, 920167782  ;;  %v3487_v34 = vsel %vm3475_vm0, %v3465_v9, %v3468_v31  ;;  %v3488_v7 = vsel %vm3478_vm13, %v3474_v51, 1326507024 }
 0x50a   : > { %v4557_v37 = vshrl.u32 %v4539_v57, %v4555_v21  ;;  %v9213_v30 = vmin.u32 %v4653_v33, %v12820_v12  ;;  %vm3476_vm12 = vcmp.lt.s32.totalorder %v12793_v48, 2  ;;  %v3485_v42 = vsel %vm3477_vm2, %v3468_v31, %v3484_v29 }
 0x50b   : > { %v4561_v62 = vshll.u32 %v4560_v28, 23  ;;  %v3486_v46 = vsel %vm3476_vm12, %v3483_v47, %v3485_v42  ;;  %v3489_v52 = vsel %vm3477_vm2, %v3471_v56, %v3488_v7  ;;  %v3557_v8 = vadd.s32 1, %v9172_v60 }
 0x50c   : > { %v4655_v43 = vclz %v9213_v30  ;;  %v3479_v51 = vsel %vm3475_vm0, %v3459_v4, %v3462_v26  ;;  %v3481_v21 = vsel %vm3477_vm2, %v3465_v9, %v3480_v54  ;;  %v3490_v57 = vsel %vm3476_vm12, %v3487_v34, %v3489_v52  ;;  %v3220_v4 = vpop.f32.mrf.mxu1 }
 0x50d   : > { %v12846_v31 = vmul.u32.u64.low %v12790_v19, %v3490_v57  ;;  %v12847_v28 = vmul.u32.u64.high %v12790_v19, %v3490_v57, %v12846_v31  ;;  %v12850_v33 = vmul.u32.u64.low %v12790_v19, %v3486_v46  ;;  %v12851_v47 = vmul.u32.u64.high %v12790_v19, %v3486_v46, %v12850_v33 }
 0x50e   : > { %v4558_v56 = vor.u32 %v4557_v37, %v4556_v13  ;;  %v9214_v60 = vadd.s32 4294967294, %v4655_v43  ;;  %v17128_v29 = vand.u32 2147483647, %v12765_v59  ;;  %vm3558_vm9 = vcmp.gt.s32.totalorder %v3557_v8, 0 }
 0x50f   : > { %v12860_v9 = vsel %vm12815_vm8, %v12426_v36, %v12782_v18  ;;  %v4562_v34 = vor.u32 4788187, %v4561_v62  ;;  %v3559_v7 = vsel %vm3558_vm9, %v3557_v8, 0  ;;  %v3482_v13 = vsel %vm3476_vm12, %v3479_v51, %v3481_v21 }
 0x510   : > { %v3554_v26 = vand.u32 8388607, %v17128_v29  ;;  %vm9215_vm6 = vcmp.lt.s32.totalorder %v9214_v60, 0  ;;  %v3561_v37 = vand.u32 31, %v3559_v7  ;;  %v4643_v42 = vadd.s32 %v12752_v35, %v12760_v11 }
 0x511   : > { %v12868_v46 = vsel %vm9215_vm6, 0, %v9214_v60  ;;  %vm3500_vm3 = vc.u32 %v12847_v28, %v12850_v33  ;;  %v12873_v18 = vadd.f32 %v3220_v4, %v12284_v16  ;;  %v4565_v62 = vcvt.s32.f32 %v4558_v56 }
 0x512   : > { %v3501_v52 = vadd.s32 1, %v12851_v47  ;;  %v3555_v8 = vor.u32 8388608, %v3554_v26  ;;  %v4563_v48 = vand.u32 2147483647, %v4562_v34  ;;  %v3498_v51 = vmul.u32 %v12790_v19, %v3482_v13 }
 0x513   : > { %17129 = vst [vmem:[#allocation14_spill] sm:$0xff] %v12873_v18  ;;  %v3560_v21 = vshrl.u32 %v3559_v7, 5  ;;  %v3562_v57 = vsub.s32 32, %v3561_v37  ;;  %v4659_v35 = vsub.s32 32, %v12868_v46  ;;  %v4663_v11 = vsub.s32 4294967266, %v12868_v46 }
 0x514   : > { %v3502_v31 = vsel %vm3500_vm3, %v3501_v52, %v12851_v47  ;;  %v3564_v16 = vshll.u32 %v16981_v17, %v3561_v37  ;;  %v3567_v29 = vshll.u32 %v16975_v14, %v3561_v37  ;;  %v3570_v4 = vshll.u32 %v16976_v10, %v3561_v37 }
 0x515   : > { %v3503_v60 = vadd.s32 %v3502_v31, %v3498_v51  ;;  %v3565_v56 = vshrl.u32 %v16975_v14, %v3562_v57  ;;  %v3568_v26 = vshrl.u32 %v16976_v10, %v3562_v57  ;;  %v3571_v19 = vshrl.u32 %v17104_v44, %v3562_v57 }
 0x516   : > { %v3573_v34 = vshll.u32 %v17104_v44, %v3561_v37  ;;  %v3574_v7 = vshrl.u32 %v16998_v2, %v3562_v57  ;;  %v4566_v13 = vmul.f32 %v4565_v62, %v4563_v48  ;;  %v4664_v54 = vadd.s32 127, %v4663_v11 }
 0x517   : > { %v3504_v43 = vadd.s32 536870912, %v3503_v60  ;;  %v3566_v47 = vor.u32 %v3565_v56, %v3564_v16  ;;  %v3569_v52 = vor.u32 %v3568_v26, %v3567_v29  ;;  %v3572_v51 = vor.u32 %v3571_v19, %v3570_v4 }
 0x518   : > { %v3575_v31 = vor.u32 %v3574_v7, %v3573_v34  ;;  %v3595_v30 = vshll.u32 %v3555_v8, 8  ;;  %v3576_v63 = vshll.u32 %v16998_v2, %v3561_v37  ;;  %v3577_v41 = vshrl.u32 %v16980_v38, %v3562_v57 }
 0x519   : > { %v12889_v59 = vshrl.u32 %v3504_v43, 30  ;;  %v3862_v0 = vand.u32 2139095040, %v12807_v15  ;;  %v4661_v20 = vshrl.u32 %v4643_v42, %v4659_v35  ;;  %v3563_v1 = vshrl.u32 %v16981_v17, %v3562_v57 }
 0x51a   : > { %vm3579_vm1 = vcmp.lt.s32.totalorder %v3560_v21, 1  ;;  %vm3582_vm7 = vcmp.lt.s32.totalorder %v3560_v21, 4  ;;  %vm4485_vm0 = vcmp.lt.s32.totalorder %v12546_v5, 0  ;;  %v3578_v48 = vor.u32 %v3577_v41, %v3576_v63 }
 0x51b   : > { %17130 = vst [vmem:[#allocation33_spill] sm:$0xff] %v12889_v59  ;;  %v3506_v62 = vshll.u32 %v12889_v59, 30  ;;  %v3584_v11 = vsel %vm3582_vm7, %v3572_v51, 2102212464  ;;  %v3587_v8 = vsel %vm3579_vm1, %v3566_v47, %v3569_v52  ;;  %v4665_v43 = vshll.u32 %v4664_v54, 23 }
 0x51c   : > { %vm3581_vm2 = vcmp.lt.s32.totalorder %v3560_v21, 3  ;;  %v3588_v37 = vsel %vm3582_vm7, %v3575_v31, 920167782  ;;  %v3591_v16 = vsel %vm3579_vm1, %v3569_v52, %v3572_v51  ;;  %vm3580_vm13 = vcmp.lt.s32.totalorder %v3560_v21, 2 }
 0x51d   : > { %v12899_v56 = vsub.s32 %v3503_v60, %v3506_v62  ;;  %v3589_v42 = vsel %vm3581_vm2, %v3572_v51, %v3588_v37  ;;  %v3592_v57 = vsel %vm3582_vm7, %v3578_v48, 1326507024  ;;  %v17131_v35 = vand.u32 2147483647, %v12546_v5 }
 0x51e   : > { %v3583_v41 = vsel %vm3579_vm1, %v3563_v1, %v3566_v47  ;;  %v3585_v63 = vsel %vm3581_vm2, %v3569_v52, %v3584_v11  ;;  %v3590_v54 = vsel %vm3580_vm13, %v3587_v8, %v3589_v42  ;;  %v3593_v26 = vsel %vm3581_vm2, %v3575_v31, %v3592_v57 }
 0x51f   : > { %vm12903_vm12 = vcmp.le.f32.partialorder %v17131_v35, 0.7853982  ;;  %v3509_v4 = vsub.s32 0, %v12899_v56  ;;  %v3594_v60 = vsel %vm3580_vm13, %v3591_v16, %v3593_v26  ;;  %v4567_v7 = vxor.u32 2147483648, %v4566_v13 }
 0x520   : > { %v12911_v19 = vmul.u32.u64.low %v3595_v30, %v3590_v54  ;;  %v12912_v34 = vmul.u32.u64.high %v3595_v30, %v3590_v54, %v12911_v19  ;;  %v12915_v51 = vmul.u32.u64.low %v3595_v30, %v3594_v60  ;;  %v12916_v62 = vmul.u32.u64.high %v3595_v30, %v3594_v60, %v12915_v51 }
 0x521   : > { %v3863_v48 = vshrl.u32 %v3862_v0, 23  ;;  %v4660_v1 = vshll.u32 %v12820_v12, %v12868_v46  ;;  %v4666_v47 = vor.u32 4788187, %v4665_v43  ;;  %v9169_v52 = vmin.u32 %v3509_v4, %v12899_v56 }
 0x522   : > { %v3586_v31 = vsel %vm3580_vm13, %v3583_v41, %v3585_v63  ;;  %v17134_v8 = vand.u32 2147483647, %v12786_v49  ;;  %v17135_v37 = vcvt.s32.f32 %v12784_v3  ;;  %v3966_v57 = vand.u32 2139095040, %v12873_v18 }
 0x523   : > { %v9184_v42 = vadd.s32 4294967169, %v3863_v48  ;;  %10014 = vcosq.f32 %v12860_v9  ;;  %v4662_v0 = vor.u32 %v4661_v20, %v4660_v1  ;;  %v3511_v12 = vclz %v9169_v52 }
 0x524   : > { %v12927_v16 = vmul.f32 %v17135_v37, %v17134_v8  ;;  %v3605_v46 = vadd.s32 1, %v12912_v34  ;;  %v4568_v21 = vsel %vm4485_vm0, %v4567_v7, %v4566_v13  ;;  %v3602_v43 = vmul.u32 %v3595_v30, %v3586_v31 }
 0x525   : > { %vm3604_vm9 = vc.u32 %v12916_v62, %v12911_v19  ;;  %v3869_v49 = vadd.s32 1, %v9184_v42  ;;  %v4667_v3 = vand.u32 2147483647, %v4666_v47  ;;  %v9170_v35 = vadd.s32 4294967294, %v3511_v12 }
 0x526   : > { %v3606_v41 = vsel %vm3604_vm9, %v3605_v46, %v12912_v34  ;;  %v17136_v63 = vand.u32 2147483647, %v12807_v15  ;;  %v3967_v4 = vshrl.u32 %v3966_v57, 23  ;;  %v12943_v30 = vsel %vm12903_vm12, %v12546_v5, %v4568_v21 }
 0x527   : > { %v3607_v26 = vadd.s32 %v3606_v41, %v3602_v43  ;;  %vm3870_vm6 = vcmp.gt.s32.totalorder %v3869_v49, 0  ;;  %v4669_v13 = vcvt.s32.f32 %v4662_v0  ;;  %vm9171_vm3 = vcmp.lt.s32.totalorder %v9170_v35, 0 }
 0x528   : > { %v3866_v54 = vand.u32 8388607, %v17136_v63  ;;  %v3871_v60 = vsel %vm3870_vm6, %v3869_v49, 0  ;;  %v3499_v7 = vadd.s32 %v12850_v33, %v12847_v28  ;;  %v3514_v34 = vsel %vm9171_vm3, 0, %v9170_v35 }
 0x529   : > { %v3608_v51 = vadd.s32 536870912, %v3607_v26  ;;  %v3873_v48 = vand.u32 31, %v3871_v60  ;;  %v12947_v1 = vmul.f32 %v4669_v13, %v4667_v3  ;;  %v3519_v47 = vsub.s32 4294967266, %v3514_v34 }
 0x52a   : > { %v3867_v52 = vor.u32 8388608, %v3866_v54  ;;  %v16810_v31 = vand.u32 2147483647, %v12873_v18  ;;  %v12952_v37 = vshrl.u32 %v3871_v60, 5  ;;  %v9188_v57 = vadd.s32 4294967169, %v3967_v4 }
 0x52b   : > { %v12950_v8 = vshrl.u32 %v3608_v51, 30  ;;  %v3874_v42 = vsub.s32 32, %v3873_v48  ;;  %v3515_v0 = vsub.s32 32, %v3514_v34  ;;  %v3520_v12 = vadd.s32 127, %v3519_v47 }
 0x52c   : > { %v3876_v46 = vshll.u32 %v16981_v17, %v3873_v48  ;;  %v3879_v28 = vshll.u32 %v16975_v14, %v3873_v48  ;;  %v3882_v49 = vshll.u32 %v16976_v10, %v3873_v48  ;;  %v3885_v41 = vshll.u32 %v17104_v44, %v3873_v48 }
 0x52d   : > { %17137 = vst [vmem:[#allocation17_spill] sm:$0xff] %v12950_v8  ;;  %v3610_v33 = vshll.u32 %v12950_v8, 30  ;;  %v3877_v21 = vshrl.u32 %v16975_v14, %v3874_v42  ;;  %v3880_v43 = vshrl.u32 %v16976_v10, %v3874_v42  ;;  %v3521_v3 = vshll.u32 %v3520_v12, 23 }
 0x52e   : > { %v3883_v35 = vshrl.u32 %v17104_v44, %v3874_v42  ;;  %v3886_v63 = vshrl.u32 %v16998_v2, %v3874_v42  ;;  %v3970_v60 = vand.u32 8388607, %v16810_v31  ;;  %v3516_v51 = vshll.u32 %v12899_v56, %v3514_v34 }
 0x52f   : > { %v12963_v54 = vsub.s32 %v3607_v26, %v3610_v33  ;;  %v3878_v4 = vor.u32 %v3877_v21, %v3876_v46  ;;  %v3881_v13 = vor.u32 %v3880_v43, %v3879_v28  ;;  %v12968_v11 = vshll.u32 %v3867_v52, 8 }
 0x530   : > { %v3884_v47 = vor.u32 %v3883_v35, %v3882_v49  ;;  %v3887_v20 = vor.u32 %v3886_v63, %v3885_v41  ;;  %v12970_v12 = vpop.eup %10014  ;;  %vm3757_vm1 = vcmp.lt.s32.totalorder %v12297_v27, 0  ;;  %v3888_v26 = vshll.u32 %v16998_v2, %v3873_v48  ;;  %v3224_v63 = vpop.f32.mrf.mxu1 }
 0x531   : > { %17138 = vst [vmem:[#allocation26_spill] sm:$0xff] %v12970_v12  ;;  %v3613_v59 = vsub.s32 0, %v12963_v54  ;;  %v3889_v46 = vshrl.u32 %v16980_v38, %v3874_v42  ;;  %v3973_v28 = vadd.s32 1, %v9188_v57  ;;  %vm4173_vm7 = vcmp.lt.s32.totalorder %v12462_v24, 0 }
 0x532   : > { %v3517_v33 = vshrl.u32 %v3499_v7, %v3515_v0  ;;  %v3522_v21 = vor.u32 4788187, %v3521_v3  ;;  %v3875_v56 = vshrl.u32 %v16981_v17, %v3874_v42  ;;  %vm3891_vm2 = vcmp.lt.s32.totalorder %v12952_v37, 1 }
 0x533   : > { %v9173_v34 = vmin.u32 %v3613_v59, %v12963_v54  ;;  %v3890_v52 = vor.u32 %v3889_v46, %v3888_v26  ;;  %vm3894_vm13 = vcmp.lt.s32.totalorder %v12952_v37, 4  ;;  %v3899_v43 = vsel %vm3891_vm2, %v3878_v4, %v3881_v13 }
 0x534   : > { %vm3893_vm9 = vcmp.lt.s32.totalorder %v12952_v37, 3  ;;  %v3896_v48 = vsel %vm3894_vm13, %v3884_v47, 2102212464  ;;  %v3900_v49 = vsel %vm3894_vm13, %v3887_v20, 920167782  ;;  %v3903_v35 = vsel %vm3891_vm2, %v3881_v13, %v3884_v47 }
 0x535   : > { %v3615_v57 = vclz %v9173_v34  ;;  %vm3892_vm6 = vcmp.lt.s32.totalorder %v12952_v37, 2  ;;  %v3901_v7 = vsel %vm3893_vm9, %v3884_v47, %v3900_v49  ;;  %v3904_v0 = vsel %vm3894_vm13, %v3890_v52, 1326507024 }
 0x536   : > { %v3518_v3 = vor.u32 %v3517_v33, %v3516_v51  ;;  %v3895_v42 = vsel %vm3891_vm2, %v3875_v56, %v3878_v4  ;;  %v3902_v41 = vsel %vm3892_vm6, %v3899_v43, %v3901_v7  ;;  %v3905_v59 = vsel %vm3893_vm9, %v3887_v20, %v3904_v0 }
 0x537   : > { %v3897_v26 = vsel %vm3893_vm9, %v3881_v13, %v3896_v48  ;;  %v3906_v46 = vsel %vm3892_vm6, %v3903_v35, %v3905_v59  ;;  %v12988_v31 = vmul.u32.u64.low %v12968_v11, %v3902_v41  ;;  %v12989_v8 = vmul.u32.u64.high %v12968_v11, %v3902_v41, %v12988_v31 }
 0x538   : > { %v9174_v34 = vadd.s32 4294967294, %v3615_v57  ;;  %v12993_v47 = vmul.u32.u64.low %v12968_v11, %v3906_v46  ;;  %v12994_v52 = vmul.u32.u64.high %v12968_v11, %v3906_v46, %v12993_v47  ;;  %vm3974_vm3 = vcmp.gt.s32.totalorder %v3973_v28, 0 }
 0x539   : > { %v3523_v4 = vand.u32 2147483647, %v3522_v21  ;;  %v3971_v51 = vor.u32 8388608, %v3970_v60  ;;  %v3975_v33 = vsel %vm3974_vm3, %v3973_v28, 0  ;;  %v12997_v20 = vadd.f32 %v3224_v63, %v12270_v22 }
 0x53a   : > { %v17139_v13 = vxor.u32 2147483648, %v12778_v53  ;;  %10016 = vsinq.f32 %v12860_v9  ;;  %v3898_v43 = vsel %vm3892_vm6, %v3895_v42, %v3897_v26  ;;  %v3977_v48 = vand.u32 31, %v3975_v33 }
 0x53b   : > { %v17141_v60 = vxor.u32 2147483648, %v12927_v16  ;;  %10018 = vcosq.f32 %v12943_v30  ;;  %v3525_v49 = vcvt.s32.f32 %v3518_v3  ;;  %vm9175_vm2 = vcmp.lt.s32.totalorder %v9174_v34, 0 }
 0x53c   : > { %v13004_v56 = vsel %vm3757_vm1, %v17139_v13, %v12778_v53  ;;  %vm3916_vm13 = vc.u32 %v12994_v52, %v12988_v31  ;;  %v3917_v53 = vadd.s32 1, %v12989_v8  ;;  %v3978_v9 = vsub.s32 32, %v3977_v48 }
 0x53d   : > { %17140 = vst [vmem:[#allocation30_spill] sm:$0xff] %v13004_v56  ;;  %v13014_v28 = vsel %vm4173_vm7, %v17141_v60, %v12927_v16  ;;  %v13021_v37 = vmul.f32 %v3525_v49, %v3523_v4  ;;  %v3914_v35 = vmul.u32 %v12968_v11, %v3898_v43  ;;  %v13024_v57 = vshll.u32 %v3971_v51, 8 }
 0x53e   : > { %v3918_v7 = vsel %vm3916_vm13, %v3917_v53, %v12989_v8  ;;  %v3980_v0 = vshll.u32 %v16981_v17, %v3977_v48  ;;  %v3981_v3 = vshrl.u32 %v16975_v14, %v3978_v9  ;;  %v3984_v42 = vshrl.u32 %v16976_v10, %v3978_v9 }
 0x53f   : > { %v13031_v41 = vsel %vm9175_vm2, 0, %v9174_v34  ;;  %v3919_v59 = vadd.s32 %v3918_v7, %v3914_v35  ;;  %v3983_v63 = vshll.u32 %v16975_v14, %v3977_v48  ;;  %v4278_v26 = vand.u32 2139095040, %v12997_v20 }
 0x540   : > { %v3976_v11 = vshrl.u32 %v3975_v33, 5  ;;  %v3982_v46 = vor.u32 %v3981_v3, %v3980_v0  ;;  %v3986_v47 = vshll.u32 %v16976_v10, %v3977_v48  ;;  %v3987_v4 = vshrl.u32 %v17104_v44, %v3978_v9 }
 0x541   : > { %v3920_v8 = vadd.s32 536870912, %v3919_v59  ;;  %v3985_v51 = vor.u32 %v3984_v42, %v3983_v63  ;;  %v3989_v13 = vshll.u32 %v17104_v44, %v3977_v48  ;;  %v3990_v43 = vshrl.u32 %v16998_v2, %v3978_v9 }
 0x542   : > { %v3527_v34 = vxor.u32 2147483648, %v13021_v37  ;;  %v3988_v60 = vor.u32 %v3987_v4, %v3986_v47  ;;  %v3992_v49 = vshll.u32 %v16998_v2, %v3977_v48  ;;  %v3993_v53 = vshrl.u32 %v16980_v38, %v3978_v9 }
 0x543   : > { %vm16825_vm9 = vcmp.lt.s32.totalorder %v12655_v25, 0  ;;  %v3623_v33 = vsub.s32 4294967266, %v13031_v41  ;;  %v13044_v35 = vshrl.u32 %v3920_v8, 30  ;;  %v3991_v7 = vor.u32 %v3990_v43, %v3989_v13 }
 0x544   : > { %v4279_v0 = vshrl.u32 %v4278_v26, 23  ;;  %v3619_v3 = vsub.s32 32, %v13031_v41  ;;  %v3979_v42 = vshrl.u32 %v16981_v17, %v3978_v9  ;;  %v3994_v63 = vor.u32 %v3993_v53, %v3992_v49 }
 0x545   : > { %17142 = vst [vmem:[#allocation18_spill] sm:$0xff] %v13044_v35  ;;  %vm3995_vm6 = vcmp.lt.s32.totalorder %v3976_v11, 1  ;;  %v3922_v47 = vshll.u32 %v13044_v35, 30  ;;  %vm3997_vm3 = vcmp.lt.s32.totalorder %v3976_v11, 3  ;;  %vm3998_vm2 = vcmp.lt.s32.totalorder %v3976_v11, 4 }
 0x546   : > { %v4003_v48 = vsel %vm3995_vm6, %v3982_v46, %v3985_v51  ;;  %v4000_v4 = vsel %vm3998_vm2, %v3988_v60, 2102212464  ;;  %v4004_v21 = vsel %vm3998_vm2, %v3991_v7, 920167782  ;;  %v4007_v16 = vsel %vm3995_vm6, %v3985_v51, %v3988_v60 }
 0x547   : > { %v4008_v18 = vsel %vm3998_vm2, %v3994_v63, 1326507024  ;;  %v13049_v39 = vpop.eup %10016  ;;  %v3624_v8 = vadd.s32 127, %v3623_v33  ;;  %v13051_v13 = vsub.s32 %v3919_v59, %v3922_v47  ;;  %vm3996_vm13 = vcmp.lt.s32.totalorder %v3976_v11, 2  ;;  %v3226_v47 = vpop.f32.mrf.mxu1 }
 0x548   : > { %17143 = vst [vmem:[#allocation32_spill] sm:$0xff] %v13049_v39  ;;  %v4005_v26 = vsel %vm3997_vm3, %v3988_v60, %v4004_v21  ;;  %v13054_v9 = vpop.eup %10018  ;;  %v3999_v43 = vsel %vm3995_vm6, %v3979_v42, %v3982_v46  ;;  %v4009_v53 = vsel %vm3997_vm3, %v3991_v7, %v4008_v18  ;;  %v9200_v35 = vadd.s32 4294967169, %v4279_v0 }
 0x549   : > { %v4006_v49 = vsel %vm3996_vm13, %v4003_v48, %v4005_v26  ;;  %v3925_v45 = vsub.s32 0, %v13051_v13  ;;  %v4001_v63 = vsel %vm3997_vm3, %v3985_v51, %v4000_v4  ;;  %v4010_v12 = vsel %vm3996_vm13, %v4007_v16, %v4009_v53 }
 0x54a   : > { %v17144_v59 = vand.u32 2147483647, %v12997_v20  ;;  %v13064_v21 = vmul.u32.u64.low %v13024_v57, %v4010_v12  ;;  %v13065_v60 = vmul.u32.u64.high %v13024_v57, %v4010_v12, %v13064_v21  ;;  %v3603_v18 = vadd.s32 %v12911_v19, %v12916_v62 }
 0x54b   : > { %v13068_v46 = vmul.u32.u64.low %v13024_v57, %v4006_v49  ;;  %v13069_v42 = vmul.u32.u64.high %v13024_v57, %v4006_v49, %v13068_v46  ;;  %v3625_v7 = vshll.u32 %v3624_v8, 23  ;;  %v9185_v51 = vmin.u32 %v3925_v45, %v13051_v13 }
 0x54c   : > { %v4282_v33 = vand.u32 8388607, %v17144_v59  ;;  %v4285_v16 = vadd.s32 1, %v9200_v35  ;;  %v13078_v0 = vsel %vm16825_vm9, %v3527_v34, %v13021_v37  ;;  %v4002_v12 = vsel %vm3996_vm13, %v3999_v43, %v4001_v63 }
 0x54d   : > { %v13082_v4 = vadd.f32 %v3226_v47, %v12270_v22  ;;  %v3915_v19 = vadd.s32 %v12988_v31, %v12994_v52  ;;  %v3927_v62 = vclz %v9185_v51  ;;  %v13088_v45 = vshrl.u32 %v3603_v18, %v3619_v3 }
 0x54e   : > { %v4283_v48 = vor.u32 8388608, %v4282_v33  ;;  %vm4286_vm6 = vcmp.gt.s32.totalorder %v4285_v16, 0  ;;  %vm4020_vm3 = vc.u32 %v13065_v60, %v13068_v46  ;;  %v4021_v37 = vadd.s32 1, %v13069_v42 }
 0x54f   : > { %v4287_v11 = vsel %vm4286_vm6, %v4285_v16, 0  ;;  %v13093_v34 = vor.u32 4788187, %v3625_v7  ;;  %v9186_v22 = vadd.s32 4294967294, %v3927_v62  ;;  %v4018_v35 = vmul.u32 %v13024_v57, %v4002_v12 }
 0x550   : > { %v4289_v8 = vand.u32 31, %v4287_v11  ;;  %v4022_v43 = vsel %vm4020_vm3, %v4021_v37, %v13069_v42  ;;  %v13097_v49 = vshrl.u32 %v4287_v11, 5  ;;  %v13099_v31 = vshll.u32 %v4283_v48, 8 }
 0x551   : > { %vm9187_vm2 = vcmp.lt.s32.totalorder %v9186_v22, 0  ;;  %v4023_v3 = vadd.s32 %v4022_v43, %v4018_v35  ;;  %v17145_v56 = vand.u32 2147483647, %v12655_v25  ;;  %v17146_v61 = vmov 0 }
 0x552   : > { %v4290_v53 = vsub.s32 32, %v4289_v8  ;;  %v3930_v59 = vsel %vm9187_vm2, 0, %v9186_v22  ;;  %v4292_v33 = vshll.u32 %v16981_v17, %v4289_v8  ;;  %v4295_v47 = vshll.u32 %v16975_v14, %v4289_v8 }
 0x553   : > { %v4298_v57 = vshll.u32 %v16976_v10, %v4289_v8  ;;  %v3931_v21 = vsub.s32 32, %v3930_v59  ;;  %v3935_v42 = vsub.s32 4294967266, %v3930_v59  ;;  %v4024_v18 = vadd.s32 536870912, %v4023_v3 }
 0x554   : > { %v4301_v7 = vshll.u32 %v17104_v44, %v4289_v8  ;;  %v3932_v51 = vshll.u32 %v13051_v13, %v3930_v59  ;;  %v4293_v16 = vshrl.u32 %v16975_v14, %v4290_v53  ;;  %v4296_v12 = vshrl.u32 %v16976_v10, %v4290_v53 }
 0x555   : > { %v4299_v48 = vshrl.u32 %v17104_v44, %v4290_v53  ;;  %v3933_v62 = vshrl.u32 %v3915_v19, %v3931_v21  ;;  %v3936_v37 = vadd.s32 127, %v3935_v42  ;;  %v13111_v11 = vshrl.u32 %v4024_v18, 30 }
 0x556   : > { %v4302_v22 = vshrl.u32 %v16998_v2, %v4290_v53  ;;  %v4291_v35 = vshrl.u32 %v16981_v17, %v4290_v53  ;;  %v4294_v43 = vor.u32 %v4293_v16, %v4292_v33  ;;  %v4297_v52 = vor.u32 %v4296_v12, %v4295_v47 }
 0x557   : > { %v4300_v63 = vor.u32 %v4299_v48, %v4298_v57  ;;  %v3934_v26 = vor.u32 %v3933_v62, %v3932_v51  ;;  %v3937_v39 = vshll.u32 %v3936_v37, 23  ;;  %v4026_v13 = vshll.u32 %v13111_v11, 30 }
 0x558   : > { %v4303_v59 = vor.u32 %v4302_v22, %v4301_v7  ;;  %vm13118_vm13 = vcmp.le.f32.partialorder %v17145_v56, 0.7853982  ;;  %v4304_v19 = vshll.u32 %v16998_v2, %v4289_v8  ;;  %v4305_v21 = vshrl.u32 %v16980_v38, %v4290_v53 }
 0x559   : > { %v17147_v61 = vsel %vm13118_vm13, 4294967295, %v17146_v61  ;;  %vm4307_vm6 = vcmp.lt.s32.totalorder %v13097_v49, 1  ;;  %vm4308_vm3 = vcmp.lt.s32.totalorder %v13097_v49, 2  ;;  %vm4589_vm2 = vcmp.lt.s32.totalorder %v12559_v32, 0 }
 0x55a   : > { %17148 = vst [vmem:[#allocation25_spill] sm:$0xff] %v17147_v61  ;;  %v3938_v33 = vor.u32 4788187, %v3937_v39  ;;  %v13127_v47 = vsub.s32 %v4023_v3, %v4026_v13  ;;  %vm4309_vm9 = vcmp.lt.s32.totalorder %v13097_v49, 3  ;;  %vm4310_vm5 = vcmp.lt.s32.totalorder %v13097_v49, 4  ;;  %v3230_v39 = vpop.f32.mrf.mxu1 }
 0x55b   : > { %v3941_v56 = vcvt.s32.f32 %v3934_v26  ;;  %v4306_v57 = vor.u32 %v4305_v21, %v4304_v19  ;;  %v4312_v42 = vsel %vm4310_vm5, %v4300_v63, 2102212464  ;;  %v4315_v8 = vsel %vm4307_vm6, %v4294_v43, %v4297_v52 }
 0x55c   : > { %v3939_v53 = vand.u32 2147483647, %v3938_v33  ;;  %v4029_v18 = vsub.s32 0, %v13127_v47  ;;  %v4311_v7 = vsel %vm4307_vm6, %v4291_v35, %v4294_v43  ;;  %v4316_v51 = vsel %vm4310_vm5, %v4303_v59, 920167782 }
 0x55d   : > { %vm16830_vm15 = vcmp.lt.s32.totalorder %v12807_v15, 0  ;;  %v4313_v3 = vsel %vm4309_vm9, %v4297_v52, %v4312_v42  ;;  %v4317_v26 = vsel %vm4309_vm9, %v4300_v63, %v4316_v51  ;;  %v4319_v16 = vsel %vm4307_vm6, %v4297_v52, %v4300_v63 }
 0x55e   : > { %v4320_v12 = vsel %vm4310_vm5, %v4306_v57, 1326507024  ;;  %v3942_v48 = vmul.f32 %v3941_v56, %v3939_v53  ;;  %v9189_v62 = vmin.u32 %v4029_v18, %v13127_v47  ;;  %v4318_v37 = vsel %vm4308_vm3, %v4315_v8, %v4317_v26 }
 0x55f   : > { %v4321_v22 = vsel %vm4309_vm9, %v4303_v59, %v4320_v12  ;;  %v13151_v43 = vmul.u32.u64.low %v13099_v31, %v4318_v37  ;;  %v13152_v13 = vmul.u32.u64.high %v13099_v31, %v4318_v37, %v13151_v43  ;;  %v13155_v19 = vadd.f32 %v3230_v39, %v12272_v58  ;;  %v3232_v37 = vpop.f32.mrf.mxu1 }
 0x560   : > { %v4322_v35 = vsel %vm4308_vm3, %v4319_v16, %v4321_v22  ;;  %v17149_v52 = vshll.u32 %v12963_v54, %v13031_v41  ;;  %v17150_v21 = vand.u32 2147483647, %v12807_v15  ;;  %v17151_v33 = vmov 0 }
 0x561   : > { %v4031_v59 = vclz %v9189_v62  ;;  %v13168_v56 = vmul.u32.u64.low %v13099_v31, %v4322_v35  ;;  %v13169_v57 = vmul.u32.u64.high %v13099_v31, %v4322_v35, %v13168_v56  ;;  %10020 = vsinq.f32 %v12943_v30 }
 0x562   : > { %v3622_v63 = vor.u32 %v13088_v45, %v17149_v52  ;;  %vm13163_vm5 = vcmp.le.f32.partialorder %v17150_v21, 0.7853982  ;;  %v4314_v42 = vsel %vm4308_vm3, %v4311_v7, %v4313_v3  ;;  %v17154_v54 = vand.u32 2139095040, %v13082_v4 }
 0x563   : > { %v17152_v33 = vsel %vm13163_vm5, 4294967295, %v17151_v33  ;;  %v17155_v45 = vand.u32 2147483647, %v13082_v4  ;;  %v3531_v53 = vsel %vm13118_vm13, %v12655_v25, %v13078_v0  ;;  %v3627_v18 = vand.u32 2147483647, %v13093_v34 }
 0x564   : > { %17153 = vst [vmem:[#allocation21_spill] sm:$0xff] %v17152_v33  ;;  %v4383_v41 = vshrl.u32 %v17154_v54, 23  ;;  %v3943_v51 = vxor.u32 2147483648, %v3942_v48  ;;  %v9190_v39 = vadd.s32 4294967294, %v4031_v59  ;;  %v17156_v30 = vxor.u32 2147483648, %v12947_v1 }
 0x565   : > { %v4386_v8 = vand.u32 8388607, %v17155_v45  ;;  %v4333_v7 = vadd.s32 1, %v13152_v13  ;;  %v16828_v26 = vand.u32 2147483647, %v13155_v19  ;;  %v3629_v16 = vcvt.s32.f32 %v3622_v63 }
 0x566   : > { %v13188_v49 = vsel %vm4589_vm2, %v17156_v30, %v12947_v1  ;;  %v9204_v3 = vadd.s32 4294967169, %v4383_v41  ;;  %vm9191_vm9 = vcmp.lt.s32.totalorder %v9190_v39, 0  ;;  %v4330_v0 = vmul.u32 %v13099_v31, %v4314_v42 }
 0x567   : > { %vm4332_vm6 = vc.u32 %v13169_v57, %v13151_v43  ;;  %10022 = vcosq.f32 %v3531_v53  ;;  %v4387_v12 = vor.u32 8388608, %v4386_v8  ;;  %v13195_v1 = vmul.f32 %v3629_v16, %v3627_v18 }
 0x568   : > { %v4334_v34 = vsel %vm4332_vm6, %v4333_v7, %v13152_v13  ;;  %v4389_v62 = vadd.s32 1, %v9204_v3  ;;  %10024 = vsinq.f32 %v3531_v53  ;;  %v3944_v22 = vsel %vm16830_vm15, %v3943_v51, %v3942_v48 }
 0x569   : > { %v4335_v35 = vadd.s32 %v4334_v34, %v4330_v0  ;;  %v13199_v52 = vsel %vm9191_vm9, 0, %v9190_v39  ;;  %v4694_v31 = vand.u32 2139095040, %v13155_v19  ;;  %v13204_v63 = vand.u32 8388607, %v16828_v26 }
 0x56a   : > { %vm4390_vm3 = vcmp.gt.s32.totalorder %v4389_v62, 0  ;;  %v13207_v59 = vadd.f32 %v3232_v37, %v12272_v58  ;;  %v13213_v48 = vsel %vm13163_vm5, %v12807_v15, %v3944_v22  ;;  %v4019_v42 = vadd.s32 %v13068_v46, %v13065_v60 }
 0x56b   : > { %v4336_v13 = vadd.s32 536870912, %v4335_v35  ;;  %v4391_v21 = vsel %vm4390_vm3, %v4389_v62, 0  ;;  %v13217_v41 = vshll.u32 %v4387_v12, 8  ;;  %v4035_v45 = vsub.s32 32, %v13199_v52 }
 0x56c   : > { %v4393_v54 = vand.u32 31, %v4391_v21  ;;  %v4036_v8 = vshll.u32 %v13127_v47, %v13199_v52  ;;  %v13223_v58 = vadd.s32 %v13151_v43, %v13169_v57  ;;  %v4039_v18 = vsub.s32 4294967266, %v13199_v52 }
 0x56d   : > { %v13225_v53 = vshrl.u32 %v4336_v13, 30  ;;  %v4695_v39 = vshrl.u32 %v4694_v31, 23  ;;  %v4699_v30 = vor.u32 8388608, %v13204_v63  ;;  %v4392_v46 = vshrl.u32 %v4391_v21, 5 }
 0x56e   : > { %v4394_v51 = vsub.s32 32, %v4393_v54  ;;  %v4396_v7 = vshll.u32 %v16981_v17, %v4393_v54  ;;  %v4399_v3 = vshll.u32 %v16975_v14, %v4393_v54  ;;  %v4402_v57 = vshll.u32 %v16976_v10, %v4393_v54  ;;  %v13236_v0 = vpop.eup %10020 }
 0x56f   : > { %v4338_v60 = vshll.u32 %v13225_v53, 30  ;;  %v4405_v12 = vshll.u32 %v17104_v44, %v4393_v54  ;;  %v4408_v37 = vshll.u32 %v16998_v2, %v4393_v54  ;;  %vm4411_vm9 = vcmp.lt.s32.totalorder %v4392_v46, 1 }
 0x570   : > { %v4397_v47 = vshrl.u32 %v16975_v14, %v4394_v51  ;;  %v4400_v43 = vshrl.u32 %v16976_v10, %v4394_v51  ;;  %v4403_v16 = vshrl.u32 %v17104_v44, %v4394_v51  ;;  %v4406_v62 = vshrl.u32 %v16998_v2, %v4394_v51 }
 0x571   : > { %v13238_v34 = vsub.s32 %v4335_v35, %v4338_v60  ;;  %v4409_v63 = vshrl.u32 %v16980_v38, %v4394_v51  ;;  %v4395_v21 = vshrl.u32 %v16981_v17, %v4394_v51  ;;  %vm4414_vm6 = vcmp.lt.s32.totalorder %v4392_v46, 4 }
 0x572   : > { %v4398_v22 = vor.u32 %v4397_v47, %v4396_v7  ;;  %v4401_v52 = vor.u32 %v4400_v43, %v4399_v3  ;;  %v4404_v31 = vor.u32 %v4403_v16, %v4402_v57  ;;  %v4407_v26 = vor.u32 %v4406_v62, %v4405_v12 }
 0x573   : > { %v4341_v13 = vsub.s32 0, %v13238_v34  ;;  %v4410_v35 = vor.u32 %v4409_v63, %v4408_v37  ;;  %v9216_v60 = vadd.s32 4294967169, %v4695_v39  ;;  %vm4413_vm3 = vcmp.lt.s32.totalorder %v4392_v46, 3 }
 0x574   : > { %v13247_v61 = vpop.eup %10022  ;;  %v4415_v7 = vsel %vm4411_vm9, %v4395_v21, %v4398_v22  ;;  %v4416_v3 = vsel %vm4414_vm6, %v4404_v31, 2102212464  ;;  %v4037_v43 = vshrl.u32 %v4019_v42, %v4035_v45  ;;  %v4419_v57 = vsel %vm4411_vm9, %v4398_v22, %v4401_v52 }
 0x575   : > { %17157 = vst [vmem:[#allocation16_spill] sm:$0xff] %v13247_v61  ;;  %v9201_v54 = vmin.u32 %v4341_v13, %v13238_v34  ;;  %v13252_v47 = vpop.eup %10024  ;;  %v4417_v51 = vsel %vm4413_vm3, %v4401_v52, %v4416_v3  ;;  %v4420_v16 = vsel %vm4414_vm6, %v4407_v26, 920167782  ;;  %vm4412_vm15 = vcmp.lt.s32.totalorder %v4392_v46, 2 }
 0x576   : > { %17158 = vst [vmem:[#allocation31_spill] sm:$0xff] %v13252_v47  ;;  %v4421_v39 = vsel %vm4413_vm3, %v4404_v31, %v4420_v16  ;;  %v4423_v62 = vsel %vm4411_vm9, %v4401_v52, %v4404_v31  ;;  %v4418_v37 = vsel %vm4412_vm15, %v4415_v7, %v4417_v51  ;;  %v4424_v13 = vsel %vm4414_vm6, %v4410_v35, 1326507024 }
 0x577   : > { %v4343_v12 = vclz %v9201_v54  ;;  %v4422_v63 = vsel %vm4412_vm15, %v4419_v57, %v4421_v39  ;;  %v4701_v21 = vadd.s32 1, %v9216_v60  ;;  %v4425_v42 = vsel %vm4413_vm3, %v4407_v26, %v4424_v13 }
 0x578   : > { %v13262_v45 = vmul.u32.u64.low %v13217_v41, %v4422_v63  ;;  %v13263_v3 = vmul.u32.u64.high %v13217_v41, %v4422_v63, %v13262_v45  ;;  %v13266_v22 = vadd.s32 127, %v4039_v18  ;;  %v4426_v54 = vsel %vm4412_vm15, %v4423_v62, %v4425_v42 }
 0x579   : > { %v9202_v56 = vadd.s32 4294967294, %v4343_v12  ;;  %vm4702_vm10 = vcmp.gt.s32.totalorder %v4701_v21, 0  ;;  %v13268_v16 = vshll.u32 %v4699_v30, 8  ;;  %v13274_v60 = vor.u32 %v4037_v43, %v4036_v8 }
 0x57a   : > { %v13271_v52 = vmul.u32.u64.low %v13217_v41, %v4426_v54  ;;  %v13272_v31 = vmul.u32.u64.high %v13217_v41, %v4426_v54, %v13271_v52  ;;  %v4703_v35 = vsel %vm4702_vm10, %v4701_v21, 0  ;;  %v4434_v46 = vmul.u32 %v13217_v41, %v4418_v37 }
 0x57b   : > { %vm9203_vm9 = vcmp.lt.s32.totalorder %v9202_v56, 0  ;;  %v4705_v7 = vand.u32 31, %v4703_v35  ;;  %v4437_v18 = vadd.s32 1, %v13263_v3  ;;  %v4798_v12 = vand.u32 2139095040, %v13207_v59 }
 0x57c   : > { %v4346_v26 = vsel %vm9203_vm9, 0, %v9202_v56  ;;  %v4704_v39 = vshrl.u32 %v4703_v35, 5  ;;  %vm4436_vm10 = vc.u32 %v13272_v31, %v13262_v45  ;;  %10026 = vcosq.f32 %v13213_v48 }
 0x57d   : > { %v4347_v51 = vsub.s32 32, %v4346_v26  ;;  %v4351_v57 = vsub.s32 4294967266, %v4346_v26  ;;  %v4348_v30 = vshll.u32 %v13238_v34, %v4346_v26  ;;  %v4706_v62 = vsub.s32 32, %v4705_v7 }
 0x57e   : > { %v4708_v63 = vshll.u32 %v16981_v17, %v4705_v7  ;;  %v4711_v56 = vshll.u32 %v16975_v14, %v4705_v7  ;;  %v4438_v41 = vsel %vm4436_vm10, %v4437_v18, %v13263_v3  ;;  %v4714_v34 = vshll.u32 %v16976_v10, %v4705_v7 }
 0x57f   : > { %v4349_v13 = vshrl.u32 %v13223_v58, %v4347_v51  ;;  %v4352_v8 = vadd.s32 127, %v4351_v57  ;;  %v4709_v43 = vshrl.u32 %v16975_v14, %v4706_v62  ;;  %v4712_v37 = vshrl.u32 %v16976_v10, %v4706_v62 }
 0x580   : > { %v4439_v54 = vadd.s32 %v4438_v41, %v4434_v46  ;;  %v4715_v52 = vshrl.u32 %v17104_v44, %v4706_v62  ;;  %v4717_v26 = vshll.u32 %v17104_v44, %v4705_v7  ;;  %v4718_v51 = vshrl.u32 %v16998_v2, %v4706_v62 }
 0x581   : > { %v4350_v21 = vor.u32 %v4349_v13, %v4348_v30  ;;  %v4353_v42 = vshll.u32 %v4352_v8, 23  ;;  %v4710_v58 = vor.u32 %v4709_v43, %v4708_v63  ;;  %v4713_v35 = vor.u32 %v4712_v37, %v4711_v56 }
 0x582   : > { %v4041_v57 = vshll.u32 %v13266_v22, 23  ;;  %v4440_v18 = vadd.s32 536870912, %v4439_v54  ;;  %v4716_v61 = vor.u32 %v4715_v52, %v4714_v34  ;;  %v4719_v47 = vor.u32 %v4718_v51, %v4717_v26 }
 0x583   : > { %v4354_v3 = vor.u32 4788187, %v4353_v42  ;;  %v4720_v25 = vshll.u32 %v16998_v2, %v4705_v7  ;;  %v4721_v30 = vshrl.u32 %v16980_v38, %v4706_v62  ;;  %v4799_v13 = vshrl.u32 %v4798_v12, 23 }
 0x584   : > { %v4357_v46 = vcvt.s32.f32 %v4350_v21  ;;  %v13295_v8 = vshrl.u32 %v4440_v18, 30  ;;  %v4707_v63 = vshrl.u32 %v16981_v17, %v4706_v62  ;;  %vm4723_vm15 = vcmp.lt.s32.totalorder %v4704_v39, 1 }
 0x585   : > { %v4355_v56 = vand.u32 2147483647, %v4354_v3  ;;  %v4722_v41 = vor.u32 %v4721_v30, %v4720_v25  ;;  %vm4726_vm6 = vcmp.lt.s32.totalorder %v4704_v39, 4  ;;  %v4731_v43 = vsel %vm4723_vm15, %v4710_v58, %v4713_v35 }
 0x586   : > { %v4442_v22 = vshll.u32 %v13295_v8, 30  ;;  %vm4725_vm3 = vcmp.lt.s32.totalorder %v4704_v39, 3  ;;  %v4728_v37 = vsel %vm4726_vm6, %v4716_v61, 2102212464  ;;  %v4732_v34 = vsel %vm4726_vm6, %v4719_v47, 920167782 }
 0x587   : > { %vm4724_vm9 = vcmp.lt.s32.totalorder %v4704_v39, 2  ;;  %v4733_v7 = vsel %vm4725_vm3, %v4716_v61, %v4732_v34  ;;  %v4735_v42 = vsel %vm4723_vm15, %v4713_v35, %v4716_v61  ;;  %v4736_v52 = vsel %vm4726_vm6, %v4722_v41, 1326507024 }
 0x588   : > { %v13299_v12 = vsub.s32 %v4439_v54, %v4442_v22  ;;  %v4727_v21 = vsel %vm4723_vm15, %v4707_v63, %v4710_v58  ;;  %v4729_v26 = vsel %vm4725_vm3, %v4713_v35, %v4728_v37  ;;  %v4734_v62 = vsel %vm4724_vm9, %v4731_v43, %v4733_v7 }
 0x589   : > { %v4042_v51 = vor.u32 4788187, %v4041_v57  ;;  %vm16839_vm10 = vcmp.lt.s32.totalorder %v12997_v20, 0  ;;  %v4737_v25 = vsel %vm4725_vm3, %v4719_v47, %v4736_v52  ;;  %v4358_v30 = vmul.f32 %v4357_v46, %v4355_v56 }
 0x58a   : > { %v13304_v3 = vmul.u32.u64.low %v13268_v16, %v4734_v62  ;;  %v13305_v18 = vmul.u32.u64.high %v13268_v16, %v4734_v62, %v13304_v3  ;;  %v4445_v33 = vsub.s32 0, %v13299_v12  ;;  %v4738_v61 = vsel %vm4724_vm9, %v4735_v42, %v4737_v25 }
 0x58b   : > { %v9220_v41 = vadd.s32 4294967169, %v4799_v13  ;;  %v4730_v54 = vsel %vm4724_vm9, %v4727_v21, %v4729_v26  ;;  %v13311_v58 = vmul.u32.u64.low %v13268_v16, %v4738_v61  ;;  %v13312_v35 = vmul.u32.u64.high %v13268_v16, %v4738_v61, %v13311_v58 }
 0x58c   : > { %v17159_v57 = vand.u32 2147483647, %v13207_v59  ;;  %v9205_v47 = vmin.u32 %v4445_v33, %v13299_v12  ;;  %v17160_v46 = vand.u32 2147483647, %v12559_v32  ;;  %v4043_v39 = vand.u32 2147483647, %v4042_v51 }
 0x58d   : > { %v4805_v43 = vadd.s32 1, %v9220_v41  ;;  %v4045_v13 = vcvt.s32.f32 %v13274_v60  ;;  %v4749_v22 = vadd.s32 1, %v13305_v18  ;;  %v4359_v34 = vxor.u32 2147483648, %v4358_v30 }
 0x58e   : > { %v4802_v63 = vand.u32 8388607, %v17159_v57  ;;  %vm13320_vm15 = vcmp.le.f32.partialorder %v17160_v46, 0.7853982  ;;  %v4447_v7 = vclz %v9205_v47  ;;  %v4746_v33 = vmul.u32 %v13268_v16, %v4730_v54 }
 0x58f   : > { %v4675_v37 = vsel %vm13320_vm15, %v12559_v32, %v13188_v49  ;;  %vm4806_vm6 = vcmp.gt.s32.totalorder %v4805_v43, 0  ;;  %vm4748_vm3 = vc.u32 %v13312_v35, %v13304_v3  ;;  %v17163_v21 = vsub.s32 4, %v12797_v23 }
 0x590   : > { %v4803_v42 = vor.u32 8388608, %v4802_v63  ;;  %v4807_v52 = vsel %vm4806_vm6, %v4805_v43, 0  ;;  %v9206_v26 = vadd.s32 4294967294, %v4447_v7  ;;  %v4750_v62 = vsel %vm4748_vm3, %v4749_v22, %v13305_v18 }
 0x591   : > { %v4674_v60 = vsel %vm4589_vm2, %v17163_v21, %v12797_v23  ;;  %v4809_v51 = vand.u32 31, %v4807_v52  ;;  %10028 = vcosq.f32 %v4675_v37  ;;  %v13339_v25 = vmul.f32 %v4045_v13, %v4043_v39 }
 0x592   : > { %v4751_v16 = vadd.s32 %v4750_v62, %v4746_v33  ;;  %10030 = vsinq.f32 %v4675_v37  ;;  %v13343_v61 = vsel %vm16839_vm10, %v4359_v34, %v4358_v30  ;;  %v4435_v41 = vadd.s32 %v13262_v45, %v13272_v31 }
 0x593   : > { %vm9207_vm9 = vcmp.lt.s32.totalorder %v9206_v26, 0  ;;  %v4810_v23 = vsub.s32 32, %v4809_v51  ;;  %v13347_v18 = vshll.u32 %v4803_v42, 8  ;;  %v4676_v57 = vsel %vm13320_vm15, 0, %v4674_v60 }
 0x594   : > { %v4450_v54 = vsel %vm9207_vm9, 0, %v9206_v26  ;;  %v4752_v58 = vadd.s32 536870912, %v4751_v16  ;;  %v13352_v63 = vadd.s32 %v13304_v3, %v13312_v35  ;;  %v4812_v47 = vshll.u32 %v16981_v17, %v4809_v51  ;;  %v13367_v26 = vpop.eup %10026 }
 0x595   : > { %v4815_v30 = vshll.u32 %v16975_v14, %v4809_v51  ;;  %v4818_v43 = vshll.u32 %v16976_v10, %v4809_v51  ;;  %v4813_v45 = vshrl.u32 %v16975_v14, %v4810_v23  ;;  %v4816_v31 = vshrl.u32 %v16976_v10, %v4810_v23 }
 0x596   : > { %v13357_v46 = vshrl.u32 %v4752_v58, 30  ;;  %v4819_v39 = vshrl.u32 %v17104_v44, %v4810_v23  ;;  %v4451_v13 = vsub.s32 32, %v4450_v54  ;;  %v4808_v56 = vshrl.u32 %v4807_v52, 5 }
 0x597   : > { %v4821_v22 = vshll.u32 %v17104_v44, %v4809_v51  ;;  %v4822_v3 = vshrl.u32 %v16998_v2, %v4810_v23  ;;  %v4814_v37 = vor.u32 %v4813_v45, %v4812_v47  ;;  %v4817_v34 = vor.u32 %v4816_v31, %v4815_v30 }
 0x598   : > { %v4754_v35 = vshll.u32 %v13357_v46, 30  ;;  %v4820_v7 = vor.u32 %v4819_v39, %v4818_v43  ;;  %v4455_v33 = vsub.s32 4294967266, %v4450_v54  ;;  %v4824_v21 = vshll.u32 %v16998_v2, %v4809_v51 }
 0x599   : > { %v4823_v42 = vor.u32 %v4822_v3, %v4821_v22  ;;  %v4825_v60 = vshrl.u32 %v16980_v38, %v4810_v23  ;;  %v4452_v62 = vshll.u32 %v13299_v12, %v4450_v54  ;;  %v4680_v58 = vadd.s32 3, %v4676_v57 }
 0x59a   : > { %v13370_v52 = vsub.s32 %v4751_v16, %v4754_v35  ;;  %v4569_v49 = vsub.s32 4, %v12726_v40  ;;  %v4811_v44 = vshrl.u32 %v16981_v17, %v4810_v23  ;;  %vm4827_vm2 = vcmp.lt.s32.totalorder %v4808_v56, 1 }
 0x59b   : > { %v4826_v47 = vor.u32 %v4825_v60, %v4824_v21  ;;  %vm4830_vm15 = vcmp.lt.s32.totalorder %v4808_v56, 4  ;;  %v4453_v30 = vshrl.u32 %v4435_v41, %v4451_v13  ;;  %v4835_v45 = vsel %vm4827_vm2, %v4814_v37, %v4817_v34 }
 0x59c   : > { %v4757_v43 = vsub.s32 0, %v13370_v52  ;;  %v4832_v51 = vsel %vm4830_vm15, %v4820_v7, 2102212464  ;;  %v4456_v31 = vadd.s32 127, %v4455_v33  ;;  %vm4829_vm6 = vcmp.lt.s32.totalorder %v4808_v56, 3 }
 0x59d   : > { %v4836_v39 = vsel %vm4830_vm15, %v4823_v42, 920167782  ;;  %v4839_v12 = vsel %vm4827_vm2, %v4817_v34, %v4820_v7  ;;  %vm4828_vm3 = vcmp.lt.s32.totalorder %v4808_v56, 2  ;;  %v4840_v23 = vsel %vm4830_vm15, %v4826_v47, 1326507024 }
 0x59e   : > { %v10029_v16 = vpop.eup %10028  ;;  %v9217_v54 = vmin.u32 %v4757_v43, %v13370_v52  ;;  %v4837_v57 = vsel %vm4829_vm6, %v4820_v7, %v4836_v39  ;;  %vm4679_vm9 = vweird.f32 %v12559_v32  ;;  %v4831_v41 = vsel %vm4827_vm2, %v4811_v44, %v4814_v37 }
 0x59f   : > { %v10031_v22 = vpop.eup %10030  ;;  %v4833_v13 = vsel %vm4829_vm6, %v4817_v34, %v4832_v51  ;;  %v4838_v3 = vsel %vm4828_vm3, %v4835_v45, %v4837_v57  ;;  %v4841_v35 = vsel %vm4829_vm6, %v4823_v42, %v4840_v23  ;;  %v13387_v43 = vor.u32 %v4453_v30, %v4452_v62 }
 0x5a0   : > { %v4759_v33 = vclz %v9217_v54  ;;  %v4842_v21 = vsel %vm4828_vm3, %v4839_v12, %v4841_v35  ;;  %v13383_v60 = vmul.u32.u64.low %v13347_v18, %v4838_v3  ;;  %v13384_v38 = vmul.u32.u64.high %v13347_v18, %v4838_v3, %v13383_v60 }
 0x5a1   : > { %v13390_v7 = vmul.u32.u64.low %v13347_v18, %v4842_v21  ;;  %v13391_v47 = vmul.u32.u64.high %v13347_v18, %v4842_v21, %v13390_v7  ;;  %v4681_v39 = vand.u32 3, %v4680_v58  ;;  %v4834_v37 = vsel %vm4828_vm3, %v4831_v41, %v4833_v13 }
 0x5a2   : > { %v9218_v44 = vadd.s32 4294967294, %v4759_v33  ;;  %v4684_v34 = vxor.u32 2147483648, %v10031_v22  ;;  %v4687_v42 = vxor.u32 2147483648, %v10029_v16  ;;  %v4570_v51 = vsel %vm4485_vm0, %v4569_v49, %v12726_v40 }
 0x5a3   : > { %vm4682_vm2 = vcmp.lt.s32.totalorder %v4681_v39, 2  ;;  %vm4683_vm15 = vcmp.eq.s32.totalorder %v4681_v39, 0  ;;  %vm4686_vm6 = vcmp.eq.s32.totalorder %v4681_v39, 2  ;;  %v4853_v62 = vadd.s32 1, %v13384_v38 }
 0x5a4   : > { %vm9219_vm10 = vcmp.lt.s32.totalorder %v9218_v44, 0  ;;  %v4685_v30 = vsel %vm4683_vm15, %v10029_v16, %v4684_v34  ;;  %v4688_v45 = vsel %vm4686_vm6, %v4687_v42, %v10031_v22  ;;  %v4850_v58 = vmul.u32 %v13347_v18, %v4834_v37 }
 0x5a5   : > { %v4762_v12 = vsel %vm9219_vm10, 0, %v9218_v44  ;;  %vm4852_vm3 = vc.u32 %v13391_v47, %v13383_v60  ;;  %v4689_v56 = vsel %vm4682_vm2, %v4685_v30, %v4688_v45  ;;  %v4457_v54 = vshll.u32 %v4456_v31, 23 }
 0x5a6   : > { %v4763_v57 = vsub.s32 32, %v4762_v12  ;;  %v4767_v23 = vsub.s32 4294967266, %v4762_v12  ;;  %v4854_v41 = vsel %vm4852_vm3, %v4853_v62, %v13384_v38  ;;  %v17164_v13 = vand.u32 2147483647, %v12997_v20 }
 0x5a7   : > { %v4764_v49 = vshll.u32 %v13370_v52, %v4762_v12  ;;  %v4855_v16 = vadd.s32 %v4854_v41, %v4850_v58  ;;  %v4690_v18 = vsel %vm4679_vm9, nan, %v4689_v56  ;;  %v4572_v22 = vsel %vm12903_vm12, 0, %v4570_v51 }
 0x5a8   : > { %vm13404_vm0 = vcmp.le.f32.partialorder %v17164_v13, 0.7853982  ;;  %v4765_v31 = vshrl.u32 %v13352_v63, %v4763_v57  ;;  %v4768_v3 = vadd.s32 127, %v4767_v23  ;;  %4965 = vmatprep.subr.mxu0 %v4690_v18  ;;  %v4576_v38 = vadd.s32 3, %v4572_v22 }
 0x5a9   : > { %v4580_v35 = vxor.u32 2147483648, %v13236_v0  ;;  %v4856_v33 = vadd.s32 536870912, %v4855_v16  ;;  %v4583_v21 = vxor.u32 2147483648, %v13054_v9  ;;  %v17167_v7 = vand.u32 2147483647, %v12462_v24 }
 0x5aa   : > { %v4257_v32 = vsub.s32 4, %v12633_v50  ;;  %v4766_v29 = vor.u32 %v4765_v31, %v4764_v49  ;;  %v4769_v39 = vshll.u32 %v4768_v3, 23  ;;  %v4577_v44 = vand.u32 3, %v4576_v38 }
 0x5ab   : > { %vm13418_vm10 = vcmp.le.f32.partialorder %v17167_v7, 0.7853982  ;;  %v13427_v37 = vor.u32 4788187, %v4457_v54  ;;  %vm16840_vm12 = vcmp.lt.s32.totalorder %v13155_v19, 0  ;;  %v13430_v34 = vshrl.u32 %v4856_v33, 30 }
 0x5ac   : > { %v4259_v63 = vsel %vm13418_vm10, %v12462_v24, %v13014_v28  ;;  %v4258_v42 = vsel %vm4173_vm7, %v4257_v32, %v12633_v50  ;;  %v4770_v51 = vor.u32 4788187, %v4769_v39  ;;  %v4773_v62 = vcvt.s32.f32 %v4766_v29  ;;  %v17176_v7 = vld [vmem:[#allocation23_spill] sm:$0xff]  ;;  %v17177_v32 = vld [vmem:[#allocation30_spill] sm:$0xff]  ;;  %v17178_v29 = vld [vmem:[#allocation32_spill] sm:$0xff] }
 0x5ad   : > { %10032 = vcosq.f32 %v4259_v63  ;;  %vm4578_vm9 = vcmp.lt.s32.totalorder %v4577_v44, 2  ;;  %vm4579_vm2 = vcmp.eq.s32.totalorder %v4577_v44, 0  ;;  %v4858_v30 = vshll.u32 %v13430_v34, 30 }
 0x5ae   : > { %v4581_v45 = vsel %vm4579_vm2, %v13054_v9, %v4580_v35  ;;  %vm4582_vm15 = vcmp.eq.s32.totalorder %v4577_v44, 2  ;;  %v4260_v28 = vsel %vm13418_vm10, 0, %v4258_v42  ;;  %v17170_v12 = vand.u32 2147483647, %v13155_v19 }
 0x5af   : > { %v4771_v50 = vand.u32 2147483647, %v4770_v51  ;;  %v4584_v56 = vsel %vm4582_vm15, %v4583_v21, %v13236_v0  ;;  %10034 = vsinq.f32 %v4259_v63  ;;  %v4264_v54 = vadd.s32 3, %v4260_v28  ;;  %v17179_v63 = vld [vmem:[#allocation26_spill] sm:$0xff] }
 0x5b0   : > { %vm13441_vm6 = vcmp.le.f32.partialorder %v17170_v12, 0.7853982  ;;  %v13446_v57 = vsub.s32 %v4855_v16, %v4858_v30  ;;  %vm4575_vm7 = vweird.f32 %v12546_v5  ;;  %v4585_v9 = vsel %vm4578_vm9, %v4581_v45, %v4584_v56  ;;  %v17180_v30 = vld [vmem:[#allocation11_spill] sm:$0xff] }
 0x5b1   : > { %v4153_v23 = vsub.s32 4, %v12565_v6  ;;  %v4047_v41 = vxor.u32 2147483648, %v13339_v25  ;;  %v13455_v13 = vsel %vm13404_vm0, %v12997_v20, %v13343_v61  ;;  %v4774_v49 = vmul.f32 %v4773_v62, %v4771_v50 }
 0x5b2   : > { %v4586_v18 = vsel %vm4575_vm7, nan, %v4585_v9  ;;  %v4459_v0 = vand.u32 2147483647, %v13427_v37  ;;  %v4461_v16 = vcvt.s32.f32 %v13387_v43  ;;  %v4861_v22 = vsub.s32 0, %v13446_v57 }
 0x5b3   : > { %4966 = vmatpush1.msra.mxu0 %v4586_v18  ;;  %v4154_v5 = vsel %vm4069_vm14, %v4153_v23, %v12565_v6  ;;  %v4775_v31 = vxor.u32 2147483648, %v4774_v49  ;;  %v4851_v3 = vadd.s32 %v13383_v60, %v13391_v47  ;;  %v4265_v38 = vand.u32 3, %v4264_v54  ;;  %v17181_v54 = vld [vmem:[#allocation28_spill] sm:$0xff] }
 0x5b4   : > { %v17173_v61 = vand.u32 2147483647, %v12297_v27  ;;  %v9221_v33 = vmin.u32 %v4861_v22, %v13446_v57  ;;  %v4156_v21 = vsel %vm12815_vm8, 0, %v4154_v5  ;;  %v3841_v52 = vsub.s32 4, %v17176_v7 }
 0x5b5   : > { %v4776_v60 = vsel %vm16840_vm12, %v4775_v31, %v4774_v49  ;;  %vm4159_vm14 = vweird.f32 %v12426_v36  ;;  %v4160_v47 = vadd.s32 3, %v4156_v21  ;;  %v4164_v39 = vxor.u32 2147483648, %v17178_v29  ;;  %v17186_v36 = vld [vmem:[#allocation12_spill] sm:$0xff] }
 0x5b6   : > { %vm13467_vm3 = vcmp.le.f32.partialorder %v17173_v61, 0.7853982  ;;  %v4863_v44 = vclz %v9221_v33  ;;  %v4167_v55 = vxor.u32 2147483648, %v17179_v63  ;;  %v3842_v42 = vsel %vm3757_vm1, %v3841_v52, %v17176_v7 }
 0x5b7   : > { %v3843_v6 = vsel %vm13467_vm3, %v12297_v27, %v17177_v32  ;;  %vm4266_vm8 = vcmp.lt.s32.totalorder %v4265_v38, 2  ;;  %v4161_v51 = vand.u32 3, %v4160_v47  ;;  %v3844_v62 = vsel %vm13467_vm3, 0, %v3842_v42  ;;  %v17185_v42 = vld [vmem:[#allocation27_spill] sm:$0xff] }
 0x5b8   : > { %10036 = vcosq.f32 %v3843_v6  ;;  %v3737_v45 = vsub.s32 4, %v17180_v30  ;;  %v4779_v28 = vsel %vm13441_vm6, %v13155_v19, %v4776_v60  ;;  %v9222_v12 = vadd.s32 4294967294, %v4863_v44 }
 0x5b9   : > { %10038 = vsinq.f32 %v3843_v6  ;;  %vm4263_vm10 = vweird.f32 %v12462_v24  ;;  %vm4267_vm9 = vcmp.eq.s32.totalorder %v4265_v38, 0  ;;  %v3848_v50 = vadd.s32 3, %v3844_v62 }
 0x5ba   : > { %v10033_v56 = vpop.eup %10032  ;;  %vm4162_vm2 = vcmp.lt.s32.totalorder %v4161_v51, 2  ;;  %vm4163_vm1 = vcmp.eq.s32.totalorder %v4161_v51, 0  ;;  %vm4166_vm15 = vcmp.eq.s32.totalorder %v4161_v51, 2  ;;  %vm17182_vm7 = vcmp.lt.s32.totalorder %v17181_v54, 0 }
 0x5bb   : > { %v3738_v9 = vsel %vm17182_vm7, %v3737_v45, %v17180_v30  ;;  %vm9223_vm3 = vcmp.lt.s32.totalorder %v9222_v12, 0  ;;  %v4271_v23 = vxor.u32 2147483648, %v10033_v56  ;;  %v4165_v49 = vsel %vm4163_vm1, %v17179_v63, %v4164_v39  ;;  %v17184_v63 = vld [vmem:[#allocation19_spill] sm:$0xff] }
 0x5bc   : > { %v4168_v18 = vsel %vm4166_vm15, %v4167_v55, %v17178_v29  ;;  %v4866_v22 = vsel %vm9223_vm3, 0, %v9222_v12  ;;  %v3849_v31 = vand.u32 3, %v3848_v50  ;;  %v3740_v35 = vsel %vm12601_vm11, 0, %v3738_v9  ;;  %v10035_v33 = vpop.eup %10034  ;;  %v17190_v50 = vld [vmem:[#allocation15_spill] sm:$0xff] }
 0x5bd   : > { %v4169_v5 = vsel %vm4162_vm2, %v4165_v49, %v4168_v18  ;;  %10040 = vcosq.f32 %v4779_v28  ;;  %v4867_v21 = vsub.s32 32, %v4866_v22  ;;  %v4871_v7 = vsub.s32 4294967266, %v4866_v22 }
 0x5be   : > { %vm4270_vm12 = vcmp.eq.s32.totalorder %v4265_v38, 2  ;;  %10042 = vsinq.f32 %v4779_v28  ;;  %v4868_v52 = vshll.u32 %v13446_v57, %v4866_v22  ;;  %v4268_v32 = vxor.u32 2147483648, %v10035_v33  ;;  %v17191_v38 = vld [vmem:[#allocation13_spill] sm:$0xff] }
 0x5bf   : > { %v4272_v6 = vsel %vm4270_vm12, %v4271_v23, %v10035_v33  ;;  %v4869_v60 = vshrl.u32 %v4851_v3, %v4867_v21  ;;  %v4872_v47 = vadd.s32 127, %v4871_v7  ;;  %v4170_v29 = vsel %vm4159_vm14, nan, %v4169_v5  ;;  %v17193_v7 = vld [vmem:[#allocation14_spill] sm:$0xff] }
 0x5c0   : > { %v3744_v39 = vadd.s32 3, %v3740_v35  ;;  %v4269_v44 = vsel %vm4267_vm9, %v10033_v56, %v4268_v32  ;;  %vm3850_vm2 = vcmp.lt.s32.totalorder %v3849_v31, 2  ;;  %v3748_v55 = vxor.u32 2147483648, %v17184_v63 }
 0x5c1   : > { %v3751_v51 = vxor.u32 2147483648, %v17185_v42  ;;  %v4870_v62 = vor.u32 %v4869_v60, %v4868_v52  ;;  %v4873_v30 = vshll.u32 %v4872_v47, 23  ;;  %v4273_v45 = vsel %vm4266_vm8, %v4269_v44, %v4272_v6  ;;  %v17194_v44 = vld [vmem:[#allocation9_spill] sm:$0xff] }
 0x5c2   : > { %v3745_v57 = vand.u32 3, %v3744_v39  ;;  %vm4797_vm11 = vcmp.lt.s32.totalorder %v13207_v59, 0  ;;  %v4274_v3 = vsel %vm4263_vm10, nan, %v4273_v45  ;;  %vm3851_vm12 = vcmp.eq.s32.totalorder %v3849_v31, 0 }
 0x5c3   : > { %v17187_v28 = vand.u32 2147483647, %v17186_v36  ;;  %v3425_v56 = vsub.s32 4, %v17190_v50  ;;  %v4874_v23 = vor.u32 4788187, %v4873_v30  ;;  %4967 = vmatprep.subr.mxu0 %v4274_v3  ;;  %vm3854_vm9 = vcmp.eq.s32.totalorder %v3849_v31, 2 }
 0x5c4   : > { %vm3747_vm8 = vcmp.eq.s32.totalorder %v3745_v57, 0  ;;  %4968 = vmatpush1.msra.mxu0 %v4170_v29  ;;  %vm3750_vm10 = vcmp.eq.s32.totalorder %v3745_v57, 2  ;;  %vm17192_vm1 = vcmp.lt.s32.totalorder %v17186_v36, 0  ;;  %v4877_v35 = vcvt.s32.f32 %v4870_v62  ;;  %v17207_v62 = vld [vmem:[#allocation24_spill] sm:$0xff] }
 0x5c5   : > { %vm13513_vm14 = vcmp.le.f32.partialorder %v17187_v28, 0.7853982  ;;  %v10037_v9 = vpop.eup %10036  ;;  %v3749_v22 = vsel %vm3747_vm8, %v17185_v42, %v3748_v55  ;;  %v3426_v5 = vsel %vm17192_vm1, %v3425_v56, %v17190_v50  ;;  %v4875_v61 = vand.u32 2147483647, %v4874_v23  ;;  %v17201_v50 = vld [vmem:[#allocation7_spill] sm:$0xff] }
 0x5c6   : > { %v3427_v24 = vsel %vm13513_vm14, %v17186_v36, %v17191_v38  ;;  %v10039_v49 = vpop.eup %10038  ;;  %v3855_v18 = vxor.u32 2147483648, %v10037_v9  ;;  %v3752_v21 = vsel %vm3750_vm10, %v3751_v51, %v17184_v63  ;;  %vm3965_vm15 = vcmp.lt.s32.totalorder %v17193_v7, 0 }
 0x5c7   : > { %v3852_v33 = vxor.u32 2147483648, %v10039_v49  ;;  %vm3746_vm7 = vcmp.lt.s32.totalorder %v3745_v57, 2  ;;  %v3428_v32 = vsel %vm13513_vm14, 0, %v3426_v5  ;;  %10044 = vcosq.f32 %v3427_v24 }
 0x5c8   : > { %v3856_v52 = vsel %vm3854_vm9, %v3855_v18, %v10039_v49  ;;  %vm4381_vm3 = vcmp.lt.s32.totalorder %v13082_v4, 0  ;;  %v4878_v6 = vmul.f32 %v4877_v35, %v4875_v61  ;;  %v3753_v47 = vsel %vm3746_vm7, %v3749_v22, %v3752_v21 }
 0x5c9   : > { %v3853_v60 = vsel %vm3851_vm12, %v10037_v9, %v3852_v33  ;;  %10046 = vsinq.f32 %v3427_v24  ;;  %v4462_v29 = vmul.f32 %v4461_v16, %v4459_v0  ;;  %vm3847_vm8 = vweird.f32 %v12297_v27  ;;  %v17195_v0 = vld [vmem:[#allocation29_spill] sm:$0xff]  ;;  %v17202_v9 = vld [vmem:[#allocation20_spill] sm:$0xff] }
 0x5ca   : > { %v3857_v39 = vsel %vm3850_vm2, %v3853_v60, %v3856_v52  ;;  %v3321_v63 = vsub.s32 4, %v17194_v44  ;;  %10048 = vcosq.f32 %v13455_v13  ;;  %v4879_v55 = vxor.u32 2147483648, %v4878_v6  ;;  %v13541_v51 = vpop.eup %10040 }
 0x5cb   : > { %v3858_v42 = vsel %vm3847_vm8, nan, %v3857_v39  ;;  %vm3743_vm14 = vweird.f32 %v17181_v54  ;;  %10050 = vsinq.f32 %v13455_v13  ;;  %v3432_v43 = vadd.s32 3, %v3428_v32  ;;  %v13547_v16 = vpop.eup %10042 }
 0x5cc   : > { %4969 = vmatprep.subr.mxu0 %v3858_v42  ;;  %v3754_v37 = vsel %vm3743_vm14, nan, %v3753_v47  ;;  %vm17196_vm12 = vcmp.lt.s32.totalorder %v17195_v0, 0  ;;  %v4880_v31 = vsel %vm4797_vm11, %v4879_v55, %v4878_v6  ;;  %v17198_v30 = vand.u32 2147483647, %v13207_v59 }
 0x5cd   : > { %v3322_v27 = vsel %vm17196_vm12, %v3321_v63, %v17194_v44  ;;  %4970 = vmatpush1.msra.mxu0 %v3754_v37  ;;  %v4881_v45 = vsub.s32 4, %v13430_v34  ;;  %v4463_v57 = vxor.u32 2147483648, %v4462_v29  ;;  %v4777_v12 = vsub.s32 4, %v13357_v46 }
 0x5ce   : > { %v3324_v54 = vsel %vm12530_vm4, 0, %v3322_v27  ;;  %vm13555_vm2 = vcmp.le.f32.partialorder %v17198_v30, 0.7853982  ;;  %v3332_v56 = vxor.u32 2147483648, %v17201_v50  ;;  %v3335_v23 = vxor.u32 2147483648, %v17202_v9 }
 0x5cf   : > { %v3328_v3 = vadd.s32 3, %v3324_v54  ;;  %v4883_v28 = vsel %vm13555_vm2, %v13207_v59, %v4880_v31  ;;  %v4882_v38 = vsel %vm4797_vm11, %v4881_v45, %v13430_v34  ;;  %vm17203_vm4 = vcmp.lt.s32.totalorder %v13155_v19, 0 }
 0x5d0   : > { %10052 = vcosq.f32 %v4883_v28  ;;  %v4884_v49 = vsel %vm13555_vm2, 0, %v4882_v38  ;;  %v4778_v18 = vsel %vm17203_vm4, %v4777_v12, %v13357_v46  ;;  %v4048_v22 = vsel %vm3965_vm15, %v4047_v41, %v13339_v25  ;;  %v17224_v12 = vld [vmem:[#allocation33_spill] sm:$0xff] }
 0x5d1   : > { %v3329_v24 = vand.u32 3, %v3328_v3  ;;  %10054 = vsinq.f32 %v4883_v28  ;;  %v3433_v5 = vand.u32 3, %v3432_v43  ;;  %v4780_v34 = vsel %vm13441_vm6, 0, %v4778_v18 }
 0x5d2   : > { %10056 = vsinq.f32 %v13213_v48  ;;  %v4464_v61 = vsel %vm4381_vm3, %v4463_v57, %v4462_v29  ;;  %v4784_v35 = vadd.s32 3, %v4780_v34  ;;  %v4888_v33 = vadd.s32 3, %v4884_v49  ;;  %v13622_v57 = vld [vmem:[%s16700_s3 + $0x20] sm:$0xff] }
 0x5d3   : > { %vm3331_vm11 = vcmp.eq.s32.totalorder %v3329_v24, 0  ;;  %vm3334_vm9 = vcmp.eq.s32.totalorder %v3329_v24, 2  ;;  %v4465_v21 = vsub.s32 4, %v13295_v8  ;;  %vm3431_vm10 = vweird.f32 %v17186_v36 }
 0x5d4   : > { %v3333_v46 = vsel %vm3331_vm11, %v17202_v9, %v3332_v56  ;;  %v3336_v48 = vsel %vm3334_vm9, %v3335_v23, %v17201_v50  ;;  %vm3327_vm1 = vweird.f32 %v17195_v0  ;;  %vm3330_vm7 = vcmp.lt.s32.totalorder %v3329_v24, 2  ;;  %v10045_v41 = vpop.eup %10044 }
 0x5d5   : > { %v17204_v25 = vand.u32 2147483647, %v13082_v4  ;;  %vm3434_vm8 = vcmp.lt.s32.totalorder %v3433_v5, 2  ;;  %v3337_v52 = vsel %vm3330_vm7, %v3333_v46, %v3336_v48  ;;  %v4785_v32 = vand.u32 3, %v4784_v35  ;;  %v17214_v48 = vld [vmem:[#allocation18_spill] sm:$0xff] }
 0x5d6   : > { %v10047_v60 = vpop.eup %10046  ;;  %vm3435_vm14 = vcmp.eq.s32.totalorder %v3433_v5, 0  ;;  %v3439_v47 = vxor.u32 2147483648, %v10045_v41  ;;  %v4788_v29 = vxor.u32 2147483648, %v13547_v16  ;;  %v4791_v39 = vxor.u32 2147483648, %v13541_v51 }
 0x5d7   : > { %vm13591_vm6 = vcmp.le.f32.partialorder %v17204_v25, 0.7853982  ;;  %v3436_v44 = vxor.u32 2147483648, %v10047_v60  ;;  %vm3438_vm12 = vcmp.eq.s32.totalorder %v3433_v5, 2  ;;  %v4889_v63 = vand.u32 3, %v4888_v33  ;;  %v13603_v42 = vpop.eup %10048 }
 0x5d8   : > { %v4467_v6 = vsel %vm13591_vm6, %v13082_v4, %v4464_v61  ;;  %v4466_v55 = vsel %vm4381_vm3, %v4465_v21, %v13295_v8  ;;  %v3440_v37 = vsel %vm3438_vm12, %v3439_v47, %v10047_v60  ;;  %v3338_v43 = vsel %vm3327_vm1, nan, %v3337_v52  ;;  %v13609_v31 = vpop.eup %10050 }
 0x5d9   : > { %v4468_v27 = vsel %vm13591_vm6, 0, %v4466_v55  ;;  %10058 = vcosq.f32 %v4467_v6  ;;  %vm3549_vm2 = vcmp.lt.s32.totalorder %v17207_v62, 0  ;;  %v3437_v54 = vsel %vm3435_vm14, %v10045_v41, %v3436_v44 }
 0x5da   : > { %vm4887_vm4 = vweird.f32 %v13207_v59  ;;  %vm4787_vm11 = vcmp.eq.s32.totalorder %v4785_v32, 0  ;;  %vm4790_vm9 = vcmp.eq.s32.totalorder %v4785_v32, 2  ;;  %10060 = vsinq.f32 %v4467_v6  ;;  %v13676_v6 = vld [vmem:[%s16700_s3 + $0x30] sm:$0xff] }
 0x5db   : > { %v3441_v8 = vsel %vm3434_vm8, %v3437_v54, %v3440_v37  ;;  %v4789_v30 = vsel %vm4787_vm11, %v13541_v51, %v4788_v29  ;;  %v4792_v0 = vsel %vm4790_vm9, %v4791_v39, %v13547_v16  ;;  %v4361_v13 = vsub.s32 4, %v13225_v53  ;;  %v17222_v37 = vld [vmem:[#allocation17_spill] sm:$0xff] }
 0x5dc   : > { %v3442_v45 = vsel %vm3431_vm10, nan, %v3441_v8  ;;  %vm4890_vm3 = vcmp.lt.s32.totalorder %v4889_v63, 2  ;;  %v4472_v3 = vadd.s32 3, %v4468_v27  ;;  %v17208_v28 = vand.u32 2147483647, %v17193_v7 }
 0x5dd   : > { %v10053_v51 = vpop.eup %10052  ;;  %4971 = vmatprep.subr.mxu0 %v3442_v45  ;;  %vm4786_vm7 = vcmp.lt.s32.totalorder %v4785_v32, 2  ;;  %vm17211_vm6 = vcmp.lt.s32.totalorder %v12997_v20, 0  ;;  %v4049_v16 = vsub.s32 4, %v13111_v11  ;;  %vm4891_vm10 = vcmp.eq.s32.totalorder %v4889_v63, 0 }
 0x5de   : > { %vm13626_vm1 = vcmp.le.f32.partialorder %v17208_v28, 0.7853982  ;;  %v4362_v36 = vsel %vm17211_vm6, %v4361_v13, %v13225_v53  ;;  %v10055_v56 = vpop.eup %10054  ;;  %4972 = vmatpush1.msra.mxu0 %v3338_v43  ;;  %vm4894_vm8 = vcmp.eq.s32.totalorder %v4889_v63, 2  ;;  %v4895_v9 = vxor.u32 2147483648, %v10053_v51 }
 0x5df   : > { %v4051_v50 = vsel %vm13626_vm1, %v17193_v7, %v4048_v22  ;;  %v4793_v23 = vsel %vm4786_vm7, %v4789_v30, %v4792_v0  ;;  %v13637_v38 = vpop.eup %10056  ;;  %vm17212_vm14 = vcmask 261120   ;;  %v4892_v24 = vxor.u32 2147483648, %v10055_v56  ;;  %v13650_v22 = vld [vmem:[%s16700_s3 + $0x28] sm:$0xff]  ;;  %v13699_v30 = vld [vmem:[%s16700_s3 + $0x38] sm:$0xff] }
 0x5e0   : > { %9232 = vmatmul.mubr.msk.f32.vlgmr.msra.gmra.mxu0 %vm17212_vm14, %v13622_v57  ;;  %v4364_v53 = vsel %vm13404_vm0, 0, %v4362_v36  ;;  %v4050_v49 = vsel %vm3965_vm15, %v4049_v16, %v13111_v11  ;;  %10062 = vcosq.f32 %v4051_v50  ;;  %v17213_v18 = vmov 0.0   ;;  %vm17216_vm15 = vmmov %vm17212_vm14 }
 0x5e1   : > { %5011 = vmatprep.mubr.f32.mxu0 %v17213_v18  ;;  %v4896_v5 = vsel %vm4894_vm8, %v4895_v9, %v10055_v56  ;;  %v4473_v34 = vand.u32 3, %v4472_v3  ;;  %v4368_v61 = vadd.s32 3, %v4364_v53  ;;  %10064 = vsinq.f32 %v4051_v50  ;;  %v17226_v53 = vld [vmem:[#allocation10_spill] sm:$0xff] }
 0x5e2   : > { %v4893_v35 = vsel %vm4891_vm10, %v10053_v51, %v4892_v24  ;;  %v4372_v40 = vxor.u32 2147483648, %v13609_v31  ;;  %v4375_v46 = vxor.u32 2147483648, %v13603_v42  ;;  %v3945_v11 = vsub.s32 4, %v17214_v48 }
 0x5e3   : > { %v4897_v33 = vsel %vm4890_vm3, %v4893_v35, %v4896_v5  ;;  %vm4783_vm0 = vweird.f32 %v13155_v19  ;;  %v4369_v21 = vand.u32 3, %v4368_v61  ;;  %v4052_v25 = vsel %vm13626_vm1, 0, %v4050_v49 }
 0x5e4   : > { %v17215_v58 = vxor.u32 2147483648, %v13195_v1  ;;  %9233 = vmatmul.mubr.msk.f32.gmra.mxu0 %vm17216_vm15, %v13650_v22  ;;  %v4898_v52 = vsel %vm4887_vm4, nan, %v4897_v33  ;;  %v4794_v32 = vsel %vm4783_vm0, nan, %v4793_v23  ;;  %vm17217_vm12 = vcmp.lt.s32.totalorder %v12807_v15, 0 }
 0x5e5   : > { %v3946_v19 = vsel %vm17217_vm12, %v3945_v11, %v17214_v48  ;;  %5017 = vmatprep.mubr.f32.mxu0 %v17213_v18  ;;  %5054 = vmatprep.subr.mxu1 %v4898_v52  ;;  %vm4475_vm11 = vcmp.eq.s32.totalorder %v4473_v34, 0  ;;  %vm4371_vm9 = vcmp.eq.s32.totalorder %v4369_v21, 0  ;;  %vm4374_vm3 = vcmp.eq.s32.totalorder %v4369_v21, 2  ;;  %v17230_v52 = vld [vmem:[#allocation16_spill] sm:$0xff] }
 0x5e6   : > { %v3632_v41 = vsel %vm3549_vm2, %v17215_v58, %v13195_v1  ;;  %v3948_v59 = vsel %vm13163_vm5, 0, %v3946_v19  ;;  %5055 = vmatpush1.msra.mxu1 %v4794_v32  ;;  %vm4478_vm4 = vcmp.eq.s32.totalorder %v4473_v34, 2  ;;  %v4373_v60 = vsel %vm4371_vm9, %v13603_v42, %v4372_v40  ;;  %v10059_v39 = vpop.eup %10058  ;;  %vm17223_vm5 = vmmov %vm17212_vm14 }
 0x5e7   : > { %v4376_v47 = vsel %vm4374_vm3, %v4375_v46, %v13609_v31  ;;  %v4056_v29 = vadd.s32 3, %v4052_v25  ;;  %vm4370_vm1 = vcmp.lt.s32.totalorder %v4369_v21, 2  ;;  %v3952_v44 = vadd.s32 3, %v3948_v59  ;;  %v10061_v27 = vpop.eup %10060  ;;  %vm17225_vm8 = vmmov %vm17223_vm5 }
 0x5e8   : > { %v17219_v63 = vand.u32 2147483647, %v17207_v62  ;;  %v3633_v43 = vsub.s32 4, %v17222_v37  ;;  %9234 = vmatmul.mubr.msk.f32.gmra.mxu0 %vm17223_vm5, %v13676_v6  ;;  %v4479_v54 = vxor.u32 2147483648, %v10059_v39  ;;  %v4377_v42 = vsel %vm4370_vm1, %v4373_v60, %v4376_v47 }
 0x5e9   : > { %v3956_v31 = vxor.u32 2147483648, %v13637_v38  ;;  %5023 = vmatprep.mubr.f32.mxu0 %v17213_v18  ;;  %v4476_v0 = vxor.u32 2147483648, %v10061_v27  ;;  %v3953_v13 = vand.u32 3, %v3952_v44  ;;  %v3959_v28 = vxor.u32 2147483648, %v13367_v26 }
 0x5ea   : > { %vm13684_vm7 = vcmp.le.f32.partialorder %v17219_v63, 0.7853982  ;;  %v3634_v45 = vsel %vm3549_vm2, %v3633_v43, %v17222_v37  ;;  %v4480_v3 = vsel %vm4478_vm4, %v4479_v54, %v10061_v27  ;;  %v3529_v51 = vsub.s32 4, %v17224_v12 }
 0x5eb   : > { %v3635_v8 = vsel %vm13684_vm7, %v17207_v62, %v3632_v41  ;;  %vm4474_vm6 = vcmp.lt.s32.totalorder %v4473_v34, 2  ;;  %v4477_v36 = vsel %vm4475_vm11, %v10059_v39, %v4476_v0  ;;  %vm4367_vm10 = vweird.f32 %v12997_v20 }
 0x5ec   : > { %10066 = vcosq.f32 %v3635_v8  ;;  %v4057_v16 = vand.u32 3, %v4056_v29  ;;  %9235 = vmatmul.mubr.msk.f32.gmra.mxu0 %vm17225_vm8, %v13699_v30  ;;  %vm4471_vm14 = vweird.f32 %v13082_v4  ;;  %v4481_v50 = vsel %vm4474_vm6, %v4477_v36, %v4480_v3 }
 0x5ed   : > { %10068 = vsinq.f32 %v3635_v8  ;;  %v4378_v56 = vsel %vm4367_vm10, nan, %v4377_v42  ;;  %v3636_v9 = vsel %vm13684_vm7, 0, %v3634_v45  ;;  %v10063_v23 = vpop.eup %10062  ;;  %v4482_v24 = vsel %vm4471_vm14, nan, %v4481_v50  ;;  %6889 = vmatprep.mubr.f32.mxu0 %v17213_v18 }
 0x5ee   : > { %vm3955_vm2 = vcmp.eq.s32.totalorder %v3953_v13, 0  ;;  %vm3958_vm0 = vcmp.eq.s32.totalorder %v3953_v13, 2  ;;  %vm17227_vm15 = vcmp.lt.s32.totalorder %v17226_v53, 0  ;;  %v10065_v20 = vpop.eup %10064  ;;  %5056 = vmatprep.subr.mxu1 %v4482_v24  ;;  %v4063_v5 = vxor.u32 2147483648, %v10063_v23 }
 0x5ef   : > { %v3530_v49 = vsel %vm17227_vm15, %v3529_v51, %v17224_v12  ;;  %v3957_v4 = vsel %vm3955_vm2, %v13367_v26, %v3956_v31  ;;  %v3960_v34 = vsel %vm3958_vm0, %v3959_v28, %v13637_v38  ;;  %5057 = vmatpush1.msra.mxu1 %v4378_v56  ;;  %v4060_v40 = vxor.u32 2147483648, %v10065_v20  ;;  %v17229_v38 = vld [vmem:[#allocation31_spill] sm:$0xff] }
 0x5f0   : > { %v3532_v35 = vsel %vm13118_vm13, 0, %v3530_v49  ;;  %vm4062_vm12 = vcmp.eq.s32.totalorder %v4057_v16, 2  ;;  %vm4059_vm11 = vcmp.eq.s32.totalorder %v4057_v16, 0  ;;  %vm3954_vm9 = vcmp.lt.s32.totalorder %v3953_v13, 2 }
 0x5f1   : > { %v3536_v46 = vadd.s32 3, %v3532_v35  ;;  %v4064_v48 = vsel %vm4062_vm12, %v4063_v5, %v10065_v20  ;;  %v3640_v11 = vadd.s32 3, %v3636_v9  ;;  %vm4058_vm3 = vcmp.lt.s32.totalorder %v4057_v16, 2 }
 0x5f2   : > { %v4061_v33 = vsel %vm4059_vm11, %v10063_v23, %v4060_v40  ;;  %v3961_v21 = vsel %vm3954_vm9, %v3957_v4, %v3960_v34  ;;  %vm4055_vm4 = vweird.f32 %v17193_v7  ;;  %vm3951_vm1 = vweird.f32 %v12807_v15 }
 0x5f3   : > { %v4065_v25 = vsel %vm4058_vm3, %v4061_v33, %v4064_v48  ;;  %v3537_v26 = vand.u32 3, %v3536_v46  ;;  %v3540_v41 = vxor.u32 2147483648, %v17229_v38  ;;  %v3543_v32 = vxor.u32 2147483648, %v17230_v52 }
 0x5f4   : > { %v4066_v58 = vsel %vm4055_vm4, nan, %v4065_v25  ;;  %v3962_v19 = vsel %vm3951_vm1, nan, %v3961_v21  ;;  %v3641_v1 = vand.u32 3, %v3640_v11  ;;  %vm3639_vm14 = vweird.f32 %v17207_v62  ;;  %v13742_v62 = vpop.permute.xlu1 %4921 }
 0x5f5   : > { %5058 = vmatprep.subr.mxu1 %v4066_v58  ;;  %vm3539_vm13 = vcmp.eq.s32.totalorder %v3537_v26, 0  ;;  %vm3542_vm7 = vcmp.eq.s32.totalorder %v3537_v26, 2  ;;  %vm3538_vm10 = vcmp.lt.s32.totalorder %v3537_v26, 2  ;;  %vm3535_vm2 = vweird.f32 %v17226_v53 }
 0x5f6   : > { %5059 = vmatpush1.msra.mxu1 %v3962_v19  ;;  %v3541_v7 = vsel %vm3539_vm13, %v17230_v52, %v3540_v41  ;;  %v3544_v29 = vsel %vm3542_vm7, %v3543_v32, %v17229_v38  ;;  %vm3646_vm5 = vcmp.eq.s32.totalorder %v3641_v1, 2  ;;  %vm3643_vm6 = vcmp.eq.s32.totalorder %v3641_v1, 0 }
 0x5f7   : > { %vm3642_vm8 = vcmp.lt.s32.totalorder %v3641_v1, 2  ;;  %v3545_v63 = vsel %vm3538_vm10, %v3541_v7, %v3544_v29  ;;  %vm17231_vm0 = vcmask 261120   ;;  %v17238_v58 = vmov 2102212464  }
 0x5f8   : > { %v3546_v43 = vsel %vm3535_vm2, nan, %v3545_v63  ;;  %vm17232_vm15 = vmmov %vm17231_vm0  ;;  %v13746_v27 = vpop.permute.xlu1 %4911 }
 0x5f9   : > { %v10067_v59 = vpop.eup %10066  ;;  %vm17233_vm12 = vmmov %vm17231_vm0 }
 0x5fa   : > { %v10069_v60 = vpop.eup %10068  ;;  %v3647_v47 = vxor.u32 2147483648, %v10067_v59  ;;  %vm17234_vm11 = vmmov %vm17231_vm0 }
 0x5fb   : > { %v3644_v39 = vxor.u32 2147483648, %v10069_v60 }
 0x5fc   : > { %v3648_v15 = vsel %vm3646_vm5, %v3647_v47, %v10069_v60  ;;  %v17239_v60 = vmov 1326507024  }
 0x5fd   : > { %v3645_v44 = vsel %vm3643_vm6, %v10067_v59, %v3644_v39 }
 0x5fe   : > { %v3649_v55 = vsel %vm3642_vm8, %v3645_v44, %v3648_v15 }
 0x5ff   : > { %v3650_v37 = vsel %vm3639_vm14, nan, %v3649_v55 }
 0x600   : > { %5060 = vmatprep.subr.mxu1 %v3650_v37 }
 0x601   : > { %5061 = vmatpush1.msra.mxu1 %v3546_v43 }
 0x602   : > { %9236 = vmatmul.mubr.msk.f32.vlgmr.msra.gmra.mxu1 %vm17231_vm0, %v13622_v57  ;;  %v13744_v57 = vpop.permute.xlu0 %4926 }
 0x603   : > { %5100 = vmatprep.mubr.f32.mxu1 %v17213_v18 }
 0x606   : > { %9237 = vmatmul.mubr.msk.f32.gmra.mxu1 %vm17232_vm15, %v13650_v22  ;;  %v13756_v0 = vpop.permute.xlu0 %4916 }
 0x607   : > { %5106 = vmatprep.mubr.f32.mxu1 %v17213_v18 }
 0x60a   : > { %9238 = vmatmul.mubr.msk.f32.gmra.mxu1 %vm17233_vm12, %v13676_v6 }
 0x60b   : > { %5112 = vmatprep.mubr.f32.mxu1 %v17213_v18 }
 0x60e   : > { %9239 = vmatmul.mubr.msk.f32.gmra.mxu1 %vm17234_vm11, %v13699_v30 }
 0x60f   : > { %6978 = vmatprep.mubr.f32.mxu1 %v17213_v18 }
 0x6a0   : > { %v5007_v54 = vpop.f32.mrf.mxu0 }
 0x6a1   : > { %v13749_v22 = vadd.f32 %v5007_v54, %v13746_v27 }
 0x6a2   : > { %v5009_v42 = vpop.f32.mrf.mxu0 }
 0x6a3   : > { %17235 = vst [vmem:[#allocation35_spill] sm:$0xff] %v13749_v22  ;;  %v5119_v6 = vand.u32 2147483647, %v13749_v22  ;;  %v5122_v31 = vand.u32 2139095040, %v13749_v22  ;;  %v13754_v8 = vadd.f32 %v5009_v42, %v13746_v27 }
 0x6a4   : > { %v5013_v30 = vpop.f32.mrf.mxu0 }
 0x6a5   : > { %17236 = vst [vmem:[#allocation34_spill] sm:$0xff] %v13754_v8  ;;  %v5123_v13 = vshrl.u32 %v5122_v31, 23  ;;  %v5126_v45 = vand.u32 8388607, %v5119_v6  ;;  %v16841_v3 = vand.u32 2147483647, %v13754_v8  ;;  %v13763_v12 = vadd.f32 %v5013_v30, %v13756_v0 }
 0x6a6   : > { %v5226_v28 = vand.u32 2139095040, %v13754_v8  ;;  %v5015_v36 = vpop.f32.mrf.mxu0 }
 0x6a7   : > { %17237 = vst [vmem:[#allocation23_spill] sm:$0xff] %v13763_v12  ;;  %v9240_v51 = vadd.s32 4294967169, %v5123_v13  ;;  %v5230_v50 = vand.u32 8388607, %v16841_v3  ;;  %v5538_v9 = vand.u32 2139095040, %v13763_v12  ;;  %v5127_v23 = vor.u32 8388608, %v5126_v45 }
 0x6a8   : > { %v5227_v16 = vshrl.u32 %v5226_v28, 23  ;;  %v13769_v49 = vadd.f32 %v5015_v36, %v13756_v0  ;;  %v5535_v35 = vand.u32 2147483647, %v13763_v12 }
 0x6a9   : > { %v5129_v56 = vadd.s32 1, %v9240_v51  ;;  %v5231_v53 = vor.u32 8388608, %v5230_v50  ;;  %v5539_v20 = vshrl.u32 %v5538_v9, 23  ;;  %v13772_v40 = vshll.u32 %v5127_v23, 8 }
 0x6aa   : > { %v9244_v24 = vadd.s32 4294967169, %v5227_v16  ;;  %v5642_v11 = vand.u32 2139095040, %v13769_v49 }
 0x6ab   : > { %vm5130_vm9 = vcmp.gt.s32.totalorder %v5129_v56, 0  ;;  %v13774_v46 = vshll.u32 %v5231_v53, 8  ;;  %v13776_v48 = vadd.s32 4294967169, %v5539_v20 }
 0x6ac   : > { %v5131_v5 = vsel %vm5130_vm9, %v5129_v56, 0  ;;  %v5233_v4 = vadd.s32 1, %v9244_v24 }
 0x6ad   : > { %v5132_v34 = vshrl.u32 %v5131_v5, 5  ;;  %v5133_v61 = vand.u32 31, %v5131_v5 }
 0x6ae   : > { %vm5234_vm3 = vcmp.gt.s32.totalorder %v5233_v4, 0 }
 0x6af   : > { %v5134_v33 = vsub.s32 32, %v5133_v61  ;;  %v5136_v21 = vshll.u32 %v16981_v17, %v5133_v61  ;;  %v5139_v25 = vshll.u32 %v16975_v14, %v5133_v61  ;;  %v5142_v26 = vshll.u32 %v16976_v10, %v5133_v61 }
 0x6b0   : > { %v5145_v38 = vshll.u32 %v17238_v58, %v5133_v61  ;;  %v5148_v41 = vshll.u32 %v16998_v2, %v5133_v61  ;;  %vm5151_vm4 = vcmp.lt.s32.totalorder %v5132_v34, 1  ;;  %vm5152_vm1 = vcmp.lt.s32.totalorder %v5132_v34, 2 }
 0x6b1   : > { %v5137_v52 = vshrl.u32 %v16975_v14, %v5134_v33  ;;  %v5140_v32 = vshrl.u32 %v16976_v10, %v5134_v33  ;;  %v5143_v19 = vshrl.u32 %v17238_v58, %v5134_v33  ;;  %v5135_v1 = vshrl.u32 %v16981_v17, %v5134_v33 }
 0x6b2   : > { %v5146_v59 = vshrl.u32 %v16998_v2, %v5134_v33  ;;  %v5149_v47 = vshrl.u32 %v17239_v60, %v5134_v33  ;;  %vm5153_vm13 = vcmp.lt.s32.totalorder %v5132_v34, 3  ;;  %v5235_v15 = vsel %vm5234_vm3, %v5233_v4, 0 }
 0x6b3   : > { %v5138_v7 = vor.u32 %v5137_v52, %v5136_v21  ;;  %v5141_v29 = vor.u32 %v5140_v32, %v5139_v25  ;;  %v5144_v39 = vor.u32 %v5143_v19, %v5142_v26  ;;  %vm5154_vm7 = vcmp.lt.s32.totalorder %v5132_v34, 4 }
 0x6b4   : > { %v5147_v44 = vor.u32 %v5146_v59, %v5145_v38  ;;  %v5150_v63 = vor.u32 %v5149_v47, %v5148_v41  ;;  %v5237_v55 = vand.u32 31, %v5235_v15  ;;  %v5236_v16 = vshrl.u32 %v5235_v15, 5 }
 0x6b5   : > { %v5155_v37 = vsel %vm5151_vm4, %v5135_v1, %v5138_v7  ;;  %v5156_v43 = vsel %vm5154_vm7, %v5144_v39, 2102212464  ;;  %v5159_v54 = vsel %vm5151_vm4, %v5138_v7, %v5141_v29  ;;  %v5163_v42 = vsel %vm5151_vm4, %v5141_v29, %v5144_v39 }
 0x6b6   : > { %v5157_v31 = vsel %vm5153_vm13, %v5141_v29, %v5156_v43  ;;  %v5160_v30 = vsel %vm5154_vm7, %v5147_v44, 920167782  ;;  %v5164_v13 = vsel %vm5154_vm7, %v5150_v63, 1326507024  ;;  %v5238_v45 = vsub.s32 32, %v5237_v55 }
 0x6b7   : > { %v5158_v28 = vsel %vm5152_vm1, %v5155_v37, %v5157_v31  ;;  %v5161_v51 = vsel %vm5153_vm13, %v5144_v39, %v5160_v30  ;;  %v5165_v36 = vsel %vm5153_vm13, %v5147_v44, %v5164_v13  ;;  %v5240_v23 = vshll.u32 %v16981_v17, %v5237_v55 }
 0x6b8   : > { %v5162_v50 = vsel %vm5152_vm1, %v5159_v54, %v5161_v51  ;;  %v5166_v56 = vsel %vm5152_vm1, %v5163_v42, %v5165_v36  ;;  %v5174_v9 = vmul.u32 %v13772_v40, %v5158_v28  ;;  %v5239_v4 = vshrl.u32 %v16981_v17, %v5238_v45 }
 0x6b9   : > { %v13803_v24 = vmul.u32.u64.low %v13772_v40, %v5166_v56  ;;  %v13804_v53 = vmul.u32.u64.high %v13772_v40, %v5166_v56, %v13803_v24  ;;  %v13807_v20 = vmul.u32.u64.low %v13772_v40, %v5162_v50  ;;  %v13808_v5 = vmul.u32.u64.high %v13772_v40, %v5162_v50, %v13807_v20 }
 0x6ba   : > { %v5241_v61 = vshrl.u32 %v16975_v14, %v5238_v45  ;;  %v5243_v34 = vshll.u32 %v16975_v14, %v5237_v55  ;;  %v5244_v33 = vshrl.u32 %v16976_v10, %v5238_v45  ;;  %v5246_v21 = vshll.u32 %v16976_v10, %v5237_v55 }
 0x6bb   : > { %v5247_v25 = vshrl.u32 %v17238_v58, %v5238_v45  ;;  %v5249_v26 = vshll.u32 %v17238_v58, %v5237_v55  ;;  %v5250_v38 = vshrl.u32 %v16998_v2, %v5238_v45  ;;  %v5252_v52 = vshll.u32 %v16998_v2, %v5237_v55 }
 0x6bc   : > { %v5242_v41 = vor.u32 %v5241_v61, %v5240_v23  ;;  %v5245_v40 = vor.u32 %v5244_v33, %v5243_v34  ;;  %v5253_v32 = vshrl.u32 %v17239_v60, %v5238_v45  ;;  %vm5176_vm5 = vc.u32 %v13804_v53, %v13807_v20 }
 0x6bd   : > { %v5177_v19 = vadd.s32 1, %v13808_v5  ;;  %v5248_v1 = vor.u32 %v5247_v25, %v5246_v21  ;;  %vm5255_vm6 = vcmp.lt.s32.totalorder %v5236_v16, 1  ;;  %v5251_v59 = vor.u32 %v5250_v38, %v5249_v26 }
 0x6be   : > { %v5254_v47 = vor.u32 %v5253_v32, %v5252_v52  ;;  %vm5256_vm10 = vcmp.lt.s32.totalorder %v5236_v16, 2  ;;  %vm5257_vm8 = vcmp.lt.s32.totalorder %v5236_v16, 3  ;;  %vm5258_vm14 = vcmp.lt.s32.totalorder %v5236_v16, 4 }
 0x6bf   : > { %v5178_v7 = vsel %vm5176_vm5, %v5177_v19, %v13808_v5  ;;  %v5259_v29 = vsel %vm5255_vm6, %v5239_v4, %v5242_v41  ;;  %v5263_v39 = vsel %vm5255_vm6, %v5242_v41, %v5245_v40  ;;  %v5260_v44 = vsel %vm5258_vm14, %v5248_v1, 2102212464 }
 0x6c0   : > { %v5179_v15 = vadd.s32 %v5178_v7, %v5174_v9  ;;  %v5264_v63 = vsel %vm5258_vm14, %v5251_v59, 920167782  ;;  %v5267_v55 = vsel %vm5255_vm6, %v5245_v40, %v5248_v1  ;;  %v5261_v37 = vsel %vm5257_vm8, %v5245_v40, %v5260_v44 }
 0x6c1   : > { %v5265_v43 = vsel %vm5257_vm8, %v5248_v1, %v5264_v63  ;;  %v5268_v54 = vsel %vm5258_vm14, %v5254_v47, 1326507024  ;;  %v5545_v42 = vadd.s32 1, %v13776_v48  ;;  %v5643_v45 = vshrl.u32 %v5642_v11, 23 }
 0x6c2   : > { %v5180_v31 = vadd.s32 536870912, %v5179_v15  ;;  %v5266_v30 = vsel %vm5256_vm10, %v5263_v39, %v5265_v43  ;;  %v5269_v13 = vsel %vm5257_vm8, %v5251_v59, %v5268_v54  ;;  %v5262_v28 = vsel %vm5256_vm10, %v5259_v29, %v5261_v37 }
 0x6c3   : > { %v5270_v51 = vsel %vm5256_vm10, %v5267_v55, %v5269_v13  ;;  %v13832_v36 = vmul.u32.u64.low %v13774_v46, %v5266_v30  ;;  %v13833_v50 = vmul.u32.u64.high %v13774_v46, %v5266_v30, %v13832_v36  ;;  %vm5546_vm2 = vcmp.gt.s32.totalorder %v5545_v42, 0 }
 0x6c4   : > { %v13836_v56 = vshrl.u32 %v5180_v31, 30  ;;  %v13839_v48 = vmul.u32.u64.low %v13774_v46, %v5270_v51  ;;  %v13840_v9 = vmul.u32.u64.high %v13774_v46, %v5270_v51, %v13839_v48  ;;  %v5547_v23 = vsel %vm5546_vm2, %v5545_v42, 0 }
 0x6c5   : > { %v5549_v11 = vand.u32 31, %v5547_v23  ;;  %v5278_v5 = vmul.u32 %v13774_v46, %v5262_v28  ;;  %v5281_v16 = vadd.s32 1, %v13833_v50  ;;  %v5542_v4 = vand.u32 8388607, %v5535_v35 }
 0x6c6   : > { %17240 = vst [vmem:[#allocation30_spill] sm:$0xff] %v13836_v56  ;;  %v5182_v24 = vshll.u32 %v13836_v56, 30  ;;  %v16842_v61 = vand.u32 2147483647, %v13769_v49  ;;  %vm5280_vm0 = vc.u32 %v13840_v9, %v13832_v36  ;;  %v9260_v21 = vadd.s32 4294967169, %v5643_v45 }
 0x6c7   : > { %v5550_v33 = vsub.s32 32, %v5549_v11  ;;  %v5282_v25 = vsel %vm5280_vm0, %v5281_v16, %v13833_v50  ;;  %v5548_v26 = vshrl.u32 %v5547_v23, 5  ;;  %v5552_v38 = vshll.u32 %v16981_v17, %v5549_v11 }
 0x6c8   : > { %v13848_v34 = vsub.s32 %v5179_v15, %v5182_v24  ;;  %v5555_v46 = vshll.u32 %v16975_v14, %v5549_v11  ;;  %v5283_v40 = vadd.s32 %v5282_v25, %v5278_v5  ;;  %v5558_v32 = vshll.u32 %v16976_v10, %v5549_v11 }
 0x6c9   : > { %v5553_v52 = vshrl.u32 %v16975_v14, %v5550_v33  ;;  %v5556_v19 = vshrl.u32 %v16976_v10, %v5550_v33  ;;  %v5559_v1 = vshrl.u32 %v17238_v58, %v5550_v33  ;;  %v5561_v59 = vshll.u32 %v17238_v58, %v5549_v11 }
 0x6ca   : > { %v5185_v41 = vsub.s32 0, %v13848_v34  ;;  %v5562_v47 = vshrl.u32 %v16998_v2, %v5550_v33  ;;  %v5284_v29 = vadd.s32 536870912, %v5283_v40  ;;  %v5564_v15 = vshll.u32 %v16998_v2, %v5549_v11 }
 0x6cb   : > { %v5554_v39 = vor.u32 %v5553_v52, %v5552_v38  ;;  %v5557_v44 = vor.u32 %v5556_v19, %v5555_v46  ;;  %v5560_v63 = vor.u32 %v5559_v1, %v5558_v32  ;;  %v5565_v37 = vshrl.u32 %v17239_v60, %v5550_v33 }
 0x6cc   : > { %v9241_v7 = vmin.u32 %v5185_v41, %v13848_v34  ;;  %v5563_v55 = vor.u32 %v5562_v47, %v5561_v59  ;;  %v13865_v54 = vshrl.u32 %v5284_v29, 30  ;;  %v5543_v42 = vor.u32 8388608, %v5542_v4 }
 0x6cd   : > { %v5649_v31 = vadd.s32 1, %v9260_v21  ;;  %v5566_v30 = vor.u32 %v5565_v37, %v5564_v15  ;;  %vm5567_vm15 = vcmp.lt.s32.totalorder %v5548_v26, 1  ;;  %vm5568_vm12 = vcmp.lt.s32.totalorder %v5548_v26, 2  ;;  %v5019_v37 = vpop.f32.mrf.mxu0 }
 0x6ce   : > { %v5187_v43 = vclz %v9241_v7  ;;  %17241 = vst [vmem:[#allocation32_spill] sm:$0xff] %v13865_v54  ;;  %vm5569_vm11 = vcmp.lt.s32.totalorder %v5548_v26, 3  ;;  %v5286_v45 = vshll.u32 %v13865_v54, 30  ;;  %vm5570_vm9 = vcmp.lt.s32.totalorder %v5548_v26, 4 }
 0x6cf   : > { %v5575_v28 = vsel %vm5567_vm15, %v5554_v39, %v5557_v44  ;;  %v5551_v51 = vshrl.u32 %v16981_v17, %v5550_v33  ;;  %v5572_v50 = vsel %vm5570_vm9, %v5560_v63, 2102212464  ;;  %v5576_v48 = vsel %vm5570_vm9, %v5563_v55, 920167782 }
 0x6d0   : > { %v9242_v13 = vadd.s32 4294967294, %v5187_v43  ;;  %v5580_v23 = vsel %vm5570_vm9, %v5566_v30, 1326507024  ;;  %v13870_v24 = vsub.s32 %v5283_v40, %v5286_v45  ;;  %v5577_v11 = vsel %vm5569_vm11, %v5560_v63, %v5576_v48 }
 0x6d1   : > { %v5579_v5 = vsel %vm5567_vm15, %v5557_v44, %v5560_v63  ;;  %v5578_v4 = vsel %vm5568_vm12, %v5575_v28, %v5577_v11  ;;  %v5581_v21 = vsel %vm5569_vm11, %v5563_v55, %v5580_v23  ;;  %v5583_v25 = vshll.u32 %v5543_v42, 8 }
 0x6d2   : > { %vm9243_vm3 = vcmp.lt.s32.totalorder %v9242_v13, 0  ;;  %v5289_v46 = vsub.s32 0, %v13870_v24  ;;  %v5571_v33 = vsel %vm5567_vm15, %v5551_v51, %v5554_v39  ;;  %v5573_v41 = vsel %vm5569_vm11, %v5557_v44, %v5572_v50 }
 0x6d3   : > { %v5190_v16 = vsel %vm9243_vm3, 0, %v9242_v13  ;;  %v5582_v40 = vsel %vm5568_vm12, %v5579_v5, %v5581_v21  ;;  %v13880_v52 = vmul.u32.u64.low %v5583_v25, %v5578_v4  ;;  %v13881_v32 = vmul.u32.u64.high %v5583_v25, %v5578_v4, %v13880_v52 }
 0x6d4   : > { %v5195_v38 = vsub.s32 4294967266, %v5190_v16  ;;  %vm5650_vm4 = vcmp.gt.s32.totalorder %v5649_v31, 0  ;;  %v9245_v19 = vmin.u32 %v5289_v46, %v13870_v24  ;;  %v5574_v39 = vsel %vm5568_vm12, %v5571_v33, %v5573_v41 }
 0x6d5   : > { %v5651_v1 = vsel %vm5650_vm4, %v5649_v31, 0  ;;  %v13885_v59 = vmul.u32.u64.low %v5583_v25, %v5582_v40  ;;  %v13886_v47 = vmul.u32.u64.high %v5583_v25, %v5582_v40, %v13885_v59  ;;  %v5593_v44 = vadd.s32 1, %v13881_v32 }
 0x6d6   : > { %v5653_v7 = vand.u32 31, %v5651_v1  ;;  %v5196_v29 = vadd.s32 127, %v5195_v38  ;;  %v5291_v15 = vclz %v9245_v19  ;;  %v5646_v63 = vand.u32 8388607, %v16842_v61 }
 0x6d7   : > { %v5191_v43 = vsub.s32 32, %v5190_v16  ;;  %v5590_v30 = vmul.u32 %v5583_v25, %v5574_v39  ;;  %vm5592_vm1 = vc.u32 %v13886_v47, %v13880_v52  ;;  %v5175_v31 = vadd.s32 %v13807_v20, %v13804_v53 }
 0x6d8   : > { %v5654_v55 = vsub.s32 32, %v5653_v7  ;;  %v9246_v42 = vadd.s32 4294967294, %v5291_v15  ;;  %v5197_v13 = vshll.u32 %v5196_v29, 23  ;;  %v5594_v26 = vsel %vm5592_vm1, %v5593_v44, %v13881_v32 }
 0x6d9   : > { %v13898_v45 = vadd.f32 %v5019_v37, %v13742_v62  ;;  %v5192_v28 = vshll.u32 %v13848_v34, %v5190_v16  ;;  %v5595_v51 = vadd.s32 %v5594_v26, %v5590_v30  ;;  %v5647_v50 = vor.u32 8388608, %v5646_v63 }
 0x6da   : > { %v5657_v48 = vshrl.u32 %v16975_v14, %v5654_v55  ;;  %v5193_v23 = vshrl.u32 %v5175_v31, %v5191_v43  ;;  %vm9247_vm13 = vcmp.lt.s32.totalorder %v9246_v42, 0  ;;  %v5660_v11 = vshrl.u32 %v16976_v10, %v5654_v55 }
 0x6db   : > { %v5663_v5 = vshrl.u32 %v17238_v58, %v5654_v55  ;;  %v5596_v4 = vadd.s32 536870912, %v5595_v51  ;;  %v5652_v53 = vshrl.u32 %v5651_v1, 5  ;;  %v5656_v20 = vshll.u32 %v16981_v17, %v5653_v7 }
 0x6dc   : > { %v5659_v21 = vshll.u32 %v16975_v14, %v5653_v7  ;;  %v5198_v25 = vor.u32 4788187, %v5197_v13  ;;  %v5662_v38 = vshll.u32 %v16976_v10, %v5653_v7  ;;  %v5665_v34 = vshll.u32 %v17238_v58, %v5653_v7 }
 0x6dd   : > { %v5666_v16 = vshrl.u32 %v16998_v2, %v5654_v55  ;;  %v13909_v46 = vsel %vm9247_vm13, 0, %v9246_v42  ;;  %v13911_v33 = vshrl.u32 %v5596_v4, 30  ;;  %v5658_v41 = vor.u32 %v5657_v48, %v5656_v20 }
 0x6de   : > { %v5669_v40 = vshrl.u32 %v17239_v60, %v5654_v55  ;;  %v5661_v32 = vor.u32 %v5660_v11, %v5659_v21  ;;  %v5664_v19 = vor.u32 %v5663_v5, %v5662_v38  ;;  %v5668_v59 = vshll.u32 %v16998_v2, %v5653_v7  ;;  %v5021_v21 = vpop.f32.mrf.mxu0 }
 0x6df   : > { %17242 = vst [vmem:[#allocation26_spill] sm:$0xff] %v13911_v33  ;;  %v5667_v1 = vor.u32 %v5666_v16, %v5665_v34  ;;  %v5194_v29 = vor.u32 %v5193_v23, %v5192_v28  ;;  %v5598_v15 = vshll.u32 %v13911_v33, 30  ;;  %v5687_v39 = vshll.u32 %v5647_v50, 8 }
 0x6e0   : > { %v5199_v44 = vand.u32 2147483647, %v5198_v25  ;;  %v5655_v63 = vshrl.u32 %v16981_v17, %v5654_v55  ;;  %v5670_v37 = vor.u32 %v5669_v40, %v5668_v59  ;;  %v5954_v43 = vand.u32 2139095040, %v13898_v45 }
 0x6e1   : > { %v5299_v42 = vsub.s32 4294967266, %v13909_v46  ;;  %v13919_v30 = vsub.s32 %v5595_v51, %v5598_v15  ;;  %vm5671_vm7 = vcmp.lt.s32.totalorder %v5652_v53, 1  ;;  %vm5674_vm5 = vcmp.lt.s32.totalorder %v5652_v53, 4 }
 0x6e2   : > { %vm5673_vm6 = vcmp.lt.s32.totalorder %v5652_v53, 3  ;;  %v5676_v31 = vsel %vm5674_vm5, %v5664_v19, 2102212464  ;;  %v5679_v13 = vsel %vm5671_vm7, %v5658_v41, %v5661_v32  ;;  %v5680_v7 = vsel %vm5674_vm5, %v5667_v1, 920167782 }
 0x6e3   : > { %v5601_v26 = vsub.s32 0, %v13919_v30  ;;  %vm5672_vm10 = vcmp.lt.s32.totalorder %v5652_v53, 2  ;;  %v5681_v28 = vsel %vm5673_vm6, %v5664_v19, %v5680_v7  ;;  %v5683_v50 = vsel %vm5671_vm7, %v5661_v32, %v5664_v19 }
 0x6e4   : > { %v5675_v48 = vsel %vm5671_vm7, %v5655_v63, %v5658_v41  ;;  %v5677_v55 = vsel %vm5673_vm6, %v5661_v32, %v5676_v31  ;;  %v5682_v23 = vsel %vm5672_vm10, %v5679_v13, %v5681_v28  ;;  %v5684_v11 = vsel %vm5674_vm5, %v5670_v37, 1326507024 }
 0x6e5   : > { %v9257_v5 = vmin.u32 %v5601_v26, %v13919_v30  ;;  %v5685_v51 = vsel %vm5673_vm6, %v5667_v1, %v5684_v11  ;;  %v13924_v4 = vmul.u32.u64.low %v5687_v39, %v5682_v23  ;;  %v13925_v20 = vmul.u32.u64.high %v5687_v39, %v5682_v23, %v13924_v4 }
 0x6e6   : > { %v5201_v25 = vcvt.s32.f32 %v5194_v29  ;;  %v5686_v38 = vsel %vm5672_vm10, %v5683_v50, %v5685_v51  ;;  %v5955_v34 = vshrl.u32 %v5954_v43, 23  ;;  %v5678_v32 = vsel %vm5672_vm10, %v5675_v48, %v5677_v55 }
 0x6e7   : > { %v5603_v16 = vclz %v9257_v5  ;;  %v13929_v40 = vmul.u32.u64.low %v5687_v39, %v5686_v38  ;;  %v13930_v19 = vmul.u32.u64.high %v5687_v39, %v5686_v38, %v13929_v40  ;;  %v13934_v15 = vadd.f32 %v5021_v21, %v13742_v62 }
 0x6e8   : > { %v5202_v41 = vmul.f32 %v5201_v25, %v5199_v44  ;;  %v9272_v59 = vadd.s32 4294967169, %v5955_v34  ;;  %v5295_v1 = vsub.s32 32, %v13909_v46  ;;  %v5300_v63 = vadd.s32 127, %v5299_v42 }
 0x6e9   : > { %v9258_v37 = vadd.s32 4294967294, %v5603_v16  ;;  %v5697_v29 = vadd.s32 1, %v13925_v20  ;;  %v6058_v43 = vand.u32 2139095040, %v13934_v15  ;;  %v5279_v13 = vadd.s32 %v13832_v36, %v13840_v9 }
 0x6ea   : > { %v5961_v31 = vadd.s32 1, %v9272_v59  ;;  %v5694_v44 = vmul.u32 %v5687_v39, %v5678_v32  ;;  %vm5696_vm14 = vc.u32 %v13930_v19, %v13924_v4  ;;  %v5203_v42 = vxor.u32 2147483648, %v5202_v41 }
 0x6eb   : > { %vm9259_vm8 = vcmp.lt.s32.totalorder %v9258_v37, 0  ;;  %v5698_v7 = vsel %vm5696_vm14, %v5697_v29, %v13925_v20  ;;  %v5297_v26 = vshrl.u32 %v5279_v13, %v5295_v1  ;;  %v5301_v28 = vshll.u32 %v5300_v63, 23 }
 0x6ec   : > { %v13943_v53 = vsel %vm9259_vm8, 0, %v9258_v37  ;;  %vm5962_vm2 = vcmp.gt.s32.totalorder %v5961_v31, 0  ;;  %v5699_v50 = vadd.s32 %v5698_v7, %v5694_v44  ;;  %v16846_v55 = vand.u32 2147483647, %v13898_v45 }
 0x6ed   : > { %v5611_v48 = vsub.s32 4294967266, %v13943_v53  ;;  %v5963_v23 = vsel %vm5962_vm2, %v5961_v31, 0  ;;  %v6059_v36 = vshrl.u32 %v6058_v43, 23  ;;  %v5296_v9 = vshll.u32 %v13870_v24, %v13909_v46 }
 0x6ee   : > { %v5700_v39 = vadd.s32 536870912, %v5699_v50  ;;  %vm16883_vm0 = vcmp.lt.s32.totalorder %v13749_v22, 0  ;;  %v5591_v11 = vadd.s32 %v13880_v52, %v13886_v47  ;;  %v5965_v5 = vand.u32 31, %v5963_v23 }
 0x6ef   : > { %v13955_v51 = vsel %vm16883_vm0, %v5203_v42, %v5202_v41  ;;  %v13957_v20 = vor.u32 %v5297_v26, %v5296_v9  ;;  %v13959_v21 = vor.u32 4788187, %v5301_v28  ;;  %v5612_v38 = vadd.s32 127, %v5611_v48 }
 0x6f0   : > { %v13961_v25 = vshrl.u32 %v5700_v39, 30  ;;  %v5958_v24 = vand.u32 8388607, %v16846_v55  ;;  %v5966_v46 = vsub.s32 32, %v5965_v5  ;;  %v9276_v34 = vadd.s32 4294967169, %v6059_v36 }
 0x6f1   : > { %v5964_v52 = vshrl.u32 %v5963_v23, 5  ;;  %v5968_v47 = vshll.u32 %v16981_v17, %v5965_v5  ;;  %v5971_v40 = vshll.u32 %v16975_v14, %v5965_v5  ;;  %v5974_v59 = vshll.u32 %v16976_v10, %v5965_v5 }
 0x6f2   : > { %17243 = vst [vmem:[#allocation11_spill] sm:$0xff] %v13961_v25  ;;  %v5702_v16 = vshll.u32 %v13961_v25, 30  ;;  %v5969_v41 = vshrl.u32 %v16975_v14, %v5966_v46  ;;  %v5972_v32 = vshrl.u32 %v16976_v10, %v5966_v46  ;;  %v5975_v1 = vshrl.u32 %v17238_v58, %v5966_v46 }
 0x6f3   : > { %v5977_v37 = vshll.u32 %v17238_v58, %v5965_v5  ;;  %v5978_v29 = vshrl.u32 %v16998_v2, %v5966_v46  ;;  %v5980_v31 = vshll.u32 %v16998_v2, %v5965_v5  ;;  %v5981_v7 = vshrl.u32 %v17239_v60, %v5966_v46 }
 0x6f4   : > { %v13972_v63 = vsub.s32 %v5699_v50, %v5702_v16  ;;  %v5970_v43 = vor.u32 %v5969_v41, %v5968_v47  ;;  %v5973_v13 = vor.u32 %v5972_v32, %v5971_v40  ;;  %v5976_v44 = vor.u32 %v5975_v1, %v5974_v59 }
 0x6f5   : > { %v5959_v26 = vor.u32 8388608, %v5958_v24  ;;  %v5979_v28 = vor.u32 %v5978_v29, %v5977_v37  ;;  %v16843_v48 = vand.u32 2147483647, %v13934_v15  ;;  %v5607_v50 = vsub.s32 32, %v13943_v53 }
 0x6f6   : > { %v5705_v42 = vsub.s32 0, %v13972_v63  ;;  %v5982_v23 = vor.u32 %v5981_v7, %v5980_v31  ;;  %vm5983_vm15 = vcmp.lt.s32.totalorder %v5964_v52, 1  ;;  %v6065_v36 = vadd.s32 1, %v9276_v34 }
 0x6f7   : > { %v5613_v9 = vshll.u32 %v5612_v38, 23  ;;  %vm5985_vm12 = vcmp.lt.s32.totalorder %v5964_v52, 3  ;;  %vm5986_vm11 = vcmp.lt.s32.totalorder %v5964_v52, 4  ;;  %v5991_v39 = vsel %vm5983_vm15, %v5970_v43, %v5973_v13 }
 0x6f8   : > { %v5988_v5 = vsel %vm5986_vm11, %v5976_v44, 2102212464  ;;  %v5992_v16 = vsel %vm5986_vm11, %v5979_v28, 920167782  ;;  %v5995_v47 = vsel %vm5983_vm15, %v5973_v13, %v5976_v44  ;;  %v5996_v40 = vsel %vm5986_vm11, %v5982_v23, 1326507024  ;;  %v5025_v23 = vpop.f32.mrf.mxu0 }
 0x6f9   : > { %v9261_v24 = vmin.u32 %v5705_v42, %v13972_v63  ;;  %v5967_v41 = vshrl.u32 %v16981_v17, %v5966_v46  ;;  %vm5984_vm9 = vcmp.lt.s32.totalorder %v5964_v52, 2  ;;  %v5993_v32 = vsel %vm5985_vm12, %v5976_v44, %v5992_v16 }
 0x6fa   : > { %v5994_v59 = vsel %vm5984_vm9, %v5991_v39, %v5993_v32  ;;  %v5997_v38 = vsel %vm5985_vm12, %v5979_v28, %v5996_v40  ;;  %v5999_v34 = vshll.u32 %v5959_v26, 8  ;;  %v6062_v1 = vand.u32 8388607, %v16843_v48 }
 0x6fb   : > { %v5987_v37 = vsel %vm5983_vm15, %v5967_v41, %v5970_v43  ;;  %v5989_v29 = vsel %vm5985_vm12, %v5973_v13, %v5988_v5  ;;  %v5998_v31 = vsel %vm5984_vm9, %v5995_v47, %v5997_v38  ;;  %vm6066_vm3 = vcmp.gt.s32.totalorder %v6065_v36, 0 }
 0x6fc   : > { %v5609_v7 = vshrl.u32 %v5591_v11, %v5607_v50  ;;  %v13993_v46 = vmul.u32.u64.low %v5999_v34, %v5998_v31  ;;  %v13994_v42 = vmul.u32.u64.high %v5999_v34, %v5998_v31, %v13993_v46  ;;  %v6067_v44 = vsel %vm6066_vm3, %v6065_v36, 0 }
 0x6fd   : > { %v5614_v39 = vor.u32 4788187, %v5613_v9  ;;  %v5707_v16 = vclz %v9261_v24  ;;  %v13996_v28 = vmul.u32.u64.low %v5999_v34, %v5994_v59  ;;  %v13997_v26 = vmul.u32.u64.high %v5999_v34, %v5994_v59, %v13996_v28 }
 0x6fe   : > { %vm14002_vm4 = vcmp.le.f32.partialorder %v5119_v6, 0.7853982  ;;  %v17244_v43 = vmov 0  ;;  %v5608_v11 = vshll.u32 %v13919_v30, %v13943_v53  ;;  %v5990_v13 = vsel %vm5984_vm9, %v5987_v37, %v5989_v29 }
 0x6ff   : > { %v17245_v43 = vsel %vm14002_vm4, 4294967295, %v17244_v43  ;;  %v6069_v50 = vand.u32 31, %v6067_v44  ;;  %v14013_v36 = vsel %vm14002_vm4, %v13749_v22, %v13955_v51  ;;  %v5303_v9 = vand.u32 2147483647, %v13959_v21  ;;  %v5027_v51 = vpop.f32.mrf.mxu0 }
 0x700   : > { %17246 = vst [vmem:[#allocation28_spill] sm:$0xff] %v17245_v43  ;;  %v5305_v5 = vcvt.s32.f32 %v13957_v20  ;;  %v14018_v6 = vadd.f32 %v5025_v23, %v13744_v57  ;;  %v5610_v47 = vor.u32 %v5609_v7, %v5608_v11  ;;  %vm6008_vm1 = vc.u32 %v13994_v42, %v13996_v28 }
 0x701   : > { %v6063_v30 = vor.u32 8388608, %v6062_v1  ;;  %v6070_v53 = vsub.s32 32, %v6069_v50  ;;  %v5615_v52 = vand.u32 2147483647, %v5614_v39  ;;  %v9262_v40 = vadd.s32 4294967294, %v5707_v16 }
 0x702   : > { %v6006_v24 = vmul.u32 %v5999_v34, %v5990_v13  ;;  %v6009_v41 = vadd.s32 1, %v13997_v26  ;;  %v6068_v32 = vshrl.u32 %v6067_v44, 5  ;;  %v6072_v21 = vshll.u32 %v16981_v17, %v6069_v50 }
 0x703   : > { %v6073_v20 = vshrl.u32 %v16975_v14, %v6070_v53  ;;  %v6076_v59 = vshrl.u32 %v16976_v10, %v6070_v53  ;;  %v6075_v37 = vshll.u32 %v16975_v14, %v6069_v50  ;;  %v6078_v1 = vshll.u32 %v16976_v10, %v6069_v50 }
 0x704   : > { %v6010_v38 = vsel %vm6008_vm1, %v6009_v41, %v13997_v26  ;;  %v6079_v29 = vshrl.u32 %v17238_v58, %v6070_v53  ;;  %v5617_v31 = vcvt.s32.f32 %v5610_v47  ;;  %v14031_v46 = vadd.f32 %v5027_v51, %v13744_v57 }
 0x705   : > { %v6011_v34 = vadd.s32 %v6010_v38, %v6006_v24  ;;  %v6074_v7 = vor.u32 %v6073_v20, %v6072_v21  ;;  %v6077_v44 = vor.u32 %v6076_v59, %v6075_v37  ;;  %v6081_v39 = vshll.u32 %v17238_v58, %v6069_v50 }
 0x706   : > { %v6080_v23 = vor.u32 %v6079_v29, %v6078_v1  ;;  %v6082_v16 = vshrl.u32 %v16998_v2, %v6070_v53  ;;  %v5618_v11 = vmul.f32 %v5617_v31, %v5615_v52  ;;  %v6084_v13 = vshll.u32 %v16998_v2, %v6069_v50 }
 0x707   : > { %v6012_v26 = vadd.s32 536870912, %v6011_v34  ;;  %v6085_v41 = vshrl.u32 %v17239_v60, %v6070_v53  ;;  %vm9263_vm13 = vcmp.lt.s32.totalorder %v9262_v40, 0  ;;  %vm6090_vm7 = vcmp.lt.s32.totalorder %v6068_v32, 4 }
 0x708   : > { %v6083_v3 = vor.u32 %v6082_v16, %v6081_v39  ;;  %v6103_v47 = vshll.u32 %v6063_v30, 8  ;;  %vm6087_vm5 = vcmp.lt.s32.totalorder %v6068_v32, 1  ;;  %v6092_v21 = vsel %vm6090_vm7, %v6080_v23, 2102212464 }
 0x709   : > { %v14037_v24 = vshrl.u32 %v6012_v26, 30  ;;  %v6086_v51 = vor.u32 %v6085_v41, %v6084_v13  ;;  %v6071_v20 = vshrl.u32 %v16981_v17, %v6070_v53  ;;  %vm6089_vm6 = vcmp.lt.s32.totalorder %v6068_v32, 3 }
 0x70a   : > { %v6095_v59 = vsel %vm6087_vm5, %v6074_v7, %v6077_v44  ;;  %v6096_v52 = vsel %vm6090_vm7, %v6083_v3, 920167782  ;;  %vm16888_vm10 = vcmp.lt.s32.totalorder %v13763_v12, 0  ;;  %vm6088_vm8 = vcmp.lt.s32.totalorder %v6068_v32, 2 }
 0x70b   : > { %v6014_v50 = vshll.u32 %v14037_v24, 30  ;;  %v6097_v38 = vsel %vm6089_vm6, %v6080_v23, %v6096_v52  ;;  %v6099_v37 = vsel %vm6087_vm5, %v6077_v44, %v6080_v23  ;;  %v6091_v30 = vsel %vm6087_vm5, %v6071_v20, %v6074_v7 }
 0x70c   : > { %v6093_v1 = vsel %vm6089_vm6, %v6077_v44, %v6092_v21  ;;  %v6098_v29 = vsel %vm6088_vm8, %v6095_v59, %v6097_v38  ;;  %v6100_v31 = vsel %vm6090_vm7, %v6086_v51, 1326507024  ;;  %10070 = vcosq.f32 %v14013_v36 }
 0x70d   : > { %v14046_v39 = vsub.s32 %v6011_v34, %v6014_v50  ;;  %v6101_v53 = vsel %vm6089_vm6, %v6083_v3, %v6100_v31  ;;  %v14048_v16 = vmul.u32.u64.low %v6103_v47, %v6098_v29  ;;  %v14049_v26 = vmul.u32.u64.high %v6103_v47, %v6098_v29, %v14048_v16 }
 0x70e   : > { %v14054_v13 = vsel %vm9263_vm13, 0, %v9262_v40  ;;  %v6102_v23 = vsel %vm6088_vm8, %v6099_v37, %v6101_v53  ;;  %v6370_v7 = vand.u32 2139095040, %v14018_v6  ;;  %v14058_v44 = vmul.f32 %v5305_v5, %v5303_v9 }
 0x70f   : > { %v6017_v41 = vsub.s32 0, %v14046_v39  ;;  %v14061_v34 = vmul.u32.u64.low %v6103_v47, %v6102_v23  ;;  %v14062_v51 = vmul.u32.u64.high %v6103_v47, %v6102_v23, %v14061_v34  ;;  %v5619_v3 = vxor.u32 2147483648, %v5618_v11 }
 0x710   : > { %v6094_v21 = vsel %vm6088_vm8, %v6091_v30, %v6093_v1  ;;  %v6371_v20 = vshrl.u32 %v6370_v7, 23  ;;  %v6474_v59 = vand.u32 2139095040, %v14031_v46  ;;  %v5715_v40 = vsub.s32 4294967266, %v14054_v13 }
 0x711   : > { %v9273_v52 = vmin.u32 %v6017_v41, %v14046_v39  ;;  %v6113_v50 = vadd.s32 1, %v14049_v26  ;;  %v16845_v9 = vand.u32 2147483647, %v14018_v6  ;;  %10072 = vsinq.f32 %v14013_v36 }
 0x712   : > { %vm14073_vm14 = vcmp.le.f32.partialorder %v5535_v35, 0.7853982  ;;  %v17247_v5 = vmov 0  ;;  %v9288_v32 = vadd.s32 4294967169, %v6371_v20  ;;  %v6475_v38 = vshrl.u32 %v6474_v59, 23 }
 0x713   : > { %v17248_v5 = vsel %vm14073_vm14, 4294967295, %v17247_v5  ;;  %v6019_v30 = vclz %v9273_v52  ;;  %v6110_v1 = vmul.u32 %v6103_v47, %v6094_v21  ;;  %vm6112_vm2 = vc.u32 %v14062_v51, %v14048_v16 }
 0x714   : > { %17249 = vst [vmem:[#allocation8_spill] sm:$0xff] %v17248_v5  ;;  %v5620_v29 = vsel %vm16888_vm10, %v5619_v3, %v5618_v11  ;;  %v5711_v36 = vsub.s32 32, %v14054_v13  ;;  %v6114_v31 = vsel %vm6112_vm2, %v6113_v50, %v14049_v26  ;;  %v6377_v35 = vadd.s32 1, %v9288_v32 }
 0x715   : > { %v14084_v53 = vadd.s32 127, %v5715_v40  ;;  %v9274_v23 = vadd.s32 4294967294, %v6019_v30  ;;  %v6115_v7 = vadd.s32 %v6114_v31, %v6110_v1  ;;  %v6374_v41 = vand.u32 8388607, %v16845_v9 }
 0x716   : > { %v5695_v47 = vadd.s32 %v13924_v4, %v13930_v19  ;;  %vm6378_vm15 = vcmp.gt.s32.totalorder %v6377_v35, 0  ;;  %v16844_v34 = vand.u32 2147483647, %v14031_v46  ;;  %v9292_v21 = vadd.s32 4294967169, %v6475_v38 }
 0x717   : > { %v14094_v11 = vsel %vm14073_vm14, %v13763_v12, %v5620_v29  ;;  %vm9275_vm12 = vcmp.lt.s32.totalorder %v9274_v23, 0  ;;  %v6116_v26 = vadd.s32 536870912, %v6115_v7  ;;  %v6379_v3 = vsel %vm6378_vm15, %v6377_v35, 0 }
 0x718   : > { %v6007_v59 = vadd.s32 %v13996_v28, %v13994_v42  ;;  %v14100_v40 = vsel %vm9275_vm12, 0, %v9274_v23  ;;  %v6381_v4 = vand.u32 31, %v6379_v3  ;;  %v14102_v19 = vshrl.u32 %v5695_v47, %v5711_v36  ;;  %v5096_v23 = vpop.f32.mrf.mxu1 }
 0x719   : > { %v14105_v50 = vshrl.u32 %v6116_v26, 30  ;;  %v6375_v32 = vor.u32 8388608, %v6374_v41  ;;  %v6023_v38 = vsub.s32 32, %v14100_v40  ;;  %v14110_v1 = vand.u32 8388607, %v16844_v34  ;;  %v14112_v31 = vpop.eup %10070 }
 0x71a   : > { %v6382_v30 = vsub.s32 32, %v6381_v4  ;;  %v6481_v29 = vadd.s32 1, %v9292_v21  ;;  %17250 = vst [vmem:[#allocation19_spill] sm:$0xff] %v14112_v31  ;;  %v6027_v42 = vsub.s32 4294967266, %v14100_v40  ;;  %v6384_v36 = vshll.u32 %v16981_v17, %v6381_v4 }
 0x71b   : > { %v6118_v28 = vshll.u32 %v14105_v50, 30  ;;  %v6387_v35 = vshll.u32 %v16975_v14, %v6381_v4  ;;  %v6390_v26 = vshll.u32 %v16976_v10, %v6381_v4  ;;  %v6380_v48 = vshrl.u32 %v6379_v3, 5 }
 0x71c   : > { %v6385_v41 = vshrl.u32 %v16975_v14, %v6382_v30  ;;  %v6388_v47 = vshrl.u32 %v16976_v10, %v6382_v30  ;;  %v6391_v61 = vshrl.u32 %v17238_v58, %v6382_v30  ;;  %v6393_v34 = vshll.u32 %v17238_v58, %v6381_v4 }
 0x71d   : > { %v14122_v21 = vsub.s32 %v6115_v7, %v6118_v28  ;;  %v6394_v9 = vshrl.u32 %v16998_v2, %v6382_v30  ;;  %v14127_v37 = vadd.f32 %v5096_v23, %v13746_v27  ;;  %v6415_v22 = vshll.u32 %v6375_v32, 8 }
 0x71e   : > { %v6386_v55 = vor.u32 %v6385_v41, %v6384_v36  ;;  %v6389_v52 = vor.u32 %v6388_v47, %v6387_v35  ;;  %v6392_v20 = vor.u32 %v6391_v61, %v6390_v26  ;;  %v14129_v18 = vpop.eup %10072  ;;  %vm6482_vm11 = vcmp.gt.s32.totalorder %v6481_v29, 0 }
 0x71f   : > { %17251 = vst [vmem:[#allocation27_spill] sm:$0xff] %v14127_v37  ;;  %17252 = vst [vmem:[#allocation12_spill] sm:$0xff] %v14129_v18  ;;  %v6121_v31 = vsub.s32 0, %v14122_v21  ;;  %v6395_v43 = vor.u32 %v6394_v9, %v6393_v34  ;;  %vm16884_vm9 = vcmp.lt.s32.totalorder %v13754_v8, 0  ;;  %v6025_v7 = vshrl.u32 %v6007_v59, %v6023_v38 }
 0x720   : > { %v6028_v3 = vadd.s32 127, %v6027_v42  ;;  %v6396_v28 = vshll.u32 %v16998_v2, %v6381_v4  ;;  %v6397_v36 = vshrl.u32 %v17239_v60, %v6382_v30  ;;  %vm6399_vm3 = vcmp.lt.s32.totalorder %v6380_v48, 1 }
 0x721   : > { %v9277_v61 = vmin.u32 %v6121_v31, %v14122_v21  ;;  %vm6401_vm1 = vcmp.lt.s32.totalorder %v6380_v48, 3  ;;  %vm6402_vm13 = vcmp.lt.s32.totalorder %v6380_v48, 4  ;;  %v6407_v41 = vsel %vm6399_vm3, %v6386_v55, %v6389_v52 }
 0x722   : > { %v6398_v35 = vor.u32 %v6397_v36, %v6396_v28  ;;  %v6404_v23 = vsel %vm6402_vm13, %v6392_v20, 2102212464  ;;  %v6408_v9 = vsel %vm6402_vm13, %v6395_v43, 920167782  ;;  %v6383_v32 = vshrl.u32 %v16981_v17, %v6382_v30 }
 0x723   : > { %v6123_v34 = vclz %v9277_v61  ;;  %vm6400_vm7 = vcmp.lt.s32.totalorder %v6380_v48, 2  ;;  %v6409_v59 = vsel %vm6401_vm1, %v6392_v20, %v6408_v9  ;;  %v6029_v38 = vshll.u32 %v6028_v3, 23 }
 0x724   : > { %v6410_v4 = vsel %vm6400_vm7, %v6407_v41, %v6409_v59  ;;  %v6411_v42 = vsel %vm6399_vm3, %v6389_v52, %v6392_v20  ;;  %v6412_v31 = vsel %vm6402_vm13, %v6398_v35, 1326507024  ;;  %v6024_v47 = vshll.u32 %v14046_v39, %v14100_v40 }
 0x725   : > { %v6403_v26 = vsel %vm6399_vm3, %v6383_v32, %v6386_v55  ;;  %v6405_v28 = vsel %vm6401_vm1, %v6389_v52, %v6404_v23  ;;  %v6413_v36 = vsel %vm6401_vm1, %v6395_v43, %v6412_v31  ;;  %v6483_v3 = vsel %vm6482_vm11, %v6481_v29, 0 }
 0x726   : > { %v6414_v30 = vsel %vm6400_vm7, %v6411_v42, %v6413_v36  ;;  %v14147_v61 = vmul.u32.u64.low %v6415_v22, %v6410_v4  ;;  %v14148_v18 = vmul.u32.u64.high %v6415_v22, %v6410_v4, %v14147_v61  ;;  %v9278_v41 = vadd.s32 4294967294, %v6123_v34 }
 0x727   : > { %v14152_v20 = vmul.u32.u64.low %v6415_v22, %v6414_v30  ;;  %v14153_v35 = vmul.u32.u64.high %v6415_v22, %v6414_v30, %v14152_v20  ;;  %v6479_v39 = vor.u32 8388608, %v14110_v1  ;;  %v6026_v40 = vor.u32 %v6025_v7, %v6024_v47 }
 0x728   : > { %v6030_v55 = vor.u32 4788187, %v6029_v38  ;;  %v6406_v52 = vsel %vm6400_vm7, %v6403_v26, %v6405_v28  ;;  %v6485_v23 = vand.u32 31, %v6483_v3  ;;  %v17253_v43 = vxor.u32 2147483648, %v14058_v44 }
 0x729   : > { %10074 = vcosq.f32 %v14094_v11  ;;  %v17255_v29 = vshll.u32 %v13972_v63, %v14054_v13  ;;  %v17256_v1 = vshll.u32 %v14084_v53, 23  ;;  %v14177_v7 = vadd.s32 %v14048_v16, %v14062_v51 }
 0x72a   : > { %v14162_v9 = vsel %vm16884_vm9, %v17253_v43, %v14058_v44  ;;  %v6425_v32 = vadd.s32 1, %v14148_v18  ;;  %v6486_v44 = vsub.s32 32, %v6485_v23  ;;  %v16853_v59 = vand.u32 2147483647, %v14127_v37 }
 0x72b   : > { %17254 = vst [vmem:[#allocation15_spill] sm:$0xff] %v14162_v9  ;;  %v14169_v34 = vor.u32 %v14102_v19, %v17255_v29  ;;  %v14173_v48 = vor.u32 4788187, %v17256_v1  ;;  %vm9279_vm5 = vcmp.lt.s32.totalorder %v9278_v41, 0  ;;  %v6422_v38 = vmul.u32 %v6415_v22, %v6406_v52 }
 0x72c   : > { %vm6424_vm6 = vc.u32 %v14153_v35, %v14147_v61  ;;  %v14183_v63 = vshll.u32 %v6479_v39, 8  ;;  %v6031_v13 = vand.u32 2147483647, %v6030_v55  ;;  %v6033_v53 = vcvt.s32.f32 %v6026_v40 }
 0x72d   : > { %v6426_v19 = vsel %vm6424_vm6, %v6425_v32, %v14148_v18  ;;  %v6489_v4 = vshrl.u32 %v16975_v14, %v6486_v44  ;;  %v6488_v51 = vshll.u32 %v16981_v17, %v6485_v23  ;;  %v6491_v42 = vshll.u32 %v16975_v14, %v6485_v23 }
 0x72e   : > { %v6427_v16 = vadd.s32 %v6426_v19, %v6422_v38  ;;  %v6492_v31 = vshrl.u32 %v16976_v10, %v6486_v44  ;;  %v14190_v47 = vsel %vm9279_vm5, 0, %v9278_v41  ;;  %v6484_v22 = vshrl.u32 %v6483_v3, 5 }
 0x72f   : > { %v6494_v26 = vshll.u32 %v16976_v10, %v6485_v23  ;;  %v6495_v28 = vshrl.u32 %v17238_v58, %v6486_v44  ;;  %v6490_v30 = vor.u32 %v6489_v4, %v6488_v51  ;;  %v6497_v18 = vshll.u32 %v17238_v58, %v6485_v23 }
 0x730   : > { %v6428_v36 = vadd.s32 536870912, %v6427_v16  ;;  %v6493_v20 = vor.u32 %v6492_v31, %v6491_v42  ;;  %v6498_v40 = vshrl.u32 %v16998_v2, %v6486_v44  ;;  %v6500_v55 = vshll.u32 %v16998_v2, %v6485_v23 }
 0x731   : > { %v6496_v39 = vor.u32 %v6495_v28, %v6494_v26  ;;  %v6501_v52 = vshrl.u32 %v17239_v60, %v6486_v44  ;;  %v6034_v43 = vmul.f32 %v6033_v53, %v6031_v13  ;;  %v5330_v3 = vand.u32 2139095040, %v14127_v37 }
 0x732   : > { %v14198_v41 = vshrl.u32 %v6428_v36, 30  ;;  %v14203_v29 = vand.u32 8388607, %v16853_v59  ;;  %v6131_v1 = vsub.s32 4294967266, %v14190_v47  ;;  %v6499_v32 = vor.u32 %v6498_v40, %v6497_v18 }
 0x733   : > { %v6502_v38 = vor.u32 %v6501_v52, %v6500_v55  ;;  %vm6506_vm8 = vcmp.lt.s32.totalorder %v6484_v22, 4  ;;  %v6487_v23 = vshrl.u32 %v16981_v17, %v6486_v44  ;;  %vm6503_vm2 = vcmp.lt.s32.totalorder %v6484_v22, 1 }
 0x734   : > { %v6430_v19 = vshll.u32 %v14198_v41, 30  ;;  %v6508_v13 = vsel %vm6506_vm8, %v6496_v39, 2102212464  ;;  %vm6504_vm15 = vcmp.lt.s32.totalorder %v6484_v22, 2  ;;  %vm6505_vm12 = vcmp.lt.s32.totalorder %v6484_v22, 3 }
 0x735   : > { %v6511_v53 = vsel %vm6503_vm2, %v6490_v30, %v6493_v20  ;;  %v6512_v4 = vsel %vm6506_vm8, %v6499_v32, 920167782  ;;  %v6507_v42 = vsel %vm6503_vm2, %v6487_v23, %v6490_v30  ;;  %v6515_v26 = vsel %vm6503_vm2, %v6493_v20, %v6496_v39 }
 0x736   : > { %v14210_v51 = vsub.s32 %v6427_v16, %v6430_v19  ;;  %v6513_v31 = vsel %vm6505_vm12, %v6496_v39, %v6512_v4  ;;  %v14213_v28 = vpop.eup %10074  ;;  %vm5953_vm11 = vcmp.lt.s32.totalorder %v13898_v45, 0  ;;  %v6509_v44 = vsel %vm6505_vm12, %v6493_v20, %v6508_v13  ;;  %v5098_v19 = vpop.f32.mrf.mxu1 }
 0x737   : > { %17257 = vst [vmem:[#allocation13_spill] sm:$0xff] %v14213_v28  ;;  %v6514_v36 = vsel %vm6504_vm15, %v6511_v53, %v6513_v31  ;;  %v6516_v18 = vsel %vm6506_vm8, %v6502_v38, 1326507024  ;;  %v5331_v40 = vshrl.u32 %v5330_v3, 23  ;;  %v6127_v55 = vsub.s32 32, %v14190_v47 }
 0x738   : > { %v6132_v52 = vadd.s32 127, %v6131_v1  ;;  %v6433_v16 = vsub.s32 0, %v14210_v51  ;;  %v6517_v30 = vsel %vm6505_vm12, %v6499_v32, %v6516_v18  ;;  %v6510_v3 = vsel %vm6504_vm15, %v6507_v42, %v6509_v44 }
 0x739   : > { %v6518_v39 = vsel %vm6504_vm15, %v6515_v26, %v6517_v30  ;;  %v14224_v23 = vmul.u32.u64.low %v14183_v63, %v6514_v36  ;;  %v14225_v4 = vmul.u32.u64.high %v14183_v63, %v6514_v36, %v14224_v23  ;;  %v9248_v20 = vadd.s32 4294967169, %v5331_v40 }
 0x73a   : > { %v9289_v13 = vmin.u32 %v6433_v16, %v14210_v51  ;;  %v14231_v38 = vmul.u32.u64.low %v14183_v63, %v6518_v39  ;;  %v14232_v1 = vmul.u32.u64.high %v14183_v63, %v6518_v39, %v14231_v38  ;;  %10076 = vsinq.f32 %v14094_v11 }
 0x73b   : > { %v5721_v32 = vcvt.s32.f32 %v14169_v34  ;;  %v5337_v53 = vadd.s32 1, %v9248_v20  ;;  %v14237_v31 = vadd.f32 %v5098_v19, %v13746_v27  ;;  %v5719_v26 = vand.u32 2147483647, %v14173_v48 }
 0x73c   : > { %v6035_v36 = vxor.u32 2147483648, %v6034_v43  ;;  %v6129_v18 = vshrl.u32 %v14177_v7, %v6127_v55  ;;  %v6435_v40 = vclz %v9289_v13  ;;  %v6133_v22 = vshll.u32 %v6132_v52, 23 }
 0x73d   : > { %17258 = vst [vmem:[#allocation14_spill] sm:$0xff] %v14237_v31  ;;  %v6526_v42 = vmul.u32 %v14183_v63, %v6510_v3  ;;  %v6529_v44 = vadd.s32 1, %v14225_v4  ;;  %vm5338_vm3 = vcmp.gt.s32.totalorder %v5337_v53, 0  ;;  %vm6528_vm1 = vc.u32 %v14232_v1, %v14224_v23 }
 0x73e   : > { %v9290_v16 = vadd.s32 4294967294, %v6435_v40  ;;  %v5335_v11 = vor.u32 8388608, %v14203_v29  ;;  %v5339_v27 = vsel %vm5338_vm3, %v5337_v53, 0  ;;  %v6128_v34 = vshll.u32 %v14122_v21, %v14190_v47  ;;  %v5102_v53 = vpop.f32.mrf.mxu1 }
 0x73f   : > { %v6530_v48 = vsel %vm6528_vm1, %v6529_v44, %v14225_v4  ;;  %v5341_v7 = vand.u32 31, %v5339_v27  ;;  %v5434_v55 = vand.u32 2139095040, %v14237_v31  ;;  %v14250_v52 = vmul.f32 %v5721_v32, %v5719_v26 }
 0x740   : > { %v14254_v63 = vsel %vm5953_vm11, %v6035_v36, %v6034_v43  ;;  %vm9291_vm13 = vcmp.lt.s32.totalorder %v9290_v16, 0  ;;  %v6531_v30 = vadd.s32 %v6530_v48, %v6526_v42  ;;  %v14256_v19 = vor.u32 %v6129_v18, %v6128_v34 }
 0x741   : > { %v14258_v29 = vor.u32 4788187, %v6133_v22  ;;  %v6423_v21 = vadd.s32 %v14147_v61, %v14153_v35  ;;  %v5342_v47 = vsub.s32 32, %v5341_v7  ;;  %v6438_v39 = vsel %vm9291_vm13, 0, %v9290_v16 }
 0x742   : > { %v6532_v4 = vadd.s32 536870912, %v6531_v30  ;;  %v14262_v20 = vshll.u32 %v5335_v11, 8  ;;  %v14265_v3 = vshrl.u32 %v5339_v27, 5  ;;  %v5435_v32 = vshrl.u32 %v5434_v55, 23 }
 0x743   : > { %v5345_v43 = vshrl.u32 %v16975_v14, %v5342_v47  ;;  %v5348_v38 = vshrl.u32 %v16976_v10, %v5342_v47  ;;  %v5344_v36 = vshll.u32 %v16981_v17, %v5341_v7  ;;  %v5347_v61 = vshll.u32 %v16975_v14, %v5341_v7 }
 0x744   : > { %v14269_v26 = vshrl.u32 %v6532_v4, 30  ;;  %v5351_v35 = vshrl.u32 %v17238_v58, %v5342_v47  ;;  %v6443_v18 = vsub.s32 4294967266, %v6438_v39  ;;  %v5350_v40 = vshll.u32 %v16976_v10, %v5341_v7 }
 0x745   : > { %v5353_v22 = vshll.u32 %v17238_v58, %v5341_v7  ;;  %v5354_v42 = vshrl.u32 %v16998_v2, %v5342_v47  ;;  %v5346_v16 = vor.u32 %v5345_v43, %v5344_v36  ;;  %v5349_v11 = vor.u32 %v5348_v38, %v5347_v61 }
 0x746   : > { %v6534_v44 = vshll.u32 %v14269_v26, 30  ;;  %v14279_v27 = vadd.f32 %v5102_v53, %v13756_v0  ;;  %v5352_v34 = vor.u32 %v5351_v35, %v5350_v40  ;;  %v5356_v55 = vshll.u32 %v16998_v2, %v5341_v7 }
 0x747   : > { %v5355_v48 = vor.u32 %v5354_v42, %v5353_v22  ;;  %v5357_v4 = vshrl.u32 %v17239_v60, %v5342_v47  ;;  %v14283_v59 = vpop.eup %10076  ;;  %v17260_v13 = vand.u32 2147483647, %v13898_v45  ;;  %v6439_v9 = vsub.s32 32, %v6438_v39 }
 0x748   : > { %17259 = vst [vmem:[#allocation9_spill] sm:$0xff] %v14283_v59  ;;  %v6440_v43 = vshll.u32 %v14210_v51, %v6438_v39  ;;  %v14292_v38 = vsub.s32 %v6531_v30, %v6534_v44  ;;  %v9252_v53 = vadd.s32 4294967169, %v5435_v32  ;;  %v6444_v36 = vadd.s32 127, %v6443_v18 }
 0x749   : > { %vm14287_vm7 = vcmp.le.f32.partialorder %v17260_v13, 0.7853982  ;;  %v5343_v61 = vshrl.u32 %v16981_v17, %v5342_v47  ;;  %v5358_v7 = vor.u32 %v5357_v4, %v5356_v55  ;;  %vm5359_vm5 = vcmp.lt.s32.totalorder %v14265_v3, 1 }
 0x74a   : > { %v6537_v35 = vsub.s32 0, %v14292_v38  ;;  %vm5361_vm6 = vcmp.lt.s32.totalorder %v14265_v3, 3  ;;  %vm5362_vm8 = vcmp.lt.s32.totalorder %v14265_v3, 4  ;;  %v5367_v13 = vsel %vm5359_vm5, %v5346_v16, %v5349_v11 }
 0x74b   : > { %v5364_v40 = vsel %vm5362_vm8, %v5352_v34, 2102212464  ;;  %v5368_v51 = vsel %vm5362_vm8, %v5355_v48, 920167782  ;;  %v5371_v30 = vsel %vm5359_vm5, %v5349_v11, %v5352_v34  ;;  %v5372_v39 = vsel %vm5362_vm8, %v5358_v7, 1326507024 }
 0x74c   : > { %v6441_v32 = vshrl.u32 %v6423_v21, %v6439_v9  ;;  %v9293_v47 = vmin.u32 %v6537_v35, %v14292_v38  ;;  %vm5360_vm2 = vcmp.lt.s32.totalorder %v14265_v3, 2  ;;  %v5369_v18 = vsel %vm5361_vm6, %v5352_v34, %v5368_v51 }
 0x74d   : > { %v6445_v22 = vshll.u32 %v6444_v36, 23  ;;  %v5370_v42 = vsel %vm5360_vm2, %v5367_v13, %v5369_v18  ;;  %v5373_v44 = vsel %vm5361_vm6, %v5355_v48, %v5372_v39  ;;  %v5441_v55 = vadd.s32 1, %v9252_v53 }
 0x74e   : > { %v6539_v4 = vclz %v9293_v47  ;;  %v5363_v7 = vsel %vm5359_vm5, %v5343_v61, %v5346_v16  ;;  %v5365_v9 = vsel %vm5361_vm6, %v5349_v11, %v5364_v40  ;;  %v5374_v21 = vsel %vm5360_vm2, %v5371_v30, %v5373_v44  ;;  %v5104_v61 = vpop.f32.mrf.mxu1 }
 0x74f   : > { %v14318_v34 = vmul.u32.u64.low %v14262_v20, %v5374_v21  ;;  %v14319_v36 = vmul.u32.u64.high %v14262_v20, %v5374_v21, %v14318_v34  ;;  %v14322_v35 = vmul.u32.u64.low %v14262_v20, %v5370_v42  ;;  %v14323_v13 = vmul.u32.u64.high %v14262_v20, %v5370_v42, %v14322_v35 }
 0x750   : > { %v6442_v48 = vor.u32 %v6441_v32, %v6440_v43  ;;  %v9294_v53 = vadd.s32 4294967294, %v6539_v4  ;;  %v17263_v51 = vand.u32 2147483647, %v14237_v31  ;;  %vm5442_vm15 = vcmp.gt.s32.totalorder %v5441_v55, 0 }
 0x751   : > { %v14332_v11 = vsel %vm14287_vm7, %v13898_v45, %v14254_v63  ;;  %v6446_v30 = vor.u32 4788187, %v6445_v22  ;;  %v5443_v39 = vsel %vm5442_vm15, %v5441_v55, 0  ;;  %v5366_v43 = vsel %vm5360_vm2, %v5363_v7, %v5365_v9 }
 0x752   : > { %v5438_v16 = vand.u32 8388607, %v17263_v51  ;;  %vm9295_vm12 = vcmp.lt.s32.totalorder %v9294_v53, 0  ;;  %v5445_v32 = vand.u32 31, %v5443_v39  ;;  %v6527_v18 = vadd.s32 %v14224_v23, %v14232_v1 }
 0x753   : > { %v14340_v42 = vsel %vm9295_vm12, 0, %v9294_v53  ;;  %vm5384_vm3 = vc.u32 %v14319_v36, %v14322_v35  ;;  %v14345_v63 = vadd.f32 %v5104_v61, %v13756_v0  ;;  %v6449_v22 = vcvt.s32.f32 %v6442_v48 }
 0x754   : > { %v5385_v44 = vadd.s32 1, %v14323_v13  ;;  %v5439_v55 = vor.u32 8388608, %v5438_v16  ;;  %v6447_v3 = vand.u32 2147483647, %v6446_v30  ;;  %v5382_v7 = vmul.u32 %v14262_v20, %v5366_v43 }
 0x755   : > { %17264 = vst [vmem:[#allocation29_spill] sm:$0xff] %v14345_v63  ;;  %v5444_v9 = vshrl.u32 %v5443_v39, 5  ;;  %v5446_v21 = vsub.s32 32, %v5445_v32  ;;  %v6543_v23 = vsub.s32 32, %v14340_v42  ;;  %v6547_v1 = vsub.s32 4294967266, %v14340_v42 }
 0x756   : > { %v5386_v34 = vsel %vm5384_vm3, %v5385_v44, %v14323_v13  ;;  %v5448_v0 = vshll.u32 %v16981_v17, %v5445_v32  ;;  %v5451_v51 = vshll.u32 %v16975_v14, %v5445_v32  ;;  %v5454_v61 = vshll.u32 %v16976_v10, %v5445_v32 }
 0x757   : > { %v5387_v53 = vadd.s32 %v5386_v34, %v5382_v7  ;;  %v5449_v48 = vshrl.u32 %v16975_v14, %v5446_v21  ;;  %v5452_v16 = vshrl.u32 %v16976_v10, %v5446_v21  ;;  %v5455_v20 = vshrl.u32 %v17238_v58, %v5446_v21 }
 0x758   : > { %v5457_v30 = vshll.u32 %v17238_v58, %v5445_v32  ;;  %v5458_v39 = vshrl.u32 %v16998_v2, %v5446_v21  ;;  %v6450_v43 = vmul.f32 %v6449_v22, %v6447_v3  ;;  %v6548_v40 = vadd.s32 127, %v6547_v1 }
 0x759   : > { %v5388_v4 = vadd.s32 536870912, %v5387_v53  ;;  %v5450_v13 = vor.u32 %v5449_v48, %v5448_v0  ;;  %v5453_v44 = vor.u32 %v5452_v16, %v5451_v51  ;;  %v5456_v7 = vor.u32 %v5455_v20, %v5454_v61 }
 0x75a   : > { %v5459_v34 = vor.u32 %v5458_v39, %v5457_v30  ;;  %v5479_v47 = vshll.u32 %v5439_v55, 8  ;;  %v5460_v54 = vshll.u32 %v16998_v2, %v5445_v32  ;;  %v5461_v8 = vshrl.u32 %v17239_v60, %v5446_v21 }
 0x75b   : > { %v14361_v31 = vshrl.u32 %v5388_v4, 30  ;;  %v5746_v28 = vand.u32 2139095040, %v14279_v27  ;;  %v6545_v59 = vshrl.u32 %v6527_v18, %v6543_v23  ;;  %v5447_v5 = vshrl.u32 %v16981_v17, %v5446_v21 }
 0x75c   : > { %vm5463_vm1 = vcmp.lt.s32.totalorder %v5444_v9, 1  ;;  %vm5466_vm13 = vcmp.lt.s32.totalorder %v5444_v9, 4  ;;  %vm6369_vm5 = vcmp.lt.s32.totalorder %v14018_v6, 0  ;;  %v5462_v3 = vor.u32 %v5461_v8, %v5460_v54 }
 0x75d   : > { %17265 = vst [vmem:[#allocation22_spill] sm:$0xff] %v14361_v31  ;;  %v5390_v22 = vshll.u32 %v14361_v31, 30  ;;  %v5468_v1 = vsel %vm5466_vm13, %v5456_v7, 2102212464  ;;  %v5471_v55 = vsel %vm5463_vm1, %v5450_v13, %v5453_v44  ;;  %v6549_v4 = vshll.u32 %v6548_v40, 23 }
 0x75e   : > { %vm5465_vm6 = vcmp.lt.s32.totalorder %v5444_v9, 3  ;;  %v5472_v32 = vsel %vm5466_vm13, %v5459_v34, 920167782  ;;  %v5475_v0 = vsel %vm5463_vm1, %v5453_v44, %v5456_v7  ;;  %vm5464_vm8 = vcmp.lt.s32.totalorder %v5444_v9, 2 }
 0x75f   : > { %v14371_v48 = vsub.s32 %v5387_v53, %v5390_v22  ;;  %v5473_v18 = vsel %vm5465_vm6, %v5456_v7, %v5472_v32  ;;  %v5476_v21 = vsel %vm5466_vm13, %v5462_v3, 1326507024  ;;  %v17266_v23 = vand.u32 2147483647, %v14018_v6 }
 0x760   : > { %v5467_v8 = vsel %vm5463_vm1, %v5447_v5, %v5450_v13  ;;  %v5469_v54 = vsel %vm5465_vm6, %v5453_v44, %v5468_v1  ;;  %v5474_v40 = vsel %vm5464_vm8, %v5471_v55, %v5473_v18  ;;  %v5477_v16 = vsel %vm5465_vm6, %v5459_v34, %v5476_v21 }
 0x761   : > { %vm14375_vm2 = vcmp.le.f32.partialorder %v17266_v23, 0.7853982  ;;  %v5393_v61 = vsub.s32 0, %v14371_v48  ;;  %v5478_v53 = vsel %vm5464_vm8, %v5475_v0, %v5477_v16  ;;  %v6451_v39 = vxor.u32 2147483648, %v6450_v43 }
 0x762   : > { %v14383_v20 = vmul.u32.u64.low %v5479_v47, %v5474_v40  ;;  %v14384_v30 = vmul.u32.u64.high %v5479_v47, %v5474_v40, %v14383_v20  ;;  %v14387_v7 = vmul.u32.u64.low %v5479_v47, %v5478_v53  ;;  %v14388_v22 = vmul.u32.u64.high %v5479_v47, %v5478_v53, %v14387_v7 }
 0x763   : > { %v5747_v3 = vshrl.u32 %v5746_v28, 23  ;;  %v6544_v5 = vshll.u32 %v14292_v38, %v14340_v42  ;;  %v6550_v13 = vor.u32 4788187, %v6549_v4  ;;  %v9249_v44 = vmin.u32 %v5393_v61, %v14371_v48 }
 0x764   : > { %v5470_v34 = vsel %vm5464_vm8, %v5467_v8, %v5469_v54  ;;  %v17269_v55 = vand.u32 2147483647, %v14258_v29  ;;  %v17270_v32 = vcvt.s32.f32 %v14256_v19  ;;  %v5850_v21 = vand.u32 2139095040, %v14345_v63 }
 0x765   : > { %v9264_v18 = vadd.s32 4294967169, %v5747_v3  ;;  %10078 = vcosq.f32 %v14332_v11  ;;  %v6546_v28 = vor.u32 %v6545_v59, %v6544_v5  ;;  %v5395_v38 = vclz %v9249_v44 }
 0x766   : > { %v14399_v0 = vmul.f32 %v17270_v32, %v17269_v55  ;;  %v5489_v42 = vadd.s32 1, %v14384_v30  ;;  %v6452_v9 = vsel %vm6369_vm5, %v6451_v39, %v6450_v43  ;;  %v5486_v4 = vmul.u32 %v5479_v47, %v5470_v34 }
 0x767   : > { %vm5488_vm15 = vc.u32 %v14388_v22, %v14383_v20  ;;  %v5753_v29 = vadd.s32 1, %v9264_v18  ;;  %v6551_v19 = vand.u32 2147483647, %v6550_v13  ;;  %v9250_v23 = vadd.s32 4294967294, %v5395_v38 }
 0x768   : > { %v5490_v8 = vsel %vm5488_vm15, %v5489_v42, %v14384_v30  ;;  %v17271_v54 = vand.u32 2147483647, %v14279_v27  ;;  %v5851_v61 = vshrl.u32 %v5850_v21, 23  ;;  %v14415_v47 = vsel %vm14375_vm2, %v14018_v6, %v6452_v9 }
 0x769   : > { %v5491_v16 = vadd.s32 %v5490_v8, %v5486_v4  ;;  %vm5754_vm12 = vcmp.gt.s32.totalorder %v5753_v29, 0  ;;  %v6553_v43 = vcvt.s32.f32 %v6546_v28  ;;  %vm9251_vm3 = vcmp.lt.s32.totalorder %v9250_v23, 0 }
 0x76a   : > { %v5750_v40 = vand.u32 8388607, %v17271_v54  ;;  %v5755_v53 = vsel %vm5754_vm12, %v5753_v29, 0  ;;  %v5383_v39 = vadd.s32 %v14322_v35, %v14319_v36  ;;  %v5398_v30 = vsel %vm9251_vm3, 0, %v9250_v23 }
 0x76b   : > { %v5492_v7 = vadd.s32 536870912, %v5491_v16  ;;  %v5757_v3 = vand.u32 31, %v5755_v53  ;;  %v14419_v5 = vmul.f32 %v6553_v43, %v6551_v19  ;;  %v5403_v13 = vsub.s32 4294967266, %v5398_v30 }
 0x76c   : > { %v5751_v44 = vor.u32 8388608, %v5750_v40  ;;  %v16867_v34 = vand.u32 2147483647, %v14345_v63  ;;  %v14424_v32 = vshrl.u32 %v5755_v53, 5  ;;  %v9268_v21 = vadd.s32 4294967169, %v5851_v61 }
 0x76d   : > { %v14422_v55 = vshrl.u32 %v5492_v7, 30  ;;  %v5758_v18 = vsub.s32 32, %v5757_v3  ;;  %v5399_v28 = vsub.s32 32, %v5398_v30  ;;  %v5404_v38 = vadd.s32 127, %v5403_v13 }
 0x76e   : > { %v5760_v42 = vshll.u32 %v16981_v17, %v5757_v3  ;;  %v5763_v36 = vshll.u32 %v16975_v14, %v5757_v3  ;;  %v5766_v29 = vshll.u32 %v16976_v10, %v5757_v3  ;;  %v5769_v8 = vshll.u32 %v17238_v58, %v5757_v3 }
 0x76f   : > { %17272 = vst [vmem:[#allocation7_spill] sm:$0xff] %v14422_v55  ;;  %v5494_v35 = vshll.u32 %v14422_v55, 30  ;;  %v5761_v9 = vshrl.u32 %v16975_v14, %v5758_v18  ;;  %v5764_v4 = vshrl.u32 %v16976_v10, %v5758_v18  ;;  %v5405_v19 = vshll.u32 %v5404_v38, 23 }
 0x770   : > { %v5767_v23 = vshrl.u32 %v17238_v58, %v5758_v18  ;;  %v5770_v54 = vshrl.u32 %v16998_v2, %v5758_v18  ;;  %v5854_v53 = vand.u32 8388607, %v16867_v34  ;;  %v5400_v7 = vshll.u32 %v14371_v48, %v5398_v30 }
 0x771   : > { %v14435_v40 = vsub.s32 %v5491_v16, %v5494_v35  ;;  %v5762_v61 = vor.u32 %v5761_v9, %v5760_v42  ;;  %v5765_v43 = vor.u32 %v5764_v4, %v5763_v36  ;;  %v14440_v1 = vshll.u32 %v5751_v44, 8 }
 0x772   : > { %v5768_v13 = vor.u32 %v5767_v23, %v5766_v29  ;;  %v5771_v59 = vor.u32 %v5770_v54, %v5769_v8  ;;  %v14442_v38 = vpop.eup %10078  ;;  %vm5641_vm1 = vcmp.lt.s32.totalorder %v13769_v49, 0  ;;  %v5772_v16 = vshll.u32 %v16998_v2, %v5757_v3  ;;  %v5108_v54 = vpop.f32.mrf.mxu1 }
 0x773   : > { %17273 = vst [vmem:[#allocation20_spill] sm:$0xff] %v14442_v38  ;;  %v5497_v31 = vsub.s32 0, %v14435_v40  ;;  %v5773_v42 = vshrl.u32 %v17239_v60, %v5758_v18  ;;  %v5857_v36 = vadd.s32 1, %v9268_v21  ;;  %vm6057_vm13 = vcmp.lt.s32.totalorder %v13934_v15, 0 }
 0x774   : > { %v5401_v35 = vshrl.u32 %v5383_v39, %v5399_v28  ;;  %v5406_v9 = vor.u32 4788187, %v5405_v19  ;;  %v5759_v48 = vshrl.u32 %v16981_v17, %v5758_v18  ;;  %vm5775_vm6 = vcmp.lt.s32.totalorder %v14424_v32, 1 }
 0x775   : > { %v9253_v30 = vmin.u32 %v5497_v31, %v14435_v40  ;;  %v5774_v44 = vor.u32 %v5773_v42, %v5772_v16  ;;  %vm5778_vm8 = vcmp.lt.s32.totalorder %v14424_v32, 4  ;;  %v5783_v4 = vsel %vm5775_vm6, %v5762_v61, %v5765_v43 }
 0x776   : > { %vm5777_vm15 = vcmp.lt.s32.totalorder %v14424_v32, 3  ;;  %v5780_v3 = vsel %vm5778_vm8, %v5768_v13, 2102212464  ;;  %v5784_v29 = vsel %vm5778_vm8, %v5771_v59, 920167782  ;;  %v5787_v23 = vsel %vm5775_vm6, %v5765_v43, %v5768_v13 }
 0x777   : > { %v5499_v21 = vclz %v9253_v30  ;;  %vm5776_vm12 = vcmp.lt.s32.totalorder %v14424_v32, 2  ;;  %v5785_v39 = vsel %vm5777_vm15, %v5768_v13, %v5784_v29  ;;  %v5788_v28 = vsel %vm5778_vm8, %v5774_v44, 1326507024 }
 0x778   : > { %v5402_v19 = vor.u32 %v5401_v35, %v5400_v7  ;;  %v5779_v18 = vsel %vm5775_vm6, %v5759_v48, %v5762_v61  ;;  %v5786_v8 = vsel %vm5776_vm12, %v5783_v4, %v5785_v39  ;;  %v5789_v31 = vsel %vm5777_vm15, %v5771_v59, %v5788_v28 }
 0x779   : > { %v5781_v16 = vsel %vm5777_vm15, %v5765_v43, %v5780_v3  ;;  %v5790_v42 = vsel %vm5776_vm12, %v5787_v23, %v5789_v31  ;;  %v14460_v34 = vmul.u32.u64.low %v14440_v1, %v5786_v8  ;;  %v14461_v55 = vmul.u32.u64.high %v14440_v1, %v5786_v8, %v14460_v34 }
 0x77a   : > { %v9254_v30 = vadd.s32 4294967294, %v5499_v21  ;;  %v14465_v13 = vmul.u32.u64.low %v14440_v1, %v5790_v42  ;;  %v14466_v44 = vmul.u32.u64.high %v14440_v1, %v5790_v42, %v14465_v13  ;;  %vm5858_vm3 = vcmp.gt.s32.totalorder %v5857_v36, 0 }
 0x77b   : > { %v5407_v61 = vand.u32 2147483647, %v5406_v9  ;;  %v5855_v7 = vor.u32 8388608, %v5854_v53  ;;  %v5859_v35 = vsel %vm5858_vm3, %v5857_v36, 0  ;;  %v14469_v59 = vadd.f32 %v5108_v54, %v13742_v62 }
 0x77c   : > { %v17274_v43 = vxor.u32 2147483648, %v14250_v52  ;;  %10080 = vsinq.f32 %v14332_v11  ;;  %v5782_v4 = vsel %vm5776_vm12, %v5779_v18, %v5781_v16  ;;  %v5861_v3 = vand.u32 31, %v5859_v35 }
 0x77d   : > { %v17276_v53 = vxor.u32 2147483648, %v14399_v0  ;;  %10082 = vcosq.f32 %v14415_v47  ;;  %v5409_v29 = vcvt.s32.f32 %v5402_v19  ;;  %vm9255_vm6 = vcmp.lt.s32.totalorder %v9254_v30, 0 }
 0x77e   : > { %v14476_v48 = vsel %vm5641_vm1, %v17274_v43, %v14250_v52  ;;  %vm5800_vm8 = vc.u32 %v14466_v44, %v14460_v34  ;;  %v5801_v52 = vadd.s32 1, %v14461_v55  ;;  %v5862_v11 = vsub.s32 32, %v5861_v3 }
 0x77f   : > { %17275 = vst [vmem:[#allocation24_spill] sm:$0xff] %v14476_v48  ;;  %v14486_v36 = vsel %vm6057_vm13, %v17276_v53, %v14399_v0  ;;  %v14493_v32 = vmul.f32 %v5409_v29, %v5407_v61  ;;  %v5798_v23 = vmul.u32 %v14440_v1, %v5782_v4  ;;  %v14496_v21 = vshll.u32 %v5855_v7, 8 }
 0x780   : > { %v5802_v39 = vsel %vm5800_vm8, %v5801_v52, %v14461_v55  ;;  %v5864_v28 = vshll.u32 %v16981_v17, %v5861_v3  ;;  %v5865_v19 = vshrl.u32 %v16975_v14, %v5862_v11  ;;  %v5868_v18 = vshrl.u32 %v16976_v10, %v5862_v11 }
 0x781   : > { %v14503_v8 = vsel %vm9255_vm6, 0, %v9254_v30  ;;  %v5803_v31 = vadd.s32 %v5802_v39, %v5798_v23  ;;  %v5867_v54 = vshll.u32 %v16975_v14, %v5861_v3  ;;  %v6162_v16 = vand.u32 2139095040, %v14469_v59 }
 0x782   : > { %v5860_v1 = vshrl.u32 %v5859_v35, 5  ;;  %v5866_v42 = vor.u32 %v5865_v19, %v5864_v28  ;;  %v5870_v13 = vshll.u32 %v16976_v10, %v5861_v3  ;;  %v5871_v61 = vshrl.u32 %v17238_v58, %v5862_v11 }
 0x783   : > { %v5804_v55 = vadd.s32 536870912, %v5803_v31  ;;  %v5869_v7 = vor.u32 %v5868_v18, %v5867_v54  ;;  %v5873_v43 = vshll.u32 %v17238_v58, %v5861_v3  ;;  %v5874_v4 = vshrl.u32 %v16998_v2, %v5862_v11 }
 0x784   : > { %v5411_v30 = vxor.u32 2147483648, %v14493_v32  ;;  %v5872_v53 = vor.u32 %v5871_v61, %v5870_v13  ;;  %v5876_v29 = vshll.u32 %v16998_v2, %v5861_v3  ;;  %v5877_v52 = vshrl.u32 %v17239_v60, %v5862_v11 }
 0x785   : > { %vm16882_vm15 = vcmp.lt.s32.totalorder %v14127_v37, 0  ;;  %v5507_v35 = vsub.s32 4294967266, %v14503_v8  ;;  %v14516_v23 = vshrl.u32 %v5804_v55, 30  ;;  %v5875_v39 = vor.u32 %v5874_v4, %v5873_v43 }
 0x786   : > { %v6163_v28 = vshrl.u32 %v6162_v16, 23  ;;  %v5503_v19 = vsub.s32 32, %v14503_v8  ;;  %v5863_v18 = vshrl.u32 %v16981_v17, %v5862_v11  ;;  %v5878_v54 = vor.u32 %v5877_v52, %v5876_v29 }
 0x787   : > { %17277 = vst [vmem:[#allocation18_spill] sm:$0xff] %v14516_v23  ;;  %vm5879_vm12 = vcmp.lt.s32.totalorder %v5860_v1, 1  ;;  %v5806_v13 = vshll.u32 %v14516_v23, 30  ;;  %vm5881_vm3 = vcmp.lt.s32.totalorder %v5860_v1, 3  ;;  %vm5882_vm6 = vcmp.lt.s32.totalorder %v5860_v1, 4 }
 0x788   : > { %v5887_v3 = vsel %vm5879_vm12, %v5866_v42, %v5869_v7  ;;  %v5884_v61 = vsel %vm5882_vm6, %v5872_v53, 2102212464  ;;  %v5888_v9 = vsel %vm5882_vm6, %v5875_v39, 920167782  ;;  %v5891_v0 = vsel %vm5879_vm12, %v5869_v7, %v5872_v53 }
 0x789   : > { %v5892_v63 = vsel %vm5882_vm6, %v5878_v54, 1326507024  ;;  %v14521_v12 = vpop.eup %10080  ;;  %v5508_v55 = vadd.s32 127, %v5507_v35  ;;  %v14523_v43 = vsub.s32 %v5803_v31, %v5806_v13  ;;  %vm5880_vm8 = vcmp.lt.s32.totalorder %v5860_v1, 2  ;;  %v5110_v13 = vpop.f32.mrf.mxu1 }
 0x78a   : > { %17278 = vst [vmem:[#allocation21_spill] sm:$0xff] %v14521_v12  ;;  %v5889_v16 = vsel %vm5881_vm3, %v5872_v53, %v5888_v9  ;;  %v14526_v11 = vpop.eup %10082  ;;  %v5883_v4 = vsel %vm5879_vm12, %v5863_v18, %v5866_v42  ;;  %v5893_v52 = vsel %vm5881_vm3, %v5875_v39, %v5892_v63  ;;  %v9280_v23 = vadd.s32 4294967169, %v6163_v28 }
 0x78b   : > { %v5890_v29 = vsel %vm5880_vm8, %v5887_v3, %v5889_v16  ;;  %v5809_v33 = vsub.s32 0, %v14523_v43  ;;  %v5885_v54 = vsel %vm5881_vm3, %v5869_v7, %v5884_v61  ;;  %v5894_v38 = vsel %vm5880_vm8, %v5891_v0, %v5893_v52 }
 0x78c   : > { %v17279_v31 = vand.u32 2147483647, %v14469_v59  ;;  %v14536_v9 = vmul.u32.u64.low %v14496_v21, %v5894_v38  ;;  %v14537_v53 = vmul.u32.u64.high %v14496_v21, %v5894_v38, %v14536_v9  ;;  %v5487_v63 = vadd.s32 %v14383_v20, %v14388_v22 }
 0x78d   : > { %v14540_v42 = vmul.u32.u64.low %v14496_v21, %v5890_v29  ;;  %v14541_v18 = vmul.u32.u64.high %v14496_v21, %v5890_v29, %v14540_v42  ;;  %v5509_v39 = vshll.u32 %v5508_v55, 23  ;;  %v9265_v7 = vmin.u32 %v5809_v33, %v14523_v43 }
 0x78e   : > { %v6166_v35 = vand.u32 8388607, %v17279_v31  ;;  %v6169_v0 = vadd.s32 1, %v9280_v23  ;;  %v14550_v28 = vsel %vm16882_vm15, %v5411_v30, %v14493_v32  ;;  %v5886_v38 = vsel %vm5880_vm8, %v5883_v4, %v5885_v54 }
 0x78f   : > { %v14554_v61 = vadd.f32 %v5110_v13, %v13742_v62  ;;  %v5799_v20 = vadd.s32 %v14460_v34, %v14466_v44  ;;  %v5811_v22 = vclz %v9265_v7  ;;  %v14560_v33 = vshrl.u32 %v5487_v63, %v5503_v19 }
 0x790   : > { %v6167_v3 = vor.u32 8388608, %v6166_v35  ;;  %vm6170_vm12 = vcmp.gt.s32.totalorder %v6169_v0, 0  ;;  %vm5904_vm3 = vc.u32 %v14537_v53, %v14540_v42  ;;  %v5905_v32 = vadd.s32 1, %v14541_v18 }
 0x791   : > { %v6171_v1 = vsel %vm6170_vm12, %v6169_v0, 0  ;;  %v14565_v30 = vor.u32 4788187, %v5509_v39  ;;  %v9266_v62 = vadd.s32 4294967294, %v5811_v22  ;;  %v5902_v23 = vmul.u32 %v14496_v21, %v5886_v38 }
 0x792   : > { %v6173_v55 = vand.u32 31, %v6171_v1  ;;  %v5906_v4 = vsel %vm5904_vm3, %v5905_v32, %v14541_v18  ;;  %v14569_v29 = vshrl.u32 %v6171_v1, 5  ;;  %v14571_v34 = vshll.u32 %v6167_v3, 8 }
 0x793   : > { %vm9267_vm6 = vcmp.lt.s32.totalorder %v9266_v62, 0  ;;  %v5907_v19 = vadd.s32 %v5906_v4, %v5902_v23  ;;  %v17280_v48 = vand.u32 2147483647, %v14127_v37  ;;  %v17281_v25 = vmov 0 }
 0x794   : > { %v6174_v52 = vsub.s32 32, %v6173_v55  ;;  %v5814_v31 = vsel %vm9267_vm6, 0, %v9266_v62  ;;  %v6176_v35 = vshll.u32 %v16981_v17, %v6173_v55  ;;  %v6179_v13 = vshll.u32 %v16975_v14, %v6173_v55 }
 0x795   : > { %v6182_v21 = vshll.u32 %v16976_v10, %v6173_v55  ;;  %v5815_v9 = vsub.s32 32, %v5814_v31  ;;  %v5819_v18 = vsub.s32 4294967266, %v5814_v31  ;;  %v5908_v63 = vadd.s32 536870912, %v5907_v19 }
 0x796   : > { %v6185_v39 = vshll.u32 %v17238_v58, %v6173_v55  ;;  %v5816_v7 = vshll.u32 %v14523_v43, %v5814_v31  ;;  %v6177_v0 = vshrl.u32 %v16975_v14, %v6174_v52  ;;  %v6180_v38 = vshrl.u32 %v16976_v10, %v6174_v52 }
 0x797   : > { %v6183_v3 = vshrl.u32 %v17238_v58, %v6174_v52  ;;  %v5817_v22 = vshrl.u32 %v5799_v20, %v5815_v9  ;;  %v5820_v32 = vadd.s32 127, %v5819_v18  ;;  %v14583_v1 = vshrl.u32 %v5908_v63, 30 }
 0x798   : > { %v6186_v62 = vshrl.u32 %v16998_v2, %v6174_v52  ;;  %v6175_v23 = vshrl.u32 %v16981_v17, %v6174_v52  ;;  %v6178_v4 = vor.u32 %v6177_v0, %v6176_v35  ;;  %v6181_v44 = vor.u32 %v6180_v38, %v6179_v13 }
 0x799   : > { %v6184_v54 = vor.u32 %v6183_v3, %v6182_v21  ;;  %v5818_v16 = vor.u32 %v5817_v22, %v5816_v7  ;;  %v5821_v12 = vshll.u32 %v5820_v32, 23  ;;  %v5910_v43 = vshll.u32 %v14583_v1, 30 }
 0x79a   : > { %v6187_v31 = vor.u32 %v6186_v62, %v6185_v39  ;;  %vm14590_vm8 = vcmp.le.f32.partialorder %v17280_v48, 0.7853982  ;;  %v6188_v20 = vshll.u32 %v16998_v2, %v6173_v55  ;;  %v6189_v9 = vshrl.u32 %v17239_v60, %v6174_v52 }
 0x79b   : > { %v17282_v25 = vsel %vm14590_vm8, 4294967295, %v17281_v25  ;;  %vm6191_vm12 = vcmp.lt.s32.totalorder %v14569_v29, 1  ;;  %vm6192_vm3 = vcmp.lt.s32.totalorder %v14569_v29, 2  ;;  %vm6473_vm6 = vcmp.lt.s32.totalorder %v14031_v46, 0 }
 0x79c   : > { %17283 = vst [vmem:[#allocation17_spill] sm:$0xff] %v17282_v25  ;;  %v5822_v35 = vor.u32 4788187, %v5821_v12  ;;  %v14599_v13 = vsub.s32 %v5907_v19, %v5910_v43  ;;  %vm6193_vm15 = vcmp.lt.s32.totalorder %v14569_v29, 3  ;;  %vm6194_vm0 = vcmp.lt.s32.totalorder %v14569_v29, 4  ;;  %v5114_v12 = vpop.f32.mrf.mxu1 }
 0x79d   : > { %v5825_v48 = vcvt.s32.f32 %v5818_v16  ;;  %v6190_v21 = vor.u32 %v6189_v9, %v6188_v20  ;;  %v6196_v18 = vsel %vm6194_vm0, %v6184_v54, 2102212464  ;;  %v6199_v55 = vsel %vm6191_vm12, %v6178_v4, %v6181_v44 }
 0x79e   : > { %v5823_v52 = vand.u32 2147483647, %v5822_v35  ;;  %v5913_v63 = vsub.s32 0, %v14599_v13  ;;  %v6195_v39 = vsel %vm6191_vm12, %v6175_v23, %v6178_v4  ;;  %v6200_v7 = vsel %vm6194_vm0, %v6187_v31, 920167782 }
 0x79f   : > { %vm16887_vm9 = vcmp.lt.s32.totalorder %v14279_v27, 0  ;;  %v6197_v19 = vsel %vm6193_vm15, %v6181_v44, %v6196_v18  ;;  %v6201_v16 = vsel %vm6193_vm15, %v6184_v54, %v6200_v7  ;;  %v6203_v0 = vsel %vm6191_vm12, %v6181_v44, %v6184_v54 }
 0x7a0   : > { %v6204_v38 = vsel %vm6194_vm0, %v6190_v21, 1326507024  ;;  %v5826_v3 = vmul.f32 %v5825_v48, %v5823_v52  ;;  %v9269_v22 = vmin.u32 %v5913_v63, %v14599_v13  ;;  %v6202_v32 = vsel %vm6192_vm3, %v6199_v55, %v6201_v16 }
 0x7a1   : > { %v6205_v62 = vsel %vm6193_vm15, %v6187_v31, %v6204_v38  ;;  %v14623_v4 = vmul.u32.u64.low %v14571_v34, %v6202_v32  ;;  %v14624_v43 = vmul.u32.u64.high %v14571_v34, %v6202_v32, %v14623_v4  ;;  %v14627_v20 = vadd.f32 %v5114_v12, %v13744_v57  ;;  %v5116_v32 = vpop.f32.mrf.mxu1 }
 0x7a2   : > { %v6206_v23 = vsel %vm6192_vm3, %v6203_v0, %v6205_v62  ;;  %v17284_v44 = vshll.u32 %v14435_v40, %v14503_v8  ;;  %v17285_v9 = vand.u32 2147483647, %v14279_v27  ;;  %v17286_v35 = vmov 0 }
 0x7a3   : > { %v5915_v31 = vclz %v9269_v22  ;;  %v14640_v48 = vmul.u32.u64.low %v14571_v34, %v6206_v23  ;;  %v14641_v21 = vmul.u32.u64.high %v14571_v34, %v6206_v23, %v14640_v48  ;;  %10084 = vsinq.f32 %v14415_v47 }
 0x7a4   : > { %v5506_v54 = vor.u32 %v14560_v33, %v17284_v44  ;;  %vm14635_vm0 = vcmp.le.f32.partialorder %v17285_v9, 0.7853982  ;;  %v6198_v18 = vsel %vm6192_vm3, %v6195_v39, %v6197_v19  ;;  %v17289_v40 = vand.u32 2139095040, %v14554_v61 }
 0x7a5   : > { %v17287_v35 = vsel %vm14635_vm0, 4294967295, %v17286_v35  ;;  %v17290_v33 = vand.u32 2147483647, %v14554_v61  ;;  %v5415_v52 = vsel %vm14590_vm8, %v14127_v37, %v14550_v28  ;;  %v5511_v63 = vand.u32 2147483647, %v14565_v30 }
 0x7a6   : > { %17288 = vst [vmem:[#allocation33_spill] sm:$0xff] %v17287_v35  ;;  %v6267_v8 = vshrl.u32 %v17289_v40, 23  ;;  %v5827_v7 = vxor.u32 2147483648, %v5826_v3  ;;  %v9270_v12 = vadd.s32 4294967294, %v5915_v31  ;;  %v17291_v47 = vxor.u32 2147483648, %v14419_v5 }
 0x7a7   : > { %v6270_v55 = vand.u32 8388607, %v17290_v33  ;;  %v6217_v39 = vadd.s32 1, %v14624_v43  ;;  %v16885_v16 = vand.u32 2147483647, %v14627_v20  ;;  %v5513_v0 = vcvt.s32.f32 %v5506_v54 }
 0x7a8   : > { %v14660_v29 = vsel %vm6473_vm6, %v17291_v47, %v14419_v5  ;;  %v9284_v19 = vadd.s32 4294967169, %v6267_v8  ;;  %vm9271_vm15 = vcmp.lt.s32.totalorder %v9270_v12, 0  ;;  %v6214_v28 = vmul.u32 %v14571_v34, %v6198_v18 }
 0x7a9   : > { %vm6216_vm12 = vc.u32 %v14641_v21, %v14623_v4  ;;  %10086 = vcosq.f32 %v5415_v52  ;;  %v6271_v38 = vor.u32 8388608, %v6270_v55  ;;  %v14667_v5 = vmul.f32 %v5513_v0, %v5511_v63 }
 0x7aa   : > { %v6218_v30 = vsel %vm6216_vm12, %v6217_v39, %v14624_v43  ;;  %v6273_v22 = vadd.s32 1, %v9284_v19  ;;  %10088 = vsinq.f32 %v5415_v52  ;;  %v5828_v62 = vsel %vm16887_vm9, %v5827_v7, %v5826_v3 }
 0x7ab   : > { %v6219_v23 = vadd.s32 %v6218_v30, %v6214_v28  ;;  %v14671_v44 = vsel %vm9271_vm15, 0, %v9270_v12  ;;  %v6578_v34 = vand.u32 2139095040, %v14627_v20  ;;  %v14676_v54 = vand.u32 8388607, %v16885_v16 }
 0x7ac   : > { %vm6274_vm3 = vcmp.gt.s32.totalorder %v6273_v22, 0  ;;  %v14679_v31 = vadd.f32 %v5116_v32, %v13744_v57  ;;  %v14685_v3 = vsel %vm14635_vm0, %v14279_v27, %v5828_v62  ;;  %v5903_v18 = vadd.s32 %v14540_v42, %v14537_v53 }
 0x7ad   : > { %v6220_v43 = vadd.s32 536870912, %v6219_v23  ;;  %v6275_v9 = vsel %vm6274_vm3, %v6273_v22, 0  ;;  %v14689_v8 = vshll.u32 %v6271_v38, 8  ;;  %v5919_v33 = vsub.s32 32, %v14671_v44 }
 0x7ae   : > { %v6277_v40 = vand.u32 31, %v6275_v9  ;;  %v5920_v55 = vshll.u32 %v14599_v13, %v14671_v44  ;;  %v14695_v57 = vadd.s32 %v14623_v4, %v14641_v21  ;;  %v5923_v63 = vsub.s32 4294967266, %v14671_v44 }
 0x7af   : > { %v14697_v52 = vshrl.u32 %v6220_v43, 30  ;;  %v6579_v12 = vshrl.u32 %v6578_v34, 23  ;;  %v6583_v47 = vor.u32 8388608, %v14676_v54  ;;  %v6276_v42 = vshrl.u32 %v6275_v9, 5 }
 0x7b0   : > { %v6278_v7 = vsub.s32 32, %v6277_v40  ;;  %v6280_v39 = vshll.u32 %v16981_v17, %v6277_v40  ;;  %v6283_v19 = vshll.u32 %v16975_v14, %v6277_v40  ;;  %v6286_v21 = vshll.u32 %v16976_v10, %v6277_v40  ;;  %v14708_v28 = vpop.eup %10084 }
 0x7b1   : > { %v6222_v53 = vshll.u32 %v14697_v52, 30  ;;  %v6289_v38 = vshll.u32 %v17238_v58, %v6277_v40  ;;  %v6292_v32 = vshll.u32 %v16998_v2, %v6277_v40  ;;  %vm6295_vm15 = vcmp.lt.s32.totalorder %v6276_v42, 1 }
 0x7b2   : > { %v6281_v13 = vshrl.u32 %v16975_v14, %v6278_v7  ;;  %v6284_v4 = vshrl.u32 %v16976_v10, %v6278_v7  ;;  %v6287_v0 = vshrl.u32 %v17238_v58, %v6278_v7  ;;  %v6290_v22 = vshrl.u32 %v16998_v2, %v6278_v7 }
 0x7b3   : > { %v14710_v30 = vsub.s32 %v6219_v23, %v6222_v53  ;;  %v6293_v54 = vshrl.u32 %v17239_v60, %v6278_v7  ;;  %v6279_v9 = vshrl.u32 %v16981_v17, %v6278_v7  ;;  %vm6298_vm12 = vcmp.lt.s32.totalorder %v6276_v42, 4 }
 0x7b4   : > { %v6282_v62 = vor.u32 %v6281_v13, %v6280_v39  ;;  %v6285_v44 = vor.u32 %v6284_v4, %v6283_v19  ;;  %v6288_v34 = vor.u32 %v6287_v0, %v6286_v21  ;;  %v6291_v16 = vor.u32 %v6290_v22, %v6289_v38 }
 0x7b5   : > { %v6225_v43 = vsub.s32 0, %v14710_v30  ;;  %v6294_v23 = vor.u32 %v6293_v54, %v6292_v32  ;;  %v9296_v53 = vadd.s32 4294967169, %v6579_v12  ;;  %vm6297_vm3 = vcmp.lt.s32.totalorder %v6276_v42, 3 }
 0x7b6   : > { %v14719_v25 = vpop.eup %10086  ;;  %v6299_v39 = vsel %vm6295_vm15, %v6279_v9, %v6282_v62  ;;  %v6300_v19 = vsel %vm6298_vm12, %v6288_v34, 2102212464  ;;  %v5921_v4 = vshrl.u32 %v5903_v18, %v5919_v33  ;;  %v6303_v21 = vsel %vm6295_vm15, %v6282_v62, %v6285_v44 }
 0x7b7   : > { %17292 = vst [vmem:[#allocation10_spill] sm:$0xff] %v14719_v25  ;;  %v9281_v40 = vmin.u32 %v6225_v43, %v14710_v30  ;;  %v14724_v13 = vpop.eup %10088  ;;  %v6301_v7 = vsel %vm6297_vm3, %v6285_v44, %v6300_v19  ;;  %v6304_v0 = vsel %vm6298_vm12, %v6291_v16, 920167782  ;;  %vm6296_vm9 = vcmp.lt.s32.totalorder %v6276_v42, 2 }
 0x7b8   : > { %17293 = vst [vmem:[#allocation25_spill] sm:$0xff] %v14724_v13  ;;  %v6305_v12 = vsel %vm6297_vm3, %v6288_v34, %v6304_v0  ;;  %v6307_v22 = vsel %vm6295_vm15, %v6285_v44, %v6288_v34  ;;  %v6302_v32 = vsel %vm6296_vm9, %v6299_v39, %v6301_v7  ;;  %v6308_v43 = vsel %vm6298_vm12, %v6294_v23, 1326507024 }
 0x7b9   : > { %v6227_v38 = vclz %v9281_v40  ;;  %v6306_v54 = vsel %vm6296_vm9, %v6303_v21, %v6305_v12  ;;  %v6585_v9 = vadd.s32 1, %v9296_v53  ;;  %v6309_v18 = vsel %vm6297_vm3, %v6291_v16, %v6308_v43 }
 0x7ba   : > { %v14734_v33 = vmul.u32.u64.low %v14689_v8, %v6306_v54  ;;  %v14735_v19 = vmul.u32.u64.high %v14689_v8, %v6306_v54, %v14734_v33  ;;  %v14738_v62 = vadd.s32 127, %v5923_v63  ;;  %v6310_v40 = vsel %vm6296_vm9, %v6307_v22, %v6309_v18 }
 0x7bb   : > { %v9282_v48 = vadd.s32 4294967294, %v6227_v38  ;;  %vm6586_vm10 = vcmp.gt.s32.totalorder %v6585_v9, 0  ;;  %v14740_v0 = vshll.u32 %v6583_v47, 8  ;;  %v14746_v53 = vor.u32 %v5921_v4, %v5920_v55 }
 0x7bc   : > { %v14743_v44 = vmul.u32.u64.low %v14689_v8, %v6310_v40  ;;  %v14744_v34 = vmul.u32.u64.high %v14689_v8, %v6310_v40, %v14743_v44  ;;  %v6587_v23 = vsel %vm6586_vm10, %v6585_v9, 0  ;;  %v6318_v42 = vmul.u32 %v14689_v8, %v6302_v32 }
 0x7bd   : > { %vm9283_vm15 = vcmp.lt.s32.totalorder %v9282_v48, 0  ;;  %v6589_v39 = vand.u32 31, %v6587_v23  ;;  %v6321_v63 = vadd.s32 1, %v14735_v19  ;;  %v6682_v38 = vand.u32 2139095040, %v14679_v31 }
 0x7be   : > { %v6230_v16 = vsel %vm9283_vm15, 0, %v9282_v48  ;;  %v6588_v12 = vshrl.u32 %v6587_v23, 5  ;;  %vm6320_vm10 = vc.u32 %v14744_v34, %v14734_v33  ;;  %10090 = vcosq.f32 %v14685_v3 }
 0x7bf   : > { %v6231_v7 = vsub.s32 32, %v6230_v16  ;;  %v6235_v21 = vsub.s32 4294967266, %v6230_v16  ;;  %v6232_v47 = vshll.u32 %v14710_v30, %v6230_v16  ;;  %v6590_v22 = vsub.s32 32, %v6589_v39 }
 0x7c0   : > { %v6592_v54 = vshll.u32 %v16981_v17, %v6589_v39  ;;  %v6595_v48 = vshll.u32 %v16975_v14, %v6589_v39  ;;  %v6322_v8 = vsel %vm6320_vm10, %v6321_v63, %v14735_v19  ;;  %v6598_v30 = vshll.u32 %v16976_v10, %v6589_v39 }
 0x7c1   : > { %v6233_v43 = vshrl.u32 %v14695_v57, %v6231_v7  ;;  %v6236_v55 = vadd.s32 127, %v6235_v21  ;;  %v6593_v4 = vshrl.u32 %v16975_v14, %v6590_v22  ;;  %v6596_v32 = vshrl.u32 %v16976_v10, %v6590_v22 }
 0x7c2   : > { %v6323_v40 = vadd.s32 %v6322_v8, %v6318_v42  ;;  %v6599_v44 = vshrl.u32 %v17238_v58, %v6590_v22  ;;  %v6601_v16 = vshll.u32 %v17238_v58, %v6589_v39  ;;  %v6602_v7 = vshrl.u32 %v16998_v2, %v6590_v22 }
 0x7c3   : > { %v6234_v9 = vor.u32 %v6233_v43, %v6232_v47  ;;  %v6237_v18 = vshll.u32 %v6236_v55, 23  ;;  %v6594_v57 = vor.u32 %v6593_v4, %v6592_v54  ;;  %v6597_v23 = vor.u32 %v6596_v32, %v6595_v48 }
 0x7c4   : > { %v5925_v21 = vshll.u32 %v14738_v62, 23  ;;  %v6324_v63 = vadd.s32 536870912, %v6323_v40  ;;  %v6600_v25 = vor.u32 %v6599_v44, %v6598_v30  ;;  %v6603_v13 = vor.u32 %v6602_v7, %v6601_v16 }
 0x7c5   : > { %v6238_v19 = vor.u32 4788187, %v6237_v18  ;;  %v6604_v37 = vshll.u32 %v16998_v2, %v6589_v39  ;;  %v6605_v47 = vshrl.u32 %v17239_v60, %v6590_v22  ;;  %v6683_v43 = vshrl.u32 %v6682_v38, 23 }
 0x7c6   : > { %v6241_v42 = vcvt.s32.f32 %v6234_v9  ;;  %v14767_v55 = vshrl.u32 %v6324_v63, 30  ;;  %v6591_v54 = vshrl.u32 %v16981_v17, %v6590_v22  ;;  %vm6607_vm9 = vcmp.lt.s32.totalorder %v6588_v12, 1 }
 0x7c7   : > { %v6239_v48 = vand.u32 2147483647, %v6238_v19  ;;  %v6606_v8 = vor.u32 %v6605_v47, %v6604_v37  ;;  %vm6610_vm12 = vcmp.lt.s32.totalorder %v6588_v12, 4  ;;  %v6615_v4 = vsel %vm6607_vm9, %v6594_v57, %v6597_v23 }
 0x7c8   : > { %v6326_v62 = vshll.u32 %v14767_v55, 30  ;;  %vm6609_vm3 = vcmp.lt.s32.totalorder %v6588_v12, 3  ;;  %v6612_v32 = vsel %vm6610_vm12, %v6600_v25, 2102212464  ;;  %v6616_v30 = vsel %vm6610_vm12, %v6603_v13, 920167782 }
 0x7c9   : > { %vm6608_vm15 = vcmp.lt.s32.totalorder %v6588_v12, 2  ;;  %v6617_v39 = vsel %vm6609_vm3, %v6600_v25, %v6616_v30  ;;  %v6619_v18 = vsel %vm6607_vm9, %v6597_v23, %v6600_v25  ;;  %v6620_v44 = vsel %vm6610_vm12, %v6606_v8, 1326507024 }
 0x7ca   : > { %v14771_v38 = vsub.s32 %v6323_v40, %v6326_v62  ;;  %v6611_v9 = vsel %vm6607_vm9, %v6591_v54, %v6594_v57  ;;  %v6613_v16 = vsel %vm6609_vm3, %v6597_v23, %v6612_v32  ;;  %v6618_v22 = vsel %vm6608_vm15, %v6615_v4, %v6617_v39 }
 0x7cb   : > { %v5926_v7 = vor.u32 4788187, %v5925_v21  ;;  %vm16896_vm10 = vcmp.lt.s32.totalorder %v14469_v59, 0  ;;  %v6621_v37 = vsel %vm6609_vm3, %v6603_v13, %v6620_v44  ;;  %v6242_v47 = vmul.f32 %v6241_v42, %v6239_v48 }
 0x7cc   : > { %v14776_v19 = vmul.u32.u64.low %v14740_v0, %v6618_v22  ;;  %v14777_v63 = vmul.u32.u64.high %v14740_v0, %v6618_v22, %v14776_v19  ;;  %v6329_v35 = vsub.s32 0, %v14771_v38  ;;  %v6622_v25 = vsel %vm6608_vm15, %v6619_v18, %v6621_v37 }
 0x7cd   : > { %v9300_v8 = vadd.s32 4294967169, %v6683_v43  ;;  %v6614_v40 = vsel %vm6608_vm15, %v6611_v9, %v6613_v16  ;;  %v14783_v57 = vmul.u32.u64.low %v14740_v0, %v6622_v25  ;;  %v14784_v23 = vmul.u32.u64.high %v14740_v0, %v6622_v25, %v14783_v57 }
 0x7ce   : > { %v17294_v21 = vand.u32 2147483647, %v14679_v31  ;;  %v9285_v13 = vmin.u32 %v6329_v35, %v14771_v38  ;;  %v17295_v42 = vand.u32 2147483647, %v14031_v46  ;;  %v5927_v12 = vand.u32 2147483647, %v5926_v7 }
 0x7cf   : > { %v6689_v4 = vadd.s32 1, %v9300_v8  ;;  %v5929_v43 = vcvt.s32.f32 %v14746_v53  ;;  %v6633_v62 = vadd.s32 1, %v14777_v63  ;;  %v6243_v30 = vxor.u32 2147483648, %v6242_v47 }
 0x7d0   : > { %v6686_v54 = vand.u32 8388607, %v17294_v21  ;;  %vm14792_vm9 = vcmp.le.f32.partialorder %v17295_v42, 0.7853982  ;;  %v6331_v39 = vclz %v9285_v13  ;;  %v6630_v35 = vmul.u32 %v14740_v0, %v6614_v40 }
 0x7d1   : > { %v6559_v32 = vsel %vm14792_vm9, %v14031_v46, %v14660_v29  ;;  %vm6690_vm12 = vcmp.gt.s32.totalorder %v6689_v4, 0  ;;  %vm6632_vm3 = vc.u32 %v14784_v23, %v14776_v19  ;;  %v17298_v9 = vsub.s32 4, %v14269_v26 }
 0x7d2   : > { %v6687_v18 = vor.u32 8388608, %v6686_v54  ;;  %v6691_v44 = vsel %vm6690_vm12, %v6689_v4, 0  ;;  %v9286_v16 = vadd.s32 4294967294, %v6331_v39  ;;  %v6634_v22 = vsel %vm6632_vm3, %v6633_v62, %v14777_v63 }
 0x7d3   : > { %v6558_v53 = vsel %vm6473_vm6, %v17298_v9, %v14269_v26  ;;  %v6693_v7 = vand.u32 31, %v6691_v44  ;;  %10092 = vcosq.f32 %v6559_v32  ;;  %v14811_v37 = vmul.f32 %v5929_v43, %v5927_v12 }
 0x7d4   : > { %v6635_v0 = vadd.s32 %v6634_v22, %v6630_v35  ;;  %10094 = vsinq.f32 %v6559_v32  ;;  %v14815_v25 = vsel %vm16896_vm10, %v6243_v30, %v6242_v47  ;;  %v6319_v8 = vadd.s32 %v14734_v33, %v14744_v34 }
 0x7d5   : > { %vm9287_vm15 = vcmp.lt.s32.totalorder %v9286_v16, 0  ;;  %v6694_v26 = vsub.s32 32, %v6693_v7  ;;  %v14819_v63 = vshll.u32 %v6687_v18, 8  ;;  %v6560_v21 = vsel %vm14792_vm9, 0, %v6558_v53 }
 0x7d6   : > { %v6334_v40 = vsel %vm9287_vm15, 0, %v9286_v16  ;;  %v6636_v57 = vadd.s32 536870912, %v6635_v0  ;;  %v14824_v54 = vadd.s32 %v14776_v19, %v14784_v23  ;;  %v6696_v13 = vshll.u32 %v16981_v17, %v6693_v7  ;;  %v14839_v16 = vpop.eup %10090 }
 0x7d7   : > { %v6699_v47 = vshll.u32 %v16975_v14, %v6693_v7  ;;  %v6702_v4 = vshll.u32 %v16976_v10, %v6693_v7  ;;  %v6697_v33 = vshrl.u32 %v16975_v14, %v6694_v26  ;;  %v6700_v34 = vshrl.u32 %v16976_v10, %v6694_v26 }
 0x7d8   : > { %v14829_v42 = vshrl.u32 %v6636_v57, 30  ;;  %v6703_v12 = vshrl.u32 %v17238_v58, %v6694_v26  ;;  %v6335_v43 = vsub.s32 32, %v6334_v40  ;;  %v6692_v48 = vshrl.u32 %v6691_v44, 5 }
 0x7d9   : > { %v6705_v62 = vshll.u32 %v17238_v58, %v6693_v7  ;;  %v6706_v19 = vshrl.u32 %v16998_v2, %v6694_v26  ;;  %v6698_v32 = vor.u32 %v6697_v33, %v6696_v13  ;;  %v6701_v30 = vor.u32 %v6700_v34, %v6699_v47 }
 0x7da   : > { %v6638_v23 = vshll.u32 %v14829_v42, 30  ;;  %v6704_v39 = vor.u32 %v6703_v12, %v6702_v4  ;;  %v6339_v35 = vsub.s32 4294967266, %v6334_v40  ;;  %v6708_v9 = vshll.u32 %v16998_v2, %v6693_v7 }
 0x7db   : > { %v6707_v18 = vor.u32 %v6706_v19, %v6705_v62  ;;  %v6709_v53 = vshrl.u32 %v17239_v60, %v6694_v26  ;;  %v6336_v22 = vshll.u32 %v14771_v38, %v6334_v40  ;;  %v6564_v57 = vadd.s32 3, %v6560_v21 }
 0x7dc   : > { %v14842_v44 = vsub.s32 %v6635_v0, %v6638_v23  ;;  %v6453_v29 = vsub.s32 4, %v14198_v41  ;;  %v6695_v58 = vshrl.u32 %v16981_v17, %v6694_v26  ;;  %vm6711_vm6 = vcmp.lt.s32.totalorder %v6692_v48, 1 }
 0x7dd   : > { %v6710_v13 = vor.u32 %v6709_v53, %v6708_v9  ;;  %vm6714_vm9 = vcmp.lt.s32.totalorder %v6692_v48, 4  ;;  %v6337_v47 = vshrl.u32 %v6319_v8, %v6335_v43  ;;  %v6719_v33 = vsel %vm6711_vm6, %v6698_v32, %v6701_v30 }
 0x7de   : > { %v6641_v4 = vsub.s32 0, %v14842_v44  ;;  %v6716_v7 = vsel %vm6714_vm9, %v6704_v39, 2102212464  ;;  %v6340_v34 = vadd.s32 127, %v6339_v35  ;;  %vm6713_vm12 = vcmp.lt.s32.totalorder %v6692_v48, 3 }
 0x7df   : > { %v6720_v12 = vsel %vm6714_vm9, %v6707_v18, 920167782  ;;  %v6723_v38 = vsel %vm6711_vm6, %v6701_v30, %v6704_v39  ;;  %vm6712_vm3 = vcmp.lt.s32.totalorder %v6692_v48, 2  ;;  %v6724_v26 = vsel %vm6714_vm9, %v6710_v13, 1326507024 }
 0x7e0   : > { %v10093_v0 = vpop.eup %10092  ;;  %v9297_v40 = vmin.u32 %v6641_v4, %v14842_v44  ;;  %v6721_v21 = vsel %vm6713_vm12, %v6704_v39, %v6720_v12  ;;  %vm6563_vm15 = vweird.f32 %v14031_v46  ;;  %v6715_v8 = vsel %vm6711_vm6, %v6695_v58, %v6698_v32 }
 0x7e1   : > { %v10095_v62 = vpop.eup %10094  ;;  %v6717_v43 = vsel %vm6713_vm12, %v6701_v30, %v6716_v7  ;;  %v6722_v19 = vsel %vm6712_vm3, %v6719_v33, %v6721_v21  ;;  %v6725_v23 = vsel %vm6713_vm12, %v6707_v18, %v6724_v26  ;;  %v14859_v4 = vor.u32 %v6337_v47, %v6336_v22 }
 0x7e2   : > { %v6643_v35 = vclz %v9297_v40  ;;  %v6726_v9 = vsel %vm6712_vm3, %v6723_v38, %v6725_v23  ;;  %v14855_v53 = vmul.u32.u64.low %v14819_v63, %v6722_v19  ;;  %v14856_v60 = vmul.u32.u64.high %v14819_v63, %v6722_v19, %v14855_v53 }
 0x7e3   : > { %v14862_v39 = vmul.u32.u64.low %v14819_v63, %v6726_v9  ;;  %v14863_v13 = vmul.u32.u64.high %v14819_v63, %v6726_v9, %v14862_v39  ;;  %v6565_v12 = vand.u32 3, %v6564_v57  ;;  %v6718_v32 = vsel %vm6712_vm3, %v6715_v8, %v6717_v43 }
 0x7e4   : > { %v9298_v58 = vadd.s32 4294967294, %v6643_v35  ;;  %v6568_v30 = vxor.u32 2147483648, %v10095_v62  ;;  %v6571_v18 = vxor.u32 2147483648, %v10093_v0  ;;  %v6454_v7 = vsel %vm6369_vm5, %v6453_v29, %v14198_v41 }
 0x7e5   : > { %vm6566_vm6 = vcmp.lt.s32.totalorder %v6565_v12, 2  ;;  %vm6567_vm9 = vcmp.eq.s32.totalorder %v6565_v12, 0  ;;  %vm6570_vm12 = vcmp.eq.s32.totalorder %v6565_v12, 2  ;;  %v6737_v22 = vadd.s32 1, %v14856_v60 }
 0x7e6   : > { %vm9299_vm10 = vcmp.lt.s32.totalorder %v9298_v58, 0  ;;  %v6569_v47 = vsel %vm6567_vm9, %v10093_v0, %v6568_v30  ;;  %v6572_v33 = vsel %vm6570_vm12, %v6571_v18, %v10095_v62  ;;  %v6734_v57 = vmul.u32 %v14819_v63, %v6718_v32 }
 0x7e7   : > { %v6646_v38 = vsel %vm9299_vm10, 0, %v9298_v58  ;;  %vm6736_vm3 = vc.u32 %v14863_v13, %v14855_v53  ;;  %v6573_v48 = vsel %vm6566_vm6, %v6569_v47, %v6572_v33  ;;  %v6341_v40 = vshll.u32 %v6340_v34, 23 }
 0x7e8   : > { %v6647_v21 = vsub.s32 32, %v6646_v38  ;;  %v6651_v26 = vsub.s32 4294967266, %v6646_v38  ;;  %v6738_v8 = vsel %vm6736_vm3, %v6737_v22, %v14856_v60  ;;  %v17299_v43 = vand.u32 2147483647, %v14469_v59 }
 0x7e9   : > { %v6648_v29 = vshll.u32 %v14842_v44, %v6646_v38  ;;  %v6739_v0 = vadd.s32 %v6738_v8, %v6734_v57  ;;  %v6574_v63 = vsel %vm6563_vm15, nan, %v6573_v48  ;;  %v6456_v62 = vsel %vm14375_vm2, 0, %v6454_v7 }
 0x7ea   : > { %vm14876_vm5 = vcmp.le.f32.partialorder %v17299_v43, 0.7853982  ;;  %v6649_v34 = vshrl.u32 %v14824_v54, %v6647_v21  ;;  %v6652_v19 = vadd.s32 127, %v6651_v26  ;;  %6849 = vmatprep.subr.mxu0 %v6574_v63  ;;  %v6460_v60 = vadd.s32 3, %v6456_v62 }
 0x7eb   : > { %v6464_v23 = vxor.u32 2147483648, %v14708_v28  ;;  %v6740_v35 = vadd.s32 536870912, %v6739_v0  ;;  %v6467_v9 = vxor.u32 2147483648, %v14526_v11  ;;  %v17302_v39 = vand.u32 2147483647, %v13934_v15 }
 0x7ec   : > { %v6141_v46 = vsub.s32 4, %v14105_v50  ;;  %v6650_v51 = vor.u32 %v6649_v34, %v6648_v29  ;;  %v6653_v12 = vshll.u32 %v6652_v19, 23  ;;  %v6461_v58 = vand.u32 3, %v6460_v60 }
 0x7ed   : > { %vm14890_vm10 = vcmp.le.f32.partialorder %v17302_v39, 0.7853982  ;;  %v14899_v32 = vor.u32 4788187, %v6341_v40  ;;  %vm16897_vm2 = vcmp.lt.s32.totalorder %v14627_v20, 0  ;;  %v14902_v30 = vshrl.u32 %v6740_v35, 30 }
 0x7ee   : > { %v6143_v54 = vsel %vm14890_vm10, %v13934_v15, %v14486_v36  ;;  %v6142_v18 = vsel %vm6057_vm13, %v6141_v46, %v14105_v50  ;;  %v6654_v7 = vor.u32 4788187, %v6653_v12  ;;  %v6657_v22 = vcvt.s32.f32 %v6650_v51  ;;  %v17311_v39 = vld [vmem:[#allocation11_spill] sm:$0xff]  ;;  %v17312_v46 = vld [vmem:[#allocation24_spill] sm:$0xff]  ;;  %v17313_v51 = vld [vmem:[#allocation21_spill] sm:$0xff] }
 0x7ef   : > { %10096 = vcosq.f32 %v6143_v54  ;;  %vm6462_vm15 = vcmp.lt.s32.totalorder %v6461_v58, 2  ;;  %vm6463_vm6 = vcmp.eq.s32.totalorder %v6461_v58, 0  ;;  %v6742_v47 = vshll.u32 %v14902_v30, 30 }
 0x7f0   : > { %v6465_v33 = vsel %vm6463_vm6, %v14526_v11, %v6464_v23  ;;  %vm6466_vm9 = vcmp.eq.s32.totalorder %v6461_v58, 2  ;;  %v6144_v36 = vsel %vm14890_vm10, 0, %v6142_v18  ;;  %v17305_v38 = vand.u32 2147483647, %v14627_v20 }
 0x7f1   : > { %v6655_v50 = vand.u32 2147483647, %v6654_v7  ;;  %v6468_v48 = vsel %vm6466_vm9, %v6467_v9, %v14708_v28  ;;  %10098 = vsinq.f32 %v6143_v54  ;;  %v6148_v40 = vadd.s32 3, %v6144_v36  ;;  %v17314_v54 = vld [vmem:[#allocation20_spill] sm:$0xff] }
 0x7f2   : > { %vm14913_vm12 = vcmp.le.f32.partialorder %v17305_v38, 0.7853982  ;;  %v14918_v21 = vsub.s32 %v6739_v0, %v6742_v47  ;;  %vm6459_vm13 = vweird.f32 %v14018_v6  ;;  %v6469_v11 = vsel %vm6462_vm15, %v6465_v33, %v6468_v48  ;;  %v17315_v47 = vld [vmem:[#allocation26_spill] sm:$0xff] }
 0x7f3   : > { %v6037_v26 = vsub.s32 4, %v14037_v24  ;;  %v5931_v8 = vxor.u32 2147483648, %v14811_v37  ;;  %v14927_v43 = vsel %vm14876_vm5, %v14469_v59, %v14815_v25  ;;  %v6658_v29 = vmul.f32 %v6657_v22, %v6655_v50 }
 0x7f4   : > { %v6470_v63 = vsel %vm6459_vm13, nan, %v6469_v11  ;;  %v6343_v28 = vand.u32 2147483647, %v14899_v32  ;;  %v6345_v0 = vcvt.s32.f32 %v14859_v4  ;;  %v6745_v62 = vsub.s32 0, %v14918_v21 }
 0x7f5   : > { %6850 = vmatpush1.msra.mxu0 %v6470_v63  ;;  %v6038_v6 = vsel %vm5953_vm11, %v6037_v26, %v14037_v24  ;;  %v6659_v34 = vxor.u32 2147483648, %v6658_v29  ;;  %v6735_v19 = vadd.s32 %v14855_v53, %v14863_v13  ;;  %v6149_v60 = vand.u32 3, %v6148_v40  ;;  %v17316_v40 = vld [vmem:[#allocation23_spill] sm:$0xff] }
 0x7f6   : > { %v17308_v25 = vand.u32 2147483647, %v13769_v49  ;;  %v9301_v35 = vmin.u32 %v6745_v62, %v14918_v21  ;;  %v6040_v9 = vsel %vm14287_vm7, 0, %v6038_v6  ;;  %v5725_v44 = vsub.s32 4, %v17311_v39 }
 0x7f7   : > { %v6660_v53 = vsel %vm16897_vm2, %v6659_v34, %v6658_v29  ;;  %vm6043_vm11 = vweird.f32 %v13898_v45  ;;  %v6044_v13 = vadd.s32 3, %v6040_v9  ;;  %v6048_v12 = vxor.u32 2147483648, %v17313_v51  ;;  %v17321_v45 = vld [vmem:[#allocation34_spill] sm:$0xff] }
 0x7f8   : > { %vm14939_vm3 = vcmp.le.f32.partialorder %v17308_v25, 0.7853982  ;;  %v6747_v58 = vclz %v9301_v35  ;;  %v6051_v56 = vxor.u32 2147483648, %v17314_v54  ;;  %v5726_v18 = vsel %vm5641_vm1, %v5725_v44, %v17311_v39 }
 0x7f9   : > { %v5727_v24 = vsel %vm14939_vm3, %v13769_v49, %v17312_v46  ;;  %vm6150_vm7 = vcmp.lt.s32.totalorder %v6149_v60, 2  ;;  %v6045_v7 = vand.u32 3, %v6044_v13  ;;  %v5728_v22 = vsel %vm14939_vm3, 0, %v5726_v18  ;;  %v17320_v18 = vld [vmem:[#allocation13_spill] sm:$0xff] }
 0x7fa   : > { %10100 = vcosq.f32 %v5727_v24  ;;  %v5621_v33 = vsub.s32 4, %v17315_v47  ;;  %v6663_v36 = vsel %vm14913_vm12, %v14627_v20, %v6660_v53  ;;  %v9302_v38 = vadd.s32 4294967294, %v6747_v58 }
 0x7fb   : > { %10102 = vsinq.f32 %v5727_v24  ;;  %vm6147_vm10 = vweird.f32 %v13934_v15  ;;  %vm6151_vm15 = vcmp.eq.s32.totalorder %v6149_v60, 0  ;;  %v5732_v50 = vadd.s32 3, %v5728_v22 }
 0x7fc   : > { %v10097_v48 = vpop.eup %10096  ;;  %vm6046_vm6 = vcmp.lt.s32.totalorder %v6045_v7, 2  ;;  %vm6047_vm1 = vcmp.eq.s32.totalorder %v6045_v7, 0  ;;  %vm6050_vm9 = vcmp.eq.s32.totalorder %v6045_v7, 2  ;;  %vm17317_vm13 = vcmp.lt.s32.totalorder %v17316_v40, 0 }
 0x7fd   : > { %v5622_v11 = vsel %vm17317_vm13, %v5621_v33, %v17315_v47  ;;  %vm9303_vm3 = vcmp.lt.s32.totalorder %v9302_v38, 0  ;;  %v6155_v26 = vxor.u32 2147483648, %v10097_v48  ;;  %v6049_v29 = vsel %vm6047_vm1, %v17314_v54, %v6048_v12  ;;  %v17319_v54 = vld [vmem:[#allocation9_spill] sm:$0xff] }
 0x7fe   : > { %v6052_v63 = vsel %vm6050_vm9, %v6051_v56, %v17313_v51  ;;  %v6750_v62 = vsel %vm9303_vm3, 0, %v9302_v38  ;;  %v5733_v34 = vand.u32 3, %v5732_v50  ;;  %v5624_v23 = vsel %vm14073_vm14, 0, %v5622_v11  ;;  %v10099_v35 = vpop.eup %10098  ;;  %v17325_v50 = vld [vmem:[#allocation32_spill] sm:$0xff] }
 0x7ff   : > { %v6053_v6 = vsel %vm6046_vm6, %v6049_v29, %v6052_v63  ;;  %10104 = vcosq.f32 %v6663_v36  ;;  %v6751_v9 = vsub.s32 32, %v6750_v62  ;;  %v6755_v39 = vsub.s32 4294967266, %v6750_v62 }
 0x800   : > { %vm6154_vm2 = vcmp.eq.s32.totalorder %v6149_v60, 2  ;;  %10106 = vsinq.f32 %v6663_v36  ;;  %v6752_v44 = vshll.u32 %v14918_v21, %v6750_v62  ;;  %v6152_v46 = vxor.u32 2147483648, %v10099_v35  ;;  %v17326_v60 = vld [vmem:[#allocation15_spill] sm:$0xff] }
 0x801   : > { %v6156_v24 = vsel %vm6154_vm2, %v6155_v26, %v10099_v35  ;;  %v6753_v53 = vshrl.u32 %v6735_v19, %v6751_v9  ;;  %v6756_v13 = vadd.s32 127, %v6755_v39  ;;  %v6054_v51 = vsel %vm6043_vm11, nan, %v6053_v6  ;;  %v17328_v39 = vld [vmem:[#allocation29_spill] sm:$0xff] }
 0x802   : > { %v5628_v12 = vadd.s32 3, %v5624_v23  ;;  %v6153_v58 = vsel %vm6151_vm15, %v10097_v48, %v6152_v46  ;;  %vm5734_vm6 = vcmp.lt.s32.totalorder %v5733_v34, 2  ;;  %v5632_v56 = vxor.u32 2147483648, %v17319_v54 }
 0x803   : > { %v5635_v7 = vxor.u32 2147483648, %v17320_v18  ;;  %v6754_v22 = vor.u32 %v6753_v53, %v6752_v44  ;;  %v6757_v47 = vshll.u32 %v6756_v13, 23  ;;  %v6157_v33 = vsel %vm6150_vm7, %v6153_v58, %v6156_v24  ;;  %v17329_v58 = vld [vmem:[#allocation30_spill] sm:$0xff] }
 0x804   : > { %v5629_v21 = vand.u32 3, %v5628_v12  ;;  %vm6681_vm14 = vcmp.lt.s32.totalorder %v14679_v31, 0  ;;  %v6158_v19 = vsel %vm6147_vm10, nan, %v6157_v33  ;;  %vm5735_vm2 = vcmp.eq.s32.totalorder %v5733_v34, 0 }
 0x805   : > { %v17322_v36 = vand.u32 2147483647, %v17321_v45  ;;  %v5309_v48 = vsub.s32 4, %v17325_v50  ;;  %v6758_v26 = vor.u32 4788187, %v6757_v47  ;;  %6851 = vmatprep.subr.mxu0 %v6158_v19  ;;  %vm5738_vm15 = vcmp.eq.s32.totalorder %v5733_v34, 2 }
 0x806   : > { %vm5631_vm7 = vcmp.eq.s32.totalorder %v5629_v21, 0  ;;  %6852 = vmatpush1.msra.mxu0 %v6054_v51  ;;  %vm5634_vm10 = vcmp.eq.s32.totalorder %v5629_v21, 2  ;;  %vm17327_vm1 = vcmp.lt.s32.totalorder %v17321_v45, 0  ;;  %v6761_v23 = vcvt.s32.f32 %v6754_v22  ;;  %v17342_v22 = vld [vmem:[#allocation14_spill] sm:$0xff] }
 0x807   : > { %vm14985_vm11 = vcmp.le.f32.partialorder %v17322_v36, 0.7853982  ;;  %v10101_v11 = vpop.eup %10100  ;;  %v5633_v62 = vsel %vm5631_vm7, %v17320_v18, %v5632_v56  ;;  %v5310_v6 = vsel %vm17327_vm1, %v5309_v48, %v17325_v50  ;;  %v6759_v25 = vand.u32 2147483647, %v6758_v26  ;;  %v17336_v50 = vld [vmem:[#allocation12_spill] sm:$0xff] }
 0x808   : > { %v5311_v15 = vsel %vm14985_vm11, %v17321_v45, %v17326_v60  ;;  %v10103_v29 = vpop.eup %10102  ;;  %v5739_v63 = vxor.u32 2147483648, %v10101_v11  ;;  %v5636_v9 = vsel %vm5634_vm10, %v5635_v7, %v17319_v54  ;;  %vm5849_vm9 = vcmp.lt.s32.totalorder %v17328_v39, 0 }
 0x809   : > { %v5736_v35 = vxor.u32 2147483648, %v10103_v29  ;;  %vm5630_vm13 = vcmp.lt.s32.totalorder %v5629_v21, 2  ;;  %v5312_v46 = vsel %vm14985_vm11, 0, %v5310_v6  ;;  %10108 = vcosq.f32 %v5311_v15 }
 0x80a   : > { %v5740_v44 = vsel %vm5738_vm15, %v5739_v63, %v10103_v29  ;;  %vm6265_vm3 = vcmp.lt.s32.totalorder %v14554_v61, 0  ;;  %v6762_v24 = vmul.f32 %v6761_v23, %v6759_v25  ;;  %v5637_v13 = vsel %vm5630_vm13, %v5633_v62, %v5636_v9 }
 0x80b   : > { %v5737_v53 = vsel %vm5735_vm2, %v10101_v11, %v5736_v35  ;;  %10110 = vsinq.f32 %v5311_v15  ;;  %v6346_v51 = vmul.f32 %v6345_v0, %v6343_v28  ;;  %vm5731_vm7 = vweird.f32 %v13769_v49  ;;  %v17330_v28 = vld [vmem:[#allocation35_spill] sm:$0xff] }
 0x80c   : > { %v5741_v12 = vsel %vm5734_vm6, %v5737_v53, %v5740_v44  ;;  %v5205_v54 = vsub.s32 4, %v17329_v58  ;;  %10112 = vcosq.f32 %v14927_v43  ;;  %v6763_v56 = vxor.u32 2147483648, %v6762_v24  ;;  %v15013_v7 = vpop.eup %10104  ;;  %v17337_v11 = vld [vmem:[#allocation19_spill] sm:$0xff] }
 0x80d   : > { %v5742_v18 = vsel %vm5731_vm7, nan, %v5741_v12  ;;  %vm5627_vm11 = vweird.f32 %v17316_v40  ;;  %10114 = vsinq.f32 %v14927_v43  ;;  %v5316_v4 = vadd.s32 3, %v5312_v46  ;;  %v15019_v0 = vpop.eup %10106 }
 0x80e   : > { %6853 = vmatprep.subr.mxu0 %v5742_v18  ;;  %v5638_v32 = vsel %vm5627_vm11, nan, %v5637_v13  ;;  %vm17331_vm2 = vcmp.lt.s32.totalorder %v17330_v28, 0  ;;  %v6764_v34 = vsel %vm6681_vm14, %v6763_v56, %v6762_v24  ;;  %v17333_v47 = vand.u32 2147483647, %v14679_v31 }
 0x80f   : > { %v5206_v49 = vsel %vm17331_vm2, %v5205_v54, %v17329_v58  ;;  %6854 = vmatpush1.msra.mxu0 %v5638_v32  ;;  %v6765_v33 = vsub.s32 4, %v14902_v30  ;;  %v6347_v21 = vxor.u32 2147483648, %v6346_v51  ;;  %v6661_v38 = vsub.s32 4, %v14829_v42 }
 0x810   : > { %v5208_v40 = vsel %vm14002_vm4, 0, %v5206_v49  ;;  %vm15027_vm6 = vcmp.le.f32.partialorder %v17333_v47, 0.7853982  ;;  %v5216_v48 = vxor.u32 2147483648, %v17336_v50  ;;  %v5219_v26 = vxor.u32 2147483648, %v17337_v11 }
 0x811   : > { %v5212_v19 = vadd.s32 3, %v5208_v40  ;;  %v6767_v36 = vsel %vm15027_vm6, %v14679_v31, %v6764_v34  ;;  %v6766_v60 = vsel %vm6681_vm14, %v6765_v33, %v14902_v30  ;;  %vm17338_vm4 = vcmp.lt.s32.totalorder %v14627_v20, 0 }
 0x812   : > { %10116 = vcosq.f32 %v6767_v36  ;;  %v6768_v29 = vsel %vm15027_vm6, 0, %v6766_v60  ;;  %v6662_v63 = vsel %vm17338_vm4, %v6661_v38, %v14829_v42  ;;  %v5932_v62 = vsel %vm5849_vm9, %v5931_v8, %v14811_v37  ;;  %v17359_v38 = vld [vmem:[#allocation22_spill] sm:$0xff] }
 0x813   : > { %v5213_v15 = vand.u32 3, %v5212_v19  ;;  %10118 = vsinq.f32 %v6767_v36  ;;  %v5317_v6 = vand.u32 3, %v5316_v4  ;;  %v6664_v30 = vsel %vm14913_vm12, 0, %v6662_v63 }
 0x814   : > { %10120 = vsinq.f32 %v14685_v3  ;;  %v6348_v25 = vsel %vm6265_vm3, %v6347_v21, %v6346_v51  ;;  %v6668_v23 = vadd.s32 3, %v6664_v30  ;;  %v6772_v35 = vadd.s32 3, %v6768_v29  ;;  %v15094_v21 = vld [vmem:[%s16700_s3 + $0x40] sm:$0xff] }
 0x815   : > { %vm5215_vm14 = vcmp.eq.s32.totalorder %v5213_v15, 0  ;;  %vm5218_vm15 = vcmp.eq.s32.totalorder %v5213_v15, 2  ;;  %v6349_v9 = vsub.s32 4, %v14767_v55  ;;  %vm5315_vm10 = vweird.f32 %v17321_v45 }
 0x816   : > { %v5217_v42 = vsel %vm5215_vm14, %v17337_v11, %v5216_v48  ;;  %v5220_v3 = vsel %vm5218_vm15, %v5219_v26, %v17336_v50  ;;  %vm5211_vm1 = vweird.f32 %v17330_v28  ;;  %vm5214_vm13 = vcmp.lt.s32.totalorder %v5213_v15, 2  ;;  %v10109_v8 = vpop.eup %10108 }
 0x817   : > { %v17339_v37 = vand.u32 2147483647, %v14554_v61  ;;  %vm5318_vm7 = vcmp.lt.s32.totalorder %v5317_v6, 2  ;;  %v5221_v44 = vsel %vm5214_vm13, %v5217_v42, %v5220_v3  ;;  %v6669_v46 = vand.u32 3, %v6668_v23  ;;  %v17349_v3 = vld [vmem:[#allocation18_spill] sm:$0xff] }
 0x818   : > { %v10111_v53 = vpop.eup %10110  ;;  %vm5319_vm11 = vcmp.eq.s32.totalorder %v5317_v6, 0  ;;  %v5323_v13 = vxor.u32 2147483648, %v10109_v8  ;;  %v6672_v51 = vxor.u32 2147483648, %v15019_v0  ;;  %v6675_v12 = vxor.u32 2147483648, %v15013_v7 }
 0x819   : > { %vm15063_vm12 = vcmp.le.f32.partialorder %v17339_v37, 0.7853982  ;;  %v5320_v58 = vxor.u32 2147483648, %v10111_v53  ;;  %vm5322_vm2 = vcmp.eq.s32.totalorder %v5317_v6, 2  ;;  %v6773_v54 = vand.u32 3, %v6772_v35  ;;  %v15075_v18 = vpop.eup %10112 }
 0x81a   : > { %v6351_v24 = vsel %vm15063_vm12, %v14554_v61, %v6348_v25  ;;  %v6350_v56 = vsel %vm6265_vm3, %v6349_v9, %v14767_v55  ;;  %v5324_v32 = vsel %vm5322_vm2, %v5323_v13, %v10111_v53  ;;  %v5222_v4 = vsel %vm5211_vm1, nan, %v5221_v44  ;;  %v15081_v34 = vpop.eup %10114 }
 0x81b   : > { %v6352_v49 = vsel %vm15063_vm12, 0, %v6350_v56  ;;  %10122 = vcosq.f32 %v6351_v24  ;;  %vm5433_vm6 = vcmp.lt.s32.totalorder %v17342_v22, 0  ;;  %v5321_v40 = vsel %vm5319_vm11, %v10109_v8, %v5320_v58 }
 0x81c   : > { %vm6771_vm4 = vweird.f32 %v14679_v31  ;;  %vm6671_vm14 = vcmp.eq.s32.totalorder %v6669_v46, 0  ;;  %vm6674_vm15 = vcmp.eq.s32.totalorder %v6669_v46, 2  ;;  %10124 = vsinq.f32 %v6351_v24  ;;  %v15148_v24 = vld [vmem:[%s16700_s3 + $0x50] sm:$0xff] }
 0x81d   : > { %v5325_v55 = vsel %vm5318_vm7, %v5321_v40, %v5324_v32  ;;  %v6673_v47 = vsel %vm6671_vm14, %v15013_v7, %v6672_v51  ;;  %v6676_v28 = vsel %vm6674_vm15, %v6675_v12, %v15019_v0  ;;  %v6245_v43 = vsub.s32 4, %v14697_v52  ;;  %v17357_v32 = vld [vmem:[#allocation7_spill] sm:$0xff] }
 0x81e   : > { %v5326_v33 = vsel %vm5315_vm10, nan, %v5325_v55  ;;  %vm6774_vm3 = vcmp.lt.s32.totalorder %v6773_v54, 2  ;;  %v6356_v19 = vadd.s32 3, %v6352_v49  ;;  %v17343_v36 = vand.u32 2147483647, %v17328_v39 }
 0x81f   : > { %v10117_v7 = vpop.eup %10116  ;;  %6855 = vmatprep.subr.mxu0 %v5326_v33  ;;  %vm6670_vm13 = vcmp.lt.s32.totalorder %v6669_v46, 2  ;;  %vm17346_vm12 = vcmp.lt.s32.totalorder %v14469_v59, 0  ;;  %v5933_v0 = vsub.s32 4, %v14583_v1  ;;  %vm6775_vm10 = vcmp.eq.s32.totalorder %v6773_v54, 0 }
 0x820   : > { %vm15098_vm1 = vcmp.le.f32.partialorder %v17343_v36, 0.7853982  ;;  %v6246_v45 = vsel %vm17346_vm12, %v6245_v43, %v14697_v52  ;;  %v10119_v48 = vpop.eup %10118  ;;  %6856 = vmatpush1.msra.mxu0 %v5222_v4  ;;  %vm6778_vm7 = vcmp.eq.s32.totalorder %v6773_v54, 2  ;;  %v6779_v11 = vxor.u32 2147483648, %v10117_v7 }
 0x821   : > { %v5935_v50 = vsel %vm15098_vm1, %v17328_v39, %v5932_v62  ;;  %v6677_v26 = vsel %vm6670_vm13, %v6673_v47, %v6676_v28  ;;  %v15109_v60 = vpop.eup %10120  ;;  %vm17347_vm11 = vcmask 261120   ;;  %v6776_v15 = vxor.u32 2147483648, %v10119_v48  ;;  %v15122_v62 = vld [vmem:[%s16700_s3 + $0x48] sm:$0xff]  ;;  %v15171_v47 = vld [vmem:[%s16700_s3 + $0x58] sm:$0xff] }
 0x822   : > { %9312 = vmatmul.mubr.msk.f32.vlgmr.msra.gmra.mxu0 %vm17347_vm11, %v15094_v21  ;;  %v6248_v52 = vsel %vm14876_vm5, 0, %v6246_v45  ;;  %v5934_v29 = vsel %vm5849_vm9, %v5933_v0, %v14583_v1  ;;  %10126 = vcosq.f32 %v5935_v50  ;;  %v17348_v63 = vmov 0.0   ;;  %vm17351_vm9 = vmmov %vm17347_vm11 }
 0x823   : > { %6895 = vmatprep.mubr.f32.mxu0 %v17348_v63  ;;  %v6780_v6 = vsel %vm6778_vm7, %v6779_v11, %v10119_v48  ;;  %v6357_v30 = vand.u32 3, %v6356_v19  ;;  %v6252_v25 = vadd.s32 3, %v6248_v52  ;;  %10128 = vsinq.f32 %v5935_v50  ;;  %v17361_v52 = vld [vmem:[#allocation27_spill] sm:$0xff] }
 0x824   : > { %v6777_v23 = vsel %vm6775_vm10, %v10117_v7, %v6776_v15  ;;  %v6256_v41 = vxor.u32 2147483648, %v15081_v34  ;;  %v6259_v42 = vxor.u32 2147483648, %v15075_v18  ;;  %v5829_v1 = vsub.s32 4, %v17349_v3 }
 0x825   : > { %v6781_v35 = vsel %vm6774_vm3, %v6777_v23, %v6780_v6  ;;  %vm6667_vm5 = vweird.f32 %v14627_v20  ;;  %v6253_v9 = vand.u32 3, %v6252_v25  ;;  %v5936_v37 = vsel %vm15098_vm1, 0, %v5934_v29 }
 0x826   : > { %v17350_v57 = vxor.u32 2147483648, %v14667_v5  ;;  %9313 = vmatmul.mubr.msk.f32.gmra.mxu0 %vm17351_vm9, %v15122_v62  ;;  %v6782_v44 = vsel %vm6771_vm4, nan, %v6781_v35  ;;  %v6678_v46 = vsel %vm6667_vm5, nan, %v6677_v26  ;;  %vm17352_vm2 = vcmp.lt.s32.totalorder %v14279_v27, 0 }
 0x827   : > { %v5830_v20 = vsel %vm17352_vm2, %v5829_v1, %v17349_v3  ;;  %6901 = vmatprep.mubr.f32.mxu0 %v17348_v63  ;;  %6938 = vmatprep.subr.mxu1 %v6782_v44  ;;  %vm6359_vm14 = vcmp.eq.s32.totalorder %v6357_v30, 0  ;;  %vm6255_vm15 = vcmp.eq.s32.totalorder %v6253_v9, 0  ;;  %vm6258_vm3 = vcmp.eq.s32.totalorder %v6253_v9, 2  ;;  %v17365_v44 = vld [vmem:[#allocation10_spill] sm:$0xff] }
 0x828   : > { %v5516_v8 = vsel %vm5433_vm6, %v17350_v57, %v14667_v5  ;;  %v5832_v31 = vsel %vm14635_vm0, 0, %v5830_v20  ;;  %6939 = vmatpush1.msra.mxu1 %v6678_v46  ;;  %vm6362_vm4 = vcmp.eq.s32.totalorder %v6357_v30, 2  ;;  %v6257_v53 = vsel %vm6255_vm15, %v15075_v18, %v6256_v41  ;;  %v10123_v12 = vpop.eup %10122  ;;  %vm17358_vm0 = vmmov %vm17351_vm9 }
 0x829   : > { %v6260_v13 = vsel %vm6258_vm3, %v6259_v42, %v15081_v34  ;;  %v5940_v51 = vadd.s32 3, %v5936_v37  ;;  %vm6254_vm1 = vcmp.lt.s32.totalorder %v6253_v9, 2  ;;  %v5836_v58 = vadd.s32 3, %v5832_v31  ;;  %v10125_v49 = vpop.eup %10124  ;;  %vm17360_vm7 = vmmov %vm17358_vm0 }
 0x82a   : > { %v17354_v54 = vand.u32 2147483647, %v17342_v22  ;;  %v5517_v4 = vsub.s32 4, %v17357_v32  ;;  %9314 = vmatmul.mubr.msk.f32.gmra.mxu0 %vm17358_vm0, %v15148_v24  ;;  %v6363_v40 = vxor.u32 2147483648, %v10123_v12  ;;  %v6261_v18 = vsel %vm6254_vm1, %v6257_v53, %v6260_v13 }
 0x82b   : > { %v5840_v34 = vxor.u32 2147483648, %v15109_v60  ;;  %6907 = vmatprep.mubr.f32.mxu0 %v17348_v63  ;;  %v6360_v28 = vxor.u32 2147483648, %v10125_v49  ;;  %v5837_v43 = vand.u32 3, %v5836_v58  ;;  %v5843_v36 = vxor.u32 2147483648, %v14839_v16 }
 0x82c   : > { %vm15156_vm13 = vcmp.le.f32.partialorder %v17354_v54, 0.7853982  ;;  %v5518_v33 = vsel %vm5433_vm6, %v5517_v4, %v17357_v32  ;;  %v6364_v19 = vsel %vm6362_vm4, %v6363_v40, %v10125_v49  ;;  %v5413_v7 = vsub.s32 4, %v17359_v38  ;;  %v15215_v49 = vpop.permute.xlu0 %6810 }
 0x82d   : > { %v5519_v55 = vsel %vm15156_vm13, %v17342_v22, %v5516_v8  ;;  %vm6358_vm12 = vcmp.lt.s32.totalorder %v6357_v30, 2  ;;  %v6361_v45 = vsel %vm6359_vm14, %v10123_v12, %v6360_v28  ;;  %vm6251_vm10 = vweird.f32 %v14469_v59 }
 0x82e   : > { %10130 = vcosq.f32 %v5519_v55  ;;  %v5941_v0 = vand.u32 3, %v5940_v51  ;;  %9315 = vmatmul.mubr.msk.f32.gmra.mxu0 %vm17360_vm7, %v15171_v47  ;;  %vm6355_vm11 = vweird.f32 %v14554_v61  ;;  %v6365_v50 = vsel %vm6358_vm12, %v6361_v45, %v6364_v19 }
 0x82f   : > { %10132 = vsinq.f32 %v5519_v55  ;;  %v6262_v48 = vsel %vm6251_vm10, nan, %v6261_v18  ;;  %v5520_v11 = vsel %vm15156_vm13, 0, %v5518_v33  ;;  %v10127_v26 = vpop.eup %10126  ;;  %v6366_v15 = vsel %vm6355_vm11, nan, %v6365_v50  ;;  %8745 = vmatprep.mubr.f32.mxu0 %v17348_v63 }
 0x830   : > { %vm5839_vm6 = vcmp.eq.s32.totalorder %v5837_v43, 0  ;;  %vm5842_vm5 = vcmp.eq.s32.totalorder %v5837_v43, 2  ;;  %vm17362_vm9 = vcmp.lt.s32.totalorder %v17361_v52, 0  ;;  %v10129_v59 = vpop.eup %10128  ;;  %6940 = vmatprep.subr.mxu1 %v6366_v15  ;;  %v5947_v6 = vxor.u32 2147483648, %v10127_v26 }
 0x831   : > { %v5414_v29 = vsel %vm17362_vm9, %v5413_v7, %v17359_v38  ;;  %v5841_v61 = vsel %vm5839_vm6, %v14839_v16, %v5840_v34  ;;  %v5844_v30 = vsel %vm5842_vm5, %v5843_v36, %v15109_v60  ;;  %6941 = vmatpush1.msra.mxu1 %v6262_v48  ;;  %v5944_v41 = vxor.u32 2147483648, %v10129_v59  ;;  %v17364_v60 = vld [vmem:[#allocation25_spill] sm:$0xff] }
 0x832   : > { %v5416_v23 = vsel %vm14590_vm8, 0, %v5414_v29  ;;  %vm5946_vm2 = vcmp.eq.s32.totalorder %v5941_v0, 2  ;;  %vm5943_vm14 = vcmp.eq.s32.totalorder %v5941_v0, 0  ;;  %vm5838_vm15 = vcmp.lt.s32.totalorder %v5837_v43, 2 }
 0x833   : > { %v5420_v42 = vadd.s32 3, %v5416_v23  ;;  %v5948_v3 = vsel %vm5946_vm2, %v5947_v6, %v10129_v59  ;;  %v5524_v1 = vadd.s32 3, %v5520_v11  ;;  %vm5942_vm3 = vcmp.lt.s32.totalorder %v5941_v0, 2 }
 0x834   : > { %v5945_v35 = vsel %vm5943_vm14, %v10127_v26, %v5944_v41  ;;  %v5845_v9 = vsel %vm5838_vm15, %v5841_v61, %v5844_v30  ;;  %vm5939_vm4 = vweird.f32 %v17328_v39  ;;  %vm5835_vm1 = vweird.f32 %v14279_v27 }
 0x835   : > { %v5949_v37 = vsel %vm5942_vm3, %v5945_v35, %v5948_v3  ;;  %v5421_v16 = vand.u32 3, %v5420_v42  ;;  %v5424_v8 = vxor.u32 2147483648, %v17364_v60  ;;  %v5427_v46 = vxor.u32 2147483648, %v17365_v44 }
 0x836   : > { %v5950_v57 = vsel %vm5939_vm4, nan, %v5949_v37  ;;  %v5846_v20 = vsel %vm5835_vm1, nan, %v5845_v9  ;;  %v5525_v5 = vand.u32 3, %v5524_v1  ;;  %vm5523_vm11 = vweird.f32 %v17342_v22  ;;  %v15213_v22 = vpop.permute.xlu1 %6805 }
 0x837   : > { %6942 = vmatprep.subr.mxu1 %v5950_v57  ;;  %vm5423_vm8 = vcmp.eq.s32.totalorder %v5421_v16, 0  ;;  %vm5426_vm13 = vcmp.eq.s32.totalorder %v5421_v16, 2  ;;  %vm5422_vm10 = vcmp.lt.s32.totalorder %v5421_v16, 2  ;;  %vm5419_vm6 = vweird.f32 %v17361_v52 }
 0x838   : > { %6943 = vmatpush1.msra.mxu1 %v5846_v20  ;;  %v5425_v39 = vsel %vm5423_vm8, %v17365_v44, %v5424_v8  ;;  %v5428_v51 = vsel %vm5426_vm13, %v5427_v46, %v17364_v60  ;;  %vm5530_vm0 = vcmp.eq.s32.totalorder %v5525_v5, 2  ;;  %vm5527_vm12 = vcmp.eq.s32.totalorder %v5525_v5, 0 }
 0x839   : > { %vm5526_vm7 = vcmp.lt.s32.totalorder %v5525_v5, 2  ;;  %v5429_v54 = vsel %vm5422_vm10, %v5425_v39, %v5428_v51  ;;  %vm17366_vm5 = vcmask 261120   ;;  %v17373_v57 = vmov 2102212464  }
 0x83a   : > { %v5430_v4 = vsel %vm5419_vm6, nan, %v5429_v54  ;;  %vm17367_vm9 = vmmov %vm17366_vm5 }
 0x83b   : > { %v10131_v31 = vpop.eup %10130  ;;  %vm17368_vm2 = vmmov %vm17366_vm5 }
 0x83c   : > { %v10133_v53 = vpop.eup %10132  ;;  %v5531_v13 = vxor.u32 2147483648, %v10131_v31  ;;  %vm17369_vm14 = vmmov %vm17368_vm2 }
 0x83d   : > { %v5528_v12 = vxor.u32 2147483648, %v10133_v53 }
 0x83e   : > { %v5532_v27 = vsel %vm5530_vm0, %v5531_v13, %v10133_v53  ;;  %v17374_v53 = vmov 1326507024  }
 0x83f   : > { %v5529_v58 = vsel %vm5527_vm12, %v10131_v31, %v5528_v12 }
 0x840   : > { %v5533_v56 = vsel %vm5526_vm7, %v5529_v58, %v5532_v27 }
 0x841   : > { %v5534_v32 = vsel %vm5523_vm11, nan, %v5533_v56 }
 0x842   : > { %6944 = vmatprep.subr.mxu1 %v5534_v32 }
 0x843   : > { %6945 = vmatpush1.msra.mxu1 %v5430_v4 }
 0x844   : > { %9316 = vmatmul.mubr.msk.f32.vlgmr.msra.gmra.mxu1 %vm17366_vm5, %v15094_v21  ;;  %v15217_v21 = vpop.permute.xlu1 %6795 }
 0x845   : > { %6984 = vmatprep.mubr.f32.mxu1 %v17348_v63 }
 0x848   : > { %9317 = vmatmul.mubr.msk.f32.gmra.mxu1 %vm17367_vm9, %v15122_v62 }
 0x849   : > { %6990 = vmatprep.mubr.f32.mxu1 %v17348_v63 }
 0x84c   : > { %9318 = vmatmul.mubr.msk.f32.gmra.mxu1 %vm17368_vm2, %v15148_v24 }
 0x84d   : > { %6996 = vmatprep.mubr.f32.mxu1 %v17348_v63 }
 0x850   : > { %9319 = vmatmul.mubr.msk.f32.gmra.mxu1 %vm17369_vm14, %v15171_v47  ;;  %v15227_v47 = vpop.permute.xlu0 %6800 }
 0x8e2   : > { %v6891_v40 = vpop.f32.mrf.mxu0 }
 0x8e3   : > { %v15220_v18 = vadd.f32 %v6891_v40, %v15217_v21 }
 0x8e4   : > { %v6893_v62 = vpop.f32.mrf.mxu0 }
 0x8e5   : > { %17370 = vst [vmem:[#allocation31_spill] sm:$0xff] %v15220_v18  ;;  %v7003_v34 = vand.u32 2147483647, %v15220_v18  ;;  %v7006_v24 = vand.u32 2139095040, %v15220_v18  ;;  %v15225_v55 = vadd.f32 %v6893_v62, %v15217_v21 }
 0x8e6   : > { %v6897_v28 = vpop.f32.mrf.mxu0 }
 0x8e7   : > { %17371 = vst [vmem:[#allocation16_spill] sm:$0xff] %v15225_v55  ;;  %v7007_v43 = vshrl.u32 %v7006_v24, 23  ;;  %v7010_v33 = vand.u32 8388607, %v7003_v34  ;;  %v16898_v19 = vand.u32 2147483647, %v15225_v55  ;;  %v15234_v38 = vadd.f32 %v6897_v28, %v15227_v47 }
 0x8e8   : > { %v7110_v36 = vand.u32 2139095040, %v15225_v55  ;;  %v6899_v45 = vpop.f32.mrf.mxu0 }
 0x8e9   : > { %17372 = vst [vmem:[#allocation11_spill] sm:$0xff] %v15234_v38  ;;  %v9320_v7 = vadd.s32 4294967169, %v7007_v43  ;;  %v7114_v50 = vand.u32 8388607, %v16898_v19  ;;  %v7422_v11 = vand.u32 2139095040, %v15234_v38  ;;  %v7011_v26 = vor.u32 8388608, %v7010_v33 }
 0x8ea   : > { %v7111_v0 = vshrl.u32 %v7110_v36, 23  ;;  %v15240_v29 = vadd.f32 %v6899_v45, %v15227_v47  ;;  %v7419_v23 = vand.u32 2147483647, %v15234_v38 }
 0x8eb   : > { %v7013_v48 = vadd.s32 1, %v9320_v7  ;;  %v7115_v52 = vor.u32 8388608, %v7114_v50  ;;  %v7423_v59 = vshrl.u32 %v7422_v11, 23  ;;  %v15243_v41 = vshll.u32 %v7011_v26, 8 }
 0x8ec   : > { %v9324_v15 = vadd.s32 4294967169, %v7111_v0  ;;  %v7526_v1 = vand.u32 2139095040, %v15240_v29 }
 0x8ed   : > { %vm7014_vm15 = vcmp.gt.s32.totalorder %v7013_v48, 0  ;;  %v15245_v42 = vshll.u32 %v7115_v52, 8  ;;  %v15247_v3 = vadd.s32 4294967169, %v7423_v59 }
 0x8ee   : > { %v7015_v6 = vsel %vm7014_vm15, %v7013_v48, 0  ;;  %v7117_v61 = vadd.s32 1, %v9324_v15 }
 0x8ef   : > { %v7016_v30 = vshrl.u32 %v7015_v6, 5  ;;  %v7017_v25 = vand.u32 31, %v7015_v6 }
 0x8f0   : > { %vm7118_vm3 = vcmp.gt.s32.totalorder %v7117_v61, 0 }
 0x8f1   : > { %v7018_v35 = vsub.s32 32, %v7017_v25  ;;  %v7020_v9 = vshll.u32 %v16981_v17, %v7017_v25  ;;  %v7023_v37 = vshll.u32 %v16975_v14, %v7017_v25  ;;  %v7026_v16 = vshll.u32 %v16976_v10, %v7017_v25 }
 0x8f2   : > { %v7029_v60 = vshll.u32 %v17373_v57, %v7017_v25  ;;  %v7032_v8 = vshll.u32 %v16998_v2, %v7017_v25  ;;  %vm7035_vm4 = vcmp.lt.s32.totalorder %v7016_v30, 1  ;;  %vm7036_vm1 = vcmp.lt.s32.totalorder %v7016_v30, 2 }
 0x8f3   : > { %v7021_v44 = vshrl.u32 %v16975_v14, %v7018_v35  ;;  %v7024_v46 = vshrl.u32 %v16976_v10, %v7018_v35  ;;  %v7027_v20 = vshrl.u32 %v17373_v57, %v7018_v35  ;;  %v7019_v5 = vshrl.u32 %v16981_v17, %v7018_v35 }
 0x8f4   : > { %v7030_v31 = vshrl.u32 %v16998_v2, %v7018_v35  ;;  %v7033_v13 = vshrl.u32 %v17374_v53, %v7018_v35  ;;  %vm7037_vm8 = vcmp.lt.s32.totalorder %v7016_v30, 3  ;;  %v7119_v27 = vsel %vm7118_vm3, %v7117_v61, 0 }
 0x8f5   : > { %v7022_v39 = vor.u32 %v7021_v44, %v7020_v9  ;;  %v7025_v51 = vor.u32 %v7024_v46, %v7023_v37  ;;  %v7028_v12 = vor.u32 %v7027_v20, %v7026_v16  ;;  %vm7038_vm13 = vcmp.lt.s32.totalorder %v7016_v30, 4 }
 0x8f6   : > { %v7031_v58 = vor.u32 %v7030_v31, %v7029_v60  ;;  %v7034_v54 = vor.u32 %v7033_v13, %v7032_v8  ;;  %v7121_v56 = vand.u32 31, %v7119_v27  ;;  %v7120_v0 = vshrl.u32 %v7119_v27, 5 }
 0x8f7   : > { %v7039_v32 = vsel %vm7035_vm4, %v7019_v5, %v7022_v39  ;;  %v7040_v4 = vsel %vm7038_vm13, %v7028_v12, 2102212464  ;;  %v7043_v40 = vsel %vm7035_vm4, %v7022_v39, %v7025_v51  ;;  %v7047_v62 = vsel %vm7035_vm4, %v7025_v51, %v7028_v12 }
 0x8f8   : > { %v7041_v24 = vsel %vm7037_vm8, %v7025_v51, %v7040_v4  ;;  %v7044_v28 = vsel %vm7038_vm13, %v7031_v58, 920167782  ;;  %v7048_v43 = vsel %vm7038_vm13, %v7034_v54, 1326507024  ;;  %v7122_v33 = vsub.s32 32, %v7121_v56 }
 0x8f9   : > { %v7042_v36 = vsel %vm7036_vm1, %v7039_v32, %v7041_v24  ;;  %v7045_v7 = vsel %vm7037_vm8, %v7028_v12, %v7044_v28  ;;  %v7049_v45 = vsel %vm7037_vm8, %v7031_v58, %v7048_v43  ;;  %v7124_v26 = vshll.u32 %v16981_v17, %v7121_v56 }
 0x8fa   : > { %v7046_v50 = vsel %vm7036_vm1, %v7043_v40, %v7045_v7  ;;  %v7050_v48 = vsel %vm7036_vm1, %v7047_v62, %v7049_v45  ;;  %v7058_v11 = vmul.u32 %v15243_v41, %v7042_v36  ;;  %v7123_v61 = vshrl.u32 %v16981_v17, %v7122_v33 }
 0x8fb   : > { %v15274_v15 = vmul.u32.u64.low %v15243_v41, %v7050_v48  ;;  %v15275_v52 = vmul.u32.u64.high %v15243_v41, %v7050_v48, %v15274_v15  ;;  %v15278_v59 = vmul.u32.u64.low %v15243_v41, %v7046_v50  ;;  %v15279_v6 = vmul.u32.u64.high %v15243_v41, %v7046_v50, %v15278_v59 }
 0x8fc   : > { %v7125_v25 = vshrl.u32 %v16975_v14, %v7122_v33  ;;  %v7127_v30 = vshll.u32 %v16975_v14, %v7121_v56  ;;  %v7128_v35 = vshrl.u32 %v16976_v10, %v7122_v33  ;;  %v7130_v9 = vshll.u32 %v16976_v10, %v7121_v56 }
 0x8fd   : > { %v7131_v37 = vshrl.u32 %v17373_v57, %v7122_v33  ;;  %v7133_v16 = vshll.u32 %v17373_v57, %v7121_v56  ;;  %v7134_v60 = vshrl.u32 %v16998_v2, %v7122_v33  ;;  %v7136_v44 = vshll.u32 %v16998_v2, %v7121_v56 }
 0x8fe   : > { %v7126_v8 = vor.u32 %v7125_v25, %v7124_v26  ;;  %v7129_v41 = vor.u32 %v7128_v35, %v7127_v30  ;;  %v7137_v46 = vshrl.u32 %v17374_v53, %v7122_v33  ;;  %vm7060_vm0 = vc.u32 %v15275_v52, %v15278_v59 }
 0x8ff   : > { %v7061_v20 = vadd.s32 1, %v15279_v6  ;;  %v7132_v5 = vor.u32 %v7131_v37, %v7130_v9  ;;  %vm7139_vm12 = vcmp.lt.s32.totalorder %v7120_v0, 1  ;;  %v7135_v31 = vor.u32 %v7134_v60, %v7133_v16 }
 0x900   : > { %v7138_v13 = vor.u32 %v7137_v46, %v7136_v44  ;;  %vm7140_vm10 = vcmp.lt.s32.totalorder %v7120_v0, 2  ;;  %vm7141_vm7 = vcmp.lt.s32.totalorder %v7120_v0, 3  ;;  %vm7142_vm11 = vcmp.lt.s32.totalorder %v7120_v0, 4 }
 0x901   : > { %v7062_v39 = vsel %vm7060_vm0, %v7061_v20, %v15279_v6  ;;  %v7143_v51 = vsel %vm7139_vm12, %v7123_v61, %v7126_v8  ;;  %v7147_v12 = vsel %vm7139_vm12, %v7126_v8, %v7129_v41  ;;  %v7144_v58 = vsel %vm7142_vm11, %v7132_v5, 2102212464 }
 0x902   : > { %v7063_v27 = vadd.s32 %v7062_v39, %v7058_v11  ;;  %v7148_v54 = vsel %vm7142_vm11, %v7135_v31, 920167782  ;;  %v7151_v56 = vsel %vm7139_vm12, %v7129_v41, %v7132_v5  ;;  %v7145_v32 = vsel %vm7141_vm7, %v7129_v41, %v7144_v58 }
 0x903   : > { %v7149_v4 = vsel %vm7141_vm7, %v7132_v5, %v7148_v54  ;;  %v7152_v40 = vsel %vm7142_vm11, %v7138_v13, 1326507024  ;;  %v7429_v62 = vadd.s32 1, %v15247_v3  ;;  %v7527_v33 = vshrl.u32 %v7526_v1, 23 }
 0x904   : > { %v7064_v24 = vadd.s32 536870912, %v7063_v27  ;;  %v7150_v28 = vsel %vm7140_vm10, %v7147_v12, %v7149_v4  ;;  %v7153_v43 = vsel %vm7141_vm7, %v7135_v31, %v7152_v40  ;;  %v7146_v36 = vsel %vm7140_vm10, %v7143_v51, %v7145_v32 }
 0x905   : > { %v7154_v7 = vsel %vm7140_vm10, %v7151_v56, %v7153_v43  ;;  %v15303_v45 = vmul.u32.u64.low %v15245_v42, %v7150_v28  ;;  %v15304_v50 = vmul.u32.u64.high %v15245_v42, %v7150_v28, %v15303_v45  ;;  %vm7430_vm6 = vcmp.gt.s32.totalorder %v7429_v62, 0 }
 0x906   : > { %v15307_v48 = vshrl.u32 %v7064_v24, 30  ;;  %v15310_v3 = vmul.u32.u64.low %v15245_v42, %v7154_v7  ;;  %v15311_v11 = vmul.u32.u64.high %v15245_v42, %v7154_v7, %v15310_v3  ;;  %v7431_v26 = vsel %vm7430_vm6, %v7429_v62, 0 }
 0x907   : > { %v7433_v1 = vand.u32 31, %v7431_v26  ;;  %v7162_v6 = vmul.u32 %v15245_v42, %v7146_v36  ;;  %v7165_v0 = vadd.s32 1, %v15304_v50  ;;  %v7426_v61 = vand.u32 8388607, %v7419_v23 }
 0x908   : > { %17375 = vst [vmem:[#allocation24_spill] sm:$0xff] %v15307_v48  ;;  %v7066_v15 = vshll.u32 %v15307_v48, 30  ;;  %v16899_v25 = vand.u32 2147483647, %v15240_v29  ;;  %vm7164_vm5 = vc.u32 %v15311_v11, %v15303_v45  ;;  %v9340_v9 = vadd.s32 4294967169, %v7527_v33 }
 0x909   : > { %v7434_v35 = vsub.s32 32, %v7433_v1  ;;  %v7166_v37 = vsel %vm7164_vm5, %v7165_v0, %v15304_v50  ;;  %v7432_v16 = vshrl.u32 %v7431_v26, 5  ;;  %v7436_v60 = vshll.u32 %v16981_v17, %v7433_v1 }
 0x90a   : > { %v15319_v30 = vsub.s32 %v7063_v27, %v7066_v15  ;;  %v7439_v42 = vshll.u32 %v16975_v14, %v7433_v1  ;;  %v7167_v41 = vadd.s32 %v7166_v37, %v7162_v6  ;;  %v7442_v46 = vshll.u32 %v16976_v10, %v7433_v1 }
 0x90b   : > { %v7437_v44 = vshrl.u32 %v16975_v14, %v7434_v35  ;;  %v7440_v20 = vshrl.u32 %v16976_v10, %v7434_v35  ;;  %v7443_v5 = vshrl.u32 %v17373_v57, %v7434_v35  ;;  %v7445_v31 = vshll.u32 %v17373_v57, %v7433_v1 }
 0x90c   : > { %v7069_v8 = vsub.s32 0, %v15319_v30  ;;  %v7446_v13 = vshrl.u32 %v16998_v2, %v7434_v35  ;;  %v7168_v51 = vadd.s32 536870912, %v7167_v41  ;;  %v7448_v27 = vshll.u32 %v16998_v2, %v7433_v1 }
 0x90d   : > { %v7438_v12 = vor.u32 %v7437_v44, %v7436_v60  ;;  %v7441_v58 = vor.u32 %v7440_v20, %v7439_v42  ;;  %v7444_v54 = vor.u32 %v7443_v5, %v7442_v46  ;;  %v7449_v32 = vshrl.u32 %v17374_v53, %v7434_v35 }
 0x90e   : > { %v9321_v39 = vmin.u32 %v7069_v8, %v15319_v30  ;;  %v7447_v56 = vor.u32 %v7446_v13, %v7445_v31  ;;  %v15336_v40 = vshrl.u32 %v7168_v51, 30  ;;  %v7427_v62 = vor.u32 8388608, %v7426_v61 }
 0x90f   : > { %v7533_v24 = vadd.s32 1, %v9340_v9  ;;  %v7450_v28 = vor.u32 %v7449_v32, %v7448_v27  ;;  %vm7451_vm9 = vcmp.lt.s32.totalorder %v7432_v16, 1  ;;  %vm7452_vm2 = vcmp.lt.s32.totalorder %v7432_v16, 2  ;;  %v6903_v32 = vpop.f32.mrf.mxu0 }
 0x910   : > { %v7071_v4 = vclz %v9321_v39  ;;  %17376 = vst [vmem:[#allocation21_spill] sm:$0xff] %v15336_v40  ;;  %vm7453_vm14 = vcmp.lt.s32.totalorder %v7432_v16, 3  ;;  %v7170_v33 = vshll.u32 %v15336_v40, 30  ;;  %vm7454_vm15 = vcmp.lt.s32.totalorder %v7432_v16, 4 }
 0x911   : > { %v7459_v36 = vsel %vm7451_vm9, %v7438_v12, %v7441_v58  ;;  %v7435_v7 = vshrl.u32 %v16981_v17, %v7434_v35  ;;  %v7456_v50 = vsel %vm7454_vm15, %v7444_v54, 2102212464  ;;  %v7460_v3 = vsel %vm7454_vm15, %v7447_v56, 920167782 }
 0x912   : > { %v9322_v43 = vadd.s32 4294967294, %v7071_v4  ;;  %v7464_v26 = vsel %vm7454_vm15, %v7450_v28, 1326507024  ;;  %v15341_v15 = vsub.s32 %v7167_v41, %v7170_v33  ;;  %v7461_v1 = vsel %vm7453_vm14, %v7444_v54, %v7460_v3 }
 0x913   : > { %v7463_v6 = vsel %vm7451_vm9, %v7441_v58, %v7444_v54  ;;  %v7462_v61 = vsel %vm7452_vm2, %v7459_v36, %v7461_v1  ;;  %v7465_v9 = vsel %vm7453_vm14, %v7447_v56, %v7464_v26  ;;  %v7467_v37 = vshll.u32 %v7427_v62, 8 }
 0x914   : > { %vm9323_vm3 = vcmp.lt.s32.totalorder %v9322_v43, 0  ;;  %v7173_v42 = vsub.s32 0, %v15341_v15  ;;  %v7455_v35 = vsel %vm7451_vm9, %v7435_v7, %v7438_v12  ;;  %v7457_v8 = vsel %vm7453_vm14, %v7441_v58, %v7456_v50 }
 0x915   : > { %v7074_v0 = vsel %vm9323_vm3, 0, %v9322_v43  ;;  %v7466_v41 = vsel %vm7452_vm2, %v7463_v6, %v7465_v9  ;;  %v15351_v44 = vmul.u32.u64.low %v7467_v37, %v7462_v61  ;;  %v15352_v46 = vmul.u32.u64.high %v7467_v37, %v7462_v61, %v15351_v44 }
 0x916   : > { %v7079_v60 = vsub.s32 4294967266, %v7074_v0  ;;  %vm7534_vm4 = vcmp.gt.s32.totalorder %v7533_v24, 0  ;;  %v9325_v20 = vmin.u32 %v7173_v42, %v15341_v15  ;;  %v7458_v12 = vsel %vm7452_vm2, %v7455_v35, %v7457_v8 }
 0x917   : > { %v7535_v5 = vsel %vm7534_vm4, %v7533_v24, 0  ;;  %v15356_v31 = vmul.u32.u64.low %v7467_v37, %v7466_v41  ;;  %v15357_v13 = vmul.u32.u64.high %v7467_v37, %v7466_v41, %v15356_v31  ;;  %v7477_v58 = vadd.s32 1, %v15352_v46 }
 0x918   : > { %v7537_v39 = vand.u32 31, %v7535_v5  ;;  %v7080_v51 = vadd.s32 127, %v7079_v60  ;;  %v7175_v27 = vclz %v9325_v20  ;;  %v7530_v54 = vand.u32 8388607, %v16899_v25 }
 0x919   : > { %v7075_v4 = vsub.s32 32, %v7074_v0  ;;  %v7474_v28 = vmul.u32 %v7467_v37, %v7458_v12  ;;  %vm7476_vm1 = vc.u32 %v15357_v13, %v15351_v44  ;;  %v7059_v24 = vadd.s32 %v15278_v59, %v15275_v52 }
 0x91a   : > { %v7538_v56 = vsub.s32 32, %v7537_v39  ;;  %v9326_v62 = vadd.s32 4294967294, %v7175_v27  ;;  %v7081_v43 = vshll.u32 %v7080_v51, 23  ;;  %v7478_v16 = vsel %vm7476_vm1, %v7477_v58, %v15352_v46 }
 0x91b   : > { %v15369_v33 = vadd.f32 %v6903_v32, %v15213_v22  ;;  %v7076_v36 = vshll.u32 %v15319_v30, %v7074_v0  ;;  %v7479_v7 = vadd.s32 %v7478_v16, %v7474_v28  ;;  %v7531_v50 = vor.u32 8388608, %v7530_v54 }
 0x91c   : > { %v7541_v3 = vshrl.u32 %v16975_v14, %v7538_v56  ;;  %v7077_v26 = vshrl.u32 %v7059_v24, %v7075_v4  ;;  %vm9327_vm8 = vcmp.lt.s32.totalorder %v9326_v62, 0  ;;  %v7544_v1 = vshrl.u32 %v16976_v10, %v7538_v56 }
 0x91d   : > { %v7547_v6 = vshrl.u32 %v17373_v57, %v7538_v56  ;;  %v7480_v61 = vadd.s32 536870912, %v7479_v7  ;;  %v7536_v52 = vshrl.u32 %v7535_v5, 5  ;;  %v7540_v59 = vshll.u32 %v16981_v17, %v7537_v39 }
 0x91e   : > { %v7543_v9 = vshll.u32 %v16975_v14, %v7537_v39  ;;  %v7082_v37 = vor.u32 4788187, %v7081_v43  ;;  %v7546_v60 = vshll.u32 %v16976_v10, %v7537_v39  ;;  %v7549_v30 = vshll.u32 %v17373_v57, %v7537_v39 }
 0x91f   : > { %v7550_v0 = vshrl.u32 %v16998_v2, %v7538_v56  ;;  %v15380_v42 = vsel %vm9327_vm8, 0, %v9326_v62  ;;  %v15382_v35 = vshrl.u32 %v7480_v61, 30  ;;  %v7542_v8 = vor.u32 %v7541_v3, %v7540_v59 }
 0x920   : > { %v7553_v41 = vshrl.u32 %v17374_v53, %v7538_v56  ;;  %v7545_v46 = vor.u32 %v7544_v1, %v7543_v9  ;;  %v7548_v20 = vor.u32 %v7547_v6, %v7546_v60  ;;  %v7552_v31 = vshll.u32 %v16998_v2, %v7537_v39  ;;  %v6905_v9 = vpop.f32.mrf.mxu0 }
 0x921   : > { %17377 = vst [vmem:[#allocation20_spill] sm:$0xff] %v15382_v35  ;;  %v7551_v5 = vor.u32 %v7550_v0, %v7549_v30  ;;  %v7078_v51 = vor.u32 %v7077_v26, %v7076_v36  ;;  %v7482_v27 = vshll.u32 %v15382_v35, 30  ;;  %v7571_v12 = vshll.u32 %v7531_v50, 8 }
 0x922   : > { %v7083_v58 = vand.u32 2147483647, %v7082_v37  ;;  %v7539_v54 = vshrl.u32 %v16981_v17, %v7538_v56  ;;  %v7554_v32 = vor.u32 %v7553_v41, %v7552_v31  ;;  %v7838_v4 = vand.u32 2139095040, %v15369_v33 }
 0x923   : > { %v7183_v62 = vsub.s32 4294967266, %v15380_v42  ;;  %v15390_v28 = vsub.s32 %v7479_v7, %v7482_v27  ;;  %vm7555_vm13 = vcmp.lt.s32.totalorder %v7536_v52, 1  ;;  %vm7558_vm0 = vcmp.lt.s32.totalorder %v7536_v52, 4 }
 0x924   : > { %vm7557_vm12 = vcmp.lt.s32.totalorder %v7536_v52, 3  ;;  %v7560_v24 = vsel %vm7558_vm0, %v7548_v20, 2102212464  ;;  %v7563_v43 = vsel %vm7555_vm13, %v7542_v8, %v7545_v46  ;;  %v7564_v39 = vsel %vm7558_vm0, %v7551_v5, 920167782 }
 0x925   : > { %v7485_v16 = vsub.s32 0, %v15390_v28  ;;  %vm7556_vm10 = vcmp.lt.s32.totalorder %v7536_v52, 2  ;;  %v7565_v36 = vsel %vm7557_vm12, %v7548_v20, %v7564_v39  ;;  %v7567_v50 = vsel %vm7555_vm13, %v7545_v46, %v7548_v20 }
 0x926   : > { %v7559_v3 = vsel %vm7555_vm13, %v7539_v54, %v7542_v8  ;;  %v7561_v56 = vsel %vm7557_vm12, %v7545_v46, %v7560_v24  ;;  %v7566_v26 = vsel %vm7556_vm10, %v7563_v43, %v7565_v36  ;;  %v7568_v1 = vsel %vm7558_vm0, %v7554_v32, 1326507024 }
 0x927   : > { %v9337_v6 = vmin.u32 %v7485_v16, %v15390_v28  ;;  %v7569_v7 = vsel %vm7557_vm12, %v7551_v5, %v7568_v1  ;;  %v15395_v61 = vmul.u32.u64.low %v7571_v12, %v7566_v26  ;;  %v15396_v59 = vmul.u32.u64.high %v7571_v12, %v7566_v26, %v15395_v61 }
 0x928   : > { %v7085_v37 = vcvt.s32.f32 %v7078_v51  ;;  %v7570_v60 = vsel %vm7556_vm10, %v7567_v50, %v7569_v7  ;;  %v7839_v30 = vshrl.u32 %v7838_v4, 23  ;;  %v7562_v46 = vsel %vm7556_vm10, %v7559_v3, %v7561_v56 }
 0x929   : > { %v7487_v0 = vclz %v9337_v6  ;;  %v15400_v41 = vmul.u32.u64.low %v7571_v12, %v7570_v60  ;;  %v15401_v20 = vmul.u32.u64.high %v7571_v12, %v7570_v60, %v15400_v41  ;;  %v15405_v27 = vadd.f32 %v6905_v9, %v15213_v22 }
 0x92a   : > { %v7086_v8 = vmul.f32 %v7085_v37, %v7083_v58  ;;  %v9352_v31 = vadd.s32 4294967169, %v7839_v30  ;;  %v7179_v5 = vsub.s32 32, %v15380_v42  ;;  %v7184_v54 = vadd.s32 127, %v7183_v62 }
 0x92b   : > { %v9338_v32 = vadd.s32 4294967294, %v7487_v0  ;;  %v7581_v51 = vadd.s32 1, %v15396_v59  ;;  %v7942_v4 = vand.u32 2139095040, %v15405_v27  ;;  %v7163_v43 = vadd.s32 %v15303_v45, %v15311_v11 }
 0x92c   : > { %v7845_v24 = vadd.s32 1, %v9352_v31  ;;  %v7578_v58 = vmul.u32 %v7571_v12, %v7562_v46  ;;  %vm7580_vm11 = vc.u32 %v15401_v20, %v15395_v61  ;;  %v7087_v62 = vxor.u32 2147483648, %v7086_v8 }
 0x92d   : > { %vm9339_vm7 = vcmp.lt.s32.totalorder %v9338_v32, 0  ;;  %v7582_v39 = vsel %vm7580_vm11, %v7581_v51, %v15396_v59  ;;  %v7181_v16 = vshrl.u32 %v7163_v43, %v7179_v5  ;;  %v7185_v36 = vshll.u32 %v7184_v54, 23 }
 0x92e   : > { %v15414_v52 = vsel %vm9339_vm7, 0, %v9338_v32  ;;  %vm7846_vm6 = vcmp.gt.s32.totalorder %v7845_v24, 0  ;;  %v7583_v50 = vadd.s32 %v7582_v39, %v7578_v58  ;;  %v16903_v56 = vand.u32 2147483647, %v15369_v33 }
 0x92f   : > { %v7495_v3 = vsub.s32 4294967266, %v15414_v52  ;;  %v7847_v26 = vsel %vm7846_vm6, %v7845_v24, 0  ;;  %v7943_v45 = vshrl.u32 %v7942_v4, 23  ;;  %v7180_v11 = vshll.u32 %v15341_v15, %v15380_v42 }
 0x930   : > { %v7584_v12 = vadd.s32 536870912, %v7583_v50  ;;  %vm16940_vm5 = vcmp.lt.s32.totalorder %v15220_v18, 0  ;;  %v7475_v1 = vadd.s32 %v15351_v44, %v15357_v13  ;;  %v7849_v6 = vand.u32 31, %v7847_v26 }
 0x931   : > { %v15426_v7 = vsel %vm16940_vm5, %v7087_v62, %v7086_v8  ;;  %v15428_v59 = vor.u32 %v7181_v16, %v7180_v11  ;;  %v15430_v9 = vor.u32 4788187, %v7185_v36  ;;  %v7496_v60 = vadd.s32 127, %v7495_v3 }
 0x932   : > { %v15432_v37 = vshrl.u32 %v7584_v12, 30  ;;  %v7842_v15 = vand.u32 8388607, %v16903_v56  ;;  %v7850_v42 = vsub.s32 32, %v7849_v6  ;;  %v9356_v30 = vadd.s32 4294967169, %v7943_v45 }
 0x933   : > { %v7848_v44 = vshrl.u32 %v7847_v26, 5  ;;  %v7852_v13 = vshll.u32 %v16981_v17, %v7849_v6  ;;  %v7855_v41 = vshll.u32 %v16975_v14, %v7849_v6  ;;  %v7858_v31 = vshll.u32 %v16976_v10, %v7849_v6 }
 0x934   : > { %17378 = vst [vmem:[#allocation26_spill] sm:$0xff] %v15432_v37  ;;  %v7586_v0 = vshll.u32 %v15432_v37, 30  ;;  %v7853_v8 = vshrl.u32 %v16975_v14, %v7850_v42  ;;  %v7856_v46 = vshrl.u32 %v16976_v10, %v7850_v42  ;;  %v7859_v5 = vshrl.u32 %v17373_v57, %v7850_v42 }
 0x935   : > { %v7861_v32 = vshll.u32 %v17373_v57, %v7849_v6  ;;  %v7862_v51 = vshrl.u32 %v16998_v2, %v7850_v42  ;;  %v7864_v24 = vshll.u32 %v16998_v2, %v7849_v6  ;;  %v7865_v39 = vshrl.u32 %v17374_v53, %v7850_v42 }
 0x936   : > { %v15443_v54 = vsub.s32 %v7583_v50, %v7586_v0  ;;  %v7854_v4 = vor.u32 %v7853_v8, %v7852_v13  ;;  %v7857_v43 = vor.u32 %v7856_v46, %v7855_v41  ;;  %v7860_v58 = vor.u32 %v7859_v5, %v7858_v31 }
 0x937   : > { %v7843_v16 = vor.u32 8388608, %v7842_v15  ;;  %v7863_v36 = vor.u32 %v7862_v51, %v7861_v32  ;;  %v16900_v3 = vand.u32 2147483647, %v15405_v27  ;;  %v7491_v50 = vsub.s32 32, %v15414_v52 }
 0x938   : > { %v7589_v62 = vsub.s32 0, %v15443_v54  ;;  %v7866_v26 = vor.u32 %v7865_v39, %v7864_v24  ;;  %vm7867_vm9 = vcmp.lt.s32.totalorder %v7848_v44, 1  ;;  %v7949_v45 = vadd.s32 1, %v9356_v30 }
 0x939   : > { %v7497_v11 = vshll.u32 %v7496_v60, 23  ;;  %vm7869_vm2 = vcmp.lt.s32.totalorder %v7848_v44, 3  ;;  %vm7870_vm14 = vcmp.lt.s32.totalorder %v7848_v44, 4  ;;  %v7875_v12 = vsel %vm7867_vm9, %v7854_v4, %v7857_v43 }
 0x93a   : > { %v7872_v6 = vsel %vm7870_vm14, %v7860_v58, 2102212464  ;;  %v7876_v0 = vsel %vm7870_vm14, %v7863_v36, 920167782  ;;  %v7879_v13 = vsel %vm7867_vm9, %v7857_v43, %v7860_v58  ;;  %v7880_v41 = vsel %vm7870_vm14, %v7866_v26, 1326507024  ;;  %v6909_v26 = vpop.f32.mrf.mxu0 }
 0x93b   : > { %v9341_v15 = vmin.u32 %v7589_v62, %v15443_v54  ;;  %v7851_v8 = vshrl.u32 %v16981_v17, %v7850_v42  ;;  %vm7868_vm15 = vcmp.lt.s32.totalorder %v7848_v44, 2  ;;  %v7877_v46 = vsel %vm7869_vm2, %v7860_v58, %v7876_v0 }
 0x93c   : > { %v7878_v31 = vsel %vm7868_vm15, %v7875_v12, %v7877_v46  ;;  %v7881_v60 = vsel %vm7869_vm2, %v7863_v36, %v7880_v41  ;;  %v7883_v30 = vshll.u32 %v7843_v16, 8  ;;  %v7946_v5 = vand.u32 8388607, %v16900_v3 }
 0x93d   : > { %v7871_v32 = vsel %vm7867_vm9, %v7851_v8, %v7854_v4  ;;  %v7873_v51 = vsel %vm7869_vm2, %v7857_v43, %v7872_v6  ;;  %v7882_v24 = vsel %vm7868_vm15, %v7879_v13, %v7881_v60  ;;  %vm7950_vm3 = vcmp.gt.s32.totalorder %v7949_v45, 0 }
 0x93e   : > { %v7493_v39 = vshrl.u32 %v7475_v1, %v7491_v50  ;;  %v15464_v42 = vmul.u32.u64.low %v7883_v30, %v7882_v24  ;;  %v15465_v62 = vmul.u32.u64.high %v7883_v30, %v7882_v24, %v15464_v42  ;;  %v7951_v58 = vsel %vm7950_vm3, %v7949_v45, 0 }
 0x93f   : > { %v7498_v12 = vor.u32 4788187, %v7497_v11  ;;  %v7591_v0 = vclz %v9341_v15  ;;  %v15467_v36 = vmul.u32.u64.low %v7883_v30, %v7878_v31  ;;  %v15468_v16 = vmul.u32.u64.high %v7883_v30, %v7878_v31, %v15467_v36 }
 0x940   : > { %vm15473_vm4 = vcmp.le.f32.partialorder %v7003_v34, 0.7853982  ;;  %v17379_v4 = vmov 0  ;;  %v7492_v1 = vshll.u32 %v15390_v28, %v15414_v52  ;;  %v7874_v43 = vsel %vm7868_vm15, %v7871_v32, %v7873_v51 }
 0x941   : > { %v17380_v4 = vsel %vm15473_vm4, 4294967295, %v17379_v4  ;;  %v7953_v50 = vand.u32 31, %v7951_v58  ;;  %v15484_v45 = vsel %vm15473_vm4, %v15220_v18, %v15426_v7  ;;  %v7187_v11 = vand.u32 2147483647, %v15430_v9  ;;  %v6911_v7 = vpop.f32.mrf.mxu0 }
 0x942   : > { %17381 = vst [vmem:[#allocation23_spill] sm:$0xff] %v17380_v4  ;;  %v7189_v6 = vcvt.s32.f32 %v15428_v59  ;;  %v15489_v34 = vadd.f32 %v6909_v26, %v15215_v49  ;;  %v7494_v13 = vor.u32 %v7493_v39, %v7492_v1  ;;  %vm7892_vm1 = vc.u32 %v15465_v62, %v15467_v36 }
 0x943   : > { %v7947_v28 = vor.u32 8388608, %v7946_v5  ;;  %v7954_v52 = vsub.s32 32, %v7953_v50  ;;  %v7499_v44 = vand.u32 2147483647, %v7498_v12  ;;  %v9342_v41 = vadd.s32 4294967294, %v7591_v0 }
 0x944   : > { %v7890_v15 = vmul.u32 %v7883_v30, %v7874_v43  ;;  %v7893_v8 = vadd.s32 1, %v15468_v16  ;;  %v7952_v46 = vshrl.u32 %v7951_v58, 5  ;;  %v7956_v9 = vshll.u32 %v16981_v17, %v7953_v50 }
 0x945   : > { %v7957_v59 = vshrl.u32 %v16975_v14, %v7954_v52  ;;  %v7960_v31 = vshrl.u32 %v16976_v10, %v7954_v52  ;;  %v7959_v32 = vshll.u32 %v16975_v14, %v7953_v50  ;;  %v7962_v5 = vshll.u32 %v16976_v10, %v7953_v50 }
 0x946   : > { %v7894_v60 = vsel %vm7892_vm1, %v7893_v8, %v15468_v16  ;;  %v7963_v51 = vshrl.u32 %v17373_v57, %v7954_v52  ;;  %v7501_v24 = vcvt.s32.f32 %v7494_v13  ;;  %v15502_v42 = vadd.f32 %v6911_v7, %v15215_v49 }
 0x947   : > { %v7895_v30 = vadd.s32 %v7894_v60, %v7890_v15  ;;  %v7958_v39 = vor.u32 %v7957_v59, %v7956_v9  ;;  %v7961_v58 = vor.u32 %v7960_v31, %v7959_v32  ;;  %v7965_v12 = vshll.u32 %v17373_v57, %v7953_v50 }
 0x948   : > { %v7964_v26 = vor.u32 %v7963_v51, %v7962_v5  ;;  %v7966_v0 = vshrl.u32 %v16998_v2, %v7954_v52  ;;  %v7502_v1 = vmul.f32 %v7501_v24, %v7499_v44  ;;  %v7968_v43 = vshll.u32 %v16998_v2, %v7953_v50 }
 0x949   : > { %v7896_v16 = vadd.s32 536870912, %v7895_v30  ;;  %v7969_v8 = vshrl.u32 %v17374_v53, %v7954_v52  ;;  %vm9343_vm8 = vcmp.lt.s32.totalorder %v9342_v41, 0  ;;  %vm7974_vm13 = vcmp.lt.s32.totalorder %v7952_v46, 4 }
 0x94a   : > { %v7967_v19 = vor.u32 %v7966_v0, %v7965_v12  ;;  %v7987_v13 = vshll.u32 %v7947_v28, 8  ;;  %vm7971_vm0 = vcmp.lt.s32.totalorder %v7952_v46, 1  ;;  %v7976_v9 = vsel %vm7974_vm13, %v7964_v26, 2102212464 }
 0x94b   : > { %v15508_v15 = vshrl.u32 %v7896_v16, 30  ;;  %v7970_v7 = vor.u32 %v7969_v8, %v7968_v43  ;;  %v7955_v59 = vshrl.u32 %v16981_v17, %v7954_v52  ;;  %vm7973_vm12 = vcmp.lt.s32.totalorder %v7952_v46, 3 }
 0x94c   : > { %v7979_v31 = vsel %vm7971_vm0, %v7958_v39, %v7961_v58  ;;  %v7980_v44 = vsel %vm7974_vm13, %v7967_v19, 920167782  ;;  %vm16945_vm10 = vcmp.lt.s32.totalorder %v15234_v38, 0  ;;  %vm7972_vm7 = vcmp.lt.s32.totalorder %v7952_v46, 2 }
 0x94d   : > { %v7898_v50 = vshll.u32 %v15508_v15, 30  ;;  %v7981_v60 = vsel %vm7973_vm12, %v7964_v26, %v7980_v44  ;;  %v7983_v32 = vsel %vm7971_vm0, %v7961_v58, %v7964_v26  ;;  %v7975_v28 = vsel %vm7971_vm0, %v7955_v59, %v7958_v39 }
 0x94e   : > { %v7977_v5 = vsel %vm7973_vm12, %v7961_v58, %v7976_v9  ;;  %v7982_v51 = vsel %vm7972_vm7, %v7979_v31, %v7981_v60  ;;  %v7984_v24 = vsel %vm7974_vm13, %v7970_v7, 1326507024  ;;  %10134 = vcosq.f32 %v15484_v45 }
 0x94f   : > { %v15517_v12 = vsub.s32 %v7895_v30, %v7898_v50  ;;  %v7985_v52 = vsel %vm7973_vm12, %v7967_v19, %v7984_v24  ;;  %v15519_v0 = vmul.u32.u64.low %v7987_v13, %v7982_v51  ;;  %v15520_v16 = vmul.u32.u64.high %v7987_v13, %v7982_v51, %v15519_v0 }
 0x950   : > { %v15525_v43 = vsel %vm9343_vm8, 0, %v9342_v41  ;;  %v7986_v26 = vsel %vm7972_vm7, %v7983_v32, %v7985_v52  ;;  %v8254_v39 = vand.u32 2139095040, %v15489_v34  ;;  %v15529_v58 = vmul.f32 %v7189_v6, %v7187_v11 }
 0x951   : > { %v7901_v8 = vsub.s32 0, %v15517_v12  ;;  %v15532_v30 = vmul.u32.u64.low %v7987_v13, %v7986_v26  ;;  %v15533_v7 = vmul.u32.u64.high %v7987_v13, %v7986_v26, %v15532_v30  ;;  %v7503_v19 = vxor.u32 2147483648, %v7502_v1 }
 0x952   : > { %v7978_v9 = vsel %vm7972_vm7, %v7975_v28, %v7977_v5  ;;  %v8255_v59 = vshrl.u32 %v8254_v39, 23  ;;  %v8358_v31 = vand.u32 2139095040, %v15502_v42  ;;  %v7599_v41 = vsub.s32 4294967266, %v15525_v43 }
 0x953   : > { %v9353_v44 = vmin.u32 %v7901_v8, %v15517_v12  ;;  %v7997_v50 = vadd.s32 1, %v15520_v16  ;;  %v16902_v11 = vand.u32 2147483647, %v15489_v34  ;;  %10136 = vsinq.f32 %v15484_v45 }
 0x954   : > { %vm15544_vm11 = vcmp.le.f32.partialorder %v7419_v23, 0.7853982  ;;  %v17382_v6 = vmov 0  ;;  %v9368_v46 = vadd.s32 4294967169, %v8255_v59  ;;  %v8359_v60 = vshrl.u32 %v8358_v31, 23 }
 0x955   : > { %v17383_v6 = vsel %vm15544_vm11, 4294967295, %v17382_v6  ;;  %v7903_v28 = vclz %v9353_v44  ;;  %v7994_v5 = vmul.u32 %v7987_v13, %v7978_v9  ;;  %vm7996_vm6 = vc.u32 %v15533_v7, %v15519_v0 }
 0x956   : > { %17384 = vst [vmem:[#allocation8_spill] sm:$0xff] %v17383_v6  ;;  %v7504_v51 = vsel %vm16945_vm10, %v7503_v19, %v7502_v1  ;;  %v7595_v45 = vsub.s32 32, %v15525_v43  ;;  %v7998_v24 = vsel %vm7996_vm6, %v7997_v50, %v15520_v16  ;;  %v8261_v23 = vadd.s32 1, %v9368_v46 }
 0x957   : > { %v15555_v52 = vadd.s32 127, %v7599_v41  ;;  %v9354_v26 = vadd.s32 4294967294, %v7903_v28  ;;  %v7999_v39 = vadd.s32 %v7998_v24, %v7994_v5  ;;  %v8258_v8 = vand.u32 8388607, %v16902_v11 }
 0x958   : > { %v7579_v13 = vadd.s32 %v15395_v61, %v15401_v20  ;;  %vm8262_vm9 = vcmp.gt.s32.totalorder %v8261_v23, 0  ;;  %v16901_v30 = vand.u32 2147483647, %v15502_v42  ;;  %v9372_v9 = vadd.s32 4294967169, %v8359_v60 }
 0x959   : > { %v15565_v1 = vsel %vm15544_vm11, %v15234_v38, %v7504_v51  ;;  %vm9355_vm2 = vcmp.lt.s32.totalorder %v9354_v26, 0  ;;  %v8000_v16 = vadd.s32 536870912, %v7999_v39  ;;  %v8263_v19 = vsel %vm8262_vm9, %v8261_v23, 0 }
 0x95a   : > { %v7891_v31 = vadd.s32 %v15467_v36, %v15465_v62  ;;  %v15571_v41 = vsel %vm9355_vm2, 0, %v9354_v26  ;;  %v8265_v61 = vand.u32 31, %v8263_v19  ;;  %v15573_v20 = vshrl.u32 %v7579_v13, %v7595_v45  ;;  %v6980_v26 = vpop.f32.mrf.mxu1 }
 0x95b   : > { %v15576_v50 = vshrl.u32 %v8000_v16, 30  ;;  %v8259_v46 = vor.u32 8388608, %v8258_v8  ;;  %v7907_v60 = vsub.s32 32, %v15571_v41  ;;  %v15581_v5 = vand.u32 8388607, %v16901_v30  ;;  %v15583_v24 = vpop.eup %10134 }
 0x95c   : > { %v8266_v28 = vsub.s32 32, %v8265_v61  ;;  %v8365_v51 = vadd.s32 1, %v9372_v9  ;;  %17385 = vst [vmem:[#allocation9_spill] sm:$0xff] %v15583_v24  ;;  %v7911_v62 = vsub.s32 4294967266, %v15571_v41  ;;  %v8268_v45 = vshll.u32 %v16981_v17, %v8265_v61 }
 0x95d   : > { %v8002_v36 = vshll.u32 %v15576_v50, 30  ;;  %v8271_v23 = vshll.u32 %v16975_v14, %v8265_v61  ;;  %v8274_v16 = vshll.u32 %v16976_v10, %v8265_v61  ;;  %v8264_v3 = vshrl.u32 %v8263_v19, 5 }
 0x95e   : > { %v8269_v8 = vshrl.u32 %v16975_v14, %v8266_v28  ;;  %v8272_v13 = vshrl.u32 %v16976_v10, %v8266_v28  ;;  %v8275_v25 = vshrl.u32 %v17373_v57, %v8266_v28  ;;  %v8277_v30 = vshll.u32 %v17373_v57, %v8265_v61 }
 0x95f   : > { %v15593_v9 = vsub.s32 %v7999_v39, %v8002_v36  ;;  %v8278_v11 = vshrl.u32 %v16998_v2, %v8266_v28  ;;  %v15598_v32 = vadd.f32 %v6980_v26, %v15217_v21  ;;  %v8299_v18 = vshll.u32 %v8259_v46, 8 }
 0x960   : > { %v8270_v56 = vor.u32 %v8269_v8, %v8268_v45  ;;  %v8273_v44 = vor.u32 %v8272_v13, %v8271_v23  ;;  %v8276_v59 = vor.u32 %v8275_v25, %v8274_v16  ;;  %v15600_v63 = vpop.eup %10136  ;;  %vm8366_vm14 = vcmp.gt.s32.totalorder %v8365_v51, 0 }
 0x961   : > { %17386 = vst [vmem:[#allocation13_spill] sm:$0xff] %v15598_v32  ;;  %17387 = vst [vmem:[#allocation34_spill] sm:$0xff] %v15600_v63  ;;  %v8005_v24 = vsub.s32 0, %v15593_v9  ;;  %v8279_v4 = vor.u32 %v8278_v11, %v8277_v30  ;;  %vm16941_vm15 = vcmp.lt.s32.totalorder %v15225_v55, 0  ;;  %v7909_v39 = vshrl.u32 %v7891_v31, %v7907_v60 }
 0x962   : > { %v7912_v19 = vadd.s32 127, %v7911_v62  ;;  %v8280_v36 = vshll.u32 %v16998_v2, %v8265_v61  ;;  %v8281_v45 = vshrl.u32 %v17374_v53, %v8266_v28  ;;  %vm8283_vm3 = vcmp.lt.s32.totalorder %v8264_v3, 1 }
 0x963   : > { %v9357_v25 = vmin.u32 %v8005_v24, %v15593_v9  ;;  %vm8285_vm1 = vcmp.lt.s32.totalorder %v8264_v3, 3  ;;  %vm8286_vm8 = vcmp.lt.s32.totalorder %v8264_v3, 4  ;;  %v8291_v8 = vsel %vm8283_vm3, %v8270_v56, %v8273_v44 }
 0x964   : > { %v8282_v23 = vor.u32 %v8281_v45, %v8280_v36  ;;  %v8288_v26 = vsel %vm8286_vm8, %v8276_v59, 2102212464  ;;  %v8292_v11 = vsel %vm8286_vm8, %v8279_v4, 920167782  ;;  %v8267_v46 = vshrl.u32 %v16981_v17, %v8266_v28 }
 0x965   : > { %v8007_v30 = vclz %v9357_v25  ;;  %vm8284_vm13 = vcmp.lt.s32.totalorder %v8264_v3, 2  ;;  %v8293_v31 = vsel %vm8285_vm1, %v8276_v59, %v8292_v11  ;;  %v7913_v60 = vshll.u32 %v7912_v19, 23 }
 0x966   : > { %v8294_v61 = vsel %vm8284_vm13, %v8291_v8, %v8293_v31  ;;  %v8295_v62 = vsel %vm8283_vm3, %v8273_v44, %v8276_v59  ;;  %v8296_v24 = vsel %vm8286_vm8, %v8282_v23, 1326507024  ;;  %v7908_v13 = vshll.u32 %v15517_v12, %v15571_v41 }
 0x967   : > { %v8287_v16 = vsel %vm8283_vm3, %v8267_v46, %v8270_v56  ;;  %v8289_v36 = vsel %vm8285_vm1, %v8273_v44, %v8288_v26  ;;  %v8297_v45 = vsel %vm8285_vm1, %v8279_v4, %v8296_v24  ;;  %v8367_v19 = vsel %vm8366_vm14, %v8365_v51, 0 }
 0x968   : > { %v8298_v28 = vsel %vm8284_vm13, %v8295_v62, %v8297_v45  ;;  %v15618_v25 = vmul.u32.u64.low %v8299_v18, %v8294_v61  ;;  %v15619_v63 = vmul.u32.u64.high %v8299_v18, %v8294_v61, %v15618_v25  ;;  %v9358_v8 = vadd.s32 4294967294, %v8007_v30 }
 0x969   : > { %v15623_v59 = vmul.u32.u64.low %v8299_v18, %v8298_v28  ;;  %v15624_v23 = vmul.u32.u64.high %v8299_v18, %v8298_v28, %v15623_v59  ;;  %v8363_v12 = vor.u32 8388608, %v15581_v5  ;;  %v7910_v41 = vor.u32 %v7909_v39, %v7908_v13 }
 0x96a   : > { %v7914_v56 = vor.u32 4788187, %v7913_v60  ;;  %v8290_v44 = vsel %vm8284_vm13, %v8287_v16, %v8289_v36  ;;  %v8369_v26 = vand.u32 31, %v8367_v19  ;;  %v17388_v4 = vxor.u32 2147483648, %v15529_v58 }
 0x96b   : > { %10138 = vcosq.f32 %v15565_v1  ;;  %v17390_v51 = vshll.u32 %v15443_v54, %v15525_v43  ;;  %v17391_v5 = vshll.u32 %v15555_v52, 23  ;;  %v15648_v39 = vadd.s32 %v15519_v0, %v15533_v7 }
 0x96c   : > { %v15633_v11 = vsel %vm16941_vm15, %v17388_v4, %v15529_v58  ;;  %v8309_v46 = vadd.s32 1, %v15619_v63  ;;  %v8370_v58 = vsub.s32 32, %v8369_v26  ;;  %v16910_v31 = vand.u32 2147483647, %v15598_v32 }
 0x96d   : > { %17389 = vst [vmem:[#allocation32_spill] sm:$0xff] %v15633_v11  ;;  %v15640_v30 = vor.u32 %v15573_v20, %v17390_v51  ;;  %v15644_v3 = vor.u32 4788187, %v17391_v5  ;;  %vm9359_vm0 = vcmp.lt.s32.totalorder %v9358_v8, 0  ;;  %v8306_v60 = vmul.u32 %v8299_v18, %v8290_v44 }
 0x96e   : > { %vm8308_vm12 = vc.u32 %v15624_v23, %v15618_v25  ;;  %v15654_v54 = vshll.u32 %v8363_v12, 8  ;;  %v7915_v43 = vand.u32 2147483647, %v7914_v56  ;;  %v7917_v52 = vcvt.s32.f32 %v7910_v41 }
 0x96f   : > { %v8310_v20 = vsel %vm8308_vm12, %v8309_v46, %v15619_v63  ;;  %v8373_v61 = vshrl.u32 %v16975_v14, %v8370_v58  ;;  %v8372_v7 = vshll.u32 %v16981_v17, %v8369_v26  ;;  %v8375_v62 = vshll.u32 %v16975_v14, %v8369_v26 }
 0x970   : > { %v8311_v0 = vadd.s32 %v8310_v20, %v8306_v60  ;;  %v8376_v24 = vshrl.u32 %v16976_v10, %v8370_v58  ;;  %v15661_v13 = vsel %vm9359_vm0, 0, %v9358_v8  ;;  %v8368_v18 = vshrl.u32 %v8367_v19, 5 }
 0x971   : > { %v8378_v16 = vshll.u32 %v16976_v10, %v8369_v26  ;;  %v8379_v36 = vshrl.u32 %v17373_v57, %v8370_v58  ;;  %v8374_v28 = vor.u32 %v8373_v61, %v8372_v7  ;;  %v8381_v63 = vshll.u32 %v17373_v57, %v8369_v26 }
 0x972   : > { %v8312_v45 = vadd.s32 536870912, %v8311_v0  ;;  %v8377_v59 = vor.u32 %v8376_v24, %v8375_v62  ;;  %v8382_v41 = vshrl.u32 %v16998_v2, %v8370_v58  ;;  %v8384_v56 = vshll.u32 %v16998_v2, %v8369_v26 }
 0x973   : > { %v8380_v12 = vor.u32 %v8379_v36, %v8378_v16  ;;  %v8385_v44 = vshrl.u32 %v17374_v53, %v8370_v58  ;;  %v7918_v4 = vmul.f32 %v7917_v52, %v7915_v43  ;;  %v7214_v19 = vand.u32 2139095040, %v15598_v32 }
 0x974   : > { %v15669_v8 = vshrl.u32 %v8312_v45, 30  ;;  %v15674_v51 = vand.u32 8388607, %v16910_v31  ;;  %v8015_v5 = vsub.s32 4294967266, %v15661_v13  ;;  %v8383_v46 = vor.u32 %v8382_v41, %v8381_v63 }
 0x975   : > { %v8386_v60 = vor.u32 %v8385_v44, %v8384_v56  ;;  %vm8390_vm7 = vcmp.lt.s32.totalorder %v8368_v18, 4  ;;  %v8371_v26 = vshrl.u32 %v16981_v17, %v8370_v58  ;;  %vm8387_vm6 = vcmp.lt.s32.totalorder %v8368_v18, 1 }
 0x976   : > { %v8314_v20 = vshll.u32 %v15669_v8, 30  ;;  %v8392_v43 = vsel %vm8390_vm7, %v8380_v12, 2102212464  ;;  %vm8388_vm9 = vcmp.lt.s32.totalorder %v8368_v18, 2  ;;  %vm8389_vm2 = vcmp.lt.s32.totalorder %v8368_v18, 3 }
 0x977   : > { %v8395_v52 = vsel %vm8387_vm6, %v8374_v28, %v8377_v59  ;;  %v8396_v61 = vsel %vm8390_vm7, %v8383_v46, 920167782  ;;  %v8391_v62 = vsel %vm8387_vm6, %v8371_v26, %v8374_v28  ;;  %v8399_v16 = vsel %vm8387_vm6, %v8377_v59, %v8380_v12 }
 0x978   : > { %v15681_v7 = vsub.s32 %v8311_v0, %v8314_v20  ;;  %v8397_v24 = vsel %vm8389_vm2, %v8380_v12, %v8396_v61  ;;  %v15684_v36 = vpop.eup %10138  ;;  %vm7837_vm14 = vcmp.lt.s32.totalorder %v15369_v33, 0  ;;  %v8393_v58 = vsel %vm8389_vm2, %v8377_v59, %v8392_v43  ;;  %v6982_v20 = vpop.f32.mrf.mxu1 }
 0x979   : > { %17392 = vst [vmem:[#allocation15_spill] sm:$0xff] %v15684_v36  ;;  %v8398_v45 = vsel %vm8388_vm9, %v8395_v52, %v8397_v24  ;;  %v8400_v63 = vsel %vm8390_vm7, %v8386_v60, 1326507024  ;;  %v7215_v41 = vshrl.u32 %v7214_v19, 23  ;;  %v8011_v56 = vsub.s32 32, %v15661_v13 }
 0x97a   : > { %v8016_v44 = vadd.s32 127, %v8015_v5  ;;  %v8317_v0 = vsub.s32 0, %v15681_v7  ;;  %v8401_v28 = vsel %vm8389_vm2, %v8383_v46, %v8400_v63  ;;  %v8394_v19 = vsel %vm8388_vm9, %v8391_v62, %v8393_v58 }
 0x97b   : > { %v8402_v12 = vsel %vm8388_vm9, %v8399_v16, %v8401_v28  ;;  %v15695_v26 = vmul.u32.u64.low %v15654_v54, %v8398_v45  ;;  %v15696_v61 = vmul.u32.u64.high %v15654_v54, %v8398_v45, %v15695_v26  ;;  %v9328_v59 = vadd.s32 4294967169, %v7215_v41 }
 0x97c   : > { %v9369_v43 = vmin.u32 %v8317_v0, %v15681_v7  ;;  %v15702_v60 = vmul.u32.u64.low %v15654_v54, %v8402_v12  ;;  %v15703_v5 = vmul.u32.u64.high %v15654_v54, %v8402_v12, %v15702_v60  ;;  %10140 = vsinq.f32 %v15565_v1 }
 0x97d   : > { %v7605_v46 = vcvt.s32.f32 %v15640_v30  ;;  %v7221_v52 = vadd.s32 1, %v9328_v59  ;;  %v15708_v24 = vadd.f32 %v6982_v20, %v15217_v21  ;;  %v7603_v16 = vand.u32 2147483647, %v15644_v3 }
 0x97e   : > { %v7919_v45 = vxor.u32 2147483648, %v7918_v4  ;;  %v8013_v63 = vshrl.u32 %v15648_v39, %v8011_v56  ;;  %v8319_v41 = vclz %v9369_v43  ;;  %v8017_v18 = vshll.u32 %v8016_v44, 23 }
 0x97f   : > { %17393 = vst [vmem:[#allocation29_spill] sm:$0xff] %v15708_v24  ;;  %v8410_v62 = vmul.u32 %v15654_v54, %v8394_v19  ;;  %v8413_v58 = vadd.s32 1, %v15696_v61  ;;  %vm7222_vm3 = vcmp.gt.s32.totalorder %v7221_v52, 0  ;;  %vm8412_vm1 = vc.u32 %v15703_v5, %v15695_v26 }
 0x980   : > { %v9370_v0 = vadd.s32 4294967294, %v8319_v41  ;;  %v7219_v1 = vor.u32 8388608, %v15674_v51  ;;  %v7223_v21 = vsel %vm7222_vm3, %v7221_v52, 0  ;;  %v8012_v30 = vshll.u32 %v15593_v9, %v15661_v13  ;;  %v6986_v52 = vpop.f32.mrf.mxu1 }
 0x981   : > { %v8414_v3 = vsel %vm8412_vm1, %v8413_v58, %v15696_v61  ;;  %v7225_v39 = vand.u32 31, %v7223_v21  ;;  %v7318_v56 = vand.u32 2139095040, %v15708_v24  ;;  %v15721_v44 = vmul.f32 %v7605_v46, %v7603_v16 }
 0x982   : > { %v15725_v54 = vsel %vm7837_vm14, %v7919_v45, %v7918_v4  ;;  %vm9371_vm8 = vcmp.lt.s32.totalorder %v9370_v0, 0  ;;  %v8415_v28 = vadd.s32 %v8414_v3, %v8410_v62  ;;  %v15727_v20 = vor.u32 %v8013_v63, %v8012_v30 }
 0x983   : > { %v15729_v51 = vor.u32 4788187, %v8017_v18  ;;  %v8307_v9 = vadd.s32 %v15618_v25, %v15624_v23  ;;  %v7226_v13 = vsub.s32 32, %v7225_v39  ;;  %v8322_v12 = vsel %vm9371_vm8, 0, %v9370_v0 }
 0x984   : > { %v8416_v61 = vadd.s32 536870912, %v8415_v28  ;;  %v15733_v59 = vshll.u32 %v7219_v1, 8  ;;  %v15736_v19 = vshrl.u32 %v7223_v21, 5  ;;  %v7319_v46 = vshrl.u32 %v7318_v56, 23 }
 0x985   : > { %v7229_v4 = vshrl.u32 %v16975_v14, %v7226_v13  ;;  %v7232_v60 = vshrl.u32 %v16976_v10, %v7226_v13  ;;  %v7228_v45 = vshll.u32 %v16981_v17, %v7225_v39  ;;  %v7231_v25 = vshll.u32 %v16975_v14, %v7225_v39 }
 0x986   : > { %v15740_v16 = vshrl.u32 %v8416_v61, 30  ;;  %v7235_v23 = vshrl.u32 %v17373_v57, %v7226_v13  ;;  %v8327_v63 = vsub.s32 4294967266, %v8322_v12  ;;  %v7234_v41 = vshll.u32 %v16976_v10, %v7225_v39 }
 0x987   : > { %v7237_v18 = vshll.u32 %v17373_v57, %v7225_v39  ;;  %v7238_v62 = vshrl.u32 %v16998_v2, %v7226_v13  ;;  %v7230_v0 = vor.u32 %v7229_v4, %v7228_v45  ;;  %v7233_v1 = vor.u32 %v7232_v60, %v7231_v25 }
 0x988   : > { %v8418_v58 = vshll.u32 %v15740_v16, 30  ;;  %v15750_v21 = vadd.f32 %v6986_v52, %v15227_v47  ;;  %v7236_v30 = vor.u32 %v7235_v23, %v7234_v41  ;;  %v7240_v56 = vshll.u32 %v16998_v2, %v7225_v39 }
 0x989   : > { %v7239_v3 = vor.u32 %v7238_v62, %v7237_v18  ;;  %v7241_v61 = vshrl.u32 %v17374_v53, %v7226_v13  ;;  %v15754_v31 = vpop.eup %10140  ;;  %v17395_v43 = vand.u32 2147483647, %v15369_v33  ;;  %v8323_v11 = vsub.s32 32, %v8322_v12 }
 0x98a   : > { %17394 = vst [vmem:[#allocation30_spill] sm:$0xff] %v15754_v31  ;;  %v8324_v4 = vshll.u32 %v15681_v7, %v8322_v12  ;;  %v15763_v60 = vsub.s32 %v8415_v28, %v8418_v58  ;;  %v9332_v52 = vadd.s32 4294967169, %v7319_v46  ;;  %v8328_v45 = vadd.s32 127, %v8327_v63 }
 0x98b   : > { %vm15758_vm13 = vcmp.le.f32.partialorder %v17395_v43, 0.7853982  ;;  %v7227_v25 = vshrl.u32 %v16981_v17, %v7226_v13  ;;  %v7242_v39 = vor.u32 %v7241_v61, %v7240_v56  ;;  %vm7243_vm0 = vcmp.lt.s32.totalorder %v15736_v19, 1 }
 0x98c   : > { %v8421_v23 = vsub.s32 0, %v15763_v60  ;;  %vm7245_vm12 = vcmp.lt.s32.totalorder %v15736_v19, 3  ;;  %vm7246_vm7 = vcmp.lt.s32.totalorder %v15736_v19, 4  ;;  %v7251_v43 = vsel %vm7243_vm0, %v7230_v0, %v7233_v1 }
 0x98d   : > { %v7248_v41 = vsel %vm7246_vm7, %v7236_v30, 2102212464  ;;  %v7252_v7 = vsel %vm7246_vm7, %v7239_v3, 920167782  ;;  %v7255_v28 = vsel %vm7243_vm0, %v7233_v1, %v7236_v30  ;;  %v7256_v12 = vsel %vm7246_vm7, %v7242_v39, 1326507024 }
 0x98e   : > { %v8325_v46 = vshrl.u32 %v8307_v9, %v8323_v11  ;;  %v9373_v13 = vmin.u32 %v8421_v23, %v15763_v60  ;;  %vm7244_vm6 = vcmp.lt.s32.totalorder %v15736_v19, 2  ;;  %v7253_v63 = vsel %vm7245_vm12, %v7236_v30, %v7252_v7 }
 0x98f   : > { %v8329_v18 = vshll.u32 %v8328_v45, 23  ;;  %v7254_v62 = vsel %vm7244_vm6, %v7251_v43, %v7253_v63  ;;  %v7257_v58 = vsel %vm7245_vm12, %v7239_v3, %v7256_v12  ;;  %v7325_v56 = vadd.s32 1, %v9332_v52 }
 0x990   : > { %v8423_v61 = vclz %v9373_v13  ;;  %v7247_v39 = vsel %vm7243_vm0, %v7227_v25, %v7230_v0  ;;  %v7249_v11 = vsel %vm7245_vm12, %v7233_v1, %v7248_v41  ;;  %v7258_v9 = vsel %vm7244_vm6, %v7255_v28, %v7257_v58  ;;  %v6988_v25 = vpop.f32.mrf.mxu1 }
 0x991   : > { %v15789_v30 = vmul.u32.u64.low %v15733_v59, %v7258_v9  ;;  %v15790_v45 = vmul.u32.u64.high %v15733_v59, %v7258_v9, %v15789_v30  ;;  %v15793_v23 = vmul.u32.u64.low %v15733_v59, %v7254_v62  ;;  %v15794_v43 = vmul.u32.u64.high %v15733_v59, %v7254_v62, %v15793_v23 }
 0x992   : > { %v8326_v3 = vor.u32 %v8325_v46, %v8324_v4  ;;  %v9374_v52 = vadd.s32 4294967294, %v8423_v61  ;;  %v17398_v7 = vand.u32 2147483647, %v15708_v24  ;;  %vm7326_vm9 = vcmp.gt.s32.totalorder %v7325_v56, 0 }
 0x993   : > { %v15803_v1 = vsel %vm15758_vm13, %v15369_v33, %v15725_v54  ;;  %v8330_v28 = vor.u32 4788187, %v8329_v18  ;;  %v7327_v12 = vsel %vm7326_vm9, %v7325_v56, 0  ;;  %v7250_v4 = vsel %vm7244_vm6, %v7247_v39, %v7249_v11 }
 0x994   : > { %v7322_v0 = vand.u32 8388607, %v17398_v7  ;;  %vm9375_vm2 = vcmp.lt.s32.totalorder %v9374_v52, 0  ;;  %v7329_v46 = vand.u32 31, %v7327_v12  ;;  %v8411_v63 = vadd.s32 %v15695_v26, %v15703_v5 }
 0x995   : > { %v15811_v62 = vsel %vm9375_vm2, 0, %v9374_v52  ;;  %vm7268_vm3 = vc.u32 %v15790_v45, %v15793_v23  ;;  %v15816_v54 = vadd.f32 %v6988_v25, %v15227_v47  ;;  %v8333_v18 = vcvt.s32.f32 %v8326_v3 }
 0x996   : > { %v7269_v58 = vadd.s32 1, %v15794_v43  ;;  %v7323_v56 = vor.u32 8388608, %v7322_v0  ;;  %v8331_v19 = vand.u32 2147483647, %v8330_v28  ;;  %v7266_v39 = vmul.u32 %v15733_v59, %v7250_v4 }
 0x997   : > { %17399 = vst [vmem:[#allocation35_spill] sm:$0xff] %v15816_v54  ;;  %v7328_v11 = vshrl.u32 %v7327_v12, 5  ;;  %v7330_v9 = vsub.s32 32, %v7329_v46  ;;  %v8427_v26 = vsub.s32 32, %v15811_v62  ;;  %v8431_v5 = vsub.s32 4294967266, %v15811_v62 }
 0x998   : > { %v7270_v30 = vsel %vm7268_vm3, %v7269_v58, %v15794_v43  ;;  %v7332_v47 = vshll.u32 %v16981_v17, %v7329_v46  ;;  %v7335_v7 = vshll.u32 %v16975_v14, %v7329_v46  ;;  %v7338_v25 = vshll.u32 %v16976_v10, %v7329_v46 }
 0x999   : > { %v7271_v52 = vadd.s32 %v7270_v30, %v7266_v39  ;;  %v7333_v3 = vshrl.u32 %v16975_v14, %v7330_v9  ;;  %v7336_v0 = vshrl.u32 %v16976_v10, %v7330_v9  ;;  %v7339_v59 = vshrl.u32 %v17373_v57, %v7330_v9 }
 0x99a   : > { %v7341_v28 = vshll.u32 %v17373_v57, %v7329_v46  ;;  %v7342_v12 = vshrl.u32 %v16998_v2, %v7330_v9  ;;  %v8334_v4 = vmul.f32 %v8333_v18, %v8331_v19  ;;  %v8432_v41 = vadd.s32 127, %v8431_v5 }
 0x99b   : > { %v7272_v61 = vadd.s32 536870912, %v7271_v52  ;;  %v7334_v43 = vor.u32 %v7333_v3, %v7332_v47  ;;  %v7337_v58 = vor.u32 %v7336_v0, %v7335_v7  ;;  %v7340_v39 = vor.u32 %v7339_v59, %v7338_v25 }
 0x99c   : > { %v7343_v30 = vor.u32 %v7342_v12, %v7341_v28  ;;  %v7363_v13 = vshll.u32 %v7323_v56, 8  ;;  %v7344_v40 = vshll.u32 %v16998_v2, %v7329_v46  ;;  %v7345_v55 = vshrl.u32 %v17374_v53, %v7330_v9 }
 0x99d   : > { %v15832_v24 = vshrl.u32 %v7272_v61, 30  ;;  %v7630_v36 = vand.u32 2139095040, %v15750_v21  ;;  %v8429_v31 = vshrl.u32 %v8411_v63, %v8427_v26  ;;  %v7331_v6 = vshrl.u32 %v16981_v17, %v7330_v9 }
 0x99e   : > { %vm7347_vm1 = vcmp.lt.s32.totalorder %v7328_v11, 1  ;;  %vm7350_vm8 = vcmp.lt.s32.totalorder %v7328_v11, 4  ;;  %vm8253_vm0 = vcmp.lt.s32.totalorder %v15489_v34, 0  ;;  %v7346_v19 = vor.u32 %v7345_v55, %v7344_v40 }
 0x99f   : > { %17400 = vst [vmem:[#allocation28_spill] sm:$0xff] %v15832_v24  ;;  %v7274_v18 = vshll.u32 %v15832_v24, 30  ;;  %v7352_v5 = vsel %vm7350_vm8, %v7340_v39, 2102212464  ;;  %v7355_v56 = vsel %vm7347_vm1, %v7334_v43, %v7337_v58  ;;  %v8433_v61 = vshll.u32 %v8432_v41, 23 }
 0x9a0   : > { %vm7349_vm12 = vcmp.lt.s32.totalorder %v7328_v11, 3  ;;  %v7356_v46 = vsel %vm7350_vm8, %v7343_v30, 920167782  ;;  %v7359_v47 = vsel %vm7347_vm1, %v7337_v58, %v7340_v39  ;;  %vm7348_vm7 = vcmp.lt.s32.totalorder %v7328_v11, 2 }
 0x9a1   : > { %v15842_v3 = vsub.s32 %v7271_v52, %v7274_v18  ;;  %v7357_v63 = vsel %vm7349_vm12, %v7340_v39, %v7356_v46  ;;  %v7360_v9 = vsel %vm7350_vm8, %v7346_v19, 1326507024  ;;  %v17401_v26 = vand.u32 2147483647, %v15489_v34 }
 0x9a2   : > { %v7351_v55 = vsel %vm7347_vm1, %v7331_v6, %v7334_v43  ;;  %v7353_v40 = vsel %vm7349_vm12, %v7337_v58, %v7352_v5  ;;  %v7358_v41 = vsel %vm7348_vm7, %v7355_v56, %v7357_v63  ;;  %v7361_v0 = vsel %vm7349_vm12, %v7343_v30, %v7360_v9 }
 0x9a3   : > { %vm15846_vm6 = vcmp.le.f32.partialorder %v17401_v26, 0.7853982  ;;  %v7277_v25 = vsub.s32 0, %v15842_v3  ;;  %v7362_v52 = vsel %vm7348_vm7, %v7359_v47, %v7361_v0  ;;  %v8335_v12 = vxor.u32 2147483648, %v8334_v4 }
 0x9a4   : > { %v15854_v59 = vmul.u32.u64.low %v7363_v13, %v7358_v41  ;;  %v15855_v28 = vmul.u32.u64.high %v7363_v13, %v7358_v41, %v15854_v59  ;;  %v15858_v39 = vmul.u32.u64.low %v7363_v13, %v7362_v52  ;;  %v15859_v18 = vmul.u32.u64.high %v7363_v13, %v7362_v52, %v15858_v39 }
 0x9a5   : > { %v7631_v19 = vshrl.u32 %v7630_v36, 23  ;;  %v8428_v6 = vshll.u32 %v15763_v60, %v15811_v62  ;;  %v8434_v43 = vor.u32 4788187, %v8433_v61  ;;  %v9329_v58 = vmin.u32 %v7277_v25, %v15842_v3 }
 0x9a6   : > { %v7354_v30 = vsel %vm7348_vm7, %v7351_v55, %v7353_v40  ;;  %v17404_v56 = vand.u32 2147483647, %v15729_v51  ;;  %v17405_v46 = vcvt.s32.f32 %v15727_v20  ;;  %v7734_v9 = vand.u32 2139095040, %v15816_v54 }
 0x9a7   : > { %v9344_v63 = vadd.s32 4294967169, %v7631_v19  ;;  %10142 = vcosq.f32 %v15803_v1  ;;  %v8430_v36 = vor.u32 %v8429_v31, %v8428_v6  ;;  %v7279_v60 = vclz %v9329_v58 }
 0x9a8   : > { %v15870_v47 = vmul.f32 %v17405_v46, %v17404_v56  ;;  %v7373_v62 = vadd.s32 1, %v15855_v28  ;;  %v8336_v11 = vsel %vm8253_vm0, %v8335_v12, %v8334_v4  ;;  %v7370_v61 = vmul.u32 %v7363_v13, %v7354_v30 }
 0x9a9   : > { %vm7372_vm9 = vc.u32 %v15859_v18, %v15854_v59  ;;  %v7637_v51 = vadd.s32 1, %v9344_v63  ;;  %v8435_v20 = vand.u32 2147483647, %v8434_v43  ;;  %v9330_v26 = vadd.s32 4294967294, %v7279_v60 }
 0x9aa   : > { %v7374_v55 = vsel %vm7372_vm9, %v7373_v62, %v15855_v28  ;;  %v17406_v40 = vand.u32 2147483647, %v15750_v21  ;;  %v7735_v25 = vshrl.u32 %v7734_v9, 23  ;;  %v15886_v13 = vsel %vm15846_vm6, %v15489_v34, %v8336_v11 }
 0x9ab   : > { %v7375_v0 = vadd.s32 %v7374_v55, %v7370_v61  ;;  %vm7638_vm2 = vcmp.gt.s32.totalorder %v7637_v51, 0  ;;  %v8437_v4 = vcvt.s32.f32 %v8430_v36  ;;  %vm9331_vm3 = vcmp.lt.s32.totalorder %v9330_v26, 0 }
 0x9ac   : > { %v7634_v41 = vand.u32 8388607, %v17406_v40  ;;  %v7639_v52 = vsel %vm7638_vm2, %v7637_v51, 0  ;;  %v7267_v12 = vadd.s32 %v15793_v23, %v15790_v45  ;;  %v7282_v28 = vsel %vm9331_vm3, 0, %v9330_v26 }
 0x9ad   : > { %v7376_v39 = vadd.s32 536870912, %v7375_v0  ;;  %v7641_v19 = vand.u32 31, %v7639_v52  ;;  %v15890_v6 = vmul.f32 %v8437_v4, %v8435_v20  ;;  %v7287_v43 = vsub.s32 4294967266, %v7282_v28 }
 0x9ae   : > { %v7635_v58 = vor.u32 8388608, %v7634_v41  ;;  %v16924_v30 = vand.u32 2147483647, %v15816_v54  ;;  %v15895_v46 = vshrl.u32 %v7639_v52, 5  ;;  %v9348_v9 = vadd.s32 4294967169, %v7735_v25 }
 0x9af   : > { %v15893_v56 = vshrl.u32 %v7376_v39, 30  ;;  %v7642_v63 = vsub.s32 32, %v7641_v19  ;;  %v7283_v36 = vsub.s32 32, %v7282_v28  ;;  %v7288_v60 = vadd.s32 127, %v7287_v43 }
 0x9b0   : > { %v7644_v62 = vshll.u32 %v16981_v17, %v7641_v19  ;;  %v7647_v45 = vshll.u32 %v16975_v14, %v7641_v19  ;;  %v7650_v51 = vshll.u32 %v16976_v10, %v7641_v19  ;;  %v7653_v55 = vshll.u32 %v17373_v57, %v7641_v19 }
 0x9b1   : > { %17407 = vst [vmem:[#allocation12_spill] sm:$0xff] %v15893_v56  ;;  %v7378_v23 = vshll.u32 %v15893_v56, 30  ;;  %v7645_v11 = vshrl.u32 %v16975_v14, %v7642_v63  ;;  %v7648_v61 = vshrl.u32 %v16976_v10, %v7642_v63  ;;  %v7289_v20 = vshll.u32 %v7288_v60, 23 }
 0x9b2   : > { %v7651_v26 = vshrl.u32 %v17373_v57, %v7642_v63  ;;  %v7654_v40 = vshrl.u32 %v16998_v2, %v7642_v63  ;;  %v7738_v52 = vand.u32 8388607, %v16924_v30  ;;  %v7284_v39 = vshll.u32 %v15842_v3, %v7282_v28 }
 0x9b3   : > { %v15906_v41 = vsub.s32 %v7375_v0, %v7378_v23  ;;  %v7646_v25 = vor.u32 %v7645_v11, %v7644_v62  ;;  %v7649_v4 = vor.u32 %v7648_v61, %v7647_v45  ;;  %v15911_v5 = vshll.u32 %v7635_v58, 8 }
 0x9b4   : > { %v7652_v43 = vor.u32 %v7651_v26, %v7650_v51  ;;  %v7655_v31 = vor.u32 %v7654_v40, %v7653_v55  ;;  %v15913_v60 = vpop.eup %10142  ;;  %vm7525_vm1 = vcmp.lt.s32.totalorder %v15240_v29, 0  ;;  %v7656_v0 = vshll.u32 %v16998_v2, %v7641_v19  ;;  %v6992_v40 = vpop.f32.mrf.mxu1 }
 0x9b5   : > { %17408 = vst [vmem:[#allocation19_spill] sm:$0xff] %v15913_v60  ;;  %v7381_v24 = vsub.s32 0, %v15906_v41  ;;  %v7657_v62 = vshrl.u32 %v17374_v53, %v7642_v63  ;;  %v7741_v45 = vadd.s32 1, %v9348_v9  ;;  %vm7941_vm8 = vcmp.lt.s32.totalorder %v15405_v27, 0 }
 0x9b6   : > { %v7285_v23 = vshrl.u32 %v7267_v12, %v7283_v36  ;;  %v7290_v11 = vor.u32 4788187, %v7289_v20  ;;  %v7643_v3 = vshrl.u32 %v16981_v17, %v7642_v63  ;;  %vm7659_vm12 = vcmp.lt.s32.totalorder %v15895_v46, 1 }
 0x9b7   : > { %v9333_v28 = vmin.u32 %v7381_v24, %v15906_v41  ;;  %v7658_v58 = vor.u32 %v7657_v62, %v7656_v0  ;;  %vm7662_vm7 = vcmp.lt.s32.totalorder %v15895_v46, 4  ;;  %v7667_v61 = vsel %vm7659_vm12, %v7646_v25, %v7649_v4 }
 0x9b8   : > { %vm7661_vm9 = vcmp.lt.s32.totalorder %v15895_v46, 3  ;;  %v7664_v19 = vsel %vm7662_vm7, %v7652_v43, 2102212464  ;;  %v7668_v51 = vsel %vm7662_vm7, %v7655_v31, 920167782  ;;  %v7671_v26 = vsel %vm7659_vm12, %v7649_v4, %v7652_v43 }
 0x9b9   : > { %v7383_v9 = vclz %v9333_v28  ;;  %vm7660_vm2 = vcmp.lt.s32.totalorder %v15895_v46, 2  ;;  %v7669_v12 = vsel %vm7661_vm9, %v7652_v43, %v7668_v51  ;;  %v7672_v36 = vsel %vm7662_vm7, %v7658_v58, 1326507024 }
 0x9ba   : > { %v7286_v20 = vor.u32 %v7285_v23, %v7284_v39  ;;  %v7663_v63 = vsel %vm7659_vm12, %v7643_v3, %v7646_v25  ;;  %v7670_v55 = vsel %vm7660_vm2, %v7667_v61, %v7669_v12  ;;  %v7673_v24 = vsel %vm7661_vm9, %v7655_v31, %v7672_v36 }
 0x9bb   : > { %v7665_v0 = vsel %vm7661_vm9, %v7649_v4, %v7664_v19  ;;  %v7674_v62 = vsel %vm7660_vm2, %v7671_v26, %v7673_v24  ;;  %v15931_v30 = vmul.u32.u64.low %v15911_v5, %v7670_v55  ;;  %v15932_v56 = vmul.u32.u64.high %v15911_v5, %v7670_v55, %v15931_v30 }
 0x9bc   : > { %v9334_v28 = vadd.s32 4294967294, %v7383_v9  ;;  %v15936_v43 = vmul.u32.u64.low %v15911_v5, %v7674_v62  ;;  %v15937_v58 = vmul.u32.u64.high %v15911_v5, %v7674_v62, %v15936_v43  ;;  %vm7742_vm3 = vcmp.gt.s32.totalorder %v7741_v45, 0 }
 0x9bd   : > { %v7291_v25 = vand.u32 2147483647, %v7290_v11  ;;  %v7739_v39 = vor.u32 8388608, %v7738_v52  ;;  %v7743_v23 = vsel %vm7742_vm3, %v7741_v45, 0  ;;  %v15940_v31 = vadd.f32 %v6992_v40, %v15213_v22 }
 0x9be   : > { %v17409_v4 = vxor.u32 2147483648, %v15721_v44  ;;  %10144 = vsinq.f32 %v15803_v1  ;;  %v7666_v61 = vsel %vm7660_vm2, %v7663_v63, %v7665_v0  ;;  %v7745_v19 = vand.u32 31, %v7743_v23 }
 0x9bf   : > { %v17411_v52 = vxor.u32 2147483648, %v15870_v47  ;;  %10146 = vcosq.f32 %v15886_v13  ;;  %v7293_v51 = vcvt.s32.f32 %v7286_v20  ;;  %vm9335_vm12 = vcmp.lt.s32.totalorder %v9334_v28, 0 }
 0x9c0   : > { %v15947_v3 = vsel %vm7525_vm1, %v17409_v4, %v15721_v44  ;;  %vm7684_vm7 = vc.u32 %v15937_v58, %v15931_v30  ;;  %v7685_v44 = vadd.s32 1, %v15932_v56  ;;  %v7746_v1 = vsub.s32 32, %v7745_v19 }
 0x9c1   : > { %17410 = vst [vmem:[#allocation14_spill] sm:$0xff] %v15947_v3  ;;  %v15957_v45 = vsel %vm7941_vm8, %v17411_v52, %v15870_v47  ;;  %v15964_v46 = vmul.f32 %v7293_v51, %v7291_v25  ;;  %v7682_v26 = vmul.u32 %v15911_v5, %v7666_v61  ;;  %v15967_v9 = vshll.u32 %v7739_v39, 8 }
 0x9c2   : > { %v7686_v12 = vsel %vm7684_vm7, %v7685_v44, %v15932_v56  ;;  %v7748_v36 = vshll.u32 %v16981_v17, %v7745_v19  ;;  %v7749_v20 = vshrl.u32 %v16975_v14, %v7746_v1  ;;  %v7752_v63 = vshrl.u32 %v16976_v10, %v7746_v1 }
 0x9c3   : > { %v15974_v55 = vsel %vm9335_vm12, 0, %v9334_v28  ;;  %v7687_v24 = vadd.s32 %v7686_v12, %v7682_v26  ;;  %v7751_v40 = vshll.u32 %v16975_v14, %v7745_v19  ;;  %v8046_v0 = vand.u32 2139095040, %v15940_v31 }
 0x9c4   : > { %v7744_v5 = vshrl.u32 %v7743_v23, 5  ;;  %v7750_v62 = vor.u32 %v7749_v20, %v7748_v36  ;;  %v7754_v43 = vshll.u32 %v16976_v10, %v7745_v19  ;;  %v7755_v25 = vshrl.u32 %v17373_v57, %v7746_v1 }
 0x9c5   : > { %v7688_v56 = vadd.s32 536870912, %v7687_v24  ;;  %v7753_v39 = vor.u32 %v7752_v63, %v7751_v40  ;;  %v7757_v4 = vshll.u32 %v17373_v57, %v7745_v19  ;;  %v7758_v61 = vshrl.u32 %v16998_v2, %v7746_v1 }
 0x9c6   : > { %v7295_v28 = vxor.u32 2147483648, %v15964_v46  ;;  %v7756_v52 = vor.u32 %v7755_v25, %v7754_v43  ;;  %v7760_v51 = vshll.u32 %v16998_v2, %v7745_v19  ;;  %v7761_v44 = vshrl.u32 %v17374_v53, %v7746_v1 }
 0x9c7   : > { %vm16939_vm9 = vcmp.lt.s32.totalorder %v15598_v32, 0  ;;  %v7391_v23 = vsub.s32 4294967266, %v15974_v55  ;;  %v15987_v26 = vshrl.u32 %v7688_v56, 30  ;;  %v7759_v12 = vor.u32 %v7758_v61, %v7757_v4 }
 0x9c8   : > { %v8047_v36 = vshrl.u32 %v8046_v0, 23  ;;  %v7387_v20 = vsub.s32 32, %v15974_v55  ;;  %v7747_v63 = vshrl.u32 %v16981_v17, %v7746_v1  ;;  %v7762_v40 = vor.u32 %v7761_v44, %v7760_v51 }
 0x9c9   : > { %17412 = vst [vmem:[#allocation18_spill] sm:$0xff] %v15987_v26  ;;  %vm7763_vm2 = vcmp.lt.s32.totalorder %v7744_v5, 1  ;;  %v7690_v43 = vshll.u32 %v15987_v26, 30  ;;  %vm7765_vm3 = vcmp.lt.s32.totalorder %v7744_v5, 3  ;;  %vm7766_vm12 = vcmp.lt.s32.totalorder %v7744_v5, 4 }
 0x9ca   : > { %v7771_v19 = vsel %vm7763_vm2, %v7750_v62, %v7753_v39  ;;  %v7768_v25 = vsel %vm7766_vm12, %v7756_v52, 2102212464  ;;  %v7772_v11 = vsel %vm7766_vm12, %v7759_v12, 920167782  ;;  %v7775_v47 = vsel %vm7763_vm2, %v7753_v39, %v7756_v52 }
 0x9cb   : > { %v7776_v54 = vsel %vm7766_vm12, %v7762_v40, 1326507024  ;;  %v15992_v38 = vpop.eup %10144  ;;  %v7392_v56 = vadd.s32 127, %v7391_v23  ;;  %v15994_v4 = vsub.s32 %v7687_v24, %v7690_v43  ;;  %vm7764_vm7 = vcmp.lt.s32.totalorder %v7744_v5, 2  ;;  %v6994_v43 = vpop.f32.mrf.mxu1 }
 0x9cc   : > { %17413 = vst [vmem:[#allocation33_spill] sm:$0xff] %v15992_v38  ;;  %v7773_v0 = vsel %vm7765_vm3, %v7756_v52, %v7772_v11  ;;  %v15997_v1 = vpop.eup %10146  ;;  %v7767_v61 = vsel %vm7763_vm2, %v7747_v63, %v7750_v62  ;;  %v7777_v44 = vsel %vm7765_vm3, %v7759_v12, %v7776_v54  ;;  %v9360_v26 = vadd.s32 4294967169, %v8047_v36 }
 0x9cd   : > { %v7774_v51 = vsel %vm7764_vm7, %v7771_v19, %v7773_v0  ;;  %v7693_v35 = vsub.s32 0, %v15994_v4  ;;  %v7769_v40 = vsel %vm7765_vm3, %v7753_v39, %v7768_v25  ;;  %v7778_v60 = vsel %vm7764_vm7, %v7775_v47, %v7777_v44 }
 0x9ce   : > { %v17414_v24 = vand.u32 2147483647, %v15940_v31  ;;  %v16007_v11 = vmul.u32.u64.low %v15967_v9, %v7778_v60  ;;  %v16008_v52 = vmul.u32.u64.high %v15967_v9, %v7778_v60, %v16007_v11  ;;  %v7371_v54 = vadd.s32 %v15854_v59, %v15859_v18 }
 0x9cf   : > { %v16011_v62 = vmul.u32.u64.low %v15967_v9, %v7774_v51  ;;  %v16012_v63 = vmul.u32.u64.high %v15967_v9, %v7774_v51, %v16011_v62  ;;  %v7393_v12 = vshll.u32 %v7392_v56, 23  ;;  %v9345_v39 = vmin.u32 %v7693_v35, %v15994_v4 }
 0x9d0   : > { %v8050_v23 = vand.u32 8388607, %v17414_v24  ;;  %v8053_v47 = vadd.s32 1, %v9360_v26  ;;  %v16021_v36 = vsel %vm16939_vm9, %v7295_v28, %v15964_v46  ;;  %v7770_v60 = vsel %vm7764_vm7, %v7767_v61, %v7769_v40 }
 0x9d1   : > { %v16025_v25 = vadd.f32 %v6994_v43, %v15213_v22  ;;  %v7683_v59 = vadd.s32 %v15931_v30, %v15937_v58  ;;  %v7695_v18 = vclz %v9345_v39  ;;  %v16031_v35 = vshrl.u32 %v7371_v54, %v7387_v20 }
 0x9d2   : > { %v8051_v19 = vor.u32 8388608, %v8050_v23  ;;  %vm8054_vm2 = vcmp.gt.s32.totalorder %v8053_v47, 0  ;;  %vm7788_vm3 = vc.u32 %v16008_v52, %v16011_v62  ;;  %v7789_v46 = vadd.s32 1, %v16012_v63 }
 0x9d3   : > { %v8055_v5 = vsel %vm8054_vm2, %v8053_v47, 0  ;;  %v16036_v28 = vor.u32 4788187, %v7393_v12  ;;  %v9346_v22 = vadd.s32 4294967294, %v7695_v18  ;;  %v7786_v26 = vmul.u32 %v15967_v9, %v7770_v60 }
 0x9d4   : > { %v8057_v56 = vand.u32 31, %v8055_v5  ;;  %v7790_v61 = vsel %vm7788_vm3, %v7789_v46, %v16012_v63  ;;  %v16040_v51 = vshrl.u32 %v8055_v5, 5  ;;  %v16042_v30 = vshll.u32 %v8051_v19, 8 }
 0x9d5   : > { %vm9347_vm12 = vcmp.lt.s32.totalorder %v9346_v22, 0  ;;  %v7791_v20 = vadd.s32 %v7790_v61, %v7786_v26  ;;  %v17415_v3 = vand.u32 2147483647, %v15598_v32  ;;  %v17416_v37 = vmov 0 }
 0x9d6   : > { %v8058_v44 = vsub.s32 32, %v8057_v56  ;;  %v7698_v24 = vsel %vm9347_vm12, 0, %v9346_v22  ;;  %v8060_v23 = vshll.u32 %v16981_v17, %v8057_v56  ;;  %v8063_v43 = vshll.u32 %v16975_v14, %v8057_v56 }
 0x9d7   : > { %v8066_v9 = vshll.u32 %v16976_v10, %v8057_v56  ;;  %v7699_v11 = vsub.s32 32, %v7698_v24  ;;  %v7703_v63 = vsub.s32 4294967266, %v7698_v24  ;;  %v7792_v54 = vadd.s32 536870912, %v7791_v20 }
 0x9d8   : > { %v8069_v12 = vshll.u32 %v17373_v57, %v8057_v56  ;;  %v7700_v39 = vshll.u32 %v15994_v4, %v7698_v24  ;;  %v8061_v47 = vshrl.u32 %v16975_v14, %v8058_v44  ;;  %v8064_v60 = vshrl.u32 %v16976_v10, %v8058_v44 }
 0x9d9   : > { %v8067_v19 = vshrl.u32 %v17373_v57, %v8058_v44  ;;  %v7701_v18 = vshrl.u32 %v7683_v59, %v7699_v11  ;;  %v7704_v46 = vadd.s32 127, %v7703_v63  ;;  %v16054_v5 = vshrl.u32 %v7792_v54, 30 }
 0x9da   : > { %v8070_v22 = vshrl.u32 %v16998_v2, %v8058_v44  ;;  %v8059_v26 = vshrl.u32 %v16981_v17, %v8058_v44  ;;  %v8062_v61 = vor.u32 %v8061_v47, %v8060_v23  ;;  %v8065_v58 = vor.u32 %v8064_v60, %v8063_v43 }
 0x9db   : > { %v8068_v40 = vor.u32 %v8067_v19, %v8066_v9  ;;  %v7702_v0 = vor.u32 %v7701_v18, %v7700_v39  ;;  %v7705_v38 = vshll.u32 %v7704_v46, 23  ;;  %v7794_v4 = vshll.u32 %v16054_v5, 30 }
 0x9dc   : > { %v8071_v24 = vor.u32 %v8070_v22, %v8069_v12  ;;  %vm16061_vm7 = vcmp.le.f32.partialorder %v17415_v3, 0.7853982  ;;  %v8072_v59 = vshll.u32 %v16998_v2, %v8057_v56  ;;  %v8073_v11 = vshrl.u32 %v17374_v53, %v8058_v44 }
 0x9dd   : > { %v17417_v37 = vsel %vm16061_vm7, 4294967295, %v17416_v37  ;;  %vm8075_vm2 = vcmp.lt.s32.totalorder %v16040_v51, 1  ;;  %vm8076_vm3 = vcmp.lt.s32.totalorder %v16040_v51, 2  ;;  %vm8357_vm12 = vcmp.lt.s32.totalorder %v15502_v42, 0 }
 0x9de   : > { %17418 = vst [vmem:[#allocation7_spill] sm:$0xff] %v17417_v37  ;;  %v7706_v23 = vor.u32 4788187, %v7705_v38  ;;  %v16070_v43 = vsub.s32 %v7791_v20, %v7794_v4  ;;  %vm8077_vm9 = vcmp.lt.s32.totalorder %v16040_v51, 3  ;;  %vm8078_vm5 = vcmp.lt.s32.totalorder %v16040_v51, 4  ;;  %v6998_v38 = vpop.f32.mrf.mxu1 }
 0x9df   : > { %v7709_v3 = vcvt.s32.f32 %v7702_v0  ;;  %v8074_v9 = vor.u32 %v8073_v11, %v8072_v59  ;;  %v8080_v63 = vsel %vm8078_vm5, %v8068_v40, 2102212464  ;;  %v8083_v56 = vsel %vm8075_vm2, %v8062_v61, %v8065_v58 }
 0x9e0   : > { %v7707_v44 = vand.u32 2147483647, %v7706_v23  ;;  %v7797_v54 = vsub.s32 0, %v16070_v43  ;;  %v8079_v12 = vsel %vm8075_vm2, %v8059_v26, %v8062_v61  ;;  %v8084_v39 = vsel %vm8078_vm5, %v8071_v24, 920167782 }
 0x9e1   : > { %vm16944_vm15 = vcmp.lt.s32.totalorder %v15750_v21, 0  ;;  %v8081_v20 = vsel %vm8077_vm9, %v8065_v58, %v8080_v63  ;;  %v8085_v0 = vsel %vm8077_vm9, %v8068_v40, %v8084_v39  ;;  %v8087_v47 = vsel %vm8075_vm2, %v8065_v58, %v8068_v40 }
 0x9e2   : > { %v8088_v60 = vsel %vm8078_vm5, %v8074_v9, 1326507024  ;;  %v7710_v19 = vmul.f32 %v7709_v3, %v7707_v44  ;;  %v9349_v18 = vmin.u32 %v7797_v54, %v16070_v43  ;;  %v8086_v46 = vsel %vm8076_vm3, %v8083_v56, %v8085_v0 }
 0x9e3   : > { %v8089_v22 = vsel %vm8077_vm9, %v8071_v24, %v8088_v60  ;;  %v16094_v61 = vmul.u32.u64.low %v16042_v30, %v8086_v46  ;;  %v16095_v4 = vmul.u32.u64.high %v16042_v30, %v8086_v46, %v16094_v61  ;;  %v16098_v59 = vadd.f32 %v6998_v38, %v15215_v49  ;;  %v7000_v46 = vpop.f32.mrf.mxu1 }
 0x9e4   : > { %v8090_v26 = vsel %vm8076_vm3, %v8087_v47, %v8089_v22  ;;  %v17419_v58 = vshll.u32 %v15906_v41, %v15974_v55  ;;  %v17420_v11 = vand.u32 2147483647, %v15750_v21  ;;  %v17421_v23 = vmov 0 }
 0x9e5   : > { %v7799_v24 = vclz %v9349_v18  ;;  %v16111_v3 = vmul.u32.u64.low %v16042_v30, %v8090_v26  ;;  %v16112_v9 = vmul.u32.u64.high %v16042_v30, %v8090_v26, %v16111_v3  ;;  %10148 = vsinq.f32 %v15886_v13 }
 0x9e6   : > { %v7390_v40 = vor.u32 %v16031_v35, %v17419_v58  ;;  %vm16106_vm5 = vcmp.le.f32.partialorder %v17420_v11, 0.7853982  ;;  %v8082_v63 = vsel %vm8076_vm3, %v8079_v12, %v8081_v20  ;;  %v17424_v41 = vand.u32 2139095040, %v16025_v25 }
 0x9e7   : > { %v17422_v23 = vsel %vm16106_vm5, 4294967295, %v17421_v23  ;;  %v17425_v35 = vand.u32 2147483647, %v16025_v25  ;;  %v7299_v44 = vsel %vm16061_vm7, %v15598_v32, %v16021_v36  ;;  %v7395_v54 = vand.u32 2147483647, %v16036_v28 }
 0x9e8   : > { %17423 = vst [vmem:[#allocation22_spill] sm:$0xff] %v17422_v23  ;;  %v8151_v55 = vshrl.u32 %v17424_v41, 23  ;;  %v7711_v39 = vxor.u32 2147483648, %v7710_v19  ;;  %v9350_v38 = vadd.s32 4294967294, %v7799_v24  ;;  %v17426_v13 = vxor.u32 2147483648, %v15890_v6 }
 0x9e9   : > { %v8154_v56 = vand.u32 8388607, %v17425_v35  ;;  %v8101_v12 = vadd.s32 1, %v16095_v4  ;;  %v16942_v0 = vand.u32 2147483647, %v16098_v59  ;;  %v7397_v47 = vcvt.s32.f32 %v7390_v40 }
 0x9ea   : > { %v16131_v51 = vsel %vm8357_vm12, %v17426_v13, %v15890_v6  ;;  %v9364_v20 = vadd.s32 4294967169, %v8151_v55  ;;  %vm9351_vm9 = vcmp.lt.s32.totalorder %v9350_v38, 0  ;;  %v8098_v36 = vmul.u32 %v16042_v30, %v8082_v63 }
 0x9eb   : > { %vm8100_vm2 = vc.u32 %v16112_v9, %v16094_v61  ;;  %10150 = vcosq.f32 %v7299_v44  ;;  %v8155_v60 = vor.u32 8388608, %v8154_v56  ;;  %v16138_v6 = vmul.f32 %v7397_v47, %v7395_v54 }
 0x9ec   : > { %v8102_v28 = vsel %vm8100_vm2, %v8101_v12, %v16095_v4  ;;  %v8157_v18 = vadd.s32 1, %v9364_v20  ;;  %10152 = vsinq.f32 %v7299_v44  ;;  %v7712_v22 = vsel %vm16944_vm15, %v7711_v39, %v7710_v19 }
 0x9ed   : > { %v8103_v26 = vadd.s32 %v8102_v28, %v8098_v36  ;;  %v16142_v58 = vsel %vm9351_vm9, 0, %v9350_v38  ;;  %v8462_v30 = vand.u32 2139095040, %v16098_v59  ;;  %v16147_v40 = vand.u32 8388607, %v16942_v0 }
 0x9ee   : > { %vm8158_vm3 = vcmp.gt.s32.totalorder %v8157_v18, 0  ;;  %v16150_v24 = vadd.f32 %v7000_v46, %v15215_v49  ;;  %v16156_v19 = vsel %vm16106_vm5, %v15750_v21, %v7712_v22  ;;  %v7787_v63 = vadd.s32 %v16011_v62, %v16008_v52 }
 0x9ef   : > { %v8104_v4 = vadd.s32 536870912, %v8103_v26  ;;  %v8159_v11 = vsel %vm8158_vm3, %v8157_v18, 0  ;;  %v16160_v55 = vshll.u32 %v8155_v60, 8  ;;  %v7803_v35 = vsub.s32 32, %v16142_v58 }
 0x9f0   : > { %v8161_v41 = vand.u32 31, %v8159_v11  ;;  %v7804_v56 = vshll.u32 %v16070_v43, %v16142_v58  ;;  %v16166_v49 = vadd.s32 %v16094_v61, %v16112_v9  ;;  %v7807_v54 = vsub.s32 4294967266, %v16142_v58 }
 0x9f1   : > { %v16168_v44 = vshrl.u32 %v8104_v4, 30  ;;  %v8463_v38 = vshrl.u32 %v8462_v30, 23  ;;  %v8467_v13 = vor.u32 8388608, %v16147_v40  ;;  %v8160_v62 = vshrl.u32 %v8159_v11, 5 }
 0x9f2   : > { %v8162_v39 = vsub.s32 32, %v8161_v41  ;;  %v8164_v12 = vshll.u32 %v16981_v17, %v8161_v41  ;;  %v8167_v20 = vshll.u32 %v16975_v14, %v8161_v41  ;;  %v8170_v9 = vshll.u32 %v16976_v10, %v8161_v41  ;;  %v16179_v36 = vpop.eup %10148 }
 0x9f3   : > { %v8106_v52 = vshll.u32 %v16168_v44, 30  ;;  %v8173_v60 = vshll.u32 %v17373_v57, %v8161_v41  ;;  %v8176_v46 = vshll.u32 %v16998_v2, %v8161_v41  ;;  %vm8179_vm9 = vcmp.lt.s32.totalorder %v8160_v62, 1 }
 0x9f4   : > { %v8165_v43 = vshrl.u32 %v16975_v14, %v8162_v39  ;;  %v8168_v61 = vshrl.u32 %v16976_v10, %v8162_v39  ;;  %v8171_v47 = vshrl.u32 %v17373_v57, %v8162_v39  ;;  %v8174_v18 = vshrl.u32 %v16998_v2, %v8162_v39 }
 0x9f5   : > { %v16181_v28 = vsub.s32 %v8103_v26, %v8106_v52  ;;  %v8177_v40 = vshrl.u32 %v17374_v53, %v8162_v39  ;;  %v8163_v11 = vshrl.u32 %v16981_v17, %v8162_v39  ;;  %vm8182_vm2 = vcmp.lt.s32.totalorder %v8160_v62, 4 }
 0x9f6   : > { %v8166_v22 = vor.u32 %v8165_v43, %v8164_v12  ;;  %v8169_v58 = vor.u32 %v8168_v61, %v8167_v20  ;;  %v8172_v30 = vor.u32 %v8171_v47, %v8170_v9  ;;  %v8175_v0 = vor.u32 %v8174_v18, %v8173_v60 }
 0x9f7   : > { %v8109_v4 = vsub.s32 0, %v16181_v28  ;;  %v8178_v26 = vor.u32 %v8177_v40, %v8176_v46  ;;  %v9376_v52 = vadd.s32 4294967169, %v8463_v38  ;;  %vm8181_vm3 = vcmp.lt.s32.totalorder %v8160_v62, 3 }
 0x9f8   : > { %v16190_v37 = vpop.eup %10150  ;;  %v8183_v12 = vsel %vm8179_vm9, %v8163_v11, %v8166_v22  ;;  %v8184_v20 = vsel %vm8182_vm2, %v8172_v30, 2102212464  ;;  %v7805_v61 = vshrl.u32 %v7787_v63, %v7803_v35  ;;  %v8187_v9 = vsel %vm8179_vm9, %v8166_v22, %v8169_v58 }
 0x9f9   : > { %17427 = vst [vmem:[#allocation27_spill] sm:$0xff] %v16190_v37  ;;  %v9361_v41 = vmin.u32 %v8109_v4, %v16181_v28  ;;  %v16195_v43 = vpop.eup %10152  ;;  %v8185_v39 = vsel %vm8181_vm3, %v8169_v58, %v8184_v20  ;;  %v8188_v47 = vsel %vm8182_vm2, %v8175_v0, 920167782  ;;  %vm8180_vm15 = vcmp.lt.s32.totalorder %v8160_v62, 2 }
 0x9fa   : > { %17428 = vst [vmem:[#allocation17_spill] sm:$0xff] %v16195_v43  ;;  %v8189_v38 = vsel %vm8181_vm3, %v8172_v30, %v8188_v47  ;;  %v8191_v18 = vsel %vm8179_vm9, %v8169_v58, %v8172_v30  ;;  %v8186_v46 = vsel %vm8180_vm15, %v8183_v12, %v8185_v39  ;;  %v8192_v4 = vsel %vm8182_vm2, %v8178_v26, 1326507024 }
 0x9fb   : > { %v8111_v60 = vclz %v9361_v41  ;;  %v8190_v40 = vsel %vm8180_vm15, %v8187_v9, %v8189_v38  ;;  %v8469_v11 = vadd.s32 1, %v9376_v52  ;;  %v8193_v63 = vsel %vm8181_vm3, %v8175_v0, %v8192_v4 }
 0x9fc   : > { %v16205_v35 = vmul.u32.u64.low %v16160_v55, %v8190_v40  ;;  %v16206_v20 = vmul.u32.u64.high %v16160_v55, %v8190_v40, %v16205_v35  ;;  %v16209_v22 = vadd.s32 127, %v7807_v54  ;;  %v8194_v41 = vsel %vm8180_vm15, %v8191_v18, %v8193_v63 }
 0x9fd   : > { %v9362_v3 = vadd.s32 4294967294, %v8111_v60  ;;  %vm8470_vm10 = vcmp.gt.s32.totalorder %v8469_v11, 0  ;;  %v16211_v47 = vshll.u32 %v8467_v13, 8  ;;  %v16217_v52 = vor.u32 %v7805_v61, %v7804_v56 }
 0x9fe   : > { %v16214_v58 = vmul.u32.u64.low %v16160_v55, %v8194_v41  ;;  %v16215_v30 = vmul.u32.u64.high %v16160_v55, %v8194_v41, %v16214_v58  ;;  %v8471_v26 = vsel %vm8470_vm10, %v8469_v11, 0  ;;  %v8202_v62 = vmul.u32 %v16160_v55, %v8186_v46 }
 0x9ff   : > { %vm9363_vm9 = vcmp.lt.s32.totalorder %v9362_v3, 0  ;;  %v8473_v12 = vand.u32 31, %v8471_v26  ;;  %v8205_v54 = vadd.s32 1, %v16206_v20  ;;  %v8566_v60 = vand.u32 2139095040, %v16150_v24 }
 0xa00   : > { %v8114_v0 = vsel %vm9363_vm9, 0, %v9362_v3  ;;  %v8472_v38 = vshrl.u32 %v8471_v26, 5  ;;  %vm8204_vm10 = vc.u32 %v16215_v30, %v16205_v35  ;;  %10154 = vcosq.f32 %v16156_v19 }
 0xa01   : > { %v8115_v39 = vsub.s32 32, %v8114_v0  ;;  %v8119_v9 = vsub.s32 4294967266, %v8114_v0  ;;  %v8116_v13 = vshll.u32 %v16181_v28, %v8114_v0  ;;  %v8474_v18 = vsub.s32 32, %v8473_v12 }
 0xa02   : > { %v8476_v40 = vshll.u32 %v16981_v17, %v8473_v12  ;;  %v8479_v3 = vshll.u32 %v16975_v14, %v8473_v12  ;;  %v8206_v55 = vsel %vm8204_vm10, %v8205_v54, %v16206_v20  ;;  %v8482_v28 = vshll.u32 %v16976_v10, %v8473_v12 }
 0xa03   : > { %v8117_v4 = vshrl.u32 %v16166_v49, %v8115_v39  ;;  %v8120_v56 = vadd.s32 127, %v8119_v9  ;;  %v8477_v61 = vshrl.u32 %v16975_v14, %v8474_v18  ;;  %v8480_v46 = vshrl.u32 %v16976_v10, %v8474_v18 }
 0xa04   : > { %v8207_v41 = vadd.s32 %v8206_v55, %v8202_v62  ;;  %v8483_v58 = vshrl.u32 %v17373_v57, %v8474_v18  ;;  %v8485_v0 = vshll.u32 %v17373_v57, %v8473_v12  ;;  %v8486_v39 = vshrl.u32 %v16998_v2, %v8474_v18 }
 0xa05   : > { %v8118_v11 = vor.u32 %v8117_v4, %v8116_v13  ;;  %v8121_v63 = vshll.u32 %v8120_v56, 23  ;;  %v8478_v49 = vor.u32 %v8477_v61, %v8476_v40  ;;  %v8481_v26 = vor.u32 %v8480_v46, %v8479_v3 }
 0xa06   : > { %v7809_v9 = vshll.u32 %v16209_v22, 23  ;;  %v8208_v54 = vadd.s32 536870912, %v8207_v41  ;;  %v8484_v37 = vor.u32 %v8483_v58, %v8482_v28  ;;  %v8487_v43 = vor.u32 %v8486_v39, %v8485_v0 }
 0xa07   : > { %v8122_v20 = vor.u32 4788187, %v8121_v63  ;;  %v8488_v32 = vshll.u32 %v16998_v2, %v8473_v12  ;;  %v8489_v13 = vshrl.u32 %v17374_v53, %v8474_v18  ;;  %v8567_v4 = vshrl.u32 %v8566_v60, 23 }
 0xa08   : > { %v8125_v62 = vcvt.s32.f32 %v8118_v11  ;;  %v16238_v56 = vshrl.u32 %v8208_v54, 30  ;;  %v8475_v40 = vshrl.u32 %v16981_v17, %v8474_v18  ;;  %vm8491_vm15 = vcmp.lt.s32.totalorder %v8472_v38, 1 }
 0xa09   : > { %v8123_v3 = vand.u32 2147483647, %v8122_v20  ;;  %v8490_v55 = vor.u32 %v8489_v13, %v8488_v32  ;;  %vm8494_vm2 = vcmp.lt.s32.totalorder %v8472_v38, 4  ;;  %v8499_v61 = vsel %vm8491_vm15, %v8478_v49, %v8481_v26 }
 0xa0a   : > { %v8210_v22 = vshll.u32 %v16238_v56, 30  ;;  %vm8493_vm3 = vcmp.lt.s32.totalorder %v8472_v38, 3  ;;  %v8496_v46 = vsel %vm8494_vm2, %v8484_v37, 2102212464  ;;  %v8500_v28 = vsel %vm8494_vm2, %v8487_v43, 920167782 }
 0xa0b   : > { %vm8492_vm9 = vcmp.lt.s32.totalorder %v8472_v38, 2  ;;  %v8501_v12 = vsel %vm8493_vm3, %v8484_v37, %v8500_v28  ;;  %v8503_v63 = vsel %vm8491_vm15, %v8481_v26, %v8484_v37  ;;  %v8504_v58 = vsel %vm8494_vm2, %v8490_v55, 1326507024 }
 0xa0c   : > { %v16242_v60 = vsub.s32 %v8207_v41, %v8210_v22  ;;  %v8495_v11 = vsel %vm8491_vm15, %v8475_v40, %v8478_v49  ;;  %v8497_v0 = vsel %vm8493_vm3, %v8481_v26, %v8496_v46  ;;  %v8502_v18 = vsel %vm8492_vm9, %v8499_v61, %v8501_v12 }
 0xa0d   : > { %v7810_v39 = vor.u32 4788187, %v7809_v9  ;;  %vm16951_vm10 = vcmp.lt.s32.totalorder %v15940_v31, 0  ;;  %v8505_v32 = vsel %vm8493_vm3, %v8487_v43, %v8504_v58  ;;  %v8126_v13 = vmul.f32 %v8125_v62, %v8123_v3 }
 0xa0e   : > { %v16247_v20 = vmul.u32.u64.low %v16211_v47, %v8502_v18  ;;  %v16248_v54 = vmul.u32.u64.high %v16211_v47, %v8502_v18, %v16247_v20  ;;  %v8213_v23 = vsub.s32 0, %v16242_v60  ;;  %v8506_v37 = vsel %vm8492_vm9, %v8503_v63, %v8505_v32 }
 0xa0f   : > { %v9380_v55 = vadd.s32 4294967169, %v8567_v4  ;;  %v8498_v41 = vsel %vm8492_vm9, %v8495_v11, %v8497_v0  ;;  %v16254_v49 = vmul.u32.u64.low %v16211_v47, %v8506_v37  ;;  %v16255_v26 = vmul.u32.u64.high %v16211_v47, %v8506_v37, %v16254_v49 }
 0xa10   : > { %v17429_v9 = vand.u32 2147483647, %v16150_v24  ;;  %v9365_v43 = vmin.u32 %v8213_v23, %v16242_v60  ;;  %v17430_v62 = vand.u32 2147483647, %v15502_v42  ;;  %v7811_v38 = vand.u32 2147483647, %v7810_v39 }
 0xa11   : > { %v8573_v61 = vadd.s32 1, %v9380_v55  ;;  %v7813_v4 = vcvt.s32.f32 %v16217_v52  ;;  %v8517_v22 = vadd.s32 1, %v16248_v54  ;;  %v8127_v28 = vxor.u32 2147483648, %v8126_v13 }
 0xa12   : > { %v8570_v40 = vand.u32 8388607, %v17429_v9  ;;  %vm16263_vm15 = vcmp.le.f32.partialorder %v17430_v62, 0.7853982  ;;  %v8215_v12 = vclz %v9365_v43  ;;  %v8514_v23 = vmul.u32 %v16211_v47, %v8498_v41 }
 0xa13   : > { %v8443_v46 = vsel %vm16263_vm15, %v15502_v42, %v16131_v51  ;;  %vm8574_vm2 = vcmp.gt.s32.totalorder %v8573_v61, 0  ;;  %vm8516_vm3 = vc.u32 %v16255_v26, %v16247_v20  ;;  %v17433_v11 = vsub.s32 4, %v15740_v16 }
 0xa14   : > { %v8571_v63 = vor.u32 8388608, %v8570_v40  ;;  %v8575_v58 = vsel %vm8574_vm2, %v8573_v61, 0  ;;  %v9366_v0 = vadd.s32 4294967294, %v8215_v12  ;;  %v8518_v18 = vsel %vm8516_vm3, %v8517_v22, %v16248_v54 }
 0xa15   : > { %v8442_v52 = vsel %vm8357_vm12, %v17433_v11, %v15740_v16  ;;  %v8577_v39 = vand.u32 31, %v8575_v58  ;;  %10156 = vcosq.f32 %v8443_v46  ;;  %v7399_v51 = vxor.u32 2147483648, %v16138_v6 }
 0xa16   : > { %v16282_v32 = vmul.f32 %v7813_v4, %v7811_v38  ;;  %v8519_v47 = vadd.s32 %v8518_v18, %v8514_v23  ;;  %10158 = vsinq.f32 %v8443_v46  ;;  %v16286_v37 = vsel %vm16951_vm10, %v8127_v28, %v8126_v13 }
 0xa17   : > { %v8203_v55 = vadd.s32 %v16205_v35, %v16215_v30  ;;  %vm9367_vm9 = vcmp.lt.s32.totalorder %v9366_v0, 0  ;;  %v8578_v16 = vsub.s32 32, %v8577_v39  ;;  %v16290_v54 = vshll.u32 %v8571_v63, 8 }
 0xa18   : > { %v8218_v41 = vsel %vm9367_vm9, 0, %v9366_v0  ;;  %v8520_v49 = vadd.s32 536870912, %v8519_v47  ;;  %v8444_v9 = vsel %vm16263_vm15, 0, %v8442_v52  ;;  %v16295_v40 = vadd.s32 %v16247_v20, %v16255_v26 }
 0xa19   : > { %v8580_v43 = vshll.u32 %v16981_v17, %v8577_v39  ;;  %v8583_v13 = vshll.u32 %v16975_v14, %v8577_v39  ;;  %v8586_v61 = vshll.u32 %v16976_v10, %v8577_v39  ;;  %v8581_v35 = vshrl.u32 %v16975_v14, %v8578_v16 }
 0xa1a   : > { %v16300_v62 = vshrl.u32 %v8520_v49, 30  ;;  %v8584_v30 = vshrl.u32 %v16976_v10, %v8578_v16  ;;  %v8587_v38 = vshrl.u32 %v17373_v57, %v8578_v16  ;;  %v8219_v4 = vsub.s32 32, %v8218_v41  ;;  %v16310_v10 = vpop.eup %10154 }
 0xa1b   : > { %v8576_v3 = vshrl.u32 %v8575_v58, 5  ;;  %v8589_v22 = vshll.u32 %v17373_v57, %v8577_v39  ;;  %v8590_v20 = vshrl.u32 %v16998_v2, %v8578_v16  ;;  %v8582_v46 = vor.u32 %v8581_v35, %v8580_v43 }
 0xa1c   : > { %v8522_v26 = vshll.u32 %v16300_v62, 30  ;;  %v8585_v28 = vor.u32 %v8584_v30, %v8583_v13  ;;  %v8588_v12 = vor.u32 %v8587_v38, %v8586_v61  ;;  %v8223_v23 = vsub.s32 4294967266, %v8218_v41 }
 0xa1d   : > { %v8591_v63 = vor.u32 %v8590_v20, %v8589_v22  ;;  %v8592_v11 = vshll.u32 %v16998_v2, %v8577_v39  ;;  %v8593_v14 = vshrl.u32 %v17374_v53, %v8578_v16  ;;  %v8220_v52 = vshll.u32 %v16242_v60, %v8218_v41 }
 0xa1e   : > { %v16313_v58 = vsub.s32 %v8519_v47, %v8522_v26  ;;  %v8448_v57 = vadd.s32 3, %v8444_v9  ;;  %v8337_v0 = vsub.s32 4, %v15669_v8  ;;  %v8579_v18 = vshrl.u32 %v16981_v17, %v8578_v16 }
 0xa1f   : > { %v8594_v49 = vor.u32 %v8593_v14, %v8592_v11  ;;  %vm8595_vm12 = vcmp.lt.s32.totalorder %v8576_v3, 1  ;;  %vm8598_vm15 = vcmp.lt.s32.totalorder %v8576_v3, 4  ;;  %v8221_v43 = vshrl.u32 %v8203_v55, %v8219_v4 }
 0xa20   : > { %v8525_v13 = vsub.s32 0, %v16313_v58  ;;  %v8600_v2 = vsel %vm8598_vm15, %v8588_v12, 2102212464  ;;  %v8603_v53 = vsel %vm8595_vm12, %v8582_v46, %v8585_v28  ;;  %v8224_v39 = vadd.s32 127, %v8223_v23 }
 0xa21   : > { %vm8597_vm2 = vcmp.lt.s32.totalorder %v8576_v3, 3  ;;  %v8604_v61 = vsel %vm8598_vm15, %v8591_v63, 920167782  ;;  %v8607_v60 = vsel %vm8595_vm12, %v8585_v28, %v8588_v12  ;;  %vm8596_vm3 = vcmp.lt.s32.totalorder %v8576_v3, 2 }
 0xa22   : > { %v10157_v47 = vpop.eup %10156  ;;  %v9377_v41 = vmin.u32 %v8525_v13, %v16313_v58  ;;  %v8605_v9 = vsel %vm8597_vm2, %v8588_v12, %v8604_v61  ;;  %v8608_v17 = vsel %vm8598_vm15, %v8594_v49, 1326507024  ;;  %vm8447_vm9 = vweird.f32 %v15502_v42 }
 0xa23   : > { %v10159_v16 = vpop.eup %10158  ;;  %v8599_v55 = vsel %vm8595_vm12, %v8579_v18, %v8582_v46  ;;  %v8601_v35 = vsel %vm8597_vm2, %v8585_v28, %v8600_v2  ;;  %v8606_v30 = vsel %vm8596_vm3, %v8603_v53, %v8605_v9  ;;  %v8609_v38 = vsel %vm8597_vm2, %v8591_v63, %v8608_v17 }
 0xa24   : > { %v8527_v4 = vclz %v9377_v41  ;;  %v8610_v22 = vsel %vm8596_vm3, %v8607_v60, %v8609_v38  ;;  %v16326_v20 = vmul.u32.u64.low %v16290_v54, %v8606_v30  ;;  %v16327_v26 = vmul.u32.u64.high %v16290_v54, %v8606_v30, %v16326_v20 }
 0xa25   : > { %v16330_v23 = vor.u32 %v8221_v43, %v8220_v52  ;;  %v16333_v12 = vmul.u32.u64.low %v16290_v54, %v8610_v22  ;;  %v16334_v11 = vmul.u32.u64.high %v16290_v54, %v8610_v22, %v16333_v12  ;;  %v8449_v14 = vand.u32 3, %v8448_v57 }
 0xa26   : > { %v9378_v46 = vadd.s32 4294967294, %v8527_v4  ;;  %v8602_v28 = vsel %vm8596_vm3, %v8599_v55, %v8601_v35  ;;  %v8452_v18 = vxor.u32 2147483648, %v10159_v16  ;;  %v8455_v63 = vxor.u32 2147483648, %v10157_v47 }
 0xa27   : > { %vm8450_vm12 = vcmp.lt.s32.totalorder %v8449_v14, 2  ;;  %vm8451_vm15 = vcmp.eq.s32.totalorder %v8449_v14, 0  ;;  %vm8454_vm2 = vcmp.eq.s32.totalorder %v8449_v14, 2  ;;  %v8338_v49 = vsel %vm8253_vm0, %v8337_v0, %v15669_v8 }
 0xa28   : > { %vm9379_vm10 = vcmp.lt.s32.totalorder %v9378_v46, 0  ;;  %v8621_v52 = vadd.s32 1, %v16327_v26  ;;  %v8453_v43 = vsel %vm8451_vm15, %v10157_v47, %v8452_v18  ;;  %v8456_v13 = vsel %vm8454_vm2, %v8455_v63, %v10159_v16 }
 0xa29   : > { %v8530_v2 = vsel %vm9379_vm10, 0, %v9378_v46  ;;  %v8618_v57 = vmul.u32 %v16290_v54, %v8602_v28  ;;  %vm8620_vm3 = vc.u32 %v16334_v11, %v16326_v20  ;;  %v8457_v3 = vsel %vm8450_vm12, %v8453_v43, %v8456_v13 }
 0xa2a   : > { %v8225_v53 = vshll.u32 %v8224_v39, 23  ;;  %v8531_v61 = vsub.s32 32, %v8530_v2  ;;  %v8535_v60 = vsub.s32 4294967266, %v8530_v2  ;;  %v8622_v41 = vsel %vm8620_vm3, %v8621_v52, %v16327_v26 }
 0xa2b   : > { %v17434_v9 = vand.u32 2147483647, %v15940_v31  ;;  %v8532_v0 = vshll.u32 %v16313_v58, %v8530_v2  ;;  %v8623_v47 = vadd.s32 %v8622_v41, %v8618_v57  ;;  %v8458_v54 = vsel %vm8447_vm9, nan, %v8457_v3 }
 0xa2c   : > { %v8340_v17 = vsel %vm15846_vm6, 0, %v8338_v49  ;;  %v8533_v39 = vshrl.u32 %v16295_v40, %v8531_v61  ;;  %v8536_v16 = vadd.s32 127, %v8535_v60  ;;  %8705 = vmatprep.subr.mxu0 %v8458_v54  ;;  %v8348_v35 = vxor.u32 2147483648, %v16179_v36 }
 0xa2d   : > { %vm16347_vm0 = vcmp.le.f32.partialorder %v17434_v9, 0.7853982  ;;  %v8344_v55 = vadd.s32 3, %v8340_v17  ;;  %v8624_v30 = vadd.s32 536870912, %v8623_v47  ;;  %v8351_v38 = vxor.u32 2147483648, %v15997_v1 }
 0xa2e   : > { %v17437_v4 = vand.u32 2147483647, %v15405_v27  ;;  %v8025_v42 = vsub.s32 4, %v15576_v50  ;;  %v8534_v7 = vor.u32 %v8533_v39, %v8532_v0  ;;  %v8537_v22 = vshll.u32 %v8536_v16, 23 }
 0xa2f   : > { %v8345_v26 = vand.u32 3, %v8344_v55  ;;  %v16370_v12 = vor.u32 4788187, %v8225_v53  ;;  %vm16952_vm6 = vcmp.lt.s32.totalorder %v16098_v59, 0  ;;  %v16373_v14 = vshrl.u32 %v8624_v30, 30 }
 0xa30   : > { %vm16361_vm10 = vcmp.le.f32.partialorder %v17437_v4, 0.7853982  ;;  %v8026_v46 = vsel %vm7941_vm8, %v8025_v42, %v15576_v50  ;;  %v8538_v28 = vor.u32 4788187, %v8537_v22  ;;  %v8541_v18 = vcvt.s32.f32 %v8534_v7  ;;  %v17448_v4 = vld [vmem:[#allocation33_spill] sm:$0xff]  ;;  %v17449_v7 = vld [vmem:[#allocation19_spill] sm:$0xff] }
 0xa31   : > { %v8027_v40 = vsel %vm16361_vm10, %v15405_v27, %v15957_v45  ;;  %vm8346_vm9 = vcmp.lt.s32.totalorder %v8345_v26, 2  ;;  %vm8347_vm12 = vcmp.eq.s32.totalorder %v8345_v26, 0  ;;  %v8626_v63 = vshll.u32 %v16373_v14, 30 }
 0xa32   : > { %10160 = vcosq.f32 %v8027_v40  ;;  %v8349_v49 = vsel %vm8347_vm12, %v15997_v1, %v8348_v35  ;;  %vm8350_vm15 = vcmp.eq.s32.totalorder %v8345_v26, 2  ;;  %v8028_v45 = vsel %vm16361_vm10, 0, %v8026_v46  ;;  %v17446_v35 = vld [vmem:[#allocation26_spill] sm:$0xff]  ;;  %v17450_v46 = vld [vmem:[#allocation20_spill] sm:$0xff] }
 0xa33   : > { %v17440_v52 = vand.u32 2147483647, %v16098_v59  ;;  %v8539_v50 = vand.u32 2147483647, %v8538_v28  ;;  %v8352_v13 = vsel %vm8350_vm15, %v8351_v38, %v16179_v36  ;;  %10162 = vsinq.f32 %v8027_v40  ;;  %v17447_v38 = vld [vmem:[#allocation14_spill] sm:$0xff] }
 0xa34   : > { %v8032_v2 = vadd.s32 3, %v8028_v45  ;;  %v16389_v57 = vsub.s32 %v8623_v47, %v8626_v63  ;;  %vm8343_vm8 = vweird.f32 %v15489_v34  ;;  %v8353_v1 = vsel %vm8346_vm9, %v8349_v49, %v8352_v13 }
 0xa35   : > { %vm16384_vm2 = vcmp.le.f32.partialorder %v17440_v52, 0.7853982  ;;  %v7921_v3 = vsub.s32 4, %v15508_v15  ;;  %v7815_v53 = vxor.u32 2147483648, %v16282_v32  ;;  %v16398_v61 = vsel %vm16347_vm0, %v15940_v31, %v16286_v37  ;;  %v17451_v52 = vld [vmem:[#allocation11_spill] sm:$0xff] }
 0xa36   : > { %v8542_v60 = vmul.f32 %v8541_v18, %v8539_v50  ;;  %v8354_v41 = vsel %vm8343_vm8, nan, %v8353_v1  ;;  %v8227_v36 = vand.u32 2147483647, %v16370_v12  ;;  %v8229_v9 = vcvt.s32.f32 %v16330_v23 }
 0xa37   : > { %v8629_v0 = vsub.s32 0, %v16389_v57  ;;  %8706 = vmatpush1.msra.mxu0 %v8354_v41  ;;  %v7922_v34 = vsel %vm7837_vm14, %v7921_v3, %v15508_v15  ;;  %v8619_v54 = vadd.s32 %v16326_v20, %v16334_v11  ;;  %v8033_v17 = vand.u32 3, %v8032_v2 }
 0xa38   : > { %v8543_v47 = vxor.u32 2147483648, %v8542_v60  ;;  %v17443_v37 = vand.u32 2147483647, %v15240_v29  ;;  %v7924_v55 = vsel %vm15758_vm13, 0, %v7922_v34  ;;  %v7609_v30 = vsub.s32 4, %v17446_v35 }
 0xa39   : > { %v9381_v16 = vmin.u32 %v8629_v0, %v16389_v57  ;;  %vm7927_vm14 = vweird.f32 %v15369_v33  ;;  %v7928_v11 = vadd.s32 3, %v7924_v55  ;;  %v7932_v58 = vxor.u32 2147483648, %v17448_v4  ;;  %v17456_v33 = vld [vmem:[#allocation16_spill] sm:$0xff] }
 0xa3a   : > { %vm16410_vm3 = vcmp.le.f32.partialorder %v17443_v37, 0.7853982  ;;  %v8544_v20 = vsel %vm16952_vm6, %v8543_v47, %v8542_v60  ;;  %v7935_v48 = vxor.u32 2147483648, %v17449_v7  ;;  %v7610_v22 = vsel %vm7525_vm1, %v7609_v30, %v17446_v35 }
 0xa3b   : > { %v7611_v15 = vsel %vm16410_vm3, %v15240_v29, %v17447_v38  ;;  %v8631_v42 = vclz %v9381_v16  ;;  %vm8034_vm13 = vcmp.lt.s32.totalorder %v8033_v17, 2  ;;  %v7929_v26 = vand.u32 3, %v7928_v11 }
 0xa3c   : > { %10164 = vcosq.f32 %v7611_v15  ;;  %v7612_v40 = vsel %vm16410_vm3, 0, %v7610_v22  ;;  %v7505_v28 = vsub.s32 4, %v17450_v46  ;;  %v8547_v18 = vsel %vm16384_vm2, %v16098_v59, %v8544_v20 }
 0xa3d   : > { %10166 = vsinq.f32 %v7611_v15  ;;  %v9382_v63 = vadd.s32 4294967294, %v8631_v42  ;;  %vm8031_vm10 = vweird.f32 %v15405_v27  ;;  %vm8035_vm9 = vcmp.eq.s32.totalorder %v8033_v17, 0  ;;  %v17455_v42 = vld [vmem:[#allocation15_spill] sm:$0xff] }
 0xa3e   : > { %v7616_v49 = vadd.s32 3, %v7612_v40  ;;  %vm7930_vm12 = vcmp.lt.s32.totalorder %v7929_v26, 2  ;;  %vm7931_vm1 = vcmp.eq.s32.totalorder %v7929_v26, 0  ;;  %vm7934_vm15 = vcmp.eq.s32.totalorder %v7929_v26, 2 }
 0xa3f   : > { %v10161_v45 = vpop.eup %10160  ;;  %vm17452_vm8 = vcmp.lt.s32.totalorder %v17451_v52, 0  ;;  %vm9383_vm3 = vcmp.lt.s32.totalorder %v9382_v63, 0  ;;  %v7933_v2 = vsel %vm7931_vm1, %v17449_v7, %v7932_v58  ;;  %v7936_v1 = vsel %vm7934_vm15, %v7935_v48, %v17448_v4  ;;  %v17454_v4 = vld [vmem:[#allocation30_spill] sm:$0xff] }
 0xa40   : > { %v7506_v50 = vsel %vm17452_vm8, %v7505_v28, %v17450_v46  ;;  %v8039_v13 = vxor.u32 2147483648, %v10161_v45  ;;  %v8634_v3 = vsel %vm9383_vm3, 0, %v9382_v63  ;;  %v7937_v60 = vsel %vm7930_vm12, %v7933_v2, %v7936_v1  ;;  %v10163_v47 = vpop.eup %10162  ;;  %v17460_v28 = vld [vmem:[#allocation21_spill] sm:$0xff] }
 0xa41   : > { %v7617_v41 = vand.u32 3, %v7616_v49  ;;  %v7508_v34 = vsel %vm15544_vm11, 0, %v7506_v50  ;;  %10168 = vcosq.f32 %v8547_v18  ;;  %v8635_v37 = vsub.s32 32, %v8634_v3  ;;  %v17472_v46 = vld [vmem:[#allocation9_spill] sm:$0xff] }
 0xa42   : > { %v8639_v39 = vsub.s32 4294967266, %v8634_v3  ;;  %vm8038_vm6 = vcmp.eq.s32.totalorder %v8033_v17, 2  ;;  %10170 = vsinq.f32 %v8547_v18  ;;  %v8636_v16 = vshll.u32 %v16389_v57, %v8634_v3  ;;  %v17461_v17 = vld [vmem:[#allocation32_spill] sm:$0xff] }
 0xa43   : > { %v8036_v55 = vxor.u32 2147483648, %v10163_v47  ;;  %v8040_v35 = vsel %vm8038_vm6, %v8039_v13, %v10163_v47  ;;  %v8637_v30 = vshrl.u32 %v8619_v54, %v8635_v37  ;;  %v7938_v15 = vsel %vm7927_vm14, nan, %v7937_v60 }
 0xa44   : > { %v8640_v38 = vadd.s32 127, %v8639_v39  ;;  %v7512_v20 = vadd.s32 3, %v7508_v34  ;;  %vm7618_vm12 = vcmp.lt.s32.totalorder %v7617_v41, 2  ;;  %v7516_v58 = vxor.u32 2147483648, %v17454_v4  ;;  %v17463_v34 = vld [vmem:[#allocation35_spill] sm:$0xff] }
 0xa45   : > { %v8037_v11 = vsel %vm8035_vm9, %v10161_v45, %v8036_v55  ;;  %v7519_v7 = vxor.u32 2147483648, %v17455_v42  ;;  %v8638_v48 = vor.u32 %v8637_v30, %v8636_v16  ;;  %vm8565_vm11 = vcmp.lt.s32.totalorder %v16150_v24, 0 }
 0xa46   : > { %v8641_v22 = vshll.u32 %v8640_v38, 23  ;;  %v8041_v26 = vsel %vm8034_vm13, %v8037_v11, %v8040_v35  ;;  %v7513_v57 = vand.u32 3, %v7512_v20  ;;  %vm7619_vm6 = vcmp.eq.s32.totalorder %v7617_v41, 0  ;;  %v17464_v38 = vld [vmem:[#allocation24_spill] sm:$0xff] }
 0xa47   : > { %v8042_v54 = vsel %vm8031_vm10, nan, %v8041_v26  ;;  %v17457_v40 = vand.u32 2147483647, %v17456_v33  ;;  %v7193_v18 = vsub.s32 4, %v17460_v28  ;;  %vm7622_vm9 = vcmp.eq.s32.totalorder %v7617_v41, 2 }
 0xa48   : > { %v8642_v49 = vor.u32 4788187, %v8641_v22  ;;  %8707 = vmatprep.subr.mxu0 %v8042_v54  ;;  %vm7515_vm13 = vcmp.eq.s32.totalorder %v7513_v57, 0  ;;  %vm7518_vm10 = vcmp.eq.s32.totalorder %v7513_v57, 2  ;;  %vm17462_vm1 = vcmp.lt.s32.totalorder %v17456_v33, 0  ;;  %v17471_v54 = vld [vmem:[#allocation34_spill] sm:$0xff] }
 0xa49   : > { %vm16456_vm14 = vcmp.le.f32.partialorder %v17457_v40, 0.7853982  ;;  %v10165_v63 = vpop.eup %10164  ;;  %8708 = vmatpush1.msra.mxu0 %v7938_v15  ;;  %v7517_v13 = vsel %vm7515_vm13, %v17455_v42, %v7516_v58  ;;  %v7194_v2 = vsel %vm17462_vm1, %v7193_v18, %v17460_v28  ;;  %v8645_v3 = vcvt.s32.f32 %v8638_v48 }
 0xa4a   : > { %v7195_v27 = vsel %vm16456_vm14, %v17456_v33, %v17461_v17  ;;  %v10167_v45 = vpop.eup %10166  ;;  %v7623_v50 = vxor.u32 2147483648, %v10165_v63  ;;  %v8643_v1 = vand.u32 2147483647, %v8642_v49  ;;  %v7520_v0 = vsel %vm7518_vm10, %v7519_v7, %v17454_v4 }
 0xa4b   : > { %v7620_v60 = vxor.u32 2147483648, %v10167_v45  ;;  %vm7733_vm15 = vcmp.lt.s32.totalorder %v17463_v34, 0  ;;  %vm7514_vm8 = vcmp.lt.s32.totalorder %v7513_v57, 2  ;;  %v7196_v37 = vsel %vm16456_vm14, 0, %v7194_v2 }
 0xa4c   : > { %v7624_v47 = vsel %vm7622_vm9, %v7623_v50, %v10167_v45  ;;  %10172 = vcosq.f32 %v7195_v27  ;;  %vm8149_vm3 = vcmp.lt.s32.totalorder %v16025_v25, 0  ;;  %v8646_v39 = vmul.f32 %v8645_v3, %v8643_v1 }
 0xa4d   : > { %v7621_v16 = vsel %vm7619_vm6, %v10165_v63, %v7620_v60  ;;  %v7521_v55 = vsel %vm7514_vm8, %v7517_v13, %v7520_v0  ;;  %10174 = vsinq.f32 %v7195_v27  ;;  %v8230_v35 = vmul.f32 %v8229_v9, %v8227_v36  ;;  %v17465_v36 = vld [vmem:[#allocation31_spill] sm:$0xff] }
 0xa4e   : > { %vm7615_vm13 = vweird.f32 %v15240_v29  ;;  %v7625_v30 = vsel %vm7618_vm12, %v7621_v16, %v7624_v47  ;;  %v7089_v15 = vsub.s32 4, %v17464_v38  ;;  %10176 = vcosq.f32 %v16398_v61  ;;  %v16484_v4 = vpop.eup %10168 }
 0xa4f   : > { %v8647_v20 = vxor.u32 2147483648, %v8646_v39  ;;  %v7626_v11 = vsel %vm7615_vm13, nan, %v7625_v30  ;;  %vm7511_vm14 = vweird.f32 %v17451_v52  ;;  %10178 = vsinq.f32 %v16398_v61  ;;  %v16490_v9 = vpop.eup %10170 }
 0xa50   : > { %8709 = vmatprep.subr.mxu0 %v7626_v11  ;;  %v7522_v12 = vsel %vm7511_vm14, nan, %v7521_v55  ;;  %v7200_v23 = vadd.s32 3, %v7196_v37  ;;  %vm17466_vm6 = vcmp.lt.s32.totalorder %v17465_v36, 0  ;;  %v17468_v42 = vand.u32 2147483647, %v16150_v24 }
 0xa51   : > { %v7090_v29 = vsel %vm17466_vm6, %v7089_v15, %v17464_v38  ;;  %v8648_v41 = vsel %vm8565_vm11, %v8647_v20, %v8646_v39  ;;  %8710 = vmatpush1.msra.mxu0 %v7522_v12  ;;  %v8649_v7 = vsub.s32 4, %v16373_v14  ;;  %v8231_v48 = vxor.u32 2147483648, %v8230_v35 }
 0xa52   : > { %v7092_v52 = vsel %vm15473_vm4, 0, %v7090_v29  ;;  %vm16498_vm12 = vcmp.le.f32.partialorder %v17468_v42, 0.7853982  ;;  %v8545_v57 = vsub.s32 4, %v16300_v62  ;;  %v7100_v40 = vxor.u32 2147483648, %v17471_v54 }
 0xa53   : > { %v7096_v22 = vadd.s32 3, %v7092_v52  ;;  %v8651_v26 = vsel %vm16498_vm12, %v16150_v24, %v8648_v41  ;;  %v7103_v28 = vxor.u32 2147483648, %v17472_v46  ;;  %v8650_v18 = vsel %vm8565_vm11, %v8649_v7, %v16373_v14 }
 0xa54   : > { %10180 = vcosq.f32 %v8651_v26  ;;  %v8652_v49 = vsel %vm16498_vm12, 0, %v8650_v18  ;;  %vm17473_vm4 = vcmp.lt.s32.totalorder %v16098_v59, 0  ;;  %v7816_v27 = vsel %vm7733_vm15, %v7815_v53, %v16282_v32 }
 0xa55   : > { %v7097_v63 = vand.u32 3, %v7096_v22  ;;  %10182 = vsinq.f32 %v8651_v26  ;;  %v8546_v17 = vsel %vm17473_vm4, %v8545_v57, %v16300_v62  ;;  %v7201_v45 = vand.u32 3, %v7200_v23  ;;  %v17477_v23 = vld [vmem:[#allocation29_spill] sm:$0xff] }
 0xa56   : > { %10184 = vsinq.f32 %v16156_v19  ;;  %v8548_v14 = vsel %vm16384_vm2, 0, %v8546_v17  ;;  %v8232_v50 = vsel %vm8149_vm3, %v8231_v48, %v8230_v35  ;;  %v8656_v2 = vadd.s32 3, %v8652_v49 }
 0xa57   : > { %vm7099_vm11 = vcmp.eq.s32.totalorder %v7097_v63, 0  ;;  %vm7102_vm9 = vcmp.eq.s32.totalorder %v7097_v63, 2  ;;  %v8552_v13 = vadd.s32 3, %v8548_v14  ;;  %v8233_v1 = vsub.s32 4, %v16238_v56 }
 0xa58   : > { %v7101_v62 = vsel %vm7099_vm11, %v17472_v46, %v7100_v40  ;;  %v7104_v19 = vsel %vm7102_vm9, %v7103_v28, %v17471_v54  ;;  %vm7199_vm10 = vweird.f32 %v17456_v33  ;;  %vm7095_vm1 = vweird.f32 %v17465_v36  ;;  %v16558_v36 = vld [vmem:[%s16701_s4] sm:$0x1] }
 0xa59   : > { %vm7098_vm8 = vcmp.lt.s32.totalorder %v7097_v63, 2  ;;  %v17474_v32 = vand.u32 2147483647, %v16025_v25  ;;  %v10173_v53 = vpop.eup %10172  ;;  %vm7202_vm13 = vcmp.lt.s32.totalorder %v7201_v45, 2  ;;  %v8553_v60 = vand.u32 3, %v8552_v13 }
 0xa5a   : > { %v7105_v3 = vsel %vm7098_vm8, %v7101_v62, %v7104_v19  ;;  %v10175_v47 = vpop.eup %10174  ;;  %vm7203_vm14 = vcmp.eq.s32.totalorder %v7201_v45, 0  ;;  %v7207_v37 = vxor.u32 2147483648, %v10173_v53  ;;  %v8556_v39 = vxor.u32 2147483648, %v16490_v9 }
 0xa5b   : > { %vm16534_vm2 = vcmp.le.f32.partialorder %v17474_v32, 0.7853982  ;;  %v8559_v16 = vxor.u32 2147483648, %v16484_v4  ;;  %v7204_v55 = vxor.u32 2147483648, %v10175_v47  ;;  %vm7206_vm6 = vcmp.eq.s32.totalorder %v7201_v45, 2  ;;  %v16546_v38 = vpop.eup %10176 }
 0xa5c   : > { %v8235_v0 = vsel %vm16534_vm2, %v16025_v25, %v8232_v50  ;;  %v8657_v35 = vand.u32 3, %v8656_v2  ;;  %v8234_v30 = vsel %vm8149_vm3, %v8233_v1, %v16238_v56  ;;  %v7208_v15 = vsel %vm7206_vm6, %v7207_v37, %v10175_v47  ;;  %v10179_v12 = vpop.eup %10178  ;;  %v17484_v50 = vld [vmem:[#allocation18_spill] sm:$0xff]  ;;  %v17490_v47 = vld [vmem:[#allocation12_spill] sm:$0xff] }
 0xa5d   : > { %v7106_v20 = vsel %vm7095_vm1, nan, %v7105_v3  ;;  %v8236_v11 = vsel %vm16534_vm2, 0, %v8234_v30  ;;  %10186 = vcosq.f32 %v8235_v0  ;;  %vm7317_vm12 = vcmp.lt.s32.totalorder %v17477_v23, 0 }
 0xa5e   : > { %v7205_v29 = vsel %vm7203_vm14, %v10173_v53, %v7204_v55  ;;  %vm8655_vm4 = vweird.f32 %v16150_v24  ;;  %vm8555_vm11 = vcmp.eq.s32.totalorder %v8553_v60, 0  ;;  %vm8558_vm9 = vcmp.eq.s32.totalorder %v8553_v60, 2 }
 0xa5f   : > { %10188 = vsinq.f32 %v8235_v0  ;;  %v7209_v56 = vsel %vm7202_vm13, %v7205_v29, %v7208_v15  ;;  %v8557_v41 = vsel %vm8555_vm11, %v16484_v4, %v8556_v39  ;;  %v8560_v58 = vsel %vm8558_vm9, %v8559_v16, %v16490_v9  ;;  %v17491_v29 = vld [vmem:[#allocation28_spill] sm:$0xff] }
 0xa60   : > { %v8129_v52 = vsub.s32 4, %v16168_v44  ;;  %v7210_v42 = vsel %vm7199_vm10, nan, %v7209_v56  ;;  %vm8658_vm3 = vcmp.lt.s32.totalorder %v8657_v35, 2  ;;  %v8240_v61 = vadd.s32 3, %v8236_v11 }
 0xa61   : > { %v17478_v7 = vand.u32 2147483647, %v17463_v34  ;;  %v10181_v22 = vpop.eup %10180  ;;  %8711 = vmatprep.subr.mxu0 %v7210_v42  ;;  %vm8554_vm8 = vcmp.lt.s32.totalorder %v8553_v60, 2  ;;  %vm17481_vm2 = vcmp.lt.s32.totalorder %v15940_v31, 0  ;;  %v7817_v9 = vsub.s32 4, %v16054_v5 }
 0xa62   : > { %v8130_v4 = vsel %vm17481_vm2, %v8129_v52, %v16168_v44  ;;  %v10183_v26 = vpop.eup %10182  ;;  %8712 = vmatpush1.msra.mxu0 %v7106_v20  ;;  %vm8659_vm10 = vcmp.eq.s32.totalorder %v8657_v35, 0  ;;  %vm8662_vm13 = vcmp.eq.s32.totalorder %v8657_v35, 2  ;;  %v8663_v57 = vxor.u32 2147483648, %v10181_v22 }
 0xa63   : > { %vm16567_vm1 = vcmp.le.f32.partialorder %v17478_v7, 0.7853982  ;;  %v8561_v54 = vsel %vm8554_vm8, %v8557_v41, %v8560_v58  ;;  %v16578_v40 = vpop.eup %10184  ;;  %vm17482_vm14 = vcmask 261120   ;;  %v8660_v46 = vxor.u32 2147483648, %v10183_v26 }
 0xa64   : > { %v7819_v33 = vsel %vm16567_vm1, %v17463_v34, %v7816_v27  ;;  %9384 = vmatmul.mubr.msk.f32.vlgmr.msra.gmra.mxu0 %vm17482_vm14, %v16558_v36  ;;  %v8132_v44 = vsel %vm16347_vm0, 0, %v8130_v4  ;;  %v7818_v28 = vsel %vm7733_vm15, %v7817_v9, %v16054_v5  ;;  %v8664_v18 = vsel %vm8662_vm13, %v8663_v57, %v10183_v26 }
 0xa65   : > { %10190 = vcosq.f32 %v7819_v33  ;;  %v8241_v63 = vand.u32 3, %v8240_v61  ;;  %v8136_v49 = vadd.s32 3, %v8132_v44  ;;  %v17483_v17 = vmov 0.0  }
 0xa66   : > { %10192 = vsinq.f32 %v7819_v33  ;;  %8816 = vmatprep.mubr.f32.mxu0 %v17483_v17  ;;  %v8661_v27 = vsel %vm8659_vm10, %v10181_v22, %v8660_v46  ;;  %v8140_v45 = vxor.u32 2147483648, %v10179_v12  ;;  %v8143_v14 = vxor.u32 2147483648, %v16546_v38  ;;  %v17492_v22 = vld [vmem:[#allocation13_spill] sm:$0xff] }
 0xa67   : > { %v7713_v13 = vsub.s32 4, %v17484_v50  ;;  %v8665_v8 = vsel %vm8658_vm3, %v8661_v27, %v8664_v18  ;;  %vm8551_vm0 = vweird.f32 %v16098_v59  ;;  %v8137_v62 = vand.u32 3, %v8136_v49 }
 0xa68   : > { %v7820_v5 = vsel %vm16567_vm1, 0, %v7818_v28  ;;  %v7400_v19 = vsel %vm7317_vm12, %v7399_v51, %v16138_v6  ;;  %v8666_v2 = vsel %vm8655_vm4, nan, %v8665_v8  ;;  %v8562_v1 = vsel %vm8551_vm0, nan, %v8561_v54 }
 0xa69   : > { %vm17485_vm15 = vcmp.lt.s32.totalorder %v15750_v21, 0  ;;  %8776 = vmatprep.subr.mxu0 %v8666_v2  ;;  %vm8243_vm6 = vcmp.eq.s32.totalorder %v8241_v63, 0  ;;  %vm8139_vm11 = vcmp.eq.s32.totalorder %v8137_v62, 0  ;;  %vm8142_vm9 = vcmp.eq.s32.totalorder %v8137_v62, 2 }
 0xa6a   : > { %v7714_v32 = vsel %vm17485_vm15, %v7713_v13, %v17484_v50  ;;  %8777 = vmatpush1.msra.mxu0 %v8562_v1  ;;  %vm8246_vm3 = vcmp.eq.s32.totalorder %v8241_v63, 2  ;;  %v8141_v53 = vsel %vm8139_vm11, %v16546_v38, %v8140_v45  ;;  %v8144_v6 = vsel %vm8142_vm9, %v8143_v14, %v10179_v12  ;;  %v10187_v24 = vpop.eup %10186  ;;  %v17496_v45 = vld [vmem:[#allocation27_spill] sm:$0xff] }
 0xa6b   : > { %v7716_v43 = vsel %vm16106_vm5, 0, %v7714_v32  ;;  %v7824_v51 = vadd.s32 3, %v7820_v5  ;;  %vm8138_vm4 = vcmp.lt.s32.totalorder %v8137_v62, 2  ;;  %v17487_v60 = vand.u32 2147483647, %v17477_v23 }
 0xa6c   : > { %v7720_v3 = vadd.s32 3, %v7716_v43  ;;  %v7401_v37 = vsub.s32 4, %v17490_v47  ;;  %v10189_v39 = vpop.eup %10188  ;;  %v8247_v16 = vxor.u32 2147483648, %v10187_v24  ;;  %v8145_v55 = vsel %vm8138_vm4, %v8141_v53, %v8144_v6 }
 0xa6d   : > { %vm16609_vm1 = vcmp.le.f32.partialorder %v17487_v60, 0.7853982  ;;  %v7724_v35 = vxor.u32 2147483648, %v16578_v40  ;;  %v8244_v38 = vxor.u32 2147483648, %v10189_v39  ;;  %v7727_v12 = vxor.u32 2147483648, %v16310_v10 }
 0xa6e   : > { %v7403_v30 = vsel %vm16609_vm1, %v17477_v23, %v7400_v19  ;;  %v7721_v15 = vand.u32 3, %v7720_v3  ;;  %v7402_v20 = vsel %vm7317_vm12, %v7401_v37, %v17490_v47  ;;  %v8248_v11 = vsel %vm8246_vm3, %v8247_v16, %v10189_v39  ;;  %v8672_v3 = vpop.permute.xlu0 %8671 }
 0xa6f   : > { %10194 = vcosq.f32 %v7403_v30  ;;  %v7297_v56 = vsub.s32 4, %v17491_v29  ;;  %vm8242_vm5 = vcmp.lt.s32.totalorder %v8241_v63, 2  ;;  %v8245_v41 = vsel %vm8243_vm6, %v10187_v24, %v8244_v38 }
 0xa70   : > { %10196 = vsinq.f32 %v7403_v30  ;;  %vm8135_vm8 = vweird.f32 %v15940_v31  ;;  %v7825_v58 = vand.u32 3, %v7824_v51  ;;  %vm8239_vm2 = vweird.f32 %v16025_v25  ;;  %v17498_v51 = vld [vmem:[#allocation6_spill] sm:$0xff] }
 0xa71   : > { %v8249_v52 = vsel %vm8242_vm5, %v8245_v41, %v8248_v11  ;;  %v8146_v42 = vsel %vm8135_vm8, nan, %v8145_v55  ;;  %v7404_v61 = vsel %vm16609_vm1, 0, %v7402_v20  ;;  %vm7723_vm12 = vcmp.eq.s32.totalorder %v7721_v15, 0 }
 0xa72   : > { %v10191_v7 = vpop.eup %10190  ;;  %v8250_v48 = vsel %vm8239_vm2, nan, %v8249_v52  ;;  %vm7726_vm10 = vcmp.eq.s32.totalorder %v7721_v15, 2  ;;  %vm17493_vm13 = vcmp.lt.s32.totalorder %v17492_v22, 0  ;;  %v7725_v31 = vsel %vm7723_vm12, %v16310_v10, %v7724_v35 }
 0xa73   : > { %v7298_v4 = vsel %vm17493_vm13, %v7297_v56, %v17491_v29  ;;  %v10193_v9 = vpop.eup %10192  ;;  %8778 = vmatprep.subr.mxu0 %v8250_v48  ;;  %v7831_v33 = vxor.u32 2147483648, %v10191_v7  ;;  %v7728_v25 = vsel %vm7726_vm10, %v7727_v12, %v16578_v40  ;;  %vm7830_vm14 = vcmp.eq.s32.totalorder %v7825_v58, 2  ;;  %v17495_v40 = vld [vmem:[#allocation17_spill] sm:$0xff] }
 0xa74   : > { %v7300_v57 = vsel %vm16061_vm7, 0, %v7298_v4  ;;  %8779 = vmatpush1.msra.mxu0 %v8146_v42  ;;  %v7828_v54 = vxor.u32 2147483648, %v10193_v9  ;;  %vm7827_vm0 = vcmp.eq.s32.totalorder %v7825_v58, 0  ;;  %vm7722_vm15 = vcmp.lt.s32.totalorder %v7721_v15, 2 }
 0xa75   : > { %v7304_v46 = vadd.s32 3, %v7300_v57  ;;  %v7832_v44 = vsel %vm7830_vm14, %v7831_v33, %v10193_v9  ;;  %v7408_v28 = vadd.s32 3, %v7404_v61  ;;  %vm7826_vm6 = vcmp.lt.s32.totalorder %v7825_v58, 2 }
 0xa76   : > { %v7829_v18 = vsel %vm7827_vm0, %v10191_v7, %v7828_v54  ;;  %v7729_v63 = vsel %vm7722_vm15, %v7725_v31, %v7728_v25  ;;  %vm7823_vm11 = vweird.f32 %v17463_v34  ;;  %vm7719_vm9 = vweird.f32 %v15750_v21 }
 0xa77   : > { %v7833_v49 = vsel %vm7826_vm6, %v7829_v18, %v7832_v44  ;;  %v7305_v10 = vand.u32 3, %v7304_v46  ;;  %v7308_v27 = vxor.u32 2147483648, %v17495_v40  ;;  %v7311_v14 = vxor.u32 2147483648, %v17496_v45 }
 0xa78   : > { %v7834_v17 = vsel %vm7823_vm11, nan, %v7833_v49  ;;  %v7730_v50 = vsel %vm7719_vm9, nan, %v7729_v63  ;;  %v7409_v13 = vand.u32 3, %v7408_v28  ;;  %vm7407_vm2 = vweird.f32 %v17477_v23 }
 0xa79   : > { %8780 = vmatprep.subr.mxu0 %v7834_v17  ;;  %vm7307_vm7 = vcmp.eq.s32.totalorder %v7305_v10, 0  ;;  %vm7310_vm3 = vcmp.eq.s32.totalorder %v7305_v10, 2  ;;  %vm7306_vm5 = vcmp.lt.s32.totalorder %v7305_v10, 2  ;;  %vm7303_vm12 = vweird.f32 %v17492_v22 }
 0xa7a   : > { %8781 = vmatpush1.msra.mxu0 %v7730_v50  ;;  %v7309_v34 = vsel %vm7307_vm7, %v17496_v45, %v7308_v27  ;;  %v7312_v19 = vsel %vm7310_vm3, %v7311_v14, %v17495_v40  ;;  %vm7414_vm4 = vcmp.eq.s32.totalorder %v7409_v13, 2  ;;  %vm7411_vm1 = vcmp.eq.s32.totalorder %v7409_v13, 0 }
 0xa7b   : > { %vm7410_vm8 = vcmp.lt.s32.totalorder %v7409_v13, 2  ;;  %v7313_v32 = vsel %vm7306_vm5, %v7309_v34, %v7312_v19  ;;  %vm17497_vm10 = vcmask 261120   ;;  %v8676_v24 = vsub.s32 0, %v17498_v51 }
 0xa7c   : > { %v10195_v8 = vpop.eup %10194  ;;  %v7314_v53 = vsel %vm7303_vm12, nan, %v7313_v32  ;;  %v10268_v60 = vmov 1966171168   ;;  %v17499_v56 = vlaneseq }
 0xa7d   : > { %v10197_v62 = vpop.eup %10196  ;;  %v7415_v5 = vxor.u32 2147483648, %v10195_v8  ;;  %v8830_v0 = vunpack.c.l.s4 %v10268_v60  ;;  %v8677_v37 = vrot.slane %v8672_v3, %v8676_v24 }
 0xa7e   : > { %v7412_v2 = vxor.u32 2147483648, %v10197_v62  ;;  %vm8854_vm13 = vcmp.lt.s32.totalorder %v17499_v56, 512 }
 0xa7f   : > { %v7416_v21 = vsel %vm7414_vm4, %v7415_v5, %v10197_v62  ;;  %v8831_v39 = vunpack.c.0.s8 %v8830_v0 }
 0xa80   : > { %v7413_v1 = vsel %vm7411_vm1, %v10195_v8, %v7412_v2 }
 0xa81   : > { %v7417_v59 = vsel %vm7410_vm8, %v7413_v1, %v7416_v21  ;;  %v8834_v38 = vsub.s32 %v8831_v39, %v17498_v51 }
 0xa82   : > { %v7418_v43 = vsel %vm7407_vm2, nan, %v7417_v59 }
 0xa83   : > { %8782 = vmatprep.subr.mxu0 %v7418_v43 }
 0xa84   : > { %8783 = vmatpush1.msra.mxu0 %v7314_v53 }
 0xa85   : > { %9385 = vmatmul.mubr.msk.f32.vlgmr.msra.gmra.mxu0 %vm17497_vm10, %v16558_v36 }
 0xb24   : > { %v8747_v6 = vpop.f32.mrf.mxu0 }
 0xb25   : > { %v8748_v55 = vadd.f32 %v8747_v6, %v8677_v37 }
 0xb26   : > { %v8749_v47 = vpop.f32.mrf.mxu0 }
 0xb27   : > { %v8750_v23 = vadd.f32 %v8749_v47, %v8677_v37 }
 0xb29   : > { %v8827_v30 = vcombine.low %v8748_v55, %v8750_v23 }
 0xb2b   : > { %v8835_v11 = vrot.slane %v8827_v30, %v8834_v38 }
 0xb45   : > { %v8818_v16 = vpop.f32.mrf.mxu0 }
 0xb46   : > { %v8819_v15 = vadd.f32 %v8818_v16, %v8677_v37 }
 0xb47   : > { %v8820_v35 = vpop.f32.mrf.mxu0 }
 0xb48   : > { %v8821_v20 = vadd.f32 %v8820_v35, %v8677_v37 }
 0xb4a   : > { %v8828_v36 = vcombine.low %v8819_v15, %v8821_v20 }
 0xb4c   : > { %v8842_v12 = vrot.slane %v8828_v36, %v8834_v38 }
 0xb4e   : > { %v8843_v29 = vcombine.low %v8835_v11, %v8842_v12  ;;  %8864 = sbr.rel (!%p10346_p5) target bundleno = 2925 (0xb6d), region = 48 }
 0xb50   : > { %v8850_v41 = vrot.slane %v8843_v29, %v8834_v38 }
 0xb52   : > { %8856 = vst.msk [vmem:[%s259_s18] sm:$0xf] %vm8854_vm13, %v8850_v41 }
 0xb53   : > { %s17505_s21 = smov (!%p8867_p11, %s8866_s21), 4 }
 0xb54   : > { %s16655_s22 = sshll.u32 %s17505_s21, 4 }
 0xb55   : > { %s8871_s27 = ssub.s32 64, %s16655_s22 }
 0xb56   : > { %8872 = vsyncadd %s16650_s19, %s8871_s27  ;;  %p9389_p12 = scmp.ne.s32.totalorder %s16655_s22, 0  ;;  %s8875_s8 = scalar_lea.hbm %s16703_s6, %s10360_s12 }
 0xb57   : > { %s8877_s10 = sshll.u32 %s259_s18, 4  ;;  %s10269_s11 = smov [#allocation3]   ;;  %s8878_s10 = int_to_ptr.vmem [resolvable:$true] %s8877_s10 }
 0xb58   : > { %s10198_s5 = scalar_lea.vmem %s8878_s10, %s16655_s22  ;;  %s10202_s13 = sshll.u32 %s10269_s11, 4  ;;  %s10203_s13 = int_to_ptr.vmem [resolvable:$false] %s10202_s13 }
 0xb59   : > { %p10199_p13 = scmp.ne.s32.totalorder %s8878_s10, %s10198_s5  ;;  %s10204_s14 = scalar_lea.vmem %s10203_s13, 128 }
 0xb5a   : > { %p10205_p2 = scmp.lt.s32.totalorder %s8878_s10, %s10203_s13  ;;  %p10206_p3 = scmp.lt.s32.totalorder %s10204_s14, %s10198_s5 }
 0xb5b   : > { %p10200_p0 = pnand %p10199_p13, %p9389_p12 }
 0xb5c   : > { %p10207_p4 = por %p10206_p3, %p10205_p2 }
 0xb5d   : > { %p10201_p1 = pneg %p10200_p0 }
 0xb5f   : > { %p10208_p5 = pnand %p10207_p4, %p10201_p1 }
 0xb61   : > { %10211 = shalt.err (!%p10208_p5)
}
 0xb62   : > { %s10212_s15 = scalar_lea.hbm %s8875_s8, %s16655_s22  ;;  %s10216_s17 = scalar_lea.hbm %s16703_s6, 752 }
 0xb63   : > { %p10213_p7 = scmp.ne.s32.totalorder %s8875_s8, %s10212_s15  ;;  %p10217_p10 = scmp.lt.s32.totalorder %s8875_s8, %s16703_s6 }
 0xb64   : > { %p10218_p11 = scmp.lt.s32.totalorder %s10216_s17, %s10212_s15 }
 0xb65   : > { %p10214_p8 = pnand %p10213_p7, %p9389_p12 }
 0xb66   : > { %p10219_p13 = por %p10218_p11, %p10217_p10 }
 0xb67   : > { %p10215_p9 = pneg %p10214_p8 }
 0xb69   : > { %p10220_p0 = pnand %p10219_p13, %p10215_p9 }
 0xb6b   : > { %10223 = shalt.err (!%p10220_p0)
}
 0xb6c   : > { %8880 = dma.vmem_to_hbm [thread:$0]  (%p9389_p12), %s8878_s10, %s16655_s22, %s8875_s8, %s16650_s19  }
 0xb6d PF: > { %p9898_p1 = scmp.ge.s32.totalorder %s10258_s26, 2  ;;  %s8889_s21 = sand.u32 1, %s10246_s23  }
 0xb6e   : > { %s8890_s27 = scalar_lea.sflag [#allocation4], %s8889_s21 }
 0xb6f   : > { %p9895_p2 = pnand %p9898_p1, %p10350_p6 }
 0xb71   : > { %p9896_p3 = pneg %p9895_p2 }
 0xb73   : > { %10241 = dma.done.wait (%p9896_p3), %s8890_s27, 64  }
 0xb74   : > { %10243 = vsyncadd (%p9896_p3), %s8890_s27, 4294967232  ;;  %p18_p4 = scmp.ge.s32.totalorder %s10333_s28, 14   ;;  %s17500_s23 = smov %s10250_s24 }
 0xb75   : > { %s17501_s24 = smov %s10254_s25  ;;  %s17502_s25 = smov %s10344_s7 }
 0xb76   : > { %s17503_s26 = smov %s10333_s28  ;;  %20 = sbr.rel (!%p18_p4) target bundleno = 6 (0x6), region = 84 }
 0xb7b   :  { %8895 = vsyncpa [#allocation4], 1 }
 0xb7c   :  { %8897 = vsyncpa [#allocation4 + $0x1], 1 }

</bundles_post_ra>
